<compile_context>
chip_gen: v7x
topology: tpu7x:2x2x1
jax: 0.10.0
libtpu: 0.0.40
codegen_flags: <defaults>
</compile_context>

<pallas_src>
import functools
import math

import numpy as np

import jax
import jax.numpy as jnp
from jax.experimental import pallas as pl
from jax.experimental.pallas import tpu as pltpu


NEG_INF = -1e30   # finite mask value (avoids exp(-inf - -inf) NaN corner case)


# ----------------------------------------------------------------------------
# in-kernel helpers (value-level)
# ----------------------------------------------------------------------------
def _layernorm(x, gamma, beta):
    """LayerNorm over the last dim, eps=1e-5 (torch default)."""
    mu = jnp.mean(x, axis=-1, keepdims=True)
    var = jnp.mean(jnp.square(x - mu), axis=-1, keepdims=True)
    return (x - mu) * jax.lax.rsqrt(var + 1e-5) * gamma + beta


def _proj_mlp(xa, xb, w0a, w0b, b0, w1, b1, w2):
    """Projector backbone: Linear(cat) + ReLU, Linear + ReLU, Linear(no bias)."""
    h = (jnp.dot(xa, w0a[...], preferred_element_type=jnp.float32)
         + jnp.dot(xb, w0b[...], preferred_element_type=jnp.float32)
         + b0[...])
    h = jnp.maximum(h, 0.0)
    h = jnp.maximum(jnp.dot(h, w1[...], preferred_element_type=jnp.float32)
                    + b1[...], 0.0)
    return jnp.dot(h, w2[...], preferred_element_type=jnp.float32)


# ----------------------------------------------------------------------------
# the fused Pallas kernel (projector + encoder + decoder + projection)
# ----------------------------------------------------------------------------
def _maelnet_kernel(*refs, BB, n_heads, n_enc, n_dec, scale):
    (conv_t_ref, conv_d_ref, std_ref, mean_ref, xn_ref, seas_ref,
     pt_w0a, pt_w0b, pt_b0, pt_w1, pt_b1, pt_w2,
     pd_w0a, pd_w0b, pd_b0, pd_w1, pd_b1, pd_w2,
     e_emb, e_pe, e_wqkv, e_bqkv, e_wo, e_bo,
     e_w1, e_b1, e_w2, e_b2, e_ln1, e_ln2, e_norm,
     d_emb, d_pe,
     d_swqkv, d_sbqkv, d_swo, d_sbo,
     d_cwq, d_cbq, d_cwkv, d_cbkv, d_cwo, d_cbo,
     d_w1, d_b1, d_w2, d_b2, d_ln1, d_ln2, d_ln3, d_norm,
     d_projw, d_projb, o_ref) = refs

    L = xn_ref.shape[1]                 # encoder sequence length (= seq_len)
    Ld = seas_ref.shape[1]              # decoder length (label_len + pred_len)
    C = xn_ref.shape[2]
    D = e_wqkv.shape[1]                 # d_model
    E = D // n_heads                    # head dim

    # ---------------- de-stationary factors (projector MLPs) -----------------
    def squeeze_mid(ref):               # (BB, 1, C) ref -> (BB, C) value
        return jnp.concatenate([ref[b] for b in range(BB)], axis=0)

    conv_t = squeeze_mid(conv_t_ref)
    conv_d = squeeze_mid(conv_d_ref)
    stdv = squeeze_mid(std_ref)
    meanv = squeeze_mid(mean_ref)

    tau_all = jnp.exp(_proj_mlp(conv_t, stdv, pt_w0a, pt_w0b, pt_b0,
                                pt_w1, pt_b1, pt_w2))           # (BB, 1)
    delta_all = _proj_mlp(conv_d, meanv, pd_w0a, pd_w0b, pd_b0,
                          pd_w1, pd_b1, pd_w2)                  # (BB, S==L)
    tau_s = tau_all * scale             # fold 1/sqrt(E) into tau once

    # ---------------- shared helpers -----------------------------------------
    def embed(x_ref, emb_ref, pe_ref, length):
        """Circular Conv1d(k=3, circular pad, no bias) over time + PE."""
        x3 = x_ref[...]                                           # (BB, len, C)
        xs, xms, xps = [], [], []
        for b in range(BB):
            xb = x3[b]                                            # (len, C)
            xs.append(xb)
            xms.append(pltpu.roll(xb, shift=1, axis=0))           # x[t-1]
            xps.append(pltpu.roll(xb, shift=length - 1, axis=0))  # x[t+1]
        x = jnp.concatenate(xs, axis=0)                           # (BB*len, C)
        xm = jnp.concatenate(xms, axis=0)
        xp = jnp.concatenate(xps, axis=0)
        return (jnp.dot(xm, emb_ref[0], preferred_element_type=jnp.float32)
                + jnp.dot(x, emb_ref[1], preferred_element_type=jnp.float32)
                + jnp.dot(xp, emb_ref[2], preferred_element_type=jnp.float32)
                + pe_ref[...])

    def attention(qsrc, kvsrc, qoff, koff, voff, lq, lk, delta, mask):
        """De-stationary MHA: per-(b, head) scores/softmax, one concat, caller
        applies a single (M,D)@(D,D) output projection."""
        rows = []
        for b in range(BB):
            qb = qsrc[b * lq:(b + 1) * lq, :]
            kvb = kvsrc[b * lk:(b + 1) * lk, :]
            tb = tau_s[b:b + 1, 0:1]                               # scale*tau_b
            db = None if delta is None else delta[b:b + 1, :]      # (1, lk)
            heads = []
            for hh in range(n_heads):
                lo = hh * E
                qh = qb[:, qoff + lo:qoff + lo + E]
                kh = kvb[:, koff + lo:koff + lo + E]
                vh = kvb[:, voff + lo:voff + lo + E]
                s = jax.lax.dot_general(qh, kh, (((1,), (1,)), ((), ())),
                                        preferred_element_type=jnp.float32)
                s = s * tb
                if db is not None:
                    s = s + db
                if mask is not None:
                    s = jnp.where(mask, NEG_INF, s)
                s = s - jnp.max(s, axis=-1, keepdims=True)
                p = jnp.exp(s)
                p = p / jnp.sum(p, axis=-1, keepdims=True)          # exact divide
                heads.append(jnp.dot(p, vh, preferred_element_type=jnp.float32))
            rows.append(jnp.concatenate(heads, axis=-1))            # (lq, D)
        return jnp.concatenate(rows, axis=0)                        # (BB*lq, D)

    # ---------------- encoder ------------------------------------------------
    h0 = embed(xn_ref, e_emb, e_pe, L)                              # (BB*L, D)

    def enc_layer(l, h):
        qkv = (jnp.dot(h, e_wqkv[l], preferred_element_type=jnp.float32)
               + e_bqkv[l])
        ctx = attention(qkv, qkv, 0, D, 2 * D, L, L, delta_all, None)
        a = jnp.dot(ctx, e_wo[l], preferred_element_type=jnp.float32) + e_bo[l]
        ln = e_ln1[l]
        h = _layernorm(h + a, ln[0:1, :], ln[1:2, :])
        y = jnp.maximum(jnp.dot(h, e_w1[l], preferred_element_type=jnp.float32)
                        + e_b1[l], 0.0)
        y = jnp.dot(y, e_w2[l], preferred_element_type=jnp.float32) + e_b2[l]
        ln = e_ln2[l]
        return _layernorm(h + y, ln[0:1, :], ln[1:2, :])

    h_enc = jax.lax.fori_loop(0, n_enc, enc_layer, h0)
    h_enc = _layernorm(h_enc, e_norm[0:1, :], e_norm[1:2, :])       # (BB*L, D)

    # ---------------- decoder ------------------------------------------------
    hd0 = embed(seas_ref, d_emb, d_pe, Ld)                          # (BB*Ld, D)
    row_i = jax.lax.broadcasted_iota(jnp.int32, (Ld, Ld), 0)
    col_i = jax.lax.broadcasted_iota(jnp.int32, (Ld, Ld), 1)
    causal = col_i > row_i                                          # hoisted once

    def dec_layer(l, h):
        # causal self-attention (reference passes delta=None -> 0)
        sqkv = (jnp.dot(h, d_swqkv[l], preferred_element_type=jnp.float32)
                + d_sbqkv[l])
        ctx = attention(sqkv, sqkv, 0, D, 2 * D, Ld, Ld, None, causal)
        a = jnp.dot(ctx, d_swo[l], preferred_element_type=jnp.float32) + d_sbo[l]
        ln = d_ln1[l]
        h = _layernorm(h + a, ln[0:1, :], ln[1:2, :])

        # cross attention against the encoder output (fused KV projection)
        q = jnp.dot(h, d_cwq[l], preferred_element_type=jnp.float32) + d_cbq[l]
        kv = (jnp.dot(h_enc, d_cwkv[l], preferred_element_type=jnp.float32)
              + d_cbkv[l])
        ctx = attention(q, kv, 0, 0, D, Ld, L, delta_all, None)
        a = jnp.dot(ctx, d_cwo[l], preferred_element_type=jnp.float32) + d_cbo[l]
        ln = d_ln2[l]
        h = _layernorm(h + a, ln[0:1, :], ln[1:2, :])

        y = jnp.maximum(jnp.dot(h, d_w1[l], preferred_element_type=jnp.float32)
                        + d_b1[l], 0.0)
        y = jnp.dot(y, d_w2[l], preferred_element_type=jnp.float32) + d_b2[l]
        ln = d_ln3[l]
        return _layernorm(h + y, ln[0:1, :], ln[1:2, :])

    hd = jax.lax.fori_loop(0, n_dec, dec_layer, hd0)
    hd = _layernorm(hd, d_norm[0:1, :], d_norm[1:2, :])

    # lane-dense output projection (projw zero-padded to 128 lanes in the glue)
    out = (jnp.dot(hd, d_projw[...], preferred_element_type=jnp.float32)
           + d_projb[...])                                          # (BB*Ld, P)
    for b in range(BB):
        o_ref[b] = out[b * Ld:(b + 1) * Ld, :]


# ----------------------------------------------------------------------------
# forward pass (glue)
# ----------------------------------------------------------------------------
def maelnet_forward(params, x_enc, x_dec, cfg, *, single_buffer_weights=True):
    """x_enc: (B, seq_len, enc_in). x_dec accepted (PyTorch signature) but
    unused by the reference forward."""
    del x_dec
    B, L, C = x_enc.shape
    D = cfg['d_model']
    H = cfg['n_heads']
    Ld = cfg['label_len'] + cfg['pred_len']
    c_out = cfg['c_out']
    scale = 1.0 / math.sqrt(D // H)
    x_enc = x_enc.astype(jnp.float32)

    # ---- instance statistics (tiny element-wise XLA) ------------------------
    means = jnp.mean(x_enc, axis=1, keepdims=True)                  # (B,1,C)
    x_cent = x_enc - means
    std = jnp.sqrt(jnp.mean(x_cent * x_cent, axis=1, keepdims=True) + 1e-5)
    x_norm = x_cent / std

    # ---- series decomposition (Autoformer moving average) -------------------
    k = cfg['moving_avg']
    pad = (k - 1) // 2
    xpad = jnp.concatenate([jnp.repeat(x_norm[:, :1, :], pad, axis=1),
                            x_norm,
                            jnp.repeat(x_norm[:, -1:, :], pad, axis=1)], axis=1)
    mm = xpad[:, 0:L, :]
    for i in range(1, k):
        mm = mm + xpad[:, i:i + L, :]
    seasonal = x_norm - mm / float(k)
    seasonal_init = jnp.concatenate(
        [seasonal[:, L - cfg['label_len']:, :],
         jnp.zeros((B, cfg['pred_len'], C), jnp.float32)], axis=1)  # (B,Ld,C)

    # ---- projector series_conv (3-tap circular conv along channels, glue) ---
    x_m = jnp.roll(x_enc, 1, axis=2)     # x[..., c-1]
    x_p = jnp.roll(x_enc, -1, axis=2)    # x[..., c+1]

    def series_conv(w):                  # w: (3, L) -> (B, 1, C)
        return (jnp.einsum('l,blc->bc', w[0], x_m)
                + jnp.einsum('l,blc->bc', w[1], x_enc)
                + jnp.einsum('l,blc->bc', w[2], x_p))[:, None, :]

    conv_tau = series_conv(params['proj_tau']['conv'])
    conv_delta = series_conv(params['proj_delta']['conv'])

    # ---- batch blocking ------------------------------------------------------
    BB = max(1, min(8, (B + 1) // 2))    # several batch elems per grid step,
    nb = -(-B // BB)                     # while keeping >=2 grid steps (2 TCs)
    Bp = nb * BB

    def padb(a):
        if a.shape[0] == Bp:
            return a
        return jnp.concatenate(
            [a, jnp.zeros((Bp - a.shape[0],) + a.shape[1:], a.dtype)], axis=0)

    tp, dp = params['proj_tau'], params['proj_delta']
    ep, dpp = params['enc'], params['dec']

    P = ((c_out + 127) // 128) * 128     # lane-dense output width
    projw_pad = jnp.zeros((D, P), jnp.float32).at[:, :c_out].set(dpp['projw'])
    projb_pad = jnp.zeros((1, P), jnp.float32).at[:, :c_out].set(dpp['projb'])

    pe_enc = jnp.tile(ep['pe'], (BB, 1))                            # (BB*L, D)
    pe_dec = jnp.tile(dpp['pe'], (BB, 1))                           # (BB*Ld, D)

    batch_in = [padb(conv_tau), padb(conv_delta), padb(std), padb(means),
                padb(x_norm), padb(seasonal_init)]
    const_in = [tp['w0a'], tp['w0b'], tp['b0'], tp['w1'], tp['b1'], tp['w2'],
                dp['w0a'], dp['w0b'], dp['b0'], dp['w1'], dp['b1'], dp['w2'],
                ep['emb_w'], pe_enc, ep['wqkv'], ep['bqkv'], ep['wo'], ep['bo'],
                ep['w1'], ep['b1'], ep['w2'], ep['b2'],
                ep['ln1'], ep['ln2'], ep['norm'],
                dpp['emb_w'], pe_dec,
                dpp['swqkv'], dpp['sbqkv'], dpp['swo'], dpp['sbo'],
                dpp['cwq'], dpp['cbq'], dpp['cwkv'], dpp['cbkv'],
                dpp['cwo'], dpp['cbo'],
                dpp['w1'], dpp['b1'], dpp['w2'], dpp['b2'],
                dpp['ln1'], dpp['ln2'], dpp['ln3'], dpp['norm'],
                projw_pad, projb_pad]

    def tiled_spec(a):
        nd = a.ndim
        return pl.BlockSpec((BB,) + tuple(a.shape[1:]),
                            lambda i, _n=nd: (i,) + (0,) * (_n - 1))

    def const_spec(a):
        nd = a.ndim
        idx = lambda i, _n=nd: (0,) * _n
        if single_buffer_weights:
            # constant index_map across the batch grid -> no double buffering
            return pl.BlockSpec(tuple(a.shape), idx, pipeline_mode=pl.Buffered(1))
        return pl.BlockSpec(tuple(a.shape), idx)

    in_specs = [tiled_spec(a) for a in batch_in] + [const_spec(a) for a in const_in]

    kernel = functools.partial(_maelnet_kernel, BB=BB, n_heads=H,
                               n_enc=cfg['e_layers'], n_dec=cfg['d_layers'],
                               scale=scale)

    # TODO(synk): at production dims on v7x (64 MiB VMEM), stream the per-layer
    # weight stacks (emit_pipeline / layer grid axis) instead of keeping every
    # layer resident, and consider pltpu.CORE_PARALLEL on the batch axis to
    # guarantee 2-TensorCore sharding.
    out = pl.pallas_call(
        kernel,
        grid=(nb,),
        out_shape=jax.ShapeDtypeStruct((Bp, Ld, P), jnp.float32),
        in_specs=in_specs,
        out_specs=pl.BlockSpec((BB, Ld, P), lambda i: (i, 0, 0)),
        compiler_params=pltpu.CompilerParams(
            dimension_semantics=("parallel",),
            vmem_limit_bytes=48 * 1024 * 1024),
    )(*batch_in, *const_in)

    # ---- de-normalization + forecast slice (trivial glue) -------------------
    dec_out = out[:B, :, :c_out] * std + means
    return dec_out[:, -cfg['pred_len']:, :]


# ----------------------------------------------------------------------------
# deterministic parameter initialisation (packed layouts for the fused kernel)
# ----------------------------------------------------------------------------
def make_positional_embedding(max_len, d_model):
    pe = np.zeros((max_len, d_model), dtype=np.float32)
    position = np.arange(max_len, dtype=np.float32)[:, None]
    div_term = np.exp(np.arange(0, d_model, 2, dtype=np.float32)
                      * -(math.log(10000.0) / d_model))
    pe[:, 0::2] = np.sin(position * div_term)
    pe[:, 1::2] = np.cos(position * div_term)
    return jnp.asarray(pe)


def init_params(key, cfg):
    assert cfg['p_hidden_layers'] == 2, "projector kernel assumes 2 hidden layers"
    assert cfg.get('kernel_size', 3) == 3, "token embedding assumes kernel_size=3"
    keys = iter(jax.random.split(key, 512))

    def dense(shape, scale=None):
        kk = next(keys)
        s = (1.0 / math.sqrt(shape[-2])) if scale is None else scale
        return jax.random.normal(kk, shape, jnp.float32) * s

    D, DF = cfg['d_model'], cfg['d_ff']
    C = cfg['enc_in']
    L = cfg['seq_len']
    Ld = cfg['label_len'] + cfg['pred_len']
    NLe, NLd = cfg['e_layers'], cfg['d_layers']

    def ln_pack(n):   # [:,0]=gamma(=1), [:,1]=beta(=0)
        return jnp.concatenate([jnp.ones((n, 1, D), jnp.float32),
                                jnp.zeros((n, 1, D), jnp.float32)], axis=1)

    norm_pack = jnp.concatenate([jnp.ones((1, D), jnp.float32),
                                 jnp.zeros((1, D), jnp.float32)], axis=0)

    pe = make_positional_embedding(max(L, Ld) + 8, D)

    def proj_params(out_dim):
        H1, H2 = cfg['p_hidden_dims']
        return dict(conv=dense((3, L), scale=0.1),
                    w0a=dense((C, H1)), w0b=dense((C, H1)),
                    b0=jnp.zeros((1, H1), jnp.float32),
                    w1=dense((H1, H2)), b1=jnp.zeros((1, H2), jnp.float32),
                    w2=dense((H2, out_dim), scale=0.1))   # final layer: bias=False

    enc = dict(
        emb_w=dense((3, C, D)), pe=pe[:L],
        wqkv=dense((NLe, D, 3 * D)), bqkv=jnp.zeros((NLe, 1, 3 * D), jnp.float32),
        wo=dense((NLe, D, D)), bo=jnp.zeros((NLe, 1, D), jnp.float32),
        w1=dense((NLe, D, DF)), b1=jnp.zeros((NLe, 1, DF), jnp.float32),
        w2=dense((NLe, DF, D)), b2=jnp.zeros((NLe, 1, D), jnp.float32),
        ln1=ln_pack(NLe), ln2=ln_pack(NLe), norm=norm_pack)

    dec = dict(
        emb_w=dense((3, cfg['dec_in'], D)), pe=pe[:Ld],
        swqkv=dense((NLd, D, 3 * D)), sbqkv=jnp.zeros((NLd, 1, 3 * D), jnp.float32),
        swo=dense((NLd, D, D)), sbo=jnp.zeros((NLd, 1, D), jnp.float32),
        cwq=dense((NLd, D, D)), cbq=jnp.zeros((NLd, 1, D), jnp.float32),
        cwkv=dense((NLd, D, 2 * D)), cbkv=jnp.zeros((NLd, 1, 2 * D), jnp.float32),
        cwo=dense((NLd, D, D)), cbo=jnp.zeros((NLd, 1, D), jnp.float32),
        w1=dense((NLd, D, DF)), b1=jnp.zeros((NLd, 1, DF), jnp.float32),
        w2=dense((NLd, DF, D)), b2=jnp.zeros((NLd, 1, D), jnp.float32),
        ln1=ln_pack(NLd), ln2=ln_pack(NLd), ln3=ln_pack(NLd), norm=norm_pack,
        projw=dense((D, cfg['c_out'])),
        projb=jnp.zeros((1, cfg['c_out']), jnp.float32))

    return dict(enc=enc, dec=dec,
                proj_tau=proj_params(1),
                proj_delta=proj_params(cfg['seq_len']))


# ----------------------------------------------------------------------------
if __name__ == "__main__":
    cfg = dict(enc_in=4, dec_in=4, c_out=4,
               seq_len=16, label_len=8, pred_len=8,
               d_model=32, n_heads=4, d_ff=64,
               e_layers=1, d_layers=1,
               moving_avg=5, kernel_size=3,
               p_hidden_dims=[16, 16], p_hidden_layers=2)

    key = jax.random.PRNGKey(0)
    kp, kx, kd = jax.random.split(key, 3)
    params = init_params(kp, cfg)

    B = 2
    x_enc = jax.random.normal(kx, (B, cfg['seq_len'], cfg['enc_in']), jnp.float32)
    x_dec = jax.random.normal(kd, (B, cfg['label_len'] + cfg['pred_len'],
                                   cfg['dec_in']), jnp.float32)

    try:
        fwd = jax.jit(lambda p, a, b: maelnet_forward(
            p, a, b, cfg, single_buffer_weights=True))
        out = jax.block_until_ready(fwd(params, x_enc, x_dec))
    except Exception:
        # fallback if this JAX build rejects pipeline_mode=pl.Buffered(1)
        fwd = jax.jit(lambda p, a, b: maelnet_forward(
            p, a, b, cfg, single_buffer_weights=False))
        out = jax.block_until_ready(fwd(params, x_enc, x_dec))

    assert out.shape == (B, cfg['pred_len'], cfg['c_out']), out.shape
    assert bool(jnp.all(jnp.isfinite(out)))
    print("KERNEL_OK")
</pallas_src>

<mosaic_0001>
module attributes {stable_mosaic.version = 11 : i64} {
  func.func @_maelnet_kernel(%arg0: i32, %arg1: memref<1x1x4xf32, #tpu.memory_space<vmem>>, %arg2: memref<1x1x4xf32, #tpu.memory_space<vmem>>, %arg3: memref<1x1x4xf32, #tpu.memory_space<vmem>>, %arg4: memref<1x1x4xf32, #tpu.memory_space<vmem>>, %arg5: memref<1x16x4xf32, #tpu.memory_space<vmem>>, %arg6: memref<1x16x4xf32, #tpu.memory_space<vmem>>, %arg7: memref<4x16xf32, #tpu.memory_space<vmem>>, %arg8: memref<4x16xf32, #tpu.memory_space<vmem>>, %arg9: memref<1x16xf32, #tpu.memory_space<vmem>>, %arg10: memref<16x16xf32, #tpu.memory_space<vmem>>, %arg11: memref<1x16xf32, #tpu.memory_space<vmem>>, %arg12: memref<16x1xf32, #tpu.memory_space<vmem>>, %arg13: memref<4x16xf32, #tpu.memory_space<vmem>>, %arg14: memref<4x16xf32, #tpu.memory_space<vmem>>, %arg15: memref<1x16xf32, #tpu.memory_space<vmem>>, %arg16: memref<16x16xf32, #tpu.memory_space<vmem>>, %arg17: memref<1x16xf32, #tpu.memory_space<vmem>>, %arg18: memref<16x16xf32, #tpu.memory_space<vmem>>, %arg19: memref<3x4x32xf32, #tpu.memory_space<vmem>>, %arg20: memref<16x32xf32, #tpu.memory_space<vmem>>, %arg21: memref<1x32x96xf32, #tpu.memory_space<vmem>>, %arg22: memref<1x1x96xf32, #tpu.memory_space<vmem>>, %arg23: memref<1x32x32xf32, #tpu.memory_space<vmem>>, %arg24: memref<1x1x32xf32, #tpu.memory_space<vmem>>, %arg25: memref<1x32x64xf32, #tpu.memory_space<vmem>>, %arg26: memref<1x1x64xf32, #tpu.memory_space<vmem>>, %arg27: memref<1x64x32xf32, #tpu.memory_space<vmem>>, %arg28: memref<1x1x32xf32, #tpu.memory_space<vmem>>, %arg29: memref<1x2x32xf32, #tpu.memory_space<vmem>>, %arg30: memref<1x2x32xf32, #tpu.memory_space<vmem>>, %arg31: memref<2x32xf32, #tpu.memory_space<vmem>>, %arg32: memref<3x4x32xf32, #tpu.memory_space<vmem>>, %arg33: memref<16x32xf32, #tpu.memory_space<vmem>>, %arg34: memref<1x32x96xf32, #tpu.memory_space<vmem>>, %arg35: memref<1x1x96xf32, #tpu.memory_space<vmem>>, %arg36: memref<1x32x32xf32, #tpu.memory_space<vmem>>, %arg37: memref<1x1x32xf32, #tpu.memory_space<vmem>>, %arg38: memref<1x32x32xf32, #tpu.memory_space<vmem>>, %arg39: memref<1x1x32xf32, #tpu.memory_space<vmem>>, %arg40: memref<1x32x64xf32, #tpu.memory_space<vmem>>, %arg41: memref<1x1x64xf32, #tpu.memory_space<vmem>>, %arg42: memref<1x32x32xf32, #tpu.memory_space<vmem>>, %arg43: memref<1x1x32xf32, #tpu.memory_space<vmem>>, %arg44: memref<1x32x64xf32, #tpu.memory_space<vmem>>, %arg45: memref<1x1x64xf32, #tpu.memory_space<vmem>>, %arg46: memref<1x64x32xf32, #tpu.memory_space<vmem>>, %arg47: memref<1x1x32xf32, #tpu.memory_space<vmem>>, %arg48: memref<1x2x32xf32, #tpu.memory_space<vmem>>, %arg49: memref<1x2x32xf32, #tpu.memory_space<vmem>>, %arg50: memref<1x2x32xf32, #tpu.memory_space<vmem>>, %arg51: memref<2x32xf32, #tpu.memory_space<vmem>>, %arg52: memref<32x128xf32, #tpu.memory_space<vmem>>, %arg53: memref<1x128xf32, #tpu.memory_space<vmem>>, %arg54: memref<1x16x128xf32, #tpu.memory_space<vmem>>) attributes {dimension_semantics = [#tpu.dimension_semantics<parallel>], iteration_bounds = array<i64: 2>, scalar_prefetch = 0 : i64, scratch_operands = 0 : i64, tpu.core_type = #tpu.core_type<tc>, window_params = [{transform_indices = @transform_0, window_bounds = array<i64: 1, 1, 4>}, {transform_indices = @transform_1, window_bounds = array<i64: 1, 1, 4>}, {transform_indices = @transform_2, window_bounds = array<i64: 1, 1, 4>}, {transform_indices = @transform_3, window_bounds = array<i64: 1, 1, 4>}, {transform_indices = @transform_4, window_bounds = array<i64: 1, 16, 4>}, {transform_indices = @transform_5, window_bounds = array<i64: 1, 16, 4>}, {pipeline_mode = #tpu.pipeline_mode<synchronous>, transform_indices = @transform_6, window_bounds = array<i64: 4, 16>}, {pipeline_mode = #tpu.pipeline_mode<synchronous>, transform_indices = @transform_7, window_bounds = array<i64: 4, 16>}, {pipeline_mode = #tpu.pipeline_mode<synchronous>, transform_indices = @transform_8, window_bounds = array<i64: 1, 16>}, {pipeline_mode = #tpu.pipeline_mode<synchronous>, transform_indices = @transform_9, window_bounds = array<i64: 16, 16>}, {pipeline_mode = #tpu.pipeline_mode<synchronous>, transform_indices = @transform_10, window_bounds = array<i64: 1, 16>}, {pipeline_mode = #tpu.pipeline_mode<synchronous>, transform_indices = @transform_11, window_bounds = array<i64: 16, 1>}, {pipeline_mode = #tpu.pipeline_mode<synchronous>, transform_indices = @transform_12, window_bounds = array<i64: 4, 16>}, {pipeline_mode = #tpu.pipeline_mode<synchronous>, transform_indices = @transform_13, window_bounds = array<i64: 4, 16>}, {pipeline_mode = #tpu.pipeline_mode<synchronous>, transform_indices = @transform_14, window_bounds = array<i64: 1, 16>}, {pipeline_mode = #tpu.pipeline_mode<synchronous>, transform_indices = @transform_15, window_bounds = array<i64: 16, 16>}, {pipeline_mode = #tpu.pipeline_mode<synchronous>, transform_indices = @transform_16, window_bounds = array<i64: 1, 16>}, {pipeline_mode = #tpu.pipeline_mode<synchronous>, transform_indices = @transform_17, window_bounds = array<i64: 16, 16>}, {pipeline_mode = #tpu.pipeline_mode<synchronous>, transform_indices = @transform_18, window_bounds = array<i64: 3, 4, 32>}, {pipeline_mode = #tpu.pipeline_mode<synchronous>, transform_indices = @transform_19, window_bounds = array<i64: 16, 32>}, {pipeline_mode = #tpu.pipeline_mode<synchronous>, transform_indices = @transform_20, window_bounds = array<i64: 1, 32, 96>}, {pipeline_mode = #tpu.pipeline_mode<synchronous>, transform_indices = @transform_21, window_bounds = array<i64: 1, 1, 96>}, {pipeline_mode = #tpu.pipeline_mode<synchronous>, transform_indices = @transform_22, window_bounds = array<i64: 1, 32, 32>}, {pipeline_mode = #tpu.pipeline_mode<synchronous>, transform_indices = @transform_23, window_bounds = array<i64: 1, 1, 32>}, {pipeline_mode = #tpu.pipeline_mode<synchronous>, transform_indices = @transform_24, window_bounds = array<i64: 1, 32, 64>}, {pipeline_mode = #tpu.pipeline_mode<synchronous>, transform_indices = @transform_25, window_bounds = array<i64: 1, 1, 64>}, {pipeline_mode = #tpu.pipeline_mode<synchronous>, transform_indices = @transform_26, window_bounds = array<i64: 1, 64, 32>}, {pipeline_mode = #tpu.pipeline_mode<synchronous>, transform_indices = @transform_27, window_bounds = array<i64: 1, 1, 32>}, {pipeline_mode = #tpu.pipeline_mode<synchronous>, transform_indices = @transform_28, window_bounds = array<i64: 1, 2, 32>}, {pipeline_mode = #tpu.pipeline_mode<synchronous>, transform_indices = @transform_29, window_bounds = array<i64: 1, 2, 32>}, {pipeline_mode = #tpu.pipeline_mode<synchronous>, transform_indices = @transform_30, window_bounds = array<i64: 2, 32>}, {pipeline_mode = #tpu.pipeline_mode<synchronous>, transform_indices = @transform_31, window_bounds = array<i64: 3, 4, 32>}, {pipeline_mode = #tpu.pipeline_mode<synchronous>, transform_indices = @transform_32, window_bounds = array<i64: 16, 32>}, {pipeline_mode = #tpu.pipeline_mode<synchronous>, transform_indices = @transform_33, window_bounds = array<i64: 1, 32, 96>}, {pipeline_mode = #tpu.pipeline_mode<synchronous>, transform_indices = @transform_34, window_bounds = array<i64: 1, 1, 96>}, {pipeline_mode = #tpu.pipeline_mode<synchronous>, transform_indices = @transform_35, window_bounds = array<i64: 1, 32, 32>}, {pipeline_mode = #tpu.pipeline_mode<synchronous>, transform_indices = @transform_36, window_bounds = array<i64: 1, 1, 32>}, {pipeline_mode = #tpu.pipeline_mode<synchronous>, transform_indices = @transform_37, window_bounds = array<i64: 1, 32, 32>}, {pipeline_mode = #tpu.pipeline_mode<synchronous>, transform_indices = @transform_38, window_bounds = array<i64: 1, 1, 32>}, {pipeline_mode = #tpu.pipeline_mode<synchronous>, transform_indices = @transform_39, window_bounds = array<i64: 1, 32, 64>}, {pipeline_mode = #tpu.pipeline_mode<synchronous>, transform_indices = @transform_40, window_bounds = array<i64: 1, 1, 64>}, {pipeline_mode = #tpu.pipeline_mode<synchronous>, transform_indices = @transform_41, window_bounds = array<i64: 1, 32, 32>}, {pipeline_mode = #tpu.pipeline_mode<synchronous>, transform_indices = @transform_42, window_bounds = array<i64: 1, 1, 32>}, {pipeline_mode = #tpu.pipeline_mode<synchronous>, transform_indices = @transform_43, window_bounds = array<i64: 1, 32, 64>}, {pipeline_mode = #tpu.pipeline_mode<synchronous>, transform_indices = @transform_44, window_bounds = array<i64: 1, 1, 64>}, {pipeline_mode = #tpu.pipeline_mode<synchronous>, transform_indices = @transform_45, window_bounds = array<i64: 1, 64, 32>}, {pipeline_mode = #tpu.pipeline_mode<synchronous>, transform_indices = @transform_46, window_bounds = array<i64: 1, 1, 32>}, {pipeline_mode = #tpu.pipeline_mode<synchronous>, transform_indices = @transform_47, window_bounds = array<i64: 1, 2, 32>}, {pipeline_mode = #tpu.pipeline_mode<synchronous>, transform_indices = @transform_48, window_bounds = array<i64: 1, 2, 32>}, {pipeline_mode = #tpu.pipeline_mode<synchronous>, transform_indices = @transform_49, window_bounds = array<i64: 1, 2, 32>}, {pipeline_mode = #tpu.pipeline_mode<synchronous>, transform_indices = @transform_50, window_bounds = array<i64: 2, 32>}, {pipeline_mode = #tpu.pipeline_mode<synchronous>, transform_indices = @transform_51, window_bounds = array<i64: 32, 128>}, {pipeline_mode = #tpu.pipeline_mode<synchronous>, transform_indices = @transform_52, window_bounds = array<i64: 1, 128>}, {transform_indices = @transform_53, window_bounds = array<i64: 1, 16, 128>}]} {
    %c0 = arith.constant 0 : index
    %c0_0 = arith.constant 0 : index
    %c0_1 = arith.constant 0 : index
    %0 = vector.load %arg1[%c0, %c0_0, %c0_1] : memref<1x1x4xf32, #tpu.memory_space<vmem>>, vector<1x1x4xf32>
    %1 = vector.shape_cast %0 : vector<1x1x4xf32> to vector<1x4xf32>
    %c0_2 = arith.constant 0 : index
    %c0_3 = arith.constant 0 : index
    %c0_4 = arith.constant 0 : index
    %2 = vector.load %arg2[%c0_2, %c0_3, %c0_4] : memref<1x1x4xf32, #tpu.memory_space<vmem>>, vector<1x1x4xf32>
    %3 = vector.shape_cast %2 : vector<1x1x4xf32> to vector<1x4xf32>
    %c0_5 = arith.constant 0 : index
    %c0_6 = arith.constant 0 : index
    %c0_7 = arith.constant 0 : index
    %4 = vector.load %arg3[%c0_5, %c0_6, %c0_7] : memref<1x1x4xf32, #tpu.memory_space<vmem>>, vector<1x1x4xf32>
    %5 = vector.shape_cast %4 : vector<1x1x4xf32> to vector<1x4xf32>
    %c0_8 = arith.constant 0 : index
    %c0_9 = arith.constant 0 : index
    %c0_10 = arith.constant 0 : index
    %6 = vector.load %arg4[%c0_8, %c0_9, %c0_10] : memref<1x1x4xf32, #tpu.memory_space<vmem>>, vector<1x1x4xf32>
    %7 = vector.shape_cast %6 : vector<1x1x4xf32> to vector<1x4xf32>
    %c0_11 = arith.constant 0 : index
    %c0_12 = arith.constant 0 : index
    %8 = vector.load %arg7[%c0_11, %c0_12] : memref<4x16xf32, #tpu.memory_space<vmem>>, vector<4x16xf32>
    %cst = arith.constant dense<0.000000e+00> : vector<1x16xf32>
    %9 = tpu.matmul %1, %8, %cst {dimension_numbers = #tpu.dot_dimension_numbers<[1], [0], [0], [1], [0, 0, 1, 1], [], []>} : vector<1x4xf32>, vector<4x16xf32>, vector<1x16xf32> -> vector<1x16xf32>
    %c0_13 = arith.constant 0 : index
    %c0_14 = arith.constant 0 : index
    %10 = vector.load %arg8[%c0_13, %c0_14] : memref<4x16xf32, #tpu.memory_space<vmem>>, vector<4x16xf32>
    %cst_15 = arith.constant dense<0.000000e+00> : vector<1x16xf32>
    %11 = tpu.matmul %5, %10, %cst_15 {dimension_numbers = #tpu.dot_dimension_numbers<[1], [0], [0], [1], [0, 0, 1, 1], [], []>} : vector<1x4xf32>, vector<4x16xf32>, vector<1x16xf32> -> vector<1x16xf32>
    %12 = arith.addf %9, %11 : vector<1x16xf32>
    %c0_16 = arith.constant 0 : index
    %c0_17 = arith.constant 0 : index
    %13 = vector.load %arg9[%c0_16, %c0_17] : memref<1x16xf32, #tpu.memory_space<vmem>>, vector<1x16xf32>
    %14 = arith.addf %12, %13 : vector<1x16xf32>
    %cst_18 = arith.constant 0.000000e+00 : f32
    %15 = vector.broadcast %cst_18 : f32 to vector<1x16xf32>
    %16 = arith.maximumf %14, %15 : vector<1x16xf32>
    %c0_19 = arith.constant 0 : index
    %c0_20 = arith.constant 0 : index
    %17 = vector.load %arg10[%c0_19, %c0_20] : memref<16x16xf32, #tpu.memory_space<vmem>>, vector<16x16xf32>
    %cst_21 = arith.constant dense<0.000000e+00> : vector<1x16xf32>
    %18 = tpu.matmul %16, %17, %cst_21 {dimension_numbers = #tpu.dot_dimension_numbers<[1], [0], [0], [1], [0, 0, 1, 1], [], []>} : vector<1x16xf32>, vector<16x16xf32>, vector<1x16xf32> -> vector<1x16xf32>
    %c0_22 = arith.constant 0 : index
    %c0_23 = arith.constant 0 : index
    %19 = vector.load %arg11[%c0_22, %c0_23] : memref<1x16xf32, #tpu.memory_space<vmem>>, vector<1x16xf32>
    %20 = arith.addf %18, %19 : vector<1x16xf32>
    %cst_24 = arith.constant 0.000000e+00 : f32
    %21 = vector.broadcast %cst_24 : f32 to vector<1x16xf32>
    %22 = arith.maximumf %20, %21 : vector<1x16xf32>
    %c0_25 = arith.constant 0 : index
    %c0_26 = arith.constant 0 : index
    %23 = vector.load %arg12[%c0_25, %c0_26] : memref<16x1xf32, #tpu.memory_space<vmem>>, vector<16x1xf32>
    %cst_27 = arith.constant dense<0.000000e+00> : vector<1x1xf32>
    %24 = tpu.matmul %22, %23, %cst_27 {dimension_numbers = #tpu.dot_dimension_numbers<[1], [0], [0], [1], [0, 0, 1, 1], [], []>} : vector<1x16xf32>, vector<16x1xf32>, vector<1x1xf32> -> vector<1x1xf32>
    %25 = math.exp %24 : vector<1x1xf32>
    %c0_28 = arith.constant 0 : index
    %c0_29 = arith.constant 0 : index
    %26 = vector.load %arg13[%c0_28, %c0_29] : memref<4x16xf32, #tpu.memory_space<vmem>>, vector<4x16xf32>
    %cst_30 = arith.constant dense<0.000000e+00> : vector<1x16xf32>
    %27 = tpu.matmul %3, %26, %cst_30 {dimension_numbers = #tpu.dot_dimension_numbers<[1], [0], [0], [1], [0, 0, 1, 1], [], []>} : vector<1x4xf32>, vector<4x16xf32>, vector<1x16xf32> -> vector<1x16xf32>
    %c0_31 = arith.constant 0 : index
    %c0_32 = arith.constant 0 : index
    %28 = vector.load %arg14[%c0_31, %c0_32] : memref<4x16xf32, #tpu.memory_space<vmem>>, vector<4x16xf32>
    %cst_33 = arith.constant dense<0.000000e+00> : vector<1x16xf32>
    %29 = tpu.matmul %7, %28, %cst_33 {dimension_numbers = #tpu.dot_dimension_numbers<[1], [0], [0], [1], [0, 0, 1, 1], [], []>} : vector<1x4xf32>, vector<4x16xf32>, vector<1x16xf32> -> vector<1x16xf32>
    %30 = arith.addf %27, %29 : vector<1x16xf32>
    %c0_34 = arith.constant 0 : index
    %c0_35 = arith.constant 0 : index
    %31 = vector.load %arg15[%c0_34, %c0_35] : memref<1x16xf32, #tpu.memory_space<vmem>>, vector<1x16xf32>
    %32 = arith.addf %30, %31 : vector<1x16xf32>
    %cst_36 = arith.constant 0.000000e+00 : f32
    %33 = vector.broadcast %cst_36 : f32 to vector<1x16xf32>
    %34 = arith.maximumf %32, %33 : vector<1x16xf32>
    %c0_37 = arith.constant 0 : index
    %c0_38 = arith.constant 0 : index
    %35 = vector.load %arg16[%c0_37, %c0_38] : memref<16x16xf32, #tpu.memory_space<vmem>>, vector<16x16xf32>
    %cst_39 = arith.constant dense<0.000000e+00> : vector<1x16xf32>
    %36 = tpu.matmul %34, %35, %cst_39 {dimension_numbers = #tpu.dot_dimension_numbers<[1], [0], [0], [1], [0, 0, 1, 1], [], []>} : vector<1x16xf32>, vector<16x16xf32>, vector<1x16xf32> -> vector<1x16xf32>
    %c0_40 = arith.constant 0 : index
    %c0_41 = arith.constant 0 : index
    %37 = vector.load %arg17[%c0_40, %c0_41] : memref<1x16xf32, #tpu.memory_space<vmem>>, vector<1x16xf32>
    %38 = arith.addf %36, %37 : vector<1x16xf32>
    %cst_42 = arith.constant 0.000000e+00 : f32
    %39 = vector.broadcast %cst_42 : f32 to vector<1x16xf32>
    %40 = arith.maximumf %38, %39 : vector<1x16xf32>
    %c0_43 = arith.constant 0 : index
    %c0_44 = arith.constant 0 : index
    %41 = vector.load %arg18[%c0_43, %c0_44] : memref<16x16xf32, #tpu.memory_space<vmem>>, vector<16x16xf32>
    %cst_45 = arith.constant dense<0.000000e+00> : vector<1x16xf32>
    %42 = tpu.matmul %40, %41, %cst_45 {dimension_numbers = #tpu.dot_dimension_numbers<[1], [0], [0], [1], [0, 0, 1, 1], [], []>} : vector<1x16xf32>, vector<16x16xf32>, vector<1x16xf32> -> vector<1x16xf32>
    %cst_46 = arith.constant 0.353553385 : f32
    %43 = vector.broadcast %cst_46 : f32 to vector<1x1xf32>
    %44 = arith.mulf %25, %43 : vector<1x1xf32>
    %c0_47 = arith.constant 0 : index
    %c0_48 = arith.constant 0 : index
    %c0_49 = arith.constant 0 : index
    %45 = vector.load %arg5[%c0_47, %c0_48, %c0_49] : memref<1x16x4xf32, #tpu.memory_space<vmem>>, vector<1x16x4xf32>
    %46 = vector.shape_cast %45 : vector<1x16x4xf32> to vector<16x4xf32>
    %c1_i32 = arith.constant 1 : i32
    %47 = tpu.dynamic_rotate %46 by %c1_i32 dim 0 : vector<16x4xf32>, i32 -> vector<16x4xf32>
    %c15_i32 = arith.constant 15 : i32
    %48 = tpu.dynamic_rotate %46 by %c15_i32 dim 0 : vector<16x4xf32>, i32 -> vector<16x4xf32>
    %c0_50 = arith.constant 0 : index
    %c0_51 = arith.constant 0 : index
    %c0_52 = arith.constant 0 : index
    %49 = vector.load %arg19[%c0_50, %c0_51, %c0_52] : memref<3x4x32xf32, #tpu.memory_space<vmem>>, vector<1x4x32xf32>
    %50 = vector.shape_cast %49 : vector<1x4x32xf32> to vector<4x32xf32>
    %cst_53 = arith.constant dense<0.000000e+00> : vector<16x32xf32>
    %51 = tpu.matmul %47, %50, %cst_53 {dimension_numbers = #tpu.dot_dimension_numbers<[1], [0], [0], [1], [0, 0, 1, 1], [], []>} : vector<16x4xf32>, vector<4x32xf32>, vector<16x32xf32> -> vector<16x32xf32>
    %c1 = arith.constant 1 : index
    %c0_54 = arith.constant 0 : index
    %c0_55 = arith.constant 0 : index
    %52 = vector.load %arg19[%c1, %c0_54, %c0_55] : memref<3x4x32xf32, #tpu.memory_space<vmem>>, vector<1x4x32xf32>
    %53 = vector.shape_cast %52 : vector<1x4x32xf32> to vector<4x32xf32>
    %cst_56 = arith.constant dense<0.000000e+00> : vector<16x32xf32>
    %54 = tpu.matmul %46, %53, %cst_56 {dimension_numbers = #tpu.dot_dimension_numbers<[1], [0], [0], [1], [0, 0, 1, 1], [], []>} : vector<16x4xf32>, vector<4x32xf32>, vector<16x32xf32> -> vector<16x32xf32>
    %55 = arith.addf %51, %54 : vector<16x32xf32>
    %c2 = arith.constant 2 : index
    %c0_57 = arith.constant 0 : index
    %c0_58 = arith.constant 0 : index
    %56 = vector.load %arg19[%c2, %c0_57, %c0_58] : memref<3x4x32xf32, #tpu.memory_space<vmem>>, vector<1x4x32xf32>
    %57 = vector.shape_cast %56 : vector<1x4x32xf32> to vector<4x32xf32>
    %cst_59 = arith.constant dense<0.000000e+00> : vector<16x32xf32>
    %58 = tpu.matmul %48, %57, %cst_59 {dimension_numbers = #tpu.dot_dimension_numbers<[1], [0], [0], [1], [0, 0, 1, 1], [], []>} : vector<16x4xf32>, vector<4x32xf32>, vector<16x32xf32> -> vector<16x32xf32>
    %59 = arith.addf %55, %58 : vector<16x32xf32>
    %c0_60 = arith.constant 0 : index
    %c0_61 = arith.constant 0 : index
    %60 = vector.load %arg20[%c0_60, %c0_61] : memref<16x32xf32, #tpu.memory_space<vmem>>, vector<16x32xf32>
    %61 = arith.addf %59, %60 : vector<16x32xf32>
    %c0_i32 = arith.constant 0 : i32
    %62 = arith.index_cast %c0_i32 : i32 to index
    %c0_62 = arith.constant 0 : index
    %c0_63 = arith.constant 0 : index
    %63 = vector.load %arg21[%62, %c0_62, %c0_63] : memref<1x32x96xf32, #tpu.memory_space<vmem>>, vector<1x32x96xf32>
    %64 = vector.shape_cast %63 : vector<1x32x96xf32> to vector<32x96xf32>
    %cst_64 = arith.constant dense<0.000000e+00> : vector<16x96xf32>
    %65 = tpu.matmul %61, %64, %cst_64 {dimension_numbers = #tpu.dot_dimension_numbers<[1], [0], [0], [1], [0, 0, 1, 1], [], []>} : vector<16x32xf32>, vector<32x96xf32>, vector<16x96xf32> -> vector<16x96xf32>
    %66 = arith.index_cast %c0_i32 : i32 to index
    %c0_65 = arith.constant 0 : index
    %c0_66 = arith.constant 0 : index
    %67 = vector.load %arg22[%66, %c0_65, %c0_66] : memref<1x1x96xf32, #tpu.memory_space<vmem>>, vector<1x1x96xf32>
    %68 = vector.shape_cast %67 : vector<1x1x96xf32> to vector<1x96xf32>
    %69 = vector.broadcast %68 : vector<1x96xf32> to vector<16x96xf32>
    %70 = arith.addf %65, %69 : vector<16x96xf32>
    %71 = vector.extract_strided_slice %70 {offsets = [0, 0], sizes = [16, 8], strides = [1, 1]} : vector<16x96xf32> to vector<16x8xf32>
    %72 = vector.extract_strided_slice %70 {offsets = [0, 32], sizes = [16, 8], strides = [1, 1]} : vector<16x96xf32> to vector<16x8xf32>
    %73 = vector.extract_strided_slice %70 {offsets = [0, 64], sizes = [16, 8], strides = [1, 1]} : vector<16x96xf32> to vector<16x8xf32>
    %cst_67 = arith.constant dense<0.000000e+00> : vector<16x16xf32>
    %74 = tpu.matmul %71, %72, %cst_67 {dimension_numbers = #tpu.dot_dimension_numbers<[1], [1], [0], [0], [0, 0, 1, 0], [], []>} : vector<16x8xf32>, vector<16x8xf32>, vector<16x16xf32> -> vector<16x16xf32>
    %75 = vector.broadcast %44 : vector<1x1xf32> to vector<16x16xf32>
    %76 = arith.mulf %74, %75 : vector<16x16xf32>
    %77 = vector.broadcast %42 : vector<1x16xf32> to vector<16x16xf32>
    %78 = arith.addf %76, %77 : vector<16x16xf32>
    %cst_68 = arith.constant dense<0xFF800000> : vector<16xf32>
    %79 = vector.multi_reduction <maximumf>, %78, %cst_68 [1] : vector<16x16xf32> to vector<16xf32>
    %80 = vector.shape_cast %79 : vector<16xf32> to vector<16x1xf32>
    %81 = vector.broadcast %80 : vector<16x1xf32> to vector<16x16xf32>
    %82 = arith.subf %78, %81 : vector<16x16xf32>
    %83 = math.exp %82 : vector<16x16xf32>
    %cst_69 = arith.constant dense<0.000000e+00> : vector<16xf32>
    %84 = vector.multi_reduction <add>, %83, %cst_69 [1] : vector<16x16xf32> to vector<16xf32>
    %85 = vector.shape_cast %84 : vector<16xf32> to vector<16x1xf32>
    %86 = vector.broadcast %85 : vector<16x1xf32> to vector<16x16xf32>
    %87 = arith.divf %83, %86 : vector<16x16xf32>
    %cst_70 = arith.constant dense<0.000000e+00> : vector<16x8xf32>
    %88 = tpu.matmul %87, %73, %cst_70 {dimension_numbers = #tpu.dot_dimension_numbers<[1], [0], [0], [1], [0, 0, 1, 1], [], []>} : vector<16x16xf32>, vector<16x8xf32>, vector<16x8xf32> -> vector<16x8xf32>
    %89 = vector.extract_strided_slice %70 {offsets = [0, 8], sizes = [16, 8], strides = [1, 1]} : vector<16x96xf32> to vector<16x8xf32>
    %90 = vector.extract_strided_slice %70 {offsets = [0, 40], sizes = [16, 8], strides = [1, 1]} : vector<16x96xf32> to vector<16x8xf32>
    %91 = vector.extract_strided_slice %70 {offsets = [0, 72], sizes = [16, 8], strides = [1, 1]} : vector<16x96xf32> to vector<16x8xf32>
    %cst_71 = arith.constant dense<0.000000e+00> : vector<16x16xf32>
    %92 = tpu.matmul %89, %90, %cst_71 {dimension_numbers = #tpu.dot_dimension_numbers<[1], [1], [0], [0], [0, 0, 1, 0], [], []>} : vector<16x8xf32>, vector<16x8xf32>, vector<16x16xf32> -> vector<16x16xf32>
    %93 = vector.broadcast %44 : vector<1x1xf32> to vector<16x16xf32>
    %94 = arith.mulf %92, %93 : vector<16x16xf32>
    %95 = vector.broadcast %42 : vector<1x16xf32> to vector<16x16xf32>
    %96 = arith.addf %94, %95 : vector<16x16xf32>
    %cst_72 = arith.constant dense<0xFF800000> : vector<16xf32>
    %97 = vector.multi_reduction <maximumf>, %96, %cst_72 [1] : vector<16x16xf32> to vector<16xf32>
    %98 = vector.shape_cast %97 : vector<16xf32> to vector<16x1xf32>
    %99 = vector.broadcast %98 : vector<16x1xf32> to vector<16x16xf32>
    %100 = arith.subf %96, %99 : vector<16x16xf32>
    %101 = math.exp %100 : vector<16x16xf32>
    %cst_73 = arith.constant dense<0.000000e+00> : vector<16xf32>
    %102 = vector.multi_reduction <add>, %101, %cst_73 [1] : vector<16x16xf32> to vector<16xf32>
    %103 = vector.shape_cast %102 : vector<16xf32> to vector<16x1xf32>
    %104 = vector.broadcast %103 : vector<16x1xf32> to vector<16x16xf32>
    %105 = arith.divf %101, %104 : vector<16x16xf32>
    %cst_74 = arith.constant dense<0.000000e+00> : vector<16x8xf32>
    %106 = tpu.matmul %105, %91, %cst_74 {dimension_numbers = #tpu.dot_dimension_numbers<[1], [0], [0], [1], [0, 0, 1, 1], [], []>} : vector<16x16xf32>, vector<16x8xf32>, vector<16x8xf32> -> vector<16x8xf32>
    %107 = vector.extract_strided_slice %70 {offsets = [0, 16], sizes = [16, 8], strides = [1, 1]} : vector<16x96xf32> to vector<16x8xf32>
    %108 = vector.extract_strided_slice %70 {offsets = [0, 48], sizes = [16, 8], strides = [1, 1]} : vector<16x96xf32> to vector<16x8xf32>
    %109 = vector.extract_strided_slice %70 {offsets = [0, 80], sizes = [16, 8], strides = [1, 1]} : vector<16x96xf32> to vector<16x8xf32>
    %cst_75 = arith.constant dense<0.000000e+00> : vector<16x16xf32>
    %110 = tpu.matmul %107, %108, %cst_75 {dimension_numbers = #tpu.dot_dimension_numbers<[1], [1], [0], [0], [0, 0, 1, 0], [], []>} : vector<16x8xf32>, vector<16x8xf32>, vector<16x16xf32> -> vector<16x16xf32>
    %111 = vector.broadcast %44 : vector<1x1xf32> to vector<16x16xf32>
    %112 = arith.mulf %110, %111 : vector<16x16xf32>
    %113 = vector.broadcast %42 : vector<1x16xf32> to vector<16x16xf32>
    %114 = arith.addf %112, %113 : vector<16x16xf32>
    %cst_76 = arith.constant dense<0xFF800000> : vector<16xf32>
    %115 = vector.multi_reduction <maximumf>, %114, %cst_76 [1] : vector<16x16xf32> to vector<16xf32>
    %116 = vector.shape_cast %115 : vector<16xf32> to vector<16x1xf32>
    %117 = vector.broadcast %116 : vector<16x1xf32> to vector<16x16xf32>
    %118 = arith.subf %114, %117 : vector<16x16xf32>
    %119 = math.exp %118 : vector<16x16xf32>
    %cst_77 = arith.constant dense<0.000000e+00> : vector<16xf32>
    %120 = vector.multi_reduction <add>, %119, %cst_77 [1] : vector<16x16xf32> to vector<16xf32>
    %121 = vector.shape_cast %120 : vector<16xf32> to vector<16x1xf32>
    %122 = vector.broadcast %121 : vector<16x1xf32> to vector<16x16xf32>
    %123 = arith.divf %119, %122 : vector<16x16xf32>
    %cst_78 = arith.constant dense<0.000000e+00> : vector<16x8xf32>
    %124 = tpu.matmul %123, %109, %cst_78 {dimension_numbers = #tpu.dot_dimension_numbers<[1], [0], [0], [1], [0, 0, 1, 1], [], []>} : vector<16x16xf32>, vector<16x8xf32>, vector<16x8xf32> -> vector<16x8xf32>
    %125 = vector.extract_strided_slice %70 {offsets = [0, 24], sizes = [16, 8], strides = [1, 1]} : vector<16x96xf32> to vector<16x8xf32>
    %126 = vector.extract_strided_slice %70 {offsets = [0, 56], sizes = [16, 8], strides = [1, 1]} : vector<16x96xf32> to vector<16x8xf32>
    %127 = vector.extract_strided_slice %70 {offsets = [0, 88], sizes = [16, 8], strides = [1, 1]} : vector<16x96xf32> to vector<16x8xf32>
    %cst_79 = arith.constant dense<0.000000e+00> : vector<16x16xf32>
    %128 = tpu.matmul %125, %126, %cst_79 {dimension_numbers = #tpu.dot_dimension_numbers<[1], [1], [0], [0], [0, 0, 1, 0], [], []>} : vector<16x8xf32>, vector<16x8xf32>, vector<16x16xf32> -> vector<16x16xf32>
    %129 = vector.broadcast %44 : vector<1x1xf32> to vector<16x16xf32>
    %130 = arith.mulf %128, %129 : vector<16x16xf32>
    %131 = vector.broadcast %42 : vector<1x16xf32> to vector<16x16xf32>
    %132 = arith.addf %130, %131 : vector<16x16xf32>
    %cst_80 = arith.constant dense<0xFF800000> : vector<16xf32>
    %133 = vector.multi_reduction <maximumf>, %132, %cst_80 [1] : vector<16x16xf32> to vector<16xf32>
    %134 = vector.shape_cast %133 : vector<16xf32> to vector<16x1xf32>
    %135 = vector.broadcast %134 : vector<16x1xf32> to vector<16x16xf32>
    %136 = arith.subf %132, %135 : vector<16x16xf32>
    %137 = math.exp %136 : vector<16x16xf32>
    %cst_81 = arith.constant dense<0.000000e+00> : vector<16xf32>
    %138 = vector.multi_reduction <add>, %137, %cst_81 [1] : vector<16x16xf32> to vector<16xf32>
    %139 = vector.shape_cast %138 : vector<16xf32> to vector<16x1xf32>
    %140 = vector.broadcast %139 : vector<16x1xf32> to vector<16x16xf32>
    %141 = arith.divf %137, %140 : vector<16x16xf32>
    %cst_82 = arith.constant dense<0.000000e+00> : vector<16x8xf32>
    %142 = tpu.matmul %141, %127, %cst_82 {dimension_numbers = #tpu.dot_dimension_numbers<[1], [0], [0], [1], [0, 0, 1, 1], [], []>} : vector<16x16xf32>, vector<16x8xf32>, vector<16x8xf32> -> vector<16x8xf32>
    %143 = tpu.concatenate %88, %106, %124, %142 in 1 : vector<16x8xf32>, vector<16x8xf32>, vector<16x8xf32>, vector<16x8xf32> -> vector<16x32xf32>
    %144 = arith.index_cast %c0_i32 : i32 to index
    %c0_83 = arith.constant 0 : index
    %c0_84 = arith.constant 0 : index
    %145 = vector.load %arg23[%144, %c0_83, %c0_84] : memref<1x32x32xf32, #tpu.memory_space<vmem>>, vector<1x32x32xf32>
    %146 = vector.shape_cast %145 : vector<1x32x32xf32> to vector<32x32xf32>
    %cst_85 = arith.constant dense<0.000000e+00> : vector<16x32xf32>
    %147 = tpu.matmul %143, %146, %cst_85 {dimension_numbers = #tpu.dot_dimension_numbers<[1], [0], [0], [1], [0, 0, 1, 1], [], []>} : vector<16x32xf32>, vector<32x32xf32>, vector<16x32xf32> -> vector<16x32xf32>
    %148 = arith.index_cast %c0_i32 : i32 to index
    %c0_86 = arith.constant 0 : index
    %c0_87 = arith.constant 0 : index
    %149 = vector.load %arg24[%148, %c0_86, %c0_87] : memref<1x1x32xf32, #tpu.memory_space<vmem>>, vector<1x1x32xf32>
    %150 = vector.shape_cast %149 : vector<1x1x32xf32> to vector<1x32xf32>
    %151 = vector.broadcast %150 : vector<1x32xf32> to vector<16x32xf32>
    %152 = arith.addf %147, %151 : vector<16x32xf32>
    %153 = arith.index_cast %c0_i32 : i32 to index
    %c0_88 = arith.constant 0 : index
    %c0_89 = arith.constant 0 : index
    %154 = vector.load %arg29[%153, %c0_88, %c0_89] : memref<1x2x32xf32, #tpu.memory_space<vmem>>, vector<1x2x32xf32>
    %155 = vector.shape_cast %154 : vector<1x2x32xf32> to vector<2x32xf32>
    %156 = arith.addf %61, %152 : vector<16x32xf32>
    %157 = vector.extract_strided_slice %155 {offsets = [0, 0], sizes = [1, 32], strides = [1, 1]} : vector<2x32xf32> to vector<1x32xf32>
    %158 = vector.extract_strided_slice %155 {offsets = [1, 0], sizes = [1, 32], strides = [1, 1]} : vector<2x32xf32> to vector<1x32xf32>
    %cst_90 = arith.constant dense<0.000000e+00> : vector<16xf32>
    %159 = vector.multi_reduction <add>, %156, %cst_90 [1] : vector<16x32xf32> to vector<16xf32>
    %160 = vector.shape_cast %159 : vector<16xf32> to vector<16x1xf32>
    %cst_91 = arith.constant 3.200000e+01 : f32
    %161 = vector.broadcast %cst_91 : f32 to vector<16x1xf32>
    %162 = arith.divf %160, %161 : vector<16x1xf32>
    %163 = vector.broadcast %162 : vector<16x1xf32> to vector<16x32xf32>
    %164 = arith.subf %156, %163 : vector<16x32xf32>
    %165 = arith.mulf %164, %164 : vector<16x32xf32>
    %cst_92 = arith.constant dense<0.000000e+00> : vector<16xf32>
    %166 = vector.multi_reduction <add>, %165, %cst_92 [1] : vector<16x32xf32> to vector<16xf32>
    %167 = vector.shape_cast %166 : vector<16xf32> to vector<16x1xf32>
    %cst_93 = arith.constant 3.200000e+01 : f32
    %168 = vector.broadcast %cst_93 : f32 to vector<16x1xf32>
    %169 = arith.divf %167, %168 : vector<16x1xf32>
    %170 = vector.broadcast %162 : vector<16x1xf32> to vector<16x32xf32>
    %171 = arith.subf %156, %170 : vector<16x32xf32>
    %cst_94 = arith.constant 9.99999974E-6 : f32
    %172 = vector.broadcast %cst_94 : f32 to vector<16x1xf32>
    %173 = arith.addf %169, %172 : vector<16x1xf32>
    %174 = math.rsqrt %173 : vector<16x1xf32>
    %175 = vector.broadcast %174 : vector<16x1xf32> to vector<16x32xf32>
    %176 = arith.mulf %171, %175 : vector<16x32xf32>
    %177 = vector.broadcast %157 : vector<1x32xf32> to vector<16x32xf32>
    %178 = arith.mulf %176, %177 : vector<16x32xf32>
    %179 = vector.broadcast %158 : vector<1x32xf32> to vector<16x32xf32>
    %180 = arith.addf %178, %179 : vector<16x32xf32>
    %181 = arith.index_cast %c0_i32 : i32 to index
    %c0_95 = arith.constant 0 : index
    %c0_96 = arith.constant 0 : index
    %182 = vector.load %arg25[%181, %c0_95, %c0_96] : memref<1x32x64xf32, #tpu.memory_space<vmem>>, vector<1x32x64xf32>
    %183 = vector.shape_cast %182 : vector<1x32x64xf32> to vector<32x64xf32>
    %cst_97 = arith.constant dense<0.000000e+00> : vector<16x64xf32>
    %184 = tpu.matmul %180, %183, %cst_97 {dimension_numbers = #tpu.dot_dimension_numbers<[1], [0], [0], [1], [0, 0, 1, 1], [], []>} : vector<16x32xf32>, vector<32x64xf32>, vector<16x64xf32> -> vector<16x64xf32>
    %185 = arith.index_cast %c0_i32 : i32 to index
    %c0_98 = arith.constant 0 : index
    %c0_99 = arith.constant 0 : index
    %186 = vector.load %arg26[%185, %c0_98, %c0_99] : memref<1x1x64xf32, #tpu.memory_space<vmem>>, vector<1x1x64xf32>
    %187 = vector.shape_cast %186 : vector<1x1x64xf32> to vector<1x64xf32>
    %188 = vector.broadcast %187 : vector<1x64xf32> to vector<16x64xf32>
    %189 = arith.addf %184, %188 : vector<16x64xf32>
    %cst_100 = arith.constant 0.000000e+00 : f32
    %190 = vector.broadcast %cst_100 : f32 to vector<16x64xf32>
    %191 = arith.maximumf %189, %190 : vector<16x64xf32>
    %192 = arith.index_cast %c0_i32 : i32 to index
    %c0_101 = arith.constant 0 : index
    %c0_102 = arith.constant 0 : index
    %193 = vector.load %arg27[%192, %c0_101, %c0_102] : memref<1x64x32xf32, #tpu.memory_space<vmem>>, vector<1x64x32xf32>
    %194 = vector.shape_cast %193 : vector<1x64x32xf32> to vector<64x32xf32>
    %cst_103 = arith.constant dense<0.000000e+00> : vector<16x32xf32>
    %195 = tpu.matmul %191, %194, %cst_103 {dimension_numbers = #tpu.dot_dimension_numbers<[1], [0], [0], [1], [0, 0, 1, 1], [], []>} : vector<16x64xf32>, vector<64x32xf32>, vector<16x32xf32> -> vector<16x32xf32>
    %196 = arith.index_cast %c0_i32 : i32 to index
    %c0_104 = arith.constant 0 : index
    %c0_105 = arith.constant 0 : index
    %197 = vector.load %arg28[%196, %c0_104, %c0_105] : memref<1x1x32xf32, #tpu.memory_space<vmem>>, vector<1x1x32xf32>
    %198 = vector.shape_cast %197 : vector<1x1x32xf32> to vector<1x32xf32>
    %199 = vector.broadcast %198 : vector<1x32xf32> to vector<16x32xf32>
    %200 = arith.addf %195, %199 : vector<16x32xf32>
    %201 = arith.index_cast %c0_i32 : i32 to index
    %c0_106 = arith.constant 0 : index
    %c0_107 = arith.constant 0 : index
    %202 = vector.load %arg30[%201, %c0_106, %c0_107] : memref<1x2x32xf32, #tpu.memory_space<vmem>>, vector<1x2x32xf32>
    %203 = vector.shape_cast %202 : vector<1x2x32xf32> to vector<2x32xf32>
    %204 = arith.addf %180, %200 : vector<16x32xf32>
    %205 = vector.extract_strided_slice %203 {offsets = [0, 0], sizes = [1, 32], strides = [1, 1]} : vector<2x32xf32> to vector<1x32xf32>
    %206 = vector.extract_strided_slice %203 {offsets = [1, 0], sizes = [1, 32], strides = [1, 1]} : vector<2x32xf32> to vector<1x32xf32>
    %cst_108 = arith.constant dense<0.000000e+00> : vector<16xf32>
    %207 = vector.multi_reduction <add>, %204, %cst_108 [1] : vector<16x32xf32> to vector<16xf32>
    %208 = vector.shape_cast %207 : vector<16xf32> to vector<16x1xf32>
    %cst_109 = arith.constant 3.200000e+01 : f32
    %209 = vector.broadcast %cst_109 : f32 to vector<16x1xf32>
    %210 = arith.divf %208, %209 : vector<16x1xf32>
    %211 = vector.broadcast %210 : vector<16x1xf32> to vector<16x32xf32>
    %212 = arith.subf %204, %211 : vector<16x32xf32>
    %213 = arith.mulf %212, %212 : vector<16x32xf32>
    %cst_110 = arith.constant dense<0.000000e+00> : vector<16xf32>
    %214 = vector.multi_reduction <add>, %213, %cst_110 [1] : vector<16x32xf32> to vector<16xf32>
    %215 = vector.shape_cast %214 : vector<16xf32> to vector<16x1xf32>
    %cst_111 = arith.constant 3.200000e+01 : f32
    %216 = vector.broadcast %cst_111 : f32 to vector<16x1xf32>
    %217 = arith.divf %215, %216 : vector<16x1xf32>
    %218 = vector.broadcast %210 : vector<16x1xf32> to vector<16x32xf32>
    %219 = arith.subf %204, %218 : vector<16x32xf32>
    %cst_112 = arith.constant 9.99999974E-6 : f32
    %220 = vector.broadcast %cst_112 : f32 to vector<16x1xf32>
    %221 = arith.addf %217, %220 : vector<16x1xf32>
    %222 = math.rsqrt %221 : vector<16x1xf32>
    %223 = vector.broadcast %222 : vector<16x1xf32> to vector<16x32xf32>
    %224 = arith.mulf %219, %223 : vector<16x32xf32>
    %225 = vector.broadcast %205 : vector<1x32xf32> to vector<16x32xf32>
    %226 = arith.mulf %224, %225 : vector<16x32xf32>
    %227 = vector.broadcast %206 : vector<1x32xf32> to vector<16x32xf32>
    %228 = arith.addf %226, %227 : vector<16x32xf32>
    %c1_i32_113 = arith.constant 1 : i32
    %c0_114 = arith.constant 0 : index
    %c0_115 = arith.constant 0 : index
    %229 = vector.load %arg31[%c0_114, %c0_115] : memref<2x32xf32, #tpu.memory_space<vmem>>, vector<1x32xf32>
    %c1_116 = arith.constant 1 : index
    %c0_117 = arith.constant 0 : index
    %230 = vector.load %arg31[%c1_116, %c0_117] : memref<2x32xf32, #tpu.memory_space<vmem>>, vector<1x32xf32>
    %cst_118 = arith.constant dense<0.000000e+00> : vector<16xf32>
    %231 = vector.multi_reduction <add>, %228, %cst_118 [1] : vector<16x32xf32> to vector<16xf32>
    %232 = vector.shape_cast %231 : vector<16xf32> to vector<16x1xf32>
    %cst_119 = arith.constant 3.200000e+01 : f32
    %233 = vector.broadcast %cst_119 : f32 to vector<16x1xf32>
    %234 = arith.divf %232, %233 : vector<16x1xf32>
    %235 = vector.broadcast %234 : vector<16x1xf32> to vector<16x32xf32>
    %236 = arith.subf %228, %235 : vector<16x32xf32>
    %237 = arith.mulf %236, %236 : vector<16x32xf32>
    %cst_120 = arith.constant dense<0.000000e+00> : vector<16xf32>
    %238 = vector.multi_reduction <add>, %237, %cst_120 [1] : vector<16x32xf32> to vector<16xf32>
    %239 = vector.shape_cast %238 : vector<16xf32> to vector<16x1xf32>
    %cst_121 = arith.constant 3.200000e+01 : f32
    %240 = vector.broadcast %cst_121 : f32 to vector<16x1xf32>
    %241 = arith.divf %239, %240 : vector<16x1xf32>
    %242 = vector.broadcast %234 : vector<16x1xf32> to vector<16x32xf32>
    %243 = arith.subf %228, %242 : vector<16x32xf32>
    %cst_122 = arith.constant 9.99999974E-6 : f32
    %244 = vector.broadcast %cst_122 : f32 to vector<16x1xf32>
    %245 = arith.addf %241, %244 : vector<16x1xf32>
    %246 = math.rsqrt %245 : vector<16x1xf32>
    %247 = vector.broadcast %246 : vector<16x1xf32> to vector<16x32xf32>
    %248 = arith.mulf %243, %247 : vector<16x32xf32>
    %249 = vector.broadcast %229 : vector<1x32xf32> to vector<16x32xf32>
    %250 = arith.mulf %248, %249 : vector<16x32xf32>
    %251 = vector.broadcast %230 : vector<1x32xf32> to vector<16x32xf32>
    %252 = arith.addf %250, %251 : vector<16x32xf32>
    %c0_123 = arith.constant 0 : index
    %c0_124 = arith.constant 0 : index
    %c0_125 = arith.constant 0 : index
    %253 = vector.load %arg6[%c0_123, %c0_124, %c0_125] : memref<1x16x4xf32, #tpu.memory_space<vmem>>, vector<1x16x4xf32>
    %254 = vector.shape_cast %253 : vector<1x16x4xf32> to vector<16x4xf32>
    %c1_i32_126 = arith.constant 1 : i32
    %255 = tpu.dynamic_rotate %254 by %c1_i32_126 dim 0 : vector<16x4xf32>, i32 -> vector<16x4xf32>
    %c15_i32_127 = arith.constant 15 : i32
    %256 = tpu.dynamic_rotate %254 by %c15_i32_127 dim 0 : vector<16x4xf32>, i32 -> vector<16x4xf32>
    %c0_128 = arith.constant 0 : index
    %c0_129 = arith.constant 0 : index
    %c0_130 = arith.constant 0 : index
    %257 = vector.load %arg32[%c0_128, %c0_129, %c0_130] : memref<3x4x32xf32, #tpu.memory_space<vmem>>, vector<1x4x32xf32>
    %258 = vector.shape_cast %257 : vector<1x4x32xf32> to vector<4x32xf32>
    %cst_131 = arith.constant dense<0.000000e+00> : vector<16x32xf32>
    %259 = tpu.matmul %255, %258, %cst_131 {dimension_numbers = #tpu.dot_dimension_numbers<[1], [0], [0], [1], [0, 0, 1, 1], [], []>} : vector<16x4xf32>, vector<4x32xf32>, vector<16x32xf32> -> vector<16x32xf32>
    %c1_132 = arith.constant 1 : index
    %c0_133 = arith.constant 0 : index
    %c0_134 = arith.constant 0 : index
    %260 = vector.load %arg32[%c1_132, %c0_133, %c0_134] : memref<3x4x32xf32, #tpu.memory_space<vmem>>, vector<1x4x32xf32>
    %261 = vector.shape_cast %260 : vector<1x4x32xf32> to vector<4x32xf32>
    %cst_135 = arith.constant dense<0.000000e+00> : vector<16x32xf32>
    %262 = tpu.matmul %254, %261, %cst_135 {dimension_numbers = #tpu.dot_dimension_numbers<[1], [0], [0], [1], [0, 0, 1, 1], [], []>} : vector<16x4xf32>, vector<4x32xf32>, vector<16x32xf32> -> vector<16x32xf32>
    %263 = arith.addf %259, %262 : vector<16x32xf32>
    %c2_136 = arith.constant 2 : index
    %c0_137 = arith.constant 0 : index
    %c0_138 = arith.constant 0 : index
    %264 = vector.load %arg32[%c2_136, %c0_137, %c0_138] : memref<3x4x32xf32, #tpu.memory_space<vmem>>, vector<1x4x32xf32>
    %265 = vector.shape_cast %264 : vector<1x4x32xf32> to vector<4x32xf32>
    %cst_139 = arith.constant dense<0.000000e+00> : vector<16x32xf32>
    %266 = tpu.matmul %256, %265, %cst_139 {dimension_numbers = #tpu.dot_dimension_numbers<[1], [0], [0], [1], [0, 0, 1, 1], [], []>} : vector<16x4xf32>, vector<4x32xf32>, vector<16x32xf32> -> vector<16x32xf32>
    %267 = arith.addf %263, %266 : vector<16x32xf32>
    %c0_140 = arith.constant 0 : index
    %c0_141 = arith.constant 0 : index
    %268 = vector.load %arg33[%c0_140, %c0_141] : memref<16x32xf32, #tpu.memory_space<vmem>>, vector<16x32xf32>
    %269 = arith.addf %267, %268 : vector<16x32xf32>
    %270 = tpu.iota {dimensions = array<i32: 0>} : vector<16x16xi32>
    %271 = tpu.iota {dimensions = array<i32: 1>} : vector<16x16xi32>
    %272 = arith.cmpi sgt, %271, %270 : vector<16x16xi32>
    %c0_i32_142 = arith.constant 0 : i32
    %273 = arith.index_cast %c0_i32_142 : i32 to index
    %c0_143 = arith.constant 0 : index
    %c0_144 = arith.constant 0 : index
    %274 = vector.load %arg34[%273, %c0_143, %c0_144] : memref<1x32x96xf32, #tpu.memory_space<vmem>>, vector<1x32x96xf32>
    %275 = vector.shape_cast %274 : vector<1x32x96xf32> to vector<32x96xf32>
    %cst_145 = arith.constant dense<0.000000e+00> : vector<16x96xf32>
    %276 = tpu.matmul %269, %275, %cst_145 {dimension_numbers = #tpu.dot_dimension_numbers<[1], [0], [0], [1], [0, 0, 1, 1], [], []>} : vector<16x32xf32>, vector<32x96xf32>, vector<16x96xf32> -> vector<16x96xf32>
    %277 = arith.index_cast %c0_i32_142 : i32 to index
    %c0_146 = arith.constant 0 : index
    %c0_147 = arith.constant 0 : index
    %278 = vector.load %arg35[%277, %c0_146, %c0_147] : memref<1x1x96xf32, #tpu.memory_space<vmem>>, vector<1x1x96xf32>
    %279 = vector.shape_cast %278 : vector<1x1x96xf32> to vector<1x96xf32>
    %280 = vector.broadcast %279 : vector<1x96xf32> to vector<16x96xf32>
    %281 = arith.addf %276, %280 : vector<16x96xf32>
    %282 = vector.extract_strided_slice %281 {offsets = [0, 0], sizes = [16, 8], strides = [1, 1]} : vector<16x96xf32> to vector<16x8xf32>
    %283 = vector.extract_strided_slice %281 {offsets = [0, 32], sizes = [16, 8], strides = [1, 1]} : vector<16x96xf32> to vector<16x8xf32>
    %284 = vector.extract_strided_slice %281 {offsets = [0, 64], sizes = [16, 8], strides = [1, 1]} : vector<16x96xf32> to vector<16x8xf32>
    %cst_148 = arith.constant dense<0.000000e+00> : vector<16x16xf32>
    %285 = tpu.matmul %282, %283, %cst_148 {dimension_numbers = #tpu.dot_dimension_numbers<[1], [1], [0], [0], [0, 0, 1, 0], [], []>} : vector<16x8xf32>, vector<16x8xf32>, vector<16x16xf32> -> vector<16x16xf32>
    %286 = vector.broadcast %44 : vector<1x1xf32> to vector<16x16xf32>
    %287 = arith.mulf %285, %286 : vector<16x16xf32>
    %cst_149 = arith.constant -1.000000e+30 : f32
    %288 = vector.broadcast %cst_149 : f32 to vector<16x16xf32>
    %289 = arith.select %272, %288, %287 : vector<16x16xi1>, vector<16x16xf32>
    %cst_150 = arith.constant dense<0xFF800000> : vector<16xf32>
    %290 = vector.multi_reduction <maximumf>, %289, %cst_150 [1] : vector<16x16xf32> to vector<16xf32>
    %291 = vector.shape_cast %290 : vector<16xf32> to vector<16x1xf32>
    %292 = vector.broadcast %291 : vector<16x1xf32> to vector<16x16xf32>
    %293 = arith.subf %289, %292 : vector<16x16xf32>
    %294 = math.exp %293 : vector<16x16xf32>
    %cst_151 = arith.constant dense<0.000000e+00> : vector<16xf32>
    %295 = vector.multi_reduction <add>, %294, %cst_151 [1] : vector<16x16xf32> to vector<16xf32>
    %296 = vector.shape_cast %295 : vector<16xf32> to vector<16x1xf32>
    %297 = vector.broadcast %296 : vector<16x1xf32> to vector<16x16xf32>
    %298 = arith.divf %294, %297 : vector<16x16xf32>
    %cst_152 = arith.constant dense<0.000000e+00> : vector<16x8xf32>
    %299 = tpu.matmul %298, %284, %cst_152 {dimension_numbers = #tpu.dot_dimension_numbers<[1], [0], [0], [1], [0, 0, 1, 1], [], []>} : vector<16x16xf32>, vector<16x8xf32>, vector<16x8xf32> -> vector<16x8xf32>
    %300 = vector.extract_strided_slice %281 {offsets = [0, 8], sizes = [16, 8], strides = [1, 1]} : vector<16x96xf32> to vector<16x8xf32>
    %301 = vector.extract_strided_slice %281 {offsets = [0, 40], sizes = [16, 8], strides = [1, 1]} : vector<16x96xf32> to vector<16x8xf32>
    %302 = vector.extract_strided_slice %281 {offsets = [0, 72], sizes = [16, 8], strides = [1, 1]} : vector<16x96xf32> to vector<16x8xf32>
    %cst_153 = arith.constant dense<0.000000e+00> : vector<16x16xf32>
    %303 = tpu.matmul %300, %301, %cst_153 {dimension_numbers = #tpu.dot_dimension_numbers<[1], [1], [0], [0], [0, 0, 1, 0], [], []>} : vector<16x8xf32>, vector<16x8xf32>, vector<16x16xf32> -> vector<16x16xf32>
    %304 = vector.broadcast %44 : vector<1x1xf32> to vector<16x16xf32>
    %305 = arith.mulf %303, %304 : vector<16x16xf32>
    %cst_154 = arith.constant -1.000000e+30 : f32
    %306 = vector.broadcast %cst_154 : f32 to vector<16x16xf32>
    %307 = arith.select %272, %306, %305 : vector<16x16xi1>, vector<16x16xf32>
    %cst_155 = arith.constant dense<0xFF800000> : vector<16xf32>
    %308 = vector.multi_reduction <maximumf>, %307, %cst_155 [1] : vector<16x16xf32> to vector<16xf32>
    %309 = vector.shape_cast %308 : vector<16xf32> to vector<16x1xf32>
    %310 = vector.broadcast %309 : vector<16x1xf32> to vector<16x16xf32>
    %311 = arith.subf %307, %310 : vector<16x16xf32>
    %312 = math.exp %311 : vector<16x16xf32>
    %cst_156 = arith.constant dense<0.000000e+00> : vector<16xf32>
    %313 = vector.multi_reduction <add>, %312, %cst_156 [1] : vector<16x16xf32> to vector<16xf32>
    %314 = vector.shape_cast %313 : vector<16xf32> to vector<16x1xf32>
    %315 = vector.broadcast %314 : vector<16x1xf32> to vector<16x16xf32>
    %316 = arith.divf %312, %315 : vector<16x16xf32>
    %cst_157 = arith.constant dense<0.000000e+00> : vector<16x8xf32>
    %317 = tpu.matmul %316, %302, %cst_157 {dimension_numbers = #tpu.dot_dimension_numbers<[1], [0], [0], [1], [0, 0, 1, 1], [], []>} : vector<16x16xf32>, vector<16x8xf32>, vector<16x8xf32> -> vector<16x8xf32>
    %318 = vector.extract_strided_slice %281 {offsets = [0, 16], sizes = [16, 8], strides = [1, 1]} : vector<16x96xf32> to vector<16x8xf32>
    %319 = vector.extract_strided_slice %281 {offsets = [0, 48], sizes = [16, 8], strides = [1, 1]} : vector<16x96xf32> to vector<16x8xf32>
    %320 = vector.extract_strided_slice %281 {offsets = [0, 80], sizes = [16, 8], strides = [1, 1]} : vector<16x96xf32> to vector<16x8xf32>
    %cst_158 = arith.constant dense<0.000000e+00> : vector<16x16xf32>
    %321 = tpu.matmul %318, %319, %cst_158 {dimension_numbers = #tpu.dot_dimension_numbers<[1], [1], [0], [0], [0, 0, 1, 0], [], []>} : vector<16x8xf32>, vector<16x8xf32>, vector<16x16xf32> -> vector<16x16xf32>
    %322 = vector.broadcast %44 : vector<1x1xf32> to vector<16x16xf32>
    %323 = arith.mulf %321, %322 : vector<16x16xf32>
    %cst_159 = arith.constant -1.000000e+30 : f32
    %324 = vector.broadcast %cst_159 : f32 to vector<16x16xf32>
    %325 = arith.select %272, %324, %323 : vector<16x16xi1>, vector<16x16xf32>
    %cst_160 = arith.constant dense<0xFF800000> : vector<16xf32>
    %326 = vector.multi_reduction <maximumf>, %325, %cst_160 [1] : vector<16x16xf32> to vector<16xf32>
    %327 = vector.shape_cast %326 : vector<16xf32> to vector<16x1xf32>
    %328 = vector.broadcast %327 : vector<16x1xf32> to vector<16x16xf32>
    %329 = arith.subf %325, %328 : vector<16x16xf32>
    %330 = math.exp %329 : vector<16x16xf32>
    %cst_161 = arith.constant dense<0.000000e+00> : vector<16xf32>
    %331 = vector.multi_reduction <add>, %330, %cst_161 [1] : vector<16x16xf32> to vector<16xf32>
    %332 = vector.shape_cast %331 : vector<16xf32> to vector<16x1xf32>
    %333 = vector.broadcast %332 : vector<16x1xf32> to vector<16x16xf32>
    %334 = arith.divf %330, %333 : vector<16x16xf32>
    %cst_162 = arith.constant dense<0.000000e+00> : vector<16x8xf32>
    %335 = tpu.matmul %334, %320, %cst_162 {dimension_numbers = #tpu.dot_dimension_numbers<[1], [0], [0], [1], [0, 0, 1, 1], [], []>} : vector<16x16xf32>, vector<16x8xf32>, vector<16x8xf32> -> vector<16x8xf32>
    %336 = vector.extract_strided_slice %281 {offsets = [0, 24], sizes = [16, 8], strides = [1, 1]} : vector<16x96xf32> to vector<16x8xf32>
    %337 = vector.extract_strided_slice %281 {offsets = [0, 56], sizes = [16, 8], strides = [1, 1]} : vector<16x96xf32> to vector<16x8xf32>
    %338 = vector.extract_strided_slice %281 {offsets = [0, 88], sizes = [16, 8], strides = [1, 1]} : vector<16x96xf32> to vector<16x8xf32>
    %cst_163 = arith.constant dense<0.000000e+00> : vector<16x16xf32>
    %339 = tpu.matmul %336, %337, %cst_163 {dimension_numbers = #tpu.dot_dimension_numbers<[1], [1], [0], [0], [0, 0, 1, 0], [], []>} : vector<16x8xf32>, vector<16x8xf32>, vector<16x16xf32> -> vector<16x16xf32>
    %340 = vector.broadcast %44 : vector<1x1xf32> to vector<16x16xf32>
    %341 = arith.mulf %339, %340 : vector<16x16xf32>
    %cst_164 = arith.constant -1.000000e+30 : f32
    %342 = vector.broadcast %cst_164 : f32 to vector<16x16xf32>
    %343 = arith.select %272, %342, %341 : vector<16x16xi1>, vector<16x16xf32>
    %cst_165 = arith.constant dense<0xFF800000> : vector<16xf32>
    %344 = vector.multi_reduction <maximumf>, %343, %cst_165 [1] : vector<16x16xf32> to vector<16xf32>
    %345 = vector.shape_cast %344 : vector<16xf32> to vector<16x1xf32>
    %346 = vector.broadcast %345 : vector<16x1xf32> to vector<16x16xf32>
    %347 = arith.subf %343, %346 : vector<16x16xf32>
    %348 = math.exp %347 : vector<16x16xf32>
    %cst_166 = arith.constant dense<0.000000e+00> : vector<16xf32>
    %349 = vector.multi_reduction <add>, %348, %cst_166 [1] : vector<16x16xf32> to vector<16xf32>
    %350 = vector.shape_cast %349 : vector<16xf32> to vector<16x1xf32>
    %351 = vector.broadcast %350 : vector<16x1xf32> to vector<16x16xf32>
    %352 = arith.divf %348, %351 : vector<16x16xf32>
    %cst_167 = arith.constant dense<0.000000e+00> : vector<16x8xf32>
    %353 = tpu.matmul %352, %338, %cst_167 {dimension_numbers = #tpu.dot_dimension_numbers<[1], [0], [0], [1], [0, 0, 1, 1], [], []>} : vector<16x16xf32>, vector<16x8xf32>, vector<16x8xf32> -> vector<16x8xf32>
    %354 = tpu.concatenate %299, %317, %335, %353 in 1 : vector<16x8xf32>, vector<16x8xf32>, vector<16x8xf32>, vector<16x8xf32> -> vector<16x32xf32>
    %355 = arith.index_cast %c0_i32_142 : i32 to index
    %c0_168 = arith.constant 0 : index
    %c0_169 = arith.constant 0 : index
    %356 = vector.load %arg36[%355, %c0_168, %c0_169] : memref<1x32x32xf32, #tpu.memory_space<vmem>>, vector<1x32x32xf32>
    %357 = vector.shape_cast %356 : vector<1x32x32xf32> to vector<32x32xf32>
    %cst_170 = arith.constant dense<0.000000e+00> : vector<16x32xf32>
    %358 = tpu.matmul %354, %357, %cst_170 {dimension_numbers = #tpu.dot_dimension_numbers<[1], [0], [0], [1], [0, 0, 1, 1], [], []>} : vector<16x32xf32>, vector<32x32xf32>, vector<16x32xf32> -> vector<16x32xf32>
    %359 = arith.index_cast %c0_i32_142 : i32 to index
    %c0_171 = arith.constant 0 : index
    %c0_172 = arith.constant 0 : index
    %360 = vector.load %arg37[%359, %c0_171, %c0_172] : memref<1x1x32xf32, #tpu.memory_space<vmem>>, vector<1x1x32xf32>
    %361 = vector.shape_cast %360 : vector<1x1x32xf32> to vector<1x32xf32>
    %362 = vector.broadcast %361 : vector<1x32xf32> to vector<16x32xf32>
    %363 = arith.addf %358, %362 : vector<16x32xf32>
    %364 = arith.index_cast %c0_i32_142 : i32 to index
    %c0_173 = arith.constant 0 : index
    %c0_174 = arith.constant 0 : index
    %365 = vector.load %arg48[%364, %c0_173, %c0_174] : memref<1x2x32xf32, #tpu.memory_space<vmem>>, vector<1x2x32xf32>
    %366 = vector.shape_cast %365 : vector<1x2x32xf32> to vector<2x32xf32>
    %367 = arith.addf %269, %363 : vector<16x32xf32>
    %368 = vector.extract_strided_slice %366 {offsets = [0, 0], sizes = [1, 32], strides = [1, 1]} : vector<2x32xf32> to vector<1x32xf32>
    %369 = vector.extract_strided_slice %366 {offsets = [1, 0], sizes = [1, 32], strides = [1, 1]} : vector<2x32xf32> to vector<1x32xf32>
    %cst_175 = arith.constant dense<0.000000e+00> : vector<16xf32>
    %370 = vector.multi_reduction <add>, %367, %cst_175 [1] : vector<16x32xf32> to vector<16xf32>
    %371 = vector.shape_cast %370 : vector<16xf32> to vector<16x1xf32>
    %cst_176 = arith.constant 3.200000e+01 : f32
    %372 = vector.broadcast %cst_176 : f32 to vector<16x1xf32>
    %373 = arith.divf %371, %372 : vector<16x1xf32>
    %374 = vector.broadcast %373 : vector<16x1xf32> to vector<16x32xf32>
    %375 = arith.subf %367, %374 : vector<16x32xf32>
    %376 = arith.mulf %375, %375 : vector<16x32xf32>
    %cst_177 = arith.constant dense<0.000000e+00> : vector<16xf32>
    %377 = vector.multi_reduction <add>, %376, %cst_177 [1] : vector<16x32xf32> to vector<16xf32>
    %378 = vector.shape_cast %377 : vector<16xf32> to vector<16x1xf32>
    %cst_178 = arith.constant 3.200000e+01 : f32
    %379 = vector.broadcast %cst_178 : f32 to vector<16x1xf32>
    %380 = arith.divf %378, %379 : vector<16x1xf32>
    %381 = vector.broadcast %373 : vector<16x1xf32> to vector<16x32xf32>
    %382 = arith.subf %367, %381 : vector<16x32xf32>
    %cst_179 = arith.constant 9.99999974E-6 : f32
    %383 = vector.broadcast %cst_179 : f32 to vector<16x1xf32>
    %384 = arith.addf %380, %383 : vector<16x1xf32>
    %385 = math.rsqrt %384 : vector<16x1xf32>
    %386 = vector.broadcast %385 : vector<16x1xf32> to vector<16x32xf32>
    %387 = arith.mulf %382, %386 : vector<16x32xf32>
    %388 = vector.broadcast %368 : vector<1x32xf32> to vector<16x32xf32>
    %389 = arith.mulf %387, %388 : vector<16x32xf32>
    %390 = vector.broadcast %369 : vector<1x32xf32> to vector<16x32xf32>
    %391 = arith.addf %389, %390 : vector<16x32xf32>
    %392 = arith.index_cast %c0_i32_142 : i32 to index
    %c0_180 = arith.constant 0 : index
    %c0_181 = arith.constant 0 : index
    %393 = vector.load %arg38[%392, %c0_180, %c0_181] : memref<1x32x32xf32, #tpu.memory_space<vmem>>, vector<1x32x32xf32>
    %394 = vector.shape_cast %393 : vector<1x32x32xf32> to vector<32x32xf32>
    %cst_182 = arith.constant dense<0.000000e+00> : vector<16x32xf32>
    %395 = tpu.matmul %391, %394, %cst_182 {dimension_numbers = #tpu.dot_dimension_numbers<[1], [0], [0], [1], [0, 0, 1, 1], [], []>} : vector<16x32xf32>, vector<32x32xf32>, vector<16x32xf32> -> vector<16x32xf32>
    %396 = arith.index_cast %c0_i32_142 : i32 to index
    %c0_183 = arith.constant 0 : index
    %c0_184 = arith.constant 0 : index
    %397 = vector.load %arg39[%396, %c0_183, %c0_184] : memref<1x1x32xf32, #tpu.memory_space<vmem>>, vector<1x1x32xf32>
    %398 = vector.shape_cast %397 : vector<1x1x32xf32> to vector<1x32xf32>
    %399 = vector.broadcast %398 : vector<1x32xf32> to vector<16x32xf32>
    %400 = arith.addf %395, %399 : vector<16x32xf32>
    %401 = arith.index_cast %c0_i32_142 : i32 to index
    %c0_185 = arith.constant 0 : index
    %c0_186 = arith.constant 0 : index
    %402 = vector.load %arg40[%401, %c0_185, %c0_186] : memref<1x32x64xf32, #tpu.memory_space<vmem>>, vector<1x32x64xf32>
    %403 = vector.shape_cast %402 : vector<1x32x64xf32> to vector<32x64xf32>
    %cst_187 = arith.constant dense<0.000000e+00> : vector<16x64xf32>
    %404 = tpu.matmul %252, %403, %cst_187 {dimension_numbers = #tpu.dot_dimension_numbers<[1], [0], [0], [1], [0, 0, 1, 1], [], []>} : vector<16x32xf32>, vector<32x64xf32>, vector<16x64xf32> -> vector<16x64xf32>
    %405 = arith.index_cast %c0_i32_142 : i32 to index
    %c0_188 = arith.constant 0 : index
    %c0_189 = arith.constant 0 : index
    %406 = vector.load %arg41[%405, %c0_188, %c0_189] : memref<1x1x64xf32, #tpu.memory_space<vmem>>, vector<1x1x64xf32>
    %407 = vector.shape_cast %406 : vector<1x1x64xf32> to vector<1x64xf32>
    %408 = vector.broadcast %407 : vector<1x64xf32> to vector<16x64xf32>
    %409 = arith.addf %404, %408 : vector<16x64xf32>
    %410 = vector.extract_strided_slice %400 {offsets = [0, 0], sizes = [16, 8], strides = [1, 1]} : vector<16x32xf32> to vector<16x8xf32>
    %411 = vector.extract_strided_slice %409 {offsets = [0, 0], sizes = [16, 8], strides = [1, 1]} : vector<16x64xf32> to vector<16x8xf32>
    %412 = vector.extract_strided_slice %409 {offsets = [0, 32], sizes = [16, 8], strides = [1, 1]} : vector<16x64xf32> to vector<16x8xf32>
    %cst_190 = arith.constant dense<0.000000e+00> : vector<16x16xf32>
    %413 = tpu.matmul %410, %411, %cst_190 {dimension_numbers = #tpu.dot_dimension_numbers<[1], [1], [0], [0], [0, 0, 1, 0], [], []>} : vector<16x8xf32>, vector<16x8xf32>, vector<16x16xf32> -> vector<16x16xf32>
    %414 = vector.broadcast %44 : vector<1x1xf32> to vector<16x16xf32>
    %415 = arith.mulf %413, %414 : vector<16x16xf32>
    %416 = vector.broadcast %42 : vector<1x16xf32> to vector<16x16xf32>
    %417 = arith.addf %415, %416 : vector<16x16xf32>
    %cst_191 = arith.constant dense<0xFF800000> : vector<16xf32>
    %418 = vector.multi_reduction <maximumf>, %417, %cst_191 [1] : vector<16x16xf32> to vector<16xf32>
    %419 = vector.shape_cast %418 : vector<16xf32> to vector<16x1xf32>
    %420 = vector.broadcast %419 : vector<16x1xf32> to vector<16x16xf32>
    %421 = arith.subf %417, %420 : vector<16x16xf32>
    %422 = math.exp %421 : vector<16x16xf32>
    %cst_192 = arith.constant dense<0.000000e+00> : vector<16xf32>
    %423 = vector.multi_reduction <add>, %422, %cst_192 [1] : vector<16x16xf32> to vector<16xf32>
    %424 = vector.shape_cast %423 : vector<16xf32> to vector<16x1xf32>
    %425 = vector.broadcast %424 : vector<16x1xf32> to vector<16x16xf32>
    %426 = arith.divf %422, %425 : vector<16x16xf32>
    %cst_193 = arith.constant dense<0.000000e+00> : vector<16x8xf32>
    %427 = tpu.matmul %426, %412, %cst_193 {dimension_numbers = #tpu.dot_dimension_numbers<[1], [0], [0], [1], [0, 0, 1, 1], [], []>} : vector<16x16xf32>, vector<16x8xf32>, vector<16x8xf32> -> vector<16x8xf32>
    %428 = vector.extract_strided_slice %400 {offsets = [0, 8], sizes = [16, 8], strides = [1, 1]} : vector<16x32xf32> to vector<16x8xf32>
    %429 = vector.extract_strided_slice %409 {offsets = [0, 8], sizes = [16, 8], strides = [1, 1]} : vector<16x64xf32> to vector<16x8xf32>
    %430 = vector.extract_strided_slice %409 {offsets = [0, 40], sizes = [16, 8], strides = [1, 1]} : vector<16x64xf32> to vector<16x8xf32>
    %cst_194 = arith.constant dense<0.000000e+00> : vector<16x16xf32>
    %431 = tpu.matmul %428, %429, %cst_194 {dimension_numbers = #tpu.dot_dimension_numbers<[1], [1], [0], [0], [0, 0, 1, 0], [], []>} : vector<16x8xf32>, vector<16x8xf32>, vector<16x16xf32> -> vector<16x16xf32>
    %432 = vector.broadcast %44 : vector<1x1xf32> to vector<16x16xf32>
    %433 = arith.mulf %431, %432 : vector<16x16xf32>
    %434 = vector.broadcast %42 : vector<1x16xf32> to vector<16x16xf32>
    %435 = arith.addf %433, %434 : vector<16x16xf32>
    %cst_195 = arith.constant dense<0xFF800000> : vector<16xf32>
    %436 = vector.multi_reduction <maximumf>, %435, %cst_195 [1] : vector<16x16xf32> to vector<16xf32>
    %437 = vector.shape_cast %436 : vector<16xf32> to vector<16x1xf32>
    %438 = vector.broadcast %437 : vector<16x1xf32> to vector<16x16xf32>
    %439 = arith.subf %435, %438 : vector<16x16xf32>
    %440 = math.exp %439 : vector<16x16xf32>
    %cst_196 = arith.constant dense<0.000000e+00> : vector<16xf32>
    %441 = vector.multi_reduction <add>, %440, %cst_196 [1] : vector<16x16xf32> to vector<16xf32>
    %442 = vector.shape_cast %441 : vector<16xf32> to vector<16x1xf32>
    %443 = vector.broadcast %442 : vector<16x1xf32> to vector<16x16xf32>
    %444 = arith.divf %440, %443 : vector<16x16xf32>
    %cst_197 = arith.constant dense<0.000000e+00> : vector<16x8xf32>
    %445 = tpu.matmul %444, %430, %cst_197 {dimension_numbers = #tpu.dot_dimension_numbers<[1], [0], [0], [1], [0, 0, 1, 1], [], []>} : vector<16x16xf32>, vector<16x8xf32>, vector<16x8xf32> -> vector<16x8xf32>
    %446 = vector.extract_strided_slice %400 {offsets = [0, 16], sizes = [16, 8], strides = [1, 1]} : vector<16x32xf32> to vector<16x8xf32>
    %447 = vector.extract_strided_slice %409 {offsets = [0, 16], sizes = [16, 8], strides = [1, 1]} : vector<16x64xf32> to vector<16x8xf32>
    %448 = vector.extract_strided_slice %409 {offsets = [0, 48], sizes = [16, 8], strides = [1, 1]} : vector<16x64xf32> to vector<16x8xf32>
    %cst_198 = arith.constant dense<0.000000e+00> : vector<16x16xf32>
    %449 = tpu.matmul %446, %447, %cst_198 {dimension_numbers = #tpu.dot_dimension_numbers<[1], [1], [0], [0], [0, 0, 1, 0], [], []>} : vector<16x8xf32>, vector<16x8xf32>, vector<16x16xf32> -> vector<16x16xf32>
    %450 = vector.broadcast %44 : vector<1x1xf32> to vector<16x16xf32>
    %451 = arith.mulf %449, %450 : vector<16x16xf32>
    %452 = vector.broadcast %42 : vector<1x16xf32> to vector<16x16xf32>
    %453 = arith.addf %451, %452 : vector<16x16xf32>
    %cst_199 = arith.constant dense<0xFF800000> : vector<16xf32>
    %454 = vector.multi_reduction <maximumf>, %453, %cst_199 [1] : vector<16x16xf32> to vector<16xf32>
    %455 = vector.shape_cast %454 : vector<16xf32> to vector<16x1xf32>
    %456 = vector.broadcast %455 : vector<16x1xf32> to vector<16x16xf32>
    %457 = arith.subf %453, %456 : vector<16x16xf32>
    %458 = math.exp %457 : vector<16x16xf32>
    %cst_200 = arith.constant dense<0.000000e+00> : vector<16xf32>
    %459 = vector.multi_reduction <add>, %458, %cst_200 [1] : vector<16x16xf32> to vector<16xf32>
    %460 = vector.shape_cast %459 : vector<16xf32> to vector<16x1xf32>
    %461 = vector.broadcast %460 : vector<16x1xf32> to vector<16x16xf32>
    %462 = arith.divf %458, %461 : vector<16x16xf32>
    %cst_201 = arith.constant dense<0.000000e+00> : vector<16x8xf32>
    %463 = tpu.matmul %462, %448, %cst_201 {dimension_numbers = #tpu.dot_dimension_numbers<[1], [0], [0], [1], [0, 0, 1, 1], [], []>} : vector<16x16xf32>, vector<16x8xf32>, vector<16x8xf32> -> vector<16x8xf32>
    %464 = vector.extract_strided_slice %400 {offsets = [0, 24], sizes = [16, 8], strides = [1, 1]} : vector<16x32xf32> to vector<16x8xf32>
    %465 = vector.extract_strided_slice %409 {offsets = [0, 24], sizes = [16, 8], strides = [1, 1]} : vector<16x64xf32> to vector<16x8xf32>
    %466 = vector.extract_strided_slice %409 {offsets = [0, 56], sizes = [16, 8], strides = [1, 1]} : vector<16x64xf32> to vector<16x8xf32>
    %cst_202 = arith.constant dense<0.000000e+00> : vector<16x16xf32>
    %467 = tpu.matmul %464, %465, %cst_202 {dimension_numbers = #tpu.dot_dimension_numbers<[1], [1], [0], [0], [0, 0, 1, 0], [], []>} : vector<16x8xf32>, vector<16x8xf32>, vector<16x16xf32> -> vector<16x16xf32>
    %468 = vector.broadcast %44 : vector<1x1xf32> to vector<16x16xf32>
    %469 = arith.mulf %467, %468 : vector<16x16xf32>
    %470 = vector.broadcast %42 : vector<1x16xf32> to vector<16x16xf32>
    %471 = arith.addf %469, %470 : vector<16x16xf32>
    %cst_203 = arith.constant dense<0xFF800000> : vector<16xf32>
    %472 = vector.multi_reduction <maximumf>, %471, %cst_203 [1] : vector<16x16xf32> to vector<16xf32>
    %473 = vector.shape_cast %472 : vector<16xf32> to vector<16x1xf32>
    %474 = vector.broadcast %473 : vector<16x1xf32> to vector<16x16xf32>
    %475 = arith.subf %471, %474 : vector<16x16xf32>
    %476 = math.exp %475 : vector<16x16xf32>
    %cst_204 = arith.constant dense<0.000000e+00> : vector<16xf32>
    %477 = vector.multi_reduction <add>, %476, %cst_204 [1] : vector<16x16xf32> to vector<16xf32>
    %478 = vector.shape_cast %477 : vector<16xf32> to vector<16x1xf32>
    %479 = vector.broadcast %478 : vector<16x1xf32> to vector<16x16xf32>
    %480 = arith.divf %476, %479 : vector<16x16xf32>
    %cst_205 = arith.constant dense<0.000000e+00> : vector<16x8xf32>
    %481 = tpu.matmul %480, %466, %cst_205 {dimension_numbers = #tpu.dot_dimension_numbers<[1], [0], [0], [1], [0, 0, 1, 1], [], []>} : vector<16x16xf32>, vector<16x8xf32>, vector<16x8xf32> -> vector<16x8xf32>
    %482 = tpu.concatenate %427, %445, %463, %481 in 1 : vector<16x8xf32>, vector<16x8xf32>, vector<16x8xf32>, vector<16x8xf32> -> vector<16x32xf32>
    %483 = arith.index_cast %c0_i32_142 : i32 to index
    %c0_206 = arith.constant 0 : index
    %c0_207 = arith.constant 0 : index
    %484 = vector.load %arg42[%483, %c0_206, %c0_207] : memref<1x32x32xf32, #tpu.memory_space<vmem>>, vector<1x32x32xf32>
    %485 = vector.shape_cast %484 : vector<1x32x32xf32> to vector<32x32xf32>
    %cst_208 = arith.constant dense<0.000000e+00> : vector<16x32xf32>
    %486 = tpu.matmul %482, %485, %cst_208 {dimension_numbers = #tpu.dot_dimension_numbers<[1], [0], [0], [1], [0, 0, 1, 1], [], []>} : vector<16x32xf32>, vector<32x32xf32>, vector<16x32xf32> -> vector<16x32xf32>
    %487 = arith.index_cast %c0_i32_142 : i32 to index
    %c0_209 = arith.constant 0 : index
    %c0_210 = arith.constant 0 : index
    %488 = vector.load %arg43[%487, %c0_209, %c0_210] : memref<1x1x32xf32, #tpu.memory_space<vmem>>, vector<1x1x32xf32>
    %489 = vector.shape_cast %488 : vector<1x1x32xf32> to vector<1x32xf32>
    %490 = vector.broadcast %489 : vector<1x32xf32> to vector<16x32xf32>
    %491 = arith.addf %486, %490 : vector<16x32xf32>
    %492 = arith.index_cast %c0_i32_142 : i32 to index
    %c0_211 = arith.constant 0 : index
    %c0_212 = arith.constant 0 : index
    %493 = vector.load %arg49[%492, %c0_211, %c0_212] : memref<1x2x32xf32, #tpu.memory_space<vmem>>, vector<1x2x32xf32>
    %494 = vector.shape_cast %493 : vector<1x2x32xf32> to vector<2x32xf32>
    %495 = arith.addf %391, %491 : vector<16x32xf32>
    %496 = vector.extract_strided_slice %494 {offsets = [0, 0], sizes = [1, 32], strides = [1, 1]} : vector<2x32xf32> to vector<1x32xf32>
    %497 = vector.extract_strided_slice %494 {offsets = [1, 0], sizes = [1, 32], strides = [1, 1]} : vector<2x32xf32> to vector<1x32xf32>
    %cst_213 = arith.constant dense<0.000000e+00> : vector<16xf32>
    %498 = vector.multi_reduction <add>, %495, %cst_213 [1] : vector<16x32xf32> to vector<16xf32>
    %499 = vector.shape_cast %498 : vector<16xf32> to vector<16x1xf32>
    %cst_214 = arith.constant 3.200000e+01 : f32
    %500 = vector.broadcast %cst_214 : f32 to vector<16x1xf32>
    %501 = arith.divf %499, %500 : vector<16x1xf32>
    %502 = vector.broadcast %501 : vector<16x1xf32> to vector<16x32xf32>
    %503 = arith.subf %495, %502 : vector<16x32xf32>
    %504 = arith.mulf %503, %503 : vector<16x32xf32>
    %cst_215 = arith.constant dense<0.000000e+00> : vector<16xf32>
    %505 = vector.multi_reduction <add>, %504, %cst_215 [1] : vector<16x32xf32> to vector<16xf32>
    %506 = vector.shape_cast %505 : vector<16xf32> to vector<16x1xf32>
    %cst_216 = arith.constant 3.200000e+01 : f32
    %507 = vector.broadcast %cst_216 : f32 to vector<16x1xf32>
    %508 = arith.divf %506, %507 : vector<16x1xf32>
    %509 = vector.broadcast %501 : vector<16x1xf32> to vector<16x32xf32>
    %510 = arith.subf %495, %509 : vector<16x32xf32>
    %cst_217 = arith.constant 9.99999974E-6 : f32
    %511 = vector.broadcast %cst_217 : f32 to vector<16x1xf32>
    %512 = arith.addf %508, %511 : vector<16x1xf32>
    %513 = math.rsqrt %512 : vector<16x1xf32>
    %514 = vector.broadcast %513 : vector<16x1xf32> to vector<16x32xf32>
    %515 = arith.mulf %510, %514 : vector<16x32xf32>
    %516 = vector.broadcast %496 : vector<1x32xf32> to vector<16x32xf32>
    %517 = arith.mulf %515, %516 : vector<16x32xf32>
    %518 = vector.broadcast %497 : vector<1x32xf32> to vector<16x32xf32>
    %519 = arith.addf %517, %518 : vector<16x32xf32>
    %520 = arith.index_cast %c0_i32_142 : i32 to index
    %c0_218 = arith.constant 0 : index
    %c0_219 = arith.constant 0 : index
    %521 = vector.load %arg44[%520, %c0_218, %c0_219] : memref<1x32x64xf32, #tpu.memory_space<vmem>>, vector<1x32x64xf32>
    %522 = vector.shape_cast %521 : vector<1x32x64xf32> to vector<32x64xf32>
    %cst_220 = arith.constant dense<0.000000e+00> : vector<16x64xf32>
    %523 = tpu.matmul %519, %522, %cst_220 {dimension_numbers = #tpu.dot_dimension_numbers<[1], [0], [0], [1], [0, 0, 1, 1], [], []>} : vector<16x32xf32>, vector<32x64xf32>, vector<16x64xf32> -> vector<16x64xf32>
    %524 = arith.index_cast %c0_i32_142 : i32 to index
    %c0_221 = arith.constant 0 : index
    %c0_222 = arith.constant 0 : index
    %525 = vector.load %arg45[%524, %c0_221, %c0_222] : memref<1x1x64xf32, #tpu.memory_space<vmem>>, vector<1x1x64xf32>
    %526 = vector.shape_cast %525 : vector<1x1x64xf32> to vector<1x64xf32>
    %527 = vector.broadcast %526 : vector<1x64xf32> to vector<16x64xf32>
    %528 = arith.addf %523, %527 : vector<16x64xf32>
    %cst_223 = arith.constant 0.000000e+00 : f32
    %529 = vector.broadcast %cst_223 : f32 to vector<16x64xf32>
    %530 = arith.maximumf %528, %529 : vector<16x64xf32>
    %531 = arith.index_cast %c0_i32_142 : i32 to index
    %c0_224 = arith.constant 0 : index
    %c0_225 = arith.constant 0 : index
    %532 = vector.load %arg46[%531, %c0_224, %c0_225] : memref<1x64x32xf32, #tpu.memory_space<vmem>>, vector<1x64x32xf32>
    %533 = vector.shape_cast %532 : vector<1x64x32xf32> to vector<64x32xf32>
    %cst_226 = arith.constant dense<0.000000e+00> : vector<16x32xf32>
    %534 = tpu.matmul %530, %533, %cst_226 {dimension_numbers = #tpu.dot_dimension_numbers<[1], [0], [0], [1], [0, 0, 1, 1], [], []>} : vector<16x64xf32>, vector<64x32xf32>, vector<16x32xf32> -> vector<16x32xf32>
    %535 = arith.index_cast %c0_i32_142 : i32 to index
    %c0_227 = arith.constant 0 : index
    %c0_228 = arith.constant 0 : index
    %536 = vector.load %arg47[%535, %c0_227, %c0_228] : memref<1x1x32xf32, #tpu.memory_space<vmem>>, vector<1x1x32xf32>
    %537 = vector.shape_cast %536 : vector<1x1x32xf32> to vector<1x32xf32>
    %538 = vector.broadcast %537 : vector<1x32xf32> to vector<16x32xf32>
    %539 = arith.addf %534, %538 : vector<16x32xf32>
    %540 = arith.index_cast %c0_i32_142 : i32 to index
    %c0_229 = arith.constant 0 : index
    %c0_230 = arith.constant 0 : index
    %541 = vector.load %arg50[%540, %c0_229, %c0_230] : memref<1x2x32xf32, #tpu.memory_space<vmem>>, vector<1x2x32xf32>
    %542 = vector.shape_cast %541 : vector<1x2x32xf32> to vector<2x32xf32>
    %543 = arith.addf %519, %539 : vector<16x32xf32>
    %544 = vector.extract_strided_slice %542 {offsets = [0, 0], sizes = [1, 32], strides = [1, 1]} : vector<2x32xf32> to vector<1x32xf32>
    %545 = vector.extract_strided_slice %542 {offsets = [1, 0], sizes = [1, 32], strides = [1, 1]} : vector<2x32xf32> to vector<1x32xf32>
    %cst_231 = arith.constant dense<0.000000e+00> : vector<16xf32>
    %546 = vector.multi_reduction <add>, %543, %cst_231 [1] : vector<16x32xf32> to vector<16xf32>
    %547 = vector.shape_cast %546 : vector<16xf32> to vector<16x1xf32>
    %cst_232 = arith.constant 3.200000e+01 : f32
    %548 = vector.broadcast %cst_232 : f32 to vector<16x1xf32>
    %549 = arith.divf %547, %548 : vector<16x1xf32>
    %550 = vector.broadcast %549 : vector<16x1xf32> to vector<16x32xf32>
    %551 = arith.subf %543, %550 : vector<16x32xf32>
    %552 = arith.mulf %551, %551 : vector<16x32xf32>
    %cst_233 = arith.constant dense<0.000000e+00> : vector<16xf32>
    %553 = vector.multi_reduction <add>, %552, %cst_233 [1] : vector<16x32xf32> to vector<16xf32>
    %554 = vector.shape_cast %553 : vector<16xf32> to vector<16x1xf32>
    %cst_234 = arith.constant 3.200000e+01 : f32
    %555 = vector.broadcast %cst_234 : f32 to vector<16x1xf32>
    %556 = arith.divf %554, %555 : vector<16x1xf32>
    %557 = vector.broadcast %549 : vector<16x1xf32> to vector<16x32xf32>
    %558 = arith.subf %543, %557 : vector<16x32xf32>
    %cst_235 = arith.constant 9.99999974E-6 : f32
    %559 = vector.broadcast %cst_235 : f32 to vector<16x1xf32>
    %560 = arith.addf %556, %559 : vector<16x1xf32>
    %561 = math.rsqrt %560 : vector<16x1xf32>
    %562 = vector.broadcast %561 : vector<16x1xf32> to vector<16x32xf32>
    %563 = arith.mulf %558, %562 : vector<16x32xf32>
    %564 = vector.broadcast %544 : vector<1x32xf32> to vector<16x32xf32>
    %565 = arith.mulf %563, %564 : vector<16x32xf32>
    %566 = vector.broadcast %545 : vector<1x32xf32> to vector<16x32xf32>
    %567 = arith.addf %565, %566 : vector<16x32xf32>
    %c1_i32_236 = arith.constant 1 : i32
    %c0_237 = arith.constant 0 : index
    %c0_238 = arith.constant 0 : index
    %568 = vector.load %arg51[%c0_237, %c0_238] : memref<2x32xf32, #tpu.memory_space<vmem>>, vector<1x32xf32>
    %c1_239 = arith.constant 1 : index
    %c0_240 = arith.constant 0 : index
    %569 = vector.load %arg51[%c1_239, %c0_240] : memref<2x32xf32, #tpu.memory_space<vmem>>, vector<1x32xf32>
    %cst_241 = arith.constant dense<0.000000e+00> : vector<16xf32>
    %570 = vector.multi_reduction <add>, %567, %cst_241 [1] : vector<16x32xf32> to vector<16xf32>
    %571 = vector.shape_cast %570 : vector<16xf32> to vector<16x1xf32>
    %cst_242 = arith.constant 3.200000e+01 : f32
    %572 = vector.broadcast %cst_242 : f32 to vector<16x1xf32>
    %573 = arith.divf %571, %572 : vector<16x1xf32>
    %574 = vector.broadcast %573 : vector<16x1xf32> to vector<16x32xf32>
    %575 = arith.subf %567, %574 : vector<16x32xf32>
    %576 = arith.mulf %575, %575 : vector<16x32xf32>
    %cst_243 = arith.constant dense<0.000000e+00> : vector<16xf32>
    %577 = vector.multi_reduction <add>, %576, %cst_243 [1] : vector<16x32xf32> to vector<16xf32>
    %578 = vector.shape_cast %577 : vector<16xf32> to vector<16x1xf32>
    %cst_244 = arith.constant 3.200000e+01 : f32
    %579 = vector.broadcast %cst_244 : f32 to vector<16x1xf32>
    %580 = arith.divf %578, %579 : vector<16x1xf32>
    %581 = vector.broadcast %573 : vector<16x1xf32> to vector<16x32xf32>
    %582 = arith.subf %567, %581 : vector<16x32xf32>
    %cst_245 = arith.constant 9.99999974E-6 : f32
    %583 = vector.broadcast %cst_245 : f32 to vector<16x1xf32>
    %584 = arith.addf %580, %583 : vector<16x1xf32>
    %585 = math.rsqrt %584 : vector<16x1xf32>
    %586 = vector.broadcast %585 : vector<16x1xf32> to vector<16x32xf32>
    %587 = arith.mulf %582, %586 : vector<16x32xf32>
    %588 = vector.broadcast %568 : vector<1x32xf32> to vector<16x32xf32>
    %589 = arith.mulf %587, %588 : vector<16x32xf32>
    %590 = vector.broadcast %569 : vector<1x32xf32> to vector<16x32xf32>
    %591 = arith.addf %589, %590 : vector<16x32xf32>
    %c0_246 = arith.constant 0 : index
    %c0_247 = arith.constant 0 : index
    %592 = vector.load %arg52[%c0_246, %c0_247] : memref<32x128xf32, #tpu.memory_space<vmem>>, vector<32x128xf32>
    %cst_248 = arith.constant dense<0.000000e+00> : vector<16x128xf32>
    %593 = tpu.matmul %591, %592, %cst_248 {dimension_numbers = #tpu.dot_dimension_numbers<[1], [0], [0], [1], [0, 0, 1, 1], [], []>} : vector<16x32xf32>, vector<32x128xf32>, vector<16x128xf32> -> vector<16x128xf32>
    %c0_249 = arith.constant 0 : index
    %c0_250 = arith.constant 0 : index
    %594 = vector.load %arg53[%c0_249, %c0_250] : memref<1x128xf32, #tpu.memory_space<vmem>>, vector<1x128xf32>
    %595 = vector.broadcast %594 : vector<1x128xf32> to vector<16x128xf32>
    %596 = arith.addf %593, %595 : vector<16x128xf32>
    %c0_251 = arith.constant 0 : index
    %c0_252 = arith.constant 0 : index
    %c0_253 = arith.constant 0 : index
    %597 = vector.load %arg54[%c0_251, %c0_252, %c0_253] : memref<1x16x128xf32, #tpu.memory_space<vmem>>, vector<1x16x128xf32>
    %598 = vector.shape_cast %597 : vector<1x16x128xf32> to vector<16x128xf32>
    %599 = vector.shape_cast %596 : vector<16x128xf32> to vector<1x16x128xf32>
    tpu.vector_store %arg54[%c0_251, %c0_252, %c0_253], %599 {strides = array<i32>} : memref<1x16x128xf32, #tpu.memory_space<vmem>>, vector<1x16x128xf32>,
    return
  }
  func.func @transform_0(%arg0: i32) -> (i32, i32, i32) {
    %c0_i32 = arith.constant 0 : i32
    %c0_i32_0 = arith.constant 0 : i32
    %c0_i32_1 = arith.constant 0 : i32
    return %arg0, %c0_i32, %c0_i32_0 : i32, i32, i32
  }
  func.func @transform_1(%arg0: i32) -> (i32, i32, i32) {
    %c0_i32 = arith.constant 0 : i32
    %c0_i32_0 = arith.constant 0 : i32
    %c0_i32_1 = arith.constant 0 : i32
    return %arg0, %c0_i32, %c0_i32_0 : i32, i32, i32
  }
  func.func @transform_2(%arg0: i32) -> (i32, i32, i32) {
    %c0_i32 = arith.constant 0 : i32
    %c0_i32_0 = arith.constant 0 : i32
    %c0_i32_1 = arith.constant 0 : i32
    return %arg0, %c0_i32, %c0_i32_0 : i32, i32, i32
  }
  func.func @transform_3(%arg0: i32) -> (i32, i32, i32) {
    %c0_i32 = arith.constant 0 : i32
    %c0_i32_0 = arith.constant 0 : i32
    %c0_i32_1 = arith.constant 0 : i32
    return %arg0, %c0_i32, %c0_i32_0 : i32, i32, i32
  }
  func.func @transform_4(%arg0: i32) -> (i32, i32, i32) {
    %c0_i32 = arith.constant 0 : i32
    %c0_i32_0 = arith.constant 0 : i32
    %c0_i32_1 = arith.constant 0 : i32
    return %arg0, %c0_i32, %c0_i32_0 : i32, i32, i32
  }
  func.func @transform_5(%arg0: i32) -> (i32, i32, i32) {
    %c0_i32 = arith.constant 0 : i32
    %c0_i32_0 = arith.constant 0 : i32
    %c0_i32_1 = arith.constant 0 : i32
    return %arg0, %c0_i32, %c0_i32_0 : i32, i32, i32
  }
  func.func @transform_6(%arg0: i32) -> (i32, i32) {
    %c0_i32 = arith.constant 0 : i32
    %c0_i32_0 = arith.constant 0 : i32
    %c0_i32_1 = arith.constant 0 : i32
    return %c0_i32, %c0_i32_0 : i32, i32
  }
  func.func @transform_7(%arg0: i32) -> (i32, i32) {
    %c0_i32 = arith.constant 0 : i32
    %c0_i32_0 = arith.constant 0 : i32
    %c0_i32_1 = arith.constant 0 : i32
    return %c0_i32, %c0_i32_0 : i32, i32
  }
  func.func @transform_8(%arg0: i32) -> (i32, i32) {
    %c0_i32 = arith.constant 0 : i32
    %c0_i32_0 = arith.constant 0 : i32
    %c0_i32_1 = arith.constant 0 : i32
    return %c0_i32, %c0_i32_0 : i32, i32
  }
  func.func @transform_9(%arg0: i32) -> (i32, i32) {
    %c0_i32 = arith.constant 0 : i32
    %c0_i32_0 = arith.constant 0 : i32
    %c0_i32_1 = arith.constant 0 : i32
    return %c0_i32, %c0_i32_0 : i32, i32
  }
  func.func @transform_10(%arg0: i32) -> (i32, i32) {
    %c0_i32 = arith.constant 0 : i32
    %c0_i32_0 = arith.constant 0 : i32
    %c0_i32_1 = arith.constant 0 : i32
    return %c0_i32, %c0_i32_0 : i32, i32
  }
  func.func @transform_11(%arg0: i32) -> (i32, i32) {
    %c0_i32 = arith.constant 0 : i32
    %c0_i32_0 = arith.constant 0 : i32
    %c0_i32_1 = arith.constant 0 : i32
    return %c0_i32, %c0_i32_0 : i32, i32
  }
  func.func @transform_12(%arg0: i32) -> (i32, i32) {
    %c0_i32 = arith.constant 0 : i32
    %c0_i32_0 = arith.constant 0 : i32
    %c0_i32_1 = arith.constant 0 : i32
    return %c0_i32, %c0_i32_0 : i32, i32
  }
  func.func @transform_13(%arg0: i32) -> (i32, i32) {
    %c0_i32 = arith.constant 0 : i32
    %c0_i32_0 = arith.constant 0 : i32
    %c0_i32_1 = arith.constant 0 : i32
    return %c0_i32, %c0_i32_0 : i32, i32
  }
  func.func @transform_14(%arg0: i32) -> (i32, i32) {
    %c0_i32 = arith.constant 0 : i32
    %c0_i32_0 = arith.constant 0 : i32
    %c0_i32_1 = arith.constant 0 : i32
    return %c0_i32, %c0_i32_0 : i32, i32
  }
  func.func @transform_15(%arg0: i32) -> (i32, i32) {
    %c0_i32 = arith.constant 0 : i32
    %c0_i32_0 = arith.constant 0 : i32
    %c0_i32_1 = arith.constant 0 : i32
    return %c0_i32, %c0_i32_0 : i32, i32
  }
  func.func @transform_16(%arg0: i32) -> (i32, i32) {
    %c0_i32 = arith.constant 0 : i32
    %c0_i32_0 = arith.constant 0 : i32
    %c0_i32_1 = arith.constant 0 : i32
    return %c0_i32, %c0_i32_0 : i32, i32
  }
  func.func @transform_17(%arg0: i32) -> (i32, i32) {
    %c0_i32 = arith.constant 0 : i32
    %c0_i32_0 = arith.constant 0 : i32
    %c0_i32_1 = arith.constant 0 : i32
    return %c0_i32, %c0_i32_0 : i32, i32
  }
  func.func @transform_18(%arg0: i32) -> (i32, i32, i32) {
    %c0_i32 = arith.constant 0 : i32
    %c0_i32_0 = arith.constant 0 : i32
    %c0_i32_1 = arith.constant 0 : i32
    %c0_i32_2 = arith.constant 0 : i32
    return %c0_i32, %c0_i32_0, %c0_i32_1 : i32, i32, i32
  }
  func.func @transform_19(%arg0: i32) -> (i32, i32) {
    %c0_i32 = arith.constant 0 : i32
    %c0_i32_0 = arith.constant 0 : i32
    %c0_i32_1 = arith.constant 0 : i32
    return %c0_i32, %c0_i32_0 : i32, i32
  }
  func.func @transform_20(%arg0: i32) -> (i32, i32, i32) {
    %c0_i32 = arith.constant 0 : i32
    %c0_i32_0 = arith.constant 0 : i32
    %c0_i32_1 = arith.constant 0 : i32
    %c0_i32_2 = arith.constant 0 : i32
    return %c0_i32, %c0_i32_0, %c0_i32_1 : i32, i32, i32
  }
  func.func @transform_21(%arg0: i32) -> (i32, i32, i32) {
    %c0_i32 = arith.constant 0 : i32
    %c0_i32_0 = arith.constant 0 : i32
    %c0_i32_1 = arith.constant 0 : i32
    %c0_i32_2 = arith.constant 0 : i32
    return %c0_i32, %c0_i32_0, %c0_i32_1 : i32, i32, i32
  }
  func.func @transform_22(%arg0: i32) -> (i32, i32, i32) {
    %c0_i32 = arith.constant 0 : i32
    %c0_i32_0 = arith.constant 0 : i32
    %c0_i32_1 = arith.constant 0 : i32
    %c0_i32_2 = arith.constant 0 : i32
    return %c0_i32, %c0_i32_0, %c0_i32_1 : i32, i32, i32
  }
  func.func @transform_23(%arg0: i32) -> (i32, i32, i32) {
    %c0_i32 = arith.constant 0 : i32
    %c0_i32_0 = arith.constant 0 : i32
    %c0_i32_1 = arith.constant 0 : i32
    %c0_i32_2 = arith.constant 0 : i32
    return %c0_i32, %c0_i32_0, %c0_i32_1 : i32, i32, i32
  }
  func.func @transform_24(%arg0: i32) -> (i32, i32, i32) {
    %c0_i32 = arith.constant 0 : i32
    %c0_i32_0 = arith.constant 0 : i32
    %c0_i32_1 = arith.constant 0 : i32
    %c0_i32_2 = arith.constant 0 : i32
    return %c0_i32, %c0_i32_0, %c0_i32_1 : i32, i32, i32
  }
  func.func @transform_25(%arg0: i32) -> (i32, i32, i32) {
    %c0_i32 = arith.constant 0 : i32
    %c0_i32_0 = arith.constant 0 : i32
    %c0_i32_1 = arith.constant 0 : i32
    %c0_i32_2 = arith.constant 0 : i32
    return %c0_i32, %c0_i32_0, %c0_i32_1 : i32, i32, i32
  }
  func.func @transform_26(%arg0: i32) -> (i32, i32, i32) {
    %c0_i32 = arith.constant 0 : i32
    %c0_i32_0 = arith.constant 0 : i32
    %c0_i32_1 = arith.constant 0 : i32
    %c0_i32_2 = arith.constant 0 : i32
    return %c0_i32, %c0_i32_0, %c0_i32_1 : i32, i32, i32
  }
  func.func @transform_27(%arg0: i32) -> (i32, i32, i32) {
    %c0_i32 = arith.constant 0 : i32
    %c0_i32_0 = arith.constant 0 : i32
    %c0_i32_1 = arith.constant 0 : i32
    %c0_i32_2 = arith.constant 0 : i32
    return %c0_i32, %c0_i32_0, %c0_i32_1 : i32, i32, i32
  }
  func.func @transform_28(%arg0: i32) -> (i32, i32, i32) {
    %c0_i32 = arith.constant 0 : i32
    %c0_i32_0 = arith.constant 0 : i32
    %c0_i32_1 = arith.constant 0 : i32
    %c0_i32_2 = arith.constant 0 : i32
    return %c0_i32, %c0_i32_0, %c0_i32_1 : i32, i32, i32
  }
  func.func @transform_29(%arg0: i32) -> (i32, i32, i32) {
    %c0_i32 = arith.constant 0 : i32
    %c0_i32_0 = arith.constant 0 : i32
    %c0_i32_1 = arith.constant 0 : i32
    %c0_i32_2 = arith.constant 0 : i32
    return %c0_i32, %c0_i32_0, %c0_i32_1 : i32, i32, i32
  }
  func.func @transform_30(%arg0: i32) -> (i32, i32) {
    %c0_i32 = arith.constant 0 : i32
    %c0_i32_0 = arith.constant 0 : i32
    %c0_i32_1 = arith.constant 0 : i32
    return %c0_i32, %c0_i32_0 : i32, i32
  }
  func.func @transform_31(%arg0: i32) -> (i32, i32, i32) {
    %c0_i32 = arith.constant 0 : i32
    %c0_i32_0 = arith.constant 0 : i32
    %c0_i32_1 = arith.constant 0 : i32
    %c0_i32_2 = arith.constant 0 : i32
    return %c0_i32, %c0_i32_0, %c0_i32_1 : i32, i32, i32
  }
  func.func @transform_32(%arg0: i32) -> (i32, i32) {
    %c0_i32 = arith.constant 0 : i32
    %c0_i32_0 = arith.constant 0 : i32
    %c0_i32_1 = arith.constant 0 : i32
    return %c0_i32, %c0_i32_0 : i32, i32
  }
  func.func @transform_33(%arg0: i32) -> (i32, i32, i32) {
    %c0_i32 = arith.constant 0 : i32
    %c0_i32_0 = arith.constant 0 : i32
    %c0_i32_1 = arith.constant 0 : i32
    %c0_i32_2 = arith.constant 0 : i32
    return %c0_i32, %c0_i32_0, %c0_i32_1 : i32, i32, i32
  }
  func.func @transform_34(%arg0: i32) -> (i32, i32, i32) {
    %c0_i32 = arith.constant 0 : i32
    %c0_i32_0 = arith.constant 0 : i32
    %c0_i32_1 = arith.constant 0 : i32
    %c0_i32_2 = arith.constant 0 : i32
    return %c0_i32, %c0_i32_0, %c0_i32_1 : i32, i32, i32
  }
  func.func @transform_35(%arg0: i32) -> (i32, i32, i32) {
    %c0_i32 = arith.constant 0 : i32
    %c0_i32_0 = arith.constant 0 : i32
    %c0_i32_1 = arith.constant 0 : i32
    %c0_i32_2 = arith.constant 0 : i32
    return %c0_i32, %c0_i32_0, %c0_i32_1 : i32, i32, i32
  }
  func.func @transform_36(%arg0: i32) -> (i32, i32, i32) {
    %c0_i32 = arith.constant 0 : i32
    %c0_i32_0 = arith.constant 0 : i32
    %c0_i32_1 = arith.constant 0 : i32
    %c0_i32_2 = arith.constant 0 : i32
    return %c0_i32, %c0_i32_0, %c0_i32_1 : i32, i32, i32
  }
  func.func @transform_37(%arg0: i32) -> (i32, i32, i32) {
    %c0_i32 = arith.constant 0 : i32
    %c0_i32_0 = arith.constant 0 : i32
    %c0_i32_1 = arith.constant 0 : i32
    %c0_i32_2 = arith.constant 0 : i32
    return %c0_i32, %c0_i32_0, %c0_i32_1 : i32, i32, i32
  }
  func.func @transform_38(%arg0: i32) -> (i32, i32, i32) {
    %c0_i32 = arith.constant 0 : i32
    %c0_i32_0 = arith.constant 0 : i32
    %c0_i32_1 = arith.constant 0 : i32
    %c0_i32_2 = arith.constant 0 : i32
    return %c0_i32, %c0_i32_0, %c0_i32_1 : i32, i32, i32
  }
  func.func @transform_39(%arg0: i32) -> (i32, i32, i32) {
    %c0_i32 = arith.constant 0 : i32
    %c0_i32_0 = arith.constant 0 : i32
    %c0_i32_1 = arith.constant 0 : i32
    %c0_i32_2 = arith.constant 0 : i32
    return %c0_i32, %c0_i32_0, %c0_i32_1 : i32, i32, i32
  }
  func.func @transform_40(%arg0: i32) -> (i32, i32, i32) {
    %c0_i32 = arith.constant 0 : i32
    %c0_i32_0 = arith.constant 0 : i32
    %c0_i32_1 = arith.constant 0 : i32
    %c0_i32_2 = arith.constant 0 : i32
    return %c0_i32, %c0_i32_0, %c0_i32_1 : i32, i32, i32
  }
  func.func @transform_41(%arg0: i32) -> (i32, i32, i32) {
    %c0_i32 = arith.constant 0 : i32
    %c0_i32_0 = arith.constant 0 : i32
    %c0_i32_1 = arith.constant 0 : i32
    %c0_i32_2 = arith.constant 0 : i32
    return %c0_i32, %c0_i32_0, %c0_i32_1 : i32, i32, i32
  }
  func.func @transform_42(%arg0: i32) -> (i32, i32, i32) {
    %c0_i32 = arith.constant 0 : i32
    %c0_i32_0 = arith.constant 0 : i32
    %c0_i32_1 = arith.constant 0 : i32
    %c0_i32_2 = arith.constant 0 : i32
    return %c0_i32, %c0_i32_0, %c0_i32_1 : i32, i32, i32
  }
  func.func @transform_43(%arg0: i32) -> (i32, i32, i32) {
    %c0_i32 = arith.constant 0 : i32
    %c0_i32_0 = arith.constant 0 : i32
    %c0_i32_1 = arith.constant 0 : i32
    %c0_i32_2 = arith.constant 0 : i32
    return %c0_i32, %c0_i32_0, %c0_i32_1 : i32, i32, i32
  }
  func.func @transform_44(%arg0: i32) -> (i32, i32, i32) {
    %c0_i32 = arith.constant 0 : i32
    %c0_i32_0 = arith.constant 0 : i32
    %c0_i32_1 = arith.constant 0 : i32
    %c0_i32_2 = arith.constant 0 : i32
    return %c0_i32, %c0_i32_0, %c0_i32_1 : i32, i32, i32
  }
  func.func @transform_45(%arg0: i32) -> (i32, i32, i32) {
    %c0_i32 = arith.constant 0 : i32
    %c0_i32_0 = arith.constant 0 : i32
    %c0_i32_1 = arith.constant 0 : i32
    %c0_i32_2 = arith.constant 0 : i32
    return %c0_i32, %c0_i32_0, %c0_i32_1 : i32, i32, i32
  }
  func.func @transform_46(%arg0: i32) -> (i32, i32, i32) {
    %c0_i32 = arith.constant 0 : i32
    %c0_i32_0 = arith.constant 0 : i32
    %c0_i32_1 = arith.constant 0 : i32
    %c0_i32_2 = arith.constant 0 : i32
    return %c0_i32, %c0_i32_0, %c0_i32_1 : i32, i32, i32
  }
  func.func @transform_47(%arg0: i32) -> (i32, i32, i32) {
    %c0_i32 = arith.constant 0 : i32
    %c0_i32_0 = arith.constant 0 : i32
    %c0_i32_1 = arith.constant 0 : i32
    %c0_i32_2 = arith.constant 0 : i32
    return %c0_i32, %c0_i32_0, %c0_i32_1 : i32, i32, i32
  }
  func.func @transform_48(%arg0: i32) -> (i32, i32, i32) {
    %c0_i32 = arith.constant 0 : i32
    %c0_i32_0 = arith.constant 0 : i32
    %c0_i32_1 = arith.constant 0 : i32
    %c0_i32_2 = arith.constant 0 : i32
    return %c0_i32, %c0_i32_0, %c0_i32_1 : i32, i32, i32
  }
  func.func @transform_49(%arg0: i32) -> (i32, i32, i32) {
    %c0_i32 = arith.constant 0 : i32
    %c0_i32_0 = arith.constant 0 : i32
    %c0_i32_1 = arith.constant 0 : i32
    %c0_i32_2 = arith.constant 0 : i32
    return %c0_i32, %c0_i32_0, %c0_i32_1 : i32, i32, i32
  }
  func.func @transform_50(%arg0: i32) -> (i32, i32) {
    %c0_i32 = arith.constant 0 : i32
    %c0_i32_0 = arith.constant 0 : i32
    %c0_i32_1 = arith.constant 0 : i32
    return %c0_i32, %c0_i32_0 : i32, i32
  }
  func.func @transform_51(%arg0: i32) -> (i32, i32) {
    %c0_i32 = arith.constant 0 : i32
    %c0_i32_0 = arith.constant 0 : i32
    %c0_i32_1 = arith.constant 0 : i32
    return %c0_i32, %c0_i32_0 : i32, i32
  }
  func.func @transform_52(%arg0: i32) -> (i32, i32) {
    %c0_i32 = arith.constant 0 : i32
    %c0_i32_0 = arith.constant 0 : i32
    %c0_i32_1 = arith.constant 0 : i32
    return %c0_i32, %c0_i32_0 : i32, i32
  }
  func.func @transform_53(%arg0: i32) -> (i32, i32, i32) {
    %c0_i32 = arith.constant 0 : i32
    %c0_i32_0 = arith.constant 0 : i32
    %c0_i32_1 = arith.constant 0 : i32
    return %arg0, %c0_i32, %c0_i32_0 : i32, i32, i32
  }
}

module attributes {stable_mosaic.version = 11 : i64} {
  func.func @_maelnet_kernel(%arg0: i32, %arg1: memref<1x1x4xf32, #tpu.memory_space<vmem>>, %arg2: memref<1x1x4xf32, #tpu.memory_space<vmem>>, %arg3: memref<1x1x4xf32, #tpu.memory_space<vmem>>, %arg4: memref<1x1x4xf32, #tpu.memory_space<vmem>>, %arg5: memref<1x16x4xf32, #tpu.memory_space<vmem>>, %arg6: memref<1x16x4xf32, #tpu.memory_space<vmem>>, %arg7: memref<4x16xf32, #tpu.memory_space<vmem>>, %arg8: memref<4x16xf32, #tpu.memory_space<vmem>>, %arg9: memref<1x16xf32, #tpu.memory_space<vmem>>, %arg10: memref<16x16xf32, #tpu.memory_space<vmem>>, %arg11: memref<1x16xf32, #tpu.memory_space<vmem>>, %arg12: memref<16x1xf32, #tpu.memory_space<vmem>>, %arg13: memref<4x16xf32, #tpu.memory_space<vmem>>, %arg14: memref<4x16xf32, #tpu.memory_space<vmem>>, %arg15: memref<1x16xf32, #tpu.memory_space<vmem>>, %arg16: memref<16x16xf32, #tpu.memory_space<vmem>>, %arg17: memref<1x16xf32, #tpu.memory_space<vmem>>, %arg18: memref<16x16xf32, #tpu.memory_space<vmem>>, %arg19: memref<3x4x32xf32, #tpu.memory_space<vmem>>, %arg20: memref<16x32xf32, #tpu.memory_space<vmem>>, %arg21: memref<1x32x96xf32, #tpu.memory_space<vmem>>, %arg22: memref<1x1x96xf32, #tpu.memory_space<vmem>>, %arg23: memref<1x32x32xf32, #tpu.memory_space<vmem>>, %arg24: memref<1x1x32xf32, #tpu.memory_space<vmem>>, %arg25: memref<1x32x64xf32, #tpu.memory_space<vmem>>, %arg26: memref<1x1x64xf32, #tpu.memory_space<vmem>>, %arg27: memref<1x64x32xf32, #tpu.memory_space<vmem>>, %arg28: memref<1x1x32xf32, #tpu.memory_space<vmem>>, %arg29: memref<1x2x32xf32, #tpu.memory_space<vmem>>, %arg30: memref<1x2x32xf32, #tpu.memory_space<vmem>>, %arg31: memref<2x32xf32, #tpu.memory_space<vmem>>, %arg32: memref<3x4x32xf32, #tpu.memory_space<vmem>>, %arg33: memref<16x32xf32, #tpu.memory_space<vmem>>, %arg34: memref<1x32x96xf32, #tpu.memory_space<vmem>>, %arg35: memref<1x1x96xf32, #tpu.memory_space<vmem>>, %arg36: memref<1x32x32xf32, #tpu.memory_space<vmem>>, %arg37: memref<1x1x32xf32, #tpu.memory_space<vmem>>, %arg38: memref<1x32x32xf32, #tpu.memory_space<vmem>>, %arg39: memref<1x1x32xf32, #tpu.memory_space<vmem>>, %arg40: memref<1x32x64xf32, #tpu.memory_space<vmem>>, %arg41: memref<1x1x64xf32, #tpu.memory_space<vmem>>, %arg42: memref<1x32x32xf32, #tpu.memory_space<vmem>>, %arg43: memref<1x1x32xf32, #tpu.memory_space<vmem>>, %arg44: memref<1x32x64xf32, #tpu.memory_space<vmem>>, %arg45: memref<1x1x64xf32, #tpu.memory_space<vmem>>, %arg46: memref<1x64x32xf32, #tpu.memory_space<vmem>>, %arg47: memref<1x1x32xf32, #tpu.memory_space<vmem>>, %arg48: memref<1x2x32xf32, #tpu.memory_space<vmem>>, %arg49: memref<1x2x32xf32, #tpu.memory_space<vmem>>, %arg50: memref<1x2x32xf32, #tpu.memory_space<vmem>>, %arg51: memref<2x32xf32, #tpu.memory_space<vmem>>, %arg52: memref<32x128xf32, #tpu.memory_space<vmem>>, %arg53: memref<1x128xf32, #tpu.memory_space<vmem>>, %arg54: memref<1x16x128xf32, #tpu.memory_space<vmem>>) attributes {dimension_semantics = [#tpu.dimension_semantics<parallel>], iteration_bounds = array<i64: 2>, scalar_prefetch = 0 : i64, scratch_operands = 0 : i64, tpu.core_type = #tpu.core_type<tc>, window_params = [{transform_indices = @transform_0, window_bounds = array<i64: 1, 1, 4>}, {transform_indices = @transform_1, window_bounds = array<i64: 1, 1, 4>}, {transform_indices = @transform_2, window_bounds = array<i64: 1, 1, 4>}, {transform_indices = @transform_3, window_bounds = array<i64: 1, 1, 4>}, {transform_indices = @transform_4, window_bounds = array<i64: 1, 16, 4>}, {transform_indices = @transform_5, window_bounds = array<i64: 1, 16, 4>}, {pipeline_mode = #tpu.pipeline_mode<synchronous>, transform_indices = @transform_6, window_bounds = array<i64: 4, 16>}, {pipeline_mode = #tpu.pipeline_mode<synchronous>, transform_indices = @transform_7, window_bounds = array<i64: 4, 16>}, {pipeline_mode = #tpu.pipeline_mode<synchronous>, transform_indices = @transform_8, window_bounds = array<i64: 1, 16>}, {pipeline_mode = #tpu.pipeline_mode<synchronous>, transform_indices = @transform_9, window_bounds = array<i64: 16, 16>}, {pipeline_mode = #tpu.pipeline_mode<synchronous>, transform_indices = @transform_10, window_bounds = array<i64: 1, 16>}, {pipeline_mode = #tpu.pipeline_mode<synchronous>, transform_indices = @transform_11, window_bounds = array<i64: 16, 1>}, {pipeline_mode = #tpu.pipeline_mode<synchronous>, transform_indices = @transform_12, window_bounds = array<i64: 4, 16>}, {pipeline_mode = #tpu.pipeline_mode<synchronous>, transform_indices = @transform_13, window_bounds = array<i64: 4, 16>}, {pipeline_mode = #tpu.pipeline_mode<synchronous>, transform_indices = @transform_14, window_bounds = array<i64: 1, 16>}, {pipeline_mode = #tpu.pipeline_mode<synchronous>, transform_indices = @transform_15, window_bounds = array<i64: 16, 16>}, {pipeline_mode = #tpu.pipeline_mode<synchronous>, transform_indices = @transform_16, window_bounds = array<i64: 1, 16>}, {pipeline_mode = #tpu.pipeline_mode<synchronous>, transform_indices = @transform_17, window_bounds = array<i64: 16, 16>}, {pipeline_mode = #tpu.pipeline_mode<synchronous>, transform_indices = @transform_18, window_bounds = array<i64: 3, 4, 32>}, {pipeline_mode = #tpu.pipeline_mode<synchronous>, transform_indices = @transform_19, window_bounds = array<i64: 16, 32>}, {pipeline_mode = #tpu.pipeline_mode<synchronous>, transform_indices = @transform_20, window_bounds = array<i64: 1, 32, 96>}, {pipeline_mode = #tpu.pipeline_mode<synchronous>, transform_indices = @transform_21, window_bounds = array<i64: 1, 1, 96>}, {pipeline_mode = #tpu.pipeline_mode<synchronous>, transform_indices = @transform_22, window_bounds = array<i64: 1, 32, 32>}, {pipeline_mode = #tpu.pipeline_mode<synchronous>, transform_indices = @transform_23, window_bounds = array<i64: 1, 1, 32>}, {pipeline_mode = #tpu.pipeline_mode<synchronous>, transform_indices = @transform_24, window_bounds = array<i64: 1, 32, 64>}, {pipeline_mode = #tpu.pipeline_mode<synchronous>, transform_indices = @transform_25, window_bounds = array<i64: 1, 1, 64>}, {pipeline_mode = #tpu.pipeline_mode<synchronous>, transform_indices = @transform_26, window_bounds = array<i64: 1, 64, 32>}, {pipeline_mode = #tpu.pipeline_mode<synchronous>, transform_indices = @transform_27, window_bounds = array<i64: 1, 1, 32>}, {pipeline_mode = #tpu.pipeline_mode<synchronous>, transform_indices = @transform_28, window_bounds = array<i64: 1, 2, 32>}, {pipeline_mode = #tpu.pipeline_mode<synchronous>, transform_indices = @transform_29, window_bounds = array<i64: 1, 2, 32>}, {pipeline_mode = #tpu.pipeline_mode<synchronous>, transform_indices = @transform_30, window_bounds = array<i64: 2, 32>}, {pipeline_mode = #tpu.pipeline_mode<synchronous>, transform_indices = @transform_31, window_bounds = array<i64: 3, 4, 32>}, {pipeline_mode = #tpu.pipeline_mode<synchronous>, transform_indices = @transform_32, window_bounds = array<i64: 16, 32>}, {pipeline_mode = #tpu.pipeline_mode<synchronous>, transform_indices = @transform_33, window_bounds = array<i64: 1, 32, 96>}, {pipeline_mode = #tpu.pipeline_mode<synchronous>, transform_indices = @transform_34, window_bounds = array<i64: 1, 1, 96>}, {pipeline_mode = #tpu.pipeline_mode<synchronous>, transform_indices = @transform_35, window_bounds = array<i64: 1, 32, 32>}, {pipeline_mode = #tpu.pipeline_mode<synchronous>, transform_indices = @transform_36, window_bounds = array<i64: 1, 1, 32>}, {pipeline_mode = #tpu.pipeline_mode<synchronous>, transform_indices = @transform_37, window_bounds = array<i64: 1, 32, 32>}, {pipeline_mode = #tpu.pipeline_mode<synchronous>, transform_indices = @transform_38, window_bounds = array<i64: 1, 1, 32>}, {pipeline_mode = #tpu.pipeline_mode<synchronous>, transform_indices = @transform_39, window_bounds = array<i64: 1, 32, 64>}, {pipeline_mode = #tpu.pipeline_mode<synchronous>, transform_indices = @transform_40, window_bounds = array<i64: 1, 1, 64>}, {pipeline_mode = #tpu.pipeline_mode<synchronous>, transform_indices = @transform_41, window_bounds = array<i64: 1, 32, 32>}, {pipeline_mode = #tpu.pipeline_mode<synchronous>, transform_indices = @transform_42, window_bounds = array<i64: 1, 1, 32>}, {pipeline_mode = #tpu.pipeline_mode<synchronous>, transform_indices = @transform_43, window_bounds = array<i64: 1, 32, 64>}, {pipeline_mode = #tpu.pipeline_mode<synchronous>, transform_indices = @transform_44, window_bounds = array<i64: 1, 1, 64>}, {pipeline_mode = #tpu.pipeline_mode<synchronous>, transform_indices = @transform_45, window_bounds = array<i64: 1, 64, 32>}, {pipeline_mode = #tpu.pipeline_mode<synchronous>, transform_indices = @transform_46, window_bounds = array<i64: 1, 1, 32>}, {pipeline_mode = #tpu.pipeline_mode<synchronous>, transform_indices = @transform_47, window_bounds = array<i64: 1, 2, 32>}, {pipeline_mode = #tpu.pipeline_mode<synchronous>, transform_indices = @transform_48, window_bounds = array<i64: 1, 2, 32>}, {pipeline_mode = #tpu.pipeline_mode<synchronous>, transform_indices = @transform_49, window_bounds = array<i64: 1, 2, 32>}, {pipeline_mode = #tpu.pipeline_mode<synchronous>, transform_indices = @transform_50, window_bounds = array<i64: 2, 32>}, {pipeline_mode = #tpu.pipeline_mode<synchronous>, transform_indices = @transform_51, window_bounds = array<i64: 32, 128>}, {pipeline_mode = #tpu.pipeline_mode<synchronous>, transform_indices = @transform_52, window_bounds = array<i64: 1, 128>}, {transform_indices = @transform_53, window_bounds = array<i64: 1, 16, 128>}]} {
    %c0 = arith.constant 0 : index
    %c0_0 = arith.constant 0 : index
    %c0_1 = arith.constant 0 : index
    %0 = vector.load %arg1[%c0, %c0_0, %c0_1] : memref<1x1x4xf32, #tpu.memory_space<vmem>>, vector<1x1x4xf32>
    %1 = vector.shape_cast %0 : vector<1x1x4xf32> to vector<1x4xf32>
    %c0_2 = arith.constant 0 : index
    %c0_3 = arith.constant 0 : index
    %c0_4 = arith.constant 0 : index
    %2 = vector.load %arg2[%c0_2, %c0_3, %c0_4] : memref<1x1x4xf32, #tpu.memory_space<vmem>>, vector<1x1x4xf32>
    %3 = vector.shape_cast %2 : vector<1x1x4xf32> to vector<1x4xf32>
    %c0_5 = arith.constant 0 : index
    %c0_6 = arith.constant 0 : index
    %c0_7 = arith.constant 0 : index
    %4 = vector.load %arg3[%c0_5, %c0_6, %c0_7] : memref<1x1x4xf32, #tpu.memory_space<vmem>>, vector<1x1x4xf32>
    %5 = vector.shape_cast %4 : vector<1x1x4xf32> to vector<1x4xf32>
    %c0_8 = arith.constant 0 : index
    %c0_9 = arith.constant 0 : index
    %c0_10 = arith.constant 0 : index
    %6 = vector.load %arg4[%c0_8, %c0_9, %c0_10] : memref<1x1x4xf32, #tpu.memory_space<vmem>>, vector<1x1x4xf32>
    %7 = vector.shape_cast %6 : vector<1x1x4xf32> to vector<1x4xf32>
    %c0_11 = arith.constant 0 : index
    %c0_12 = arith.constant 0 : index
    %8 = vector.load %arg7[%c0_11, %c0_12] : memref<4x16xf32, #tpu.memory_space<vmem>>, vector<4x16xf32>
    %cst = arith.constant dense<0.000000e+00> : vector<1x16xf32>
    %9 = tpu.matmul %1, %8, %cst {dimension_numbers = #tpu.dot_dimension_numbers<[1], [0], [0], [1], [0, 0, 1, 1], [], []>} : vector<1x4xf32>, vector<4x16xf32>, vector<1x16xf32> -> vector<1x16xf32>
    %c0_13 = arith.constant 0 : index
    %c0_14 = arith.constant 0 : index
    %10 = vector.load %arg8[%c0_13, %c0_14] : memref<4x16xf32, #tpu.memory_space<vmem>>, vector<4x16xf32>
    %cst_15 = arith.constant dense<0.000000e+00> : vector<1x16xf32>
    %11 = tpu.matmul %5, %10, %cst_15 {dimension_numbers = #tpu.dot_dimension_numbers<[1], [0], [0], [1], [0, 0, 1, 1], [], []>} : vector<1x4xf32>, vector<4x16xf32>, vector<1x16xf32> -> vector<1x16xf32>
    %12 = arith.addf %9, %11 : vector<1x16xf32>
    %c0_16 = arith.constant 0 : index
    %c0_17 = arith.constant 0 : index
    %13 = vector.load %arg9[%c0_16, %c0_17] : memref<1x16xf32, #tpu.memory_space<vmem>>, vector<1x16xf32>
    %14 = arith.addf %12, %13 : vector<1x16xf32>
    %cst_18 = arith.constant 0.000000e+00 : f32
    %15 = vector.broadcast %cst_18 : f32 to vector<1x16xf32>
    %16 = arith.maximumf %14, %15 : vector<1x16xf32>
    %c0_19 = arith.constant 0 : index
    %c0_20 = arith.constant 0 : index
    %17 = vector.load %arg10[%c0_19, %c0_20] : memref<16x16xf32, #tpu.memory_space<vmem>>, vector<16x16xf32>
    %cst_21 = arith.constant dense<0.000000e+00> : vector<1x16xf32>
    %18 = tpu.matmul %16, %17, %cst_21 {dimension_numbers = #tpu.dot_dimension_numbers<[1], [0], [0], [1], [0, 0, 1, 1], [], []>} : vector<1x16xf32>, vector<16x16xf32>, vector<1x16xf32> -> vector<1x16xf32>
    %c0_22 = arith.constant 0 : index
    %c0_23 = arith.constant 0 : index
    %19 = vector.load %arg11[%c0_22, %c0_23] : memref<1x16xf32, #tpu.memory_space<vmem>>, vector<1x16xf32>
    %20 = arith.addf %18, %19 : vector<1x16xf32>
    %cst_24 = arith.constant 0.000000e+00 : f32
    %21 = vector.broadcast %cst_24 : f32 to vector<1x16xf32>
    %22 = arith.maximumf %20, %21 : vector<1x16xf32>
    %c0_25 = arith.constant 0 : index
    %c0_26 = arith.constant 0 : index
    %23 = vector.load %arg12[%c0_25, %c0_26] : memref<16x1xf32, #tpu.memory_space<vmem>>, vector<16x1xf32>
    %cst_27 = arith.constant dense<0.000000e+00> : vector<1x1xf32>
    %24 = tpu.matmul %22, %23, %cst_27 {dimension_numbers = #tpu.dot_dimension_numbers<[1], [0], [0], [1], [0, 0, 1, 1], [], []>} : vector<1x16xf32>, vector<16x1xf32>, vector<1x1xf32> -> vector<1x1xf32>
    %25 = math.exp %24 : vector<1x1xf32>
    %c0_28 = arith.constant 0 : index
    %c0_29 = arith.constant 0 : index
    %26 = vector.load %arg13[%c0_28, %c0_29] : memref<4x16xf32, #tpu.memory_space<vmem>>, vector<4x16xf32>
    %cst_30 = arith.constant dense<0.000000e+00> : vector<1x16xf32>
    %27 = tpu.matmul %3, %26, %cst_30 {dimension_numbers = #tpu.dot_dimension_numbers<[1], [0], [0], [1], [0, 0, 1, 1], [], []>} : vector<1x4xf32>, vector<4x16xf32>, vector<1x16xf32> -> vector<1x16xf32>
    %c0_31 = arith.constant 0 : index
    %c0_32 = arith.constant 0 : index
    %28 = vector.load %arg14[%c0_31, %c0_32] : memref<4x16xf32, #tpu.memory_space<vmem>>, vector<4x16xf32>
    %cst_33 = arith.constant dense<0.000000e+00> : vector<1x16xf32>
    %29 = tpu.matmul %7, %28, %cst_33 {dimension_numbers = #tpu.dot_dimension_numbers<[1], [0], [0], [1], [0, 0, 1, 1], [], []>} : vector<1x4xf32>, vector<4x16xf32>, vector<1x16xf32> -> vector<1x16xf32>
    %30 = arith.addf %27, %29 : vector<1x16xf32>
    %c0_34 = arith.constant 0 : index
    %c0_35 = arith.constant 0 : index
    %31 = vector.load %arg15[%c0_34, %c0_35] : memref<1x16xf32, #tpu.memory_space<vmem>>, vector<1x16xf32>
    %32 = arith.addf %30, %31 : vector<1x16xf32>
    %cst_36 = arith.constant 0.000000e+00 : f32
    %33 = vector.broadcast %cst_36 : f32 to vector<1x16xf32>
    %34 = arith.maximumf %32, %33 : vector<1x16xf32>
    %c0_37 = arith.constant 0 : index
    %c0_38 = arith.constant 0 : index
    %35 = vector.load %arg16[%c0_37, %c0_38] : memref<16x16xf32, #tpu.memory_space<vmem>>, vector<16x16xf32>
    %cst_39 = arith.constant dense<0.000000e+00> : vector<1x16xf32>
    %36 = tpu.matmul %34, %35, %cst_39 {dimension_numbers = #tpu.dot_dimension_numbers<[1], [0], [0], [1], [0, 0, 1, 1], [], []>} : vector<1x16xf32>, vector<16x16xf32>, vector<1x16xf32> -> vector<1x16xf32>
    %c0_40 = arith.constant 0 : index
    %c0_41 = arith.constant 0 : index
    %37 = vector.load %arg17[%c0_40, %c0_41] : memref<1x16xf32, #tpu.memory_space<vmem>>, vector<1x16xf32>
    %38 = arith.addf %36, %37 : vector<1x16xf32>
    %cst_42 = arith.constant 0.000000e+00 : f32
    %39 = vector.broadcast %cst_42 : f32 to vector<1x16xf32>
    %40 = arith.maximumf %38, %39 : vector<1x16xf32>
    %c0_43 = arith.constant 0 : index
    %c0_44 = arith.constant 0 : index
    %41 = vector.load %arg18[%c0_43, %c0_44] : memref<16x16xf32, #tpu.memory_space<vmem>>, vector<16x16xf32>
    %cst_45 = arith.constant dense<0.000000e+00> : vector<1x16xf32>
    %42 = tpu.matmul %40, %41, %cst_45 {dimension_numbers = #tpu.dot_dimension_numbers<[1], [0], [0], [1], [0, 0, 1, 1], [], []>} : vector<1x16xf32>, vector<16x16xf32>, vector<1x16xf32> -> vector<1x16xf32>
    %cst_46 = arith.constant 0.353553385 : f32
    %43 = vector.broadcast %cst_46 : f32 to vector<1x1xf32>
    %44 = arith.mulf %25, %43 : vector<1x1xf32>
    %c0_47 = arith.constant 0 : index
    %c0_48 = arith.constant 0 : index
    %c0_49 = arith.constant 0 : index
    %45 = vector.load %arg5[%c0_47, %c0_48, %c0_49] : memref<1x16x4xf32, #tpu.memory_space<vmem>>, vector<1x16x4xf32>
    %46 = vector.shape_cast %45 : vector<1x16x4xf32> to vector<16x4xf32>
    %c1_i32 = arith.constant 1 : i32
    %47 = tpu.dynamic_rotate %46 by %c1_i32 dim 0 : vector<16x4xf32>, i32 -> vector<16x4xf32>
    %c15_i32 = arith.constant 15 : i32
    %48 = tpu.dynamic_rotate %46 by %c15_i32 dim 0 : vector<16x4xf32>, i32 -> vector<16x4xf32>
    %c0_50 = arith.constant 0 : index
    %c0_51 = arith.constant 0 : index
    %c0_52 = arith.constant 0 : index
    %49 = vector.load %arg19[%c0_50, %c0_51, %c0_52] : memref<3x4x32xf32, #tpu.memory_space<vmem>>, vector<1x4x32xf32>
    %50 = vector.shape_cast %49 : vector<1x4x32xf32> to vector<4x32xf32>
    %cst_53 = arith.constant dense<0.000000e+00> : vector<16x32xf32>
    %51 = tpu.matmul %47, %50, %cst_53 {dimension_numbers = #tpu.dot_dimension_numbers<[1], [0], [0], [1], [0, 0, 1, 1], [], []>} : vector<16x4xf32>, vector<4x32xf32>, vector<16x32xf32> -> vector<16x32xf32>
    %c1 = arith.constant 1 : index
    %c0_54 = arith.constant 0 : index
    %c0_55 = arith.constant 0 : index
    %52 = vector.load %arg19[%c1, %c0_54, %c0_55] : memref<3x4x32xf32, #tpu.memory_space<vmem>>, vector<1x4x32xf32>
    %53 = vector.shape_cast %52 : vector<1x4x32xf32> to vector<4x32xf32>
    %cst_56 = arith.constant dense<0.000000e+00> : vector<16x32xf32>
    %54 = tpu.matmul %46, %53, %cst_56 {dimension_numbers = #tpu.dot_dimension_numbers<[1], [0], [0], [1], [0, 0, 1, 1], [], []>} : vector<16x4xf32>, vector<4x32xf32>, vector<16x32xf32> -> vector<16x32xf32>
    %55 = arith.addf %51, %54 : vector<16x32xf32>
    %c2 = arith.constant 2 : index
    %c0_57 = arith.constant 0 : index
    %c0_58 = arith.constant 0 : index
    %56 = vector.load %arg19[%c2, %c0_57, %c0_58] : memref<3x4x32xf32, #tpu.memory_space<vmem>>, vector<1x4x32xf32>
    %57 = vector.shape_cast %56 : vector<1x4x32xf32> to vector<4x32xf32>
    %cst_59 = arith.constant dense<0.000000e+00> : vector<16x32xf32>
    %58 = tpu.matmul %48, %57, %cst_59 {dimension_numbers = #tpu.dot_dimension_numbers<[1], [0], [0], [1], [0, 0, 1, 1], [], []>} : vector<16x4xf32>, vector<4x32xf32>, vector<16x32xf32> -> vector<16x32xf32>
    %59 = arith.addf %55, %58 : vector<16x32xf32>
    %c0_60 = arith.constant 0 : index
    %c0_61 = arith.constant 0 : index
    %60 = vector.load %arg20[%c0_60, %c0_61] : memref<16x32xf32, #tpu.memory_space<vmem>>, vector<16x32xf32>
    %61 = arith.addf %59, %60 : vector<16x32xf32>
    %c0_i32 = arith.constant 0 : i32
    %62 = arith.index_cast %c0_i32 : i32 to index
    %c0_62 = arith.constant 0 : index
    %c0_63 = arith.constant 0 : index
    %63 = vector.load %arg21[%62, %c0_62, %c0_63] : memref<1x32x96xf32, #tpu.memory_space<vmem>>, vector<1x32x96xf32>
    %64 = vector.shape_cast %63 : vector<1x32x96xf32> to vector<32x96xf32>
    %cst_64 = arith.constant dense<0.000000e+00> : vector<16x96xf32>
    %65 = tpu.matmul %61, %64, %cst_64 {dimension_numbers = #tpu.dot_dimension_numbers<[1], [0], [0], [1], [0, 0, 1, 1], [], []>} : vector<16x32xf32>, vector<32x96xf32>, vector<16x96xf32> -> vector<16x96xf32>
    %66 = arith.index_cast %c0_i32 : i32 to index
    %c0_65 = arith.constant 0 : index
    %c0_66 = arith.constant 0 : index
    %67 = vector.load %arg22[%66, %c0_65, %c0_66] : memref<1x1x96xf32, #tpu.memory_space<vmem>>, vector<1x1x96xf32>
    %68 = vector.shape_cast %67 : vector<1x1x96xf32> to vector<1x96xf32>
    %69 = vector.broadcast %68 : vector<1x96xf32> to vector<16x96xf32>
    %70 = arith.addf %65, %69 : vector<16x96xf32>
    %71 = vector.extract_strided_slice %70 {offsets = [0, 0], sizes = [16, 8], strides = [1, 1]} : vector<16x96xf32> to vector<16x8xf32>
    %72 = vector.extract_strided_slice %70 {offsets = [0, 32], sizes = [16, 8], strides = [1, 1]} : vector<16x96xf32> to vector<16x8xf32>
    %73 = vector.extract_strided_slice %70 {offsets = [0, 64], sizes = [16, 8], strides = [1, 1]} : vector<16x96xf32> to vector<16x8xf32>
    %cst_67 = arith.constant dense<0.000000e+00> : vector<16x16xf32>
    %74 = tpu.matmul %71, %72, %cst_67 {dimension_numbers = #tpu.dot_dimension_numbers<[1], [1], [0], [0], [0, 0, 1, 0], [], []>} : vector<16x8xf32>, vector<16x8xf32>, vector<16x16xf32> -> vector<16x16xf32>
    %75 = vector.broadcast %44 : vector<1x1xf32> to vector<16x16xf32>
    %76 = arith.mulf %74, %75 : vector<16x16xf32>
    %77 = vector.broadcast %42 : vector<1x16xf32> to vector<16x16xf32>
    %78 = arith.addf %76, %77 : vector<16x16xf32>
    %cst_68 = arith.constant dense<0xFF800000> : vector<16xf32>
    %79 = vector.multi_reduction <maximumf>, %78, %cst_68 [1] : vector<16x16xf32> to vector<16xf32>
    %80 = vector.shape_cast %79 : vector<16xf32> to vector<16x1xf32>
    %81 = vector.broadcast %80 : vector<16x1xf32> to vector<16x16xf32>
    %82 = arith.subf %78, %81 : vector<16x16xf32>
    %83 = math.exp %82 : vector<16x16xf32>
    %cst_69 = arith.constant dense<0.000000e+00> : vector<16xf32>
    %84 = vector.multi_reduction <add>, %83, %cst_69 [1] : vector<16x16xf32> to vector<16xf32>
    %85 = vector.shape_cast %84 : vector<16xf32> to vector<16x1xf32>
    %86 = vector.broadcast %85 : vector<16x1xf32> to vector<16x16xf32>
    %87 = arith.divf %83, %86 : vector<16x16xf32>
    %cst_70 = arith.constant dense<0.000000e+00> : vector<16x8xf32>
    %88 = tpu.matmul %87, %73, %cst_70 {dimension_numbers = #tpu.dot_dimension_numbers<[1], [0], [0], [1], [0, 0, 1, 1], [], []>} : vector<16x16xf32>, vector<16x8xf32>, vector<16x8xf32> -> vector<16x8xf32>
    %89 = vector.extract_strided_slice %70 {offsets = [0, 8], sizes = [16, 8], strides = [1, 1]} : vector<16x96xf32> to vector<16x8xf32>
    %90 = vector.extract_strided_slice %70 {offsets = [0, 40], sizes = [16, 8], strides = [1, 1]} : vector<16x96xf32> to vector<16x8xf32>
    %91 = vector.extract_strided_slice %70 {offsets = [0, 72], sizes = [16, 8], strides = [1, 1]} : vector<16x96xf32> to vector<16x8xf32>
    %cst_71 = arith.constant dense<0.000000e+00> : vector<16x16xf32>
    %92 = tpu.matmul %89, %90, %cst_71 {dimension_numbers = #tpu.dot_dimension_numbers<[1], [1], [0], [0], [0, 0, 1, 0], [], []>} : vector<16x8xf32>, vector<16x8xf32>, vector<16x16xf32> -> vector<16x16xf32>
    %93 = vector.broadcast %44 : vector<1x1xf32> to vector<16x16xf32>
    %94 = arith.mulf %92, %93 : vector<16x16xf32>
    %95 = vector.broadcast %42 : vector<1x16xf32> to vector<16x16xf32>
    %96 = arith.addf %94, %95 : vector<16x16xf32>
    %cst_72 = arith.constant dense<0xFF800000> : vector<16xf32>
    %97 = vector.multi_reduction <maximumf>, %96, %cst_72 [1] : vector<16x16xf32> to vector<16xf32>
    %98 = vector.shape_cast %97 : vector<16xf32> to vector<16x1xf32>
    %99 = vector.broadcast %98 : vector<16x1xf32> to vector<16x16xf32>
    %100 = arith.subf %96, %99 : vector<16x16xf32>
    %101 = math.exp %100 : vector<16x16xf32>
    %cst_73 = arith.constant dense<0.000000e+00> : vector<16xf32>
    %102 = vector.multi_reduction <add>, %101, %cst_73 [1] : vector<16x16xf32> to vector<16xf32>
    %103 = vector.shape_cast %102 : vector<16xf32> to vector<16x1xf32>
    %104 = vector.broadcast %103 : vector<16x1xf32> to vector<16x16xf32>
    %105 = arith.divf %101, %104 : vector<16x16xf32>
    %cst_74 = arith.constant dense<0.000000e+00> : vector<16x8xf32>
    %106 = tpu.matmul %105, %91, %cst_74 {dimension_numbers = #tpu.dot_dimension_numbers<[1], [0], [0], [1], [0, 0, 1, 1], [], []>} : vector<16x16xf32>, vector<16x8xf32>, vector<16x8xf32> -> vector<16x8xf32>
    %107 = vector.extract_strided_slice %70 {offsets = [0, 16], sizes = [16, 8], strides = [1, 1]} : vector<16x96xf32> to vector<16x8xf32>
    %108 = vector.extract_strided_slice %70 {offsets = [0, 48], sizes = [16, 8], strides = [1, 1]} : vector<16x96xf32> to vector<16x8xf32>
    %109 = vector.extract_strided_slice %70 {offsets = [0, 80], sizes = [16, 8], strides = [1, 1]} : vector<16x96xf32> to vector<16x8xf32>
    %cst_75 = arith.constant dense<0.000000e+00> : vector<16x16xf32>
    %110 = tpu.matmul %107, %108, %cst_75 {dimension_numbers = #tpu.dot_dimension_numbers<[1], [1], [0], [0], [0, 0, 1, 0], [], []>} : vector<16x8xf32>, vector<16x8xf32>, vector<16x16xf32> -> vector<16x16xf32>
    %111 = vector.broadcast %44 : vector<1x1xf32> to vector<16x16xf32>
    %112 = arith.mulf %110, %111 : vector<16x16xf32>
    %113 = vector.broadcast %42 : vector<1x16xf32> to vector<16x16xf32>
    %114 = arith.addf %112, %113 : vector<16x16xf32>
    %cst_76 = arith.constant dense<0xFF800000> : vector<16xf32>
    %115 = vector.multi_reduction <maximumf>, %114, %cst_76 [1] : vector<16x16xf32> to vector<16xf32>
    %116 = vector.shape_cast %115 : vector<16xf32> to vector<16x1xf32>
    %117 = vector.broadcast %116 : vector<16x1xf32> to vector<16x16xf32>
    %118 = arith.subf %114, %117 : vector<16x16xf32>
    %119 = math.exp %118 : vector<16x16xf32>
    %cst_77 = arith.constant dense<0.000000e+00> : vector<16xf32>
    %120 = vector.multi_reduction <add>, %119, %cst_77 [1] : vector<16x16xf32> to vector<16xf32>
    %121 = vector.shape_cast %120 : vector<16xf32> to vector<16x1xf32>
    %122 = vector.broadcast %121 : vector<16x1xf32> to vector<16x16xf32>
    %123 = arith.divf %119, %122 : vector<16x16xf32>
    %cst_78 = arith.constant dense<0.000000e+00> : vector<16x8xf32>
    %124 = tpu.matmul %123, %109, %cst_78 {dimension_numbers = #tpu.dot_dimension_numbers<[1], [0], [0], [1], [0, 0, 1, 1], [], []>} : vector<16x16xf32>, vector<16x8xf32>, vector<16x8xf32> -> vector<16x8xf32>
    %125 = vector.extract_strided_slice %70 {offsets = [0, 24], sizes = [16, 8], strides = [1, 1]} : vector<16x96xf32> to vector<16x8xf32>
    %126 = vector.extract_strided_slice %70 {offsets = [0, 56], sizes = [16, 8], strides = [1, 1]} : vector<16x96xf32> to vector<16x8xf32>
    %127 = vector.extract_strided_slice %70 {offsets = [0, 88], sizes = [16, 8], strides = [1, 1]} : vector<16x96xf32> to vector<16x8xf32>
    %cst_79 = arith.constant dense<0.000000e+00> : vector<16x16xf32>
    %128 = tpu.matmul %125, %126, %cst_79 {dimension_numbers = #tpu.dot_dimension_numbers<[1], [1], [0], [0], [0, 0, 1, 0], [], []>} : vector<16x8xf32>, vector<16x8xf32>, vector<16x16xf32> -> vector<16x16xf32>
    %129 = vector.broadcast %44 : vector<1x1xf32> to vector<16x16xf32>
    %130 = arith.mulf %128, %129 : vector<16x16xf32>
    %131 = vector.broadcast %42 : vector<1x16xf32> to vector<16x16xf32>
    %132 = arith.addf %130, %131 : vector<16x16xf32>
    %cst_80 = arith.constant dense<0xFF800000> : vector<16xf32>
    %133 = vector.multi_reduction <maximumf>, %132, %cst_80 [1] : vector<16x16xf32> to vector<16xf32>
    %134 = vector.shape_cast %133 : vector<16xf32> to vector<16x1xf32>
    %135 = vector.broadcast %134 : vector<16x1xf32> to vector<16x16xf32>
    %136 = arith.subf %132, %135 : vector<16x16xf32>
    %137 = math.exp %136 : vector<16x16xf32>
    %cst_81 = arith.constant dense<0.000000e+00> : vector<16xf32>
    %138 = vector.multi_reduction <add>, %137, %cst_81 [1] : vector<16x16xf32> to vector<16xf32>
    %139 = vector.shape_cast %138 : vector<16xf32> to vector<16x1xf32>
    %140 = vector.broadcast %139 : vector<16x1xf32> to vector<16x16xf32>
    %141 = arith.divf %137, %140 : vector<16x16xf32>
    %cst_82 = arith.constant dense<0.000000e+00> : vector<16x8xf32>
    %142 = tpu.matmul %141, %127, %cst_82 {dimension_numbers = #tpu.dot_dimension_numbers<[1], [0], [0], [1], [0, 0, 1, 1], [], []>} : vector<16x16xf32>, vector<16x8xf32>, vector<16x8xf32> -> vector<16x8xf32>
    %143 = tpu.concatenate %88, %106, %124, %142 in 1 : vector<16x8xf32>, vector<16x8xf32>, vector<16x8xf32>, vector<16x8xf32> -> vector<16x32xf32>
    %144 = arith.index_cast %c0_i32 : i32 to index
    %c0_83 = arith.constant 0 : index
    %c0_84 = arith.constant 0 : index
    %145 = vector.load %arg23[%144, %c0_83, %c0_84] : memref<1x32x32xf32, #tpu.memory_space<vmem>>, vector<1x32x32xf32>
    %146 = vector.shape_cast %145 : vector<1x32x32xf32> to vector<32x32xf32>
    %cst_85 = arith.constant dense<0.000000e+00> : vector<16x32xf32>
    %147 = tpu.matmul %143, %146, %cst_85 {dimension_numbers = #tpu.dot_dimension_numbers<[1], [0], [0], [1], [0, 0, 1, 1], [], []>} : vector<16x32xf32>, vector<32x32xf32>, vector<16x32xf32> -> vector<16x32xf32>
    %148 = arith.index_cast %c0_i32 : i32 to index
    %c0_86 = arith.constant 0 : index
    %c0_87 = arith.constant 0 : index
    %149 = vector.load %arg24[%148, %c0_86, %c0_87] : memref<1x1x32xf32, #tpu.memory_space<vmem>>, vector<1x1x32xf32>
    %150 = vector.shape_cast %149 : vector<1x1x32xf32> to vector<1x32xf32>
    %151 = vector.broadcast %150 : vector<1x32xf32> to vector<16x32xf32>
    %152 = arith.addf %147, %151 : vector<16x32xf32>
    %153 = arith.index_cast %c0_i32 : i32 to index
    %c0_88 = arith.constant 0 : index
    %c0_89 = arith.constant 0 : index
    %154 = vector.load %arg29[%153, %c0_88, %c0_89] : memref<1x2x32xf32, #tpu.memory_space<vmem>>, vector<1x2x32xf32>
    %155 = vector.shape_cast %154 : vector<1x2x32xf32> to vector<2x32xf32>
    %156 = arith.addf %61, %152 : vector<16x32xf32>
    %157 = vector.extract_strided_slice %155 {offsets = [0, 0], sizes = [1, 32], strides = [1, 1]} : vector<2x32xf32> to vector<1x32xf32>
    %158 = vector.extract_strided_slice %155 {offsets = [1, 0], sizes = [1, 32], strides = [1, 1]} : vector<2x32xf32> to vector<1x32xf32>
    %cst_90 = arith.constant dense<0.000000e+00> : vector<16xf32>
    %159 = vector.multi_reduction <add>, %156, %cst_90 [1] : vector<16x32xf32> to vector<16xf32>
    %160 = vector.shape_cast %159 : vector<16xf32> to vector<16x1xf32>
    %cst_91 = arith.constant 3.200000e+01 : f32
    %161 = vector.broadcast %cst_91 : f32 to vector<16x1xf32>
    %162 = arith.divf %160, %161 : vector<16x1xf32>
    %163 = vector.broadcast %162 : vector<16x1xf32> to vector<16x32xf32>
    %164 = arith.subf %156, %163 : vector<16x32xf32>
    %165 = arith.mulf %164, %164 : vector<16x32xf32>
    %cst_92 = arith.constant dense<0.000000e+00> : vector<16xf32>
    %166 = vector.multi_reduction <add>, %165, %cst_92 [1] : vector<16x32xf32> to vector<16xf32>
    %167 = vector.shape_cast %166 : vector<16xf32> to vector<16x1xf32>
    %cst_93 = arith.constant 3.200000e+01 : f32
    %168 = vector.broadcast %cst_93 : f32 to vector<16x1xf32>
    %169 = arith.divf %167, %168 : vector<16x1xf32>
    %170 = vector.broadcast %162 : vector<16x1xf32> to vector<16x32xf32>
    %171 = arith.subf %156, %170 : vector<16x32xf32>
    %cst_94 = arith.constant 9.99999974E-6 : f32
    %172 = vector.broadcast %cst_94 : f32 to vector<16x1xf32>
    %173 = arith.addf %169, %172 : vector<16x1xf32>
    %174 = math.rsqrt %173 : vector<16x1xf32>
    %175 = vector.broadcast %174 : vector<16x1xf32> to vector<16x32xf32>
    %176 = arith.mulf %171, %175 : vector<16x32xf32>
    %177 = vector.broadcast %157 : vector<1x32xf32> to vector<16x32xf32>
    %178 = arith.mulf %176, %177 : vector<16x32xf32>
    %179 = vector.broadcast %158 : vector<1x32xf32> to vector<16x32xf32>
    %180 = arith.addf %178, %179 : vector<16x32xf32>
    %181 = arith.index_cast %c0_i32 : i32 to index
    %c0_95 = arith.constant 0 : index
    %c0_96 = arith.constant 0 : index
    %182 = vector.load %arg25[%181, %c0_95, %c0_96] : memref<1x32x64xf32, #tpu.memory_space<vmem>>, vector<1x32x64xf32>
    %183 = vector.shape_cast %182 : vector<1x32x64xf32> to vector<32x64xf32>
    %cst_97 = arith.constant dense<0.000000e+00> : vector<16x64xf32>
    %184 = tpu.matmul %180, %183, %cst_97 {dimension_numbers = #tpu.dot_dimension_numbers<[1], [0], [0], [1], [0, 0, 1, 1], [], []>} : vector<16x32xf32>, vector<32x64xf32>, vector<16x64xf32> -> vector<16x64xf32>
    %185 = arith.index_cast %c0_i32 : i32 to index
    %c0_98 = arith.constant 0 : index
    %c0_99 = arith.constant 0 : index
    %186 = vector.load %arg26[%185, %c0_98, %c0_99] : memref<1x1x64xf32, #tpu.memory_space<vmem>>, vector<1x1x64xf32>
    %187 = vector.shape_cast %186 : vector<1x1x64xf32> to vector<1x64xf32>
    %188 = vector.broadcast %187 : vector<1x64xf32> to vector<16x64xf32>
    %189 = arith.addf %184, %188 : vector<16x64xf32>
    %cst_100 = arith.constant 0.000000e+00 : f32
    %190 = vector.broadcast %cst_100 : f32 to vector<16x64xf32>
    %191 = arith.maximumf %189, %190 : vector<16x64xf32>
    %192 = arith.index_cast %c0_i32 : i32 to index
    %c0_101 = arith.constant 0 : index
    %c0_102 = arith.constant 0 : index
    %193 = vector.load %arg27[%192, %c0_101, %c0_102] : memref<1x64x32xf32, #tpu.memory_space<vmem>>, vector<1x64x32xf32>
    %194 = vector.shape_cast %193 : vector<1x64x32xf32> to vector<64x32xf32>
    %cst_103 = arith.constant dense<0.000000e+00> : vector<16x32xf32>
    %195 = tpu.matmul %191, %194, %cst_103 {dimension_numbers = #tpu.dot_dimension_numbers<[1], [0], [0], [1], [0, 0, 1, 1], [], []>} : vector<16x64xf32>, vector<64x32xf32>, vector<16x32xf32> -> vector<16x32xf32>
    %196 = arith.index_cast %c0_i32 : i32 to index
    %c0_104 = arith.constant 0 : index
    %c0_105 = arith.constant 0 : index
    %197 = vector.load %arg28[%196, %c0_104, %c0_105] : memref<1x1x32xf32, #tpu.memory_space<vmem>>, vector<1x1x32xf32>
    %198 = vector.shape_cast %197 : vector<1x1x32xf32> to vector<1x32xf32>
    %199 = vector.broadcast %198 : vector<1x32xf32> to vector<16x32xf32>
    %200 = arith.addf %195, %199 : vector<16x32xf32>
    %201 = arith.index_cast %c0_i32 : i32 to index
    %c0_106 = arith.constant 0 : index
    %c0_107 = arith.constant 0 : index
    %202 = vector.load %arg30[%201, %c0_106, %c0_107] : memref<1x2x32xf32, #tpu.memory_space<vmem>>, vector<1x2x32xf32>
    %203 = vector.shape_cast %202 : vector<1x2x32xf32> to vector<2x32xf32>
    %204 = arith.addf %180, %200 : vector<16x32xf32>
    %205 = vector.extract_strided_slice %203 {offsets = [0, 0], sizes = [1, 32], strides = [1, 1]} : vector<2x32xf32> to vector<1x32xf32>
    %206 = vector.extract_strided_slice %203 {offsets = [1, 0], sizes = [1, 32], strides = [1, 1]} : vector<2x32xf32> to vector<1x32xf32>
    %cst_108 = arith.constant dense<0.000000e+00> : vector<16xf32>
    %207 = vector.multi_reduction <add>, %204, %cst_108 [1] : vector<16x32xf32> to vector<16xf32>
    %208 = vector.shape_cast %207 : vector<16xf32> to vector<16x1xf32>
    %cst_109 = arith.constant 3.200000e+01 : f32
    %209 = vector.broadcast %cst_109 : f32 to vector<16x1xf32>
    %210 = arith.divf %208, %209 : vector<16x1xf32>
    %211 = vector.broadcast %210 : vector<16x1xf32> to vector<16x32xf32>
    %212 = arith.subf %204, %211 : vector<16x32xf32>
    %213 = arith.mulf %212, %212 : vector<16x32xf32>
    %cst_110 = arith.constant dense<0.000000e+00> : vector<16xf32>
    %214 = vector.multi_reduction <add>, %213, %cst_110 [1] : vector<16x32xf32> to vector<16xf32>
    %215 = vector.shape_cast %214 : vector<16xf32> to vector<16x1xf32>
    %cst_111 = arith.constant 3.200000e+01 : f32
    %216 = vector.broadcast %cst_111 : f32 to vector<16x1xf32>
    %217 = arith.divf %215, %216 : vector<16x1xf32>
    %218 = vector.broadcast %210 : vector<16x1xf32> to vector<16x32xf32>
    %219 = arith.subf %204, %218 : vector<16x32xf32>
    %cst_112 = arith.constant 9.99999974E-6 : f32
    %220 = vector.broadcast %cst_112 : f32 to vector<16x1xf32>
    %221 = arith.addf %217, %220 : vector<16x1xf32>
    %222 = math.rsqrt %221 : vector<16x1xf32>
    %223 = vector.broadcast %222 : vector<16x1xf32> to vector<16x32xf32>
    %224 = arith.mulf %219, %223 : vector<16x32xf32>
    %225 = vector.broadcast %205 : vector<1x32xf32> to vector<16x32xf32>
    %226 = arith.mulf %224, %225 : vector<16x32xf32>
    %227 = vector.broadcast %206 : vector<1x32xf32> to vector<16x32xf32>
    %228 = arith.addf %226, %227 : vector<16x32xf32>
    %c1_i32_113 = arith.constant 1 : i32
    %c0_114 = arith.constant 0 : index
    %c0_115 = arith.constant 0 : index
    %229 = vector.load %arg31[%c0_114, %c0_115] : memref<2x32xf32, #tpu.memory_space<vmem>>, vector<1x32xf32>
    %c1_116 = arith.constant 1 : index
    %c0_117 = arith.constant 0 : index
    %230 = vector.load %arg31[%c1_116, %c0_117] : memref<2x32xf32, #tpu.memory_space<vmem>>, vector<1x32xf32>
    %cst_118 = arith.constant dense<0.000000e+00> : vector<16xf32>
    %231 = vector.multi_reduction <add>, %228, %cst_118 [1] : vector<16x32xf32> to vector<16xf32>
    %232 = vector.shape_cast %231 : vector<16xf32> to vector<16x1xf32>
    %cst_119 = arith.constant 3.200000e+01 : f32
    %233 = vector.broadcast %cst_119 : f32 to vector<16x1xf32>
    %234 = arith.divf %232, %233 : vector<16x1xf32>
    %235 = vector.broadcast %234 : vector<16x1xf32> to vector<16x32xf32>
    %236 = arith.subf %228, %235 : vector<16x32xf32>
    %237 = arith.mulf %236, %236 : vector<16x32xf32>
    %cst_120 = arith.constant dense<0.000000e+00> : vector<16xf32>
    %238 = vector.multi_reduction <add>, %237, %cst_120 [1] : vector<16x32xf32> to vector<16xf32>
    %239 = vector.shape_cast %238 : vector<16xf32> to vector<16x1xf32>
    %cst_121 = arith.constant 3.200000e+01 : f32
    %240 = vector.broadcast %cst_121 : f32 to vector<16x1xf32>
    %241 = arith.divf %239, %240 : vector<16x1xf32>
    %242 = vector.broadcast %234 : vector<16x1xf32> to vector<16x32xf32>
    %243 = arith.subf %228, %242 : vector<16x32xf32>
    %cst_122 = arith.constant 9.99999974E-6 : f32
    %244 = vector.broadcast %cst_122 : f32 to vector<16x1xf32>
    %245 = arith.addf %241, %244 : vector<16x1xf32>
    %246 = math.rsqrt %245 : vector<16x1xf32>
    %247 = vector.broadcast %246 : vector<16x1xf32> to vector<16x32xf32>
    %248 = arith.mulf %243, %247 : vector<16x32xf32>
    %249 = vector.broadcast %229 : vector<1x32xf32> to vector<16x32xf32>
    %250 = arith.mulf %248, %249 : vector<16x32xf32>
    %251 = vector.broadcast %230 : vector<1x32xf32> to vector<16x32xf32>
    %252 = arith.addf %250, %251 : vector<16x32xf32>
    %c0_123 = arith.constant 0 : index
    %c0_124 = arith.constant 0 : index
    %c0_125 = arith.constant 0 : index
    %253 = vector.load %arg6[%c0_123, %c0_124, %c0_125] : memref<1x16x4xf32, #tpu.memory_space<vmem>>, vector<1x16x4xf32>
    %254 = vector.shape_cast %253 : vector<1x16x4xf32> to vector<16x4xf32>
    %c1_i32_126 = arith.constant 1 : i32
    %255 = tpu.dynamic_rotate %254 by %c1_i32_126 dim 0 : vector<16x4xf32>, i32 -> vector<16x4xf32>
    %c15_i32_127 = arith.constant 15 : i32
    %256 = tpu.dynamic_rotate %254 by %c15_i32_127 dim 0 : vector<16x4xf32>, i32 -> vector<16x4xf32>
    %c0_128 = arith.constant 0 : index
    %c0_129 = arith.constant 0 : index
    %c0_130 = arith.constant 0 : index
    %257 = vector.load %arg32[%c0_128, %c0_129, %c0_130] : memref<3x4x32xf32, #tpu.memory_space<vmem>>, vector<1x4x32xf32>
    %258 = vector.shape_cast %257 : vector<1x4x32xf32> to vector<4x32xf32>
    %cst_131 = arith.constant dense<0.000000e+00> : vector<16x32xf32>
    %259 = tpu.matmul %255, %258, %cst_131 {dimension_numbers = #tpu.dot_dimension_numbers<[1], [0], [0], [1], [0, 0, 1, 1], [], []>} : vector<16x4xf32>, vector<4x32xf32>, vector<16x32xf32> -> vector<16x32xf32>
    %c1_132 = arith.constant 1 : index
    %c0_133 = arith.constant 0 : index
    %c0_134 = arith.constant 0 : index
    %260 = vector.load %arg32[%c1_132, %c0_133, %c0_134] : memref<3x4x32xf32, #tpu.memory_space<vmem>>, vector<1x4x32xf32>
    %261 = vector.shape_cast %260 : vector<1x4x32xf32> to vector<4x32xf32>
    %cst_135 = arith.constant dense<0.000000e+00> : vector<16x32xf32>
    %262 = tpu.matmul %254, %261, %cst_135 {dimension_numbers = #tpu.dot_dimension_numbers<[1], [0], [0], [1], [0, 0, 1, 1], [], []>} : vector<16x4xf32>, vector<4x32xf32>, vector<16x32xf32> -> vector<16x32xf32>
    %263 = arith.addf %259, %262 : vector<16x32xf32>
    %c2_136 = arith.constant 2 : index
    %c0_137 = arith.constant 0 : index
    %c0_138 = arith.constant 0 : index
    %264 = vector.load %arg32[%c2_136, %c0_137, %c0_138] : memref<3x4x32xf32, #tpu.memory_space<vmem>>, vector<1x4x32xf32>
    %265 = vector.shape_cast %264 : vector<1x4x32xf32> to vector<4x32xf32>
    %cst_139 = arith.constant dense<0.000000e+00> : vector<16x32xf32>
    %266 = tpu.matmul %256, %265, %cst_139 {dimension_numbers = #tpu.dot_dimension_numbers<[1], [0], [0], [1], [0, 0, 1, 1], [], []>} : vector<16x4xf32>, vector<4x32xf32>, vector<16x32xf32> -> vector<16x32xf32>
    %267 = arith.addf %263, %266 : vector<16x32xf32>
    %c0_140 = arith.constant 0 : index
    %c0_141 = arith.constant 0 : index
    %268 = vector.load %arg33[%c0_140, %c0_141] : memref<16x32xf32, #tpu.memory_space<vmem>>, vector<16x32xf32>
    %269 = arith.addf %267, %268 : vector<16x32xf32>
    %270 = tpu.iota {dimensions = array<i32: 0>} : vector<16x16xi32>
    %271 = tpu.iota {dimensions = array<i32: 1>} : vector<16x16xi32>
    %272 = arith.cmpi sgt, %271, %270 : vector<16x16xi32>
    %c0_i32_142 = arith.constant 0 : i32
    %273 = arith.index_cast %c0_i32_142 : i32 to index
    %c0_143 = arith.constant 0 : index
    %c0_144 = arith.constant 0 : index
    %274 = vector.load %arg34[%273, %c0_143, %c0_144] : memref<1x32x96xf32, #tpu.memory_space<vmem>>, vector<1x32x96xf32>
    %275 = vector.shape_cast %274 : vector<1x32x96xf32> to vector<32x96xf32>
    %cst_145 = arith.constant dense<0.000000e+00> : vector<16x96xf32>
    %276 = tpu.matmul %269, %275, %cst_145 {dimension_numbers = #tpu.dot_dimension_numbers<[1], [0], [0], [1], [0, 0, 1, 1], [], []>} : vector<16x32xf32>, vector<32x96xf32>, vector<16x96xf32> -> vector<16x96xf32>
    %277 = arith.index_cast %c0_i32_142 : i32 to index
    %c0_146 = arith.constant 0 : index
    %c0_147 = arith.constant 0 : index
    %278 = vector.load %arg35[%277, %c0_146, %c0_147] : memref<1x1x96xf32, #tpu.memory_space<vmem>>, vector<1x1x96xf32>
    %279 = vector.shape_cast %278 : vector<1x1x96xf32> to vector<1x96xf32>
    %280 = vector.broadcast %279 : vector<1x96xf32> to vector<16x96xf32>
    %281 = arith.addf %276, %280 : vector<16x96xf32>
    %282 = vector.extract_strided_slice %281 {offsets = [0, 0], sizes = [16, 8], strides = [1, 1]} : vector<16x96xf32> to vector<16x8xf32>
    %283 = vector.extract_strided_slice %281 {offsets = [0, 32], sizes = [16, 8], strides = [1, 1]} : vector<16x96xf32> to vector<16x8xf32>
    %284 = vector.extract_strided_slice %281 {offsets = [0, 64], sizes = [16, 8], strides = [1, 1]} : vector<16x96xf32> to vector<16x8xf32>
    %cst_148 = arith.constant dense<0.000000e+00> : vector<16x16xf32>
    %285 = tpu.matmul %282, %283, %cst_148 {dimension_numbers = #tpu.dot_dimension_numbers<[1], [1], [0], [0], [0, 0, 1, 0], [], []>} : vector<16x8xf32>, vector<16x8xf32>, vector<16x16xf32> -> vector<16x16xf32>
    %286 = vector.broadcast %44 : vector<1x1xf32> to vector<16x16xf32>
    %287 = arith.mulf %285, %286 : vector<16x16xf32>
    %cst_149 = arith.constant -1.000000e+30 : f32
    %288 = vector.broadcast %cst_149 : f32 to vector<16x16xf32>
    %289 = arith.select %272, %288, %287 : vector<16x16xi1>, vector<16x16xf32>
    %cst_150 = arith.constant dense<0xFF800000> : vector<16xf32>
    %290 = vector.multi_reduction <maximumf>, %289, %cst_150 [1] : vector<16x16xf32> to vector<16xf32>
    %291 = vector.shape_cast %290 : vector<16xf32> to vector<16x1xf32>
    %292 = vector.broadcast %291 : vector<16x1xf32> to vector<16x16xf32>
    %293 = arith.subf %289, %292 : vector<16x16xf32>
    %294 = math.exp %293 : vector<16x16xf32>
    %cst_151 = arith.constant dense<0.000000e+00> : vector<16xf32>
    %295 = vector.multi_reduction <add>, %294, %cst_151 [1] : vector<16x16xf32> to vector<16xf32>
    %296 = vector.shape_cast %295 : vector<16xf32> to vector<16x1xf32>
    %297 = vector.broadcast %296 : vector<16x1xf32> to vector<16x16xf32>
    %298 = arith.divf %294, %297 : vector<16x16xf32>
    %cst_152 = arith.constant dense<0.000000e+00> : vector<16x8xf32>
    %299 = tpu.matmul %298, %284, %cst_152 {dimension_numbers = #tpu.dot_dimension_numbers<[1], [0], [0], [1], [0, 0, 1, 1], [], []>} : vector<16x16xf32>, vector<16x8xf32>, vector<16x8xf32> -> vector<16x8xf32>
    %300 = vector.extract_strided_slice %281 {offsets = [0, 8], sizes = [16, 8], strides = [1, 1]} : vector<16x96xf32> to vector<16x8xf32>
    %301 = vector.extract_strided_slice %281 {offsets = [0, 40], sizes = [16, 8], strides = [1, 1]} : vector<16x96xf32> to vector<16x8xf32>
    %302 = vector.extract_strided_slice %281 {offsets = [0, 72], sizes = [16, 8], strides = [1, 1]} : vector<16x96xf32> to vector<16x8xf32>
    %cst_153 = arith.constant dense<0.000000e+00> : vector<16x16xf32>
    %303 = tpu.matmul %300, %301, %cst_153 {dimension_numbers = #tpu.dot_dimension_numbers<[1], [1], [0], [0], [0, 0, 1, 0], [], []>} : vector<16x8xf32>, vector<16x8xf32>, vector<16x16xf32> -> vector<16x16xf32>
    %304 = vector.broadcast %44 : vector<1x1xf32> to vector<16x16xf32>
    %305 = arith.mulf %303, %304 : vector<16x16xf32>
    %cst_154 = arith.constant -1.000000e+30 : f32
    %306 = vector.broadcast %cst_154 : f32 to vector<16x16xf32>
    %307 = arith.select %272, %306, %305 : vector<16x16xi1>, vector<16x16xf32>
    %cst_155 = arith.constant dense<0xFF800000> : vector<16xf32>
    %308 = vector.multi_reduction <maximumf>, %307, %cst_155 [1] : vector<16x16xf32> to vector<16xf32>
    %309 = vector.shape_cast %308 : vector<16xf32> to vector<16x1xf32>
    %310 = vector.broadcast %309 : vector<16x1xf32> to vector<16x16xf32>
    %311 = arith.subf %307, %310 : vector<16x16xf32>
    %312 = math.exp %311 : vector<16x16xf32>
    %cst_156 = arith.constant dense<0.000000e+00> : vector<16xf32>
    %313 = vector.multi_reduction <add>, %312, %cst_156 [1] : vector<16x16xf32> to vector<16xf32>
    %314 = vector.shape_cast %313 : vector<16xf32> to vector<16x1xf32>
    %315 = vector.broadcast %314 : vector<16x1xf32> to vector<16x16xf32>
    %316 = arith.divf %312, %315 : vector<16x16xf32>
    %cst_157 = arith.constant dense<0.000000e+00> : vector<16x8xf32>
    %317 = tpu.matmul %316, %302, %cst_157 {dimension_numbers = #tpu.dot_dimension_numbers<[1], [0], [0], [1], [0, 0, 1, 1], [], []>} : vector<16x16xf32>, vector<16x8xf32>, vector<16x8xf32> -> vector<16x8xf32>
    %318 = vector.extract_strided_slice %281 {offsets = [0, 16], sizes = [16, 8], strides = [1, 1]} : vector<16x96xf32> to vector<16x8xf32>
    %319 = vector.extract_strided_slice %281 {offsets = [0, 48], sizes = [16, 8], strides = [1, 1]} : vector<16x96xf32> to vector<16x8xf32>
    %320 = vector.extract_strided_slice %281 {offsets = [0, 80], sizes = [16, 8], strides = [1, 1]} : vector<16x96xf32> to vector<16x8xf32>
    %cst_158 = arith.constant dense<0.000000e+00> : vector<16x16xf32>
    %321 = tpu.matmul %318, %319, %cst_158 {dimension_numbers = #tpu.dot_dimension_numbers<[1], [1], [0], [0], [0, 0, 1, 0], [], []>} : vector<16x8xf32>, vector<16x8xf32>, vector<16x16xf32> -> vector<16x16xf32>
    %322 = vector.broadcast %44 : vector<1x1xf32> to vector<16x16xf32>
    %323 = arith.mulf %321, %322 : vector<16x16xf32>
    %cst_159 = arith.constant -1.000000e+30 : f32
    %324 = vector.broadcast %cst_159 : f32 to vector<16x16xf32>
    %325 = arith.select %272, %324, %323 : vector<16x16xi1>, vector<16x16xf32>
    %cst_160 = arith.constant dense<0xFF800000> : vector<16xf32>
    %326 = vector.multi_reduction <maximumf>, %325, %cst_160 [1] : vector<16x16xf32> to vector<16xf32>
    %327 = vector.shape_cast %326 : vector<16xf32> to vector<16x1xf32>
    %328 = vector.broadcast %327 : vector<16x1xf32> to vector<16x16xf32>
    %329 = arith.subf %325, %328 : vector<16x16xf32>
    %330 = math.exp %329 : vector<16x16xf32>
    %cst_161 = arith.constant dense<0.000000e+00> : vector<16xf32>
    %331 = vector.multi_reduction <add>, %330, %cst_161 [1] : vector<16x16xf32> to vector<16xf32>
    %332 = vector.shape_cast %331 : vector<16xf32> to vector<16x1xf32>
    %333 = vector.broadcast %332 : vector<16x1xf32> to vector<16x16xf32>
    %334 = arith.divf %330, %333 : vector<16x16xf32>
    %cst_162 = arith.constant dense<0.000000e+00> : vector<16x8xf32>
    %335 = tpu.matmul %334, %320, %cst_162 {dimension_numbers = #tpu.dot_dimension_numbers<[1], [0], [0], [1], [0, 0, 1, 1], [], []>} : vector<16x16xf32>, vector<16x8xf32>, vector<16x8xf32> -> vector<16x8xf32>
    %336 = vector.extract_strided_slice %281 {offsets = [0, 24], sizes = [16, 8], strides = [1, 1]} : vector<16x96xf32> to vector<16x8xf32>
    %337 = vector.extract_strided_slice %281 {offsets = [0, 56], sizes = [16, 8], strides = [1, 1]} : vector<16x96xf32> to vector<16x8xf32>
    %338 = vector.extract_strided_slice %281 {offsets = [0, 88], sizes = [16, 8], strides = [1, 1]} : vector<16x96xf32> to vector<16x8xf32>
    %cst_163 = arith.constant dense<0.000000e+00> : vector<16x16xf32>
    %339 = tpu.matmul %336, %337, %cst_163 {dimension_numbers = #tpu.dot_dimension_numbers<[1], [1], [0], [0], [0, 0, 1, 0], [], []>} : vector<16x8xf32>, vector<16x8xf32>, vector<16x16xf32> -> vector<16x16xf32>
    %340 = vector.broadcast %44 : vector<1x1xf32> to vector<16x16xf32>
    %341 = arith.mulf %339, %340 : vector<16x16xf32>
    %cst_164 = arith.constant -1.000000e+30 : f32
    %342 = vector.broadcast %cst_164 : f32 to vector<16x16xf32>
    %343 = arith.select %272, %342, %341 : vector<16x16xi1>, vector<16x16xf32>
    %cst_165 = arith.constant dense<0xFF800000> : vector<16xf32>
    %344 = vector.multi_reduction <maximumf>, %343, %cst_165 [1] : vector<16x16xf32> to vector<16xf32>
    %345 = vector.shape_cast %344 : vector<16xf32> to vector<16x1xf32>
    %346 = vector.broadcast %345 : vector<16x1xf32> to vector<16x16xf32>
    %347 = arith.subf %343, %346 : vector<16x16xf32>
    %348 = math.exp %347 : vector<16x16xf32>
    %cst_166 = arith.constant dense<0.000000e+00> : vector<16xf32>
    %349 = vector.multi_reduction <add>, %348, %cst_166 [1] : vector<16x16xf32> to vector<16xf32>
    %350 = vector.shape_cast %349 : vector<16xf32> to vector<16x1xf32>
    %351 = vector.broadcast %350 : vector<16x1xf32> to vector<16x16xf32>
    %352 = arith.divf %348, %351 : vector<16x16xf32>
    %cst_167 = arith.constant dense<0.000000e+00> : vector<16x8xf32>
    %353 = tpu.matmul %352, %338, %cst_167 {dimension_numbers = #tpu.dot_dimension_numbers<[1], [0], [0], [1], [0, 0, 1, 1], [], []>} : vector<16x16xf32>, vector<16x8xf32>, vector<16x8xf32> -> vector<16x8xf32>
    %354 = tpu.concatenate %299, %317, %335, %353 in 1 : vector<16x8xf32>, vector<16x8xf32>, vector<16x8xf32>, vector<16x8xf32> -> vector<16x32xf32>
    %355 = arith.index_cast %c0_i32_142 : i32 to index
    %c0_168 = arith.constant 0 : index
    %c0_169 = arith.constant 0 : index
    %356 = vector.load %arg36[%355, %c0_168, %c0_169] : memref<1x32x32xf32, #tpu.memory_space<vmem>>, vector<1x32x32xf32>
    %357 = vector.shape_cast %356 : vector<1x32x32xf32> to vector<32x32xf32>
    %cst_170 = arith.constant dense<0.000000e+00> : vector<16x32xf32>
    %358 = tpu.matmul %354, %357, %cst_170 {dimension_numbers = #tpu.dot_dimension_numbers<[1], [0], [0], [1], [0, 0, 1, 1], [], []>} : vector<16x32xf32>, vector<32x32xf32>, vector<16x32xf32> -> vector<16x32xf32>
    %359 = arith.index_cast %c0_i32_142 : i32 to index
    %c0_171 = arith.constant 0 : index
    %c0_172 = arith.constant 0 : index
    %360 = vector.load %arg37[%359, %c0_171, %c0_172] : memref<1x1x32xf32, #tpu.memory_space<vmem>>, vector<1x1x32xf32>
    %361 = vector.shape_cast %360 : vector<1x1x32xf32> to vector<1x32xf32>
    %362 = vector.broadcast %361 : vector<1x32xf32> to vector<16x32xf32>
    %363 = arith.addf %358, %362 : vector<16x32xf32>
    %364 = arith.index_cast %c0_i32_142 : i32 to index
    %c0_173 = arith.constant 0 : index
    %c0_174 = arith.constant 0 : index
    %365 = vector.load %arg48[%364, %c0_173, %c0_174] : memref<1x2x32xf32, #tpu.memory_space<vmem>>, vector<1x2x32xf32>
    %366 = vector.shape_cast %365 : vector<1x2x32xf32> to vector<2x32xf32>
    %367 = arith.addf %269, %363 : vector<16x32xf32>
    %368 = vector.extract_strided_slice %366 {offsets = [0, 0], sizes = [1, 32], strides = [1, 1]} : vector<2x32xf32> to vector<1x32xf32>
    %369 = vector.extract_strided_slice %366 {offsets = [1, 0], sizes = [1, 32], strides = [1, 1]} : vector<2x32xf32> to vector<1x32xf32>
    %cst_175 = arith.constant dense<0.000000e+00> : vector<16xf32>
    %370 = vector.multi_reduction <add>, %367, %cst_175 [1] : vector<16x32xf32> to vector<16xf32>
    %371 = vector.shape_cast %370 : vector<16xf32> to vector<16x1xf32>
    %cst_176 = arith.constant 3.200000e+01 : f32
    %372 = vector.broadcast %cst_176 : f32 to vector<16x1xf32>
    %373 = arith.divf %371, %372 : vector<16x1xf32>
    %374 = vector.broadcast %373 : vector<16x1xf32> to vector<16x32xf32>
    %375 = arith.subf %367, %374 : vector<16x32xf32>
    %376 = arith.mulf %375, %375 : vector<16x32xf32>
    %cst_177 = arith.constant dense<0.000000e+00> : vector<16xf32>
    %377 = vector.multi_reduction <add>, %376, %cst_177 [1] : vector<16x32xf32> to vector<16xf32>
    %378 = vector.shape_cast %377 : vector<16xf32> to vector<16x1xf32>
    %cst_178 = arith.constant 3.200000e+01 : f32
    %379 = vector.broadcast %cst_178 : f32 to vector<16x1xf32>
    %380 = arith.divf %378, %379 : vector<16x1xf32>
    %381 = vector.broadcast %373 : vector<16x1xf32> to vector<16x32xf32>
    %382 = arith.subf %367, %381 : vector<16x32xf32>
    %cst_179 = arith.constant 9.99999974E-6 : f32
    %383 = vector.broadcast %cst_179 : f32 to vector<16x1xf32>
    %384 = arith.addf %380, %383 : vector<16x1xf32>
    %385 = math.rsqrt %384 : vector<16x1xf32>
    %386 = vector.broadcast %385 : vector<16x1xf32> to vector<16x32xf32>
    %387 = arith.mulf %382, %386 : vector<16x32xf32>
    %388 = vector.broadcast %368 : vector<1x32xf32> to vector<16x32xf32>
    %389 = arith.mulf %387, %388 : vector<16x32xf32>
    %390 = vector.broadcast %369 : vector<1x32xf32> to vector<16x32xf32>
    %391 = arith.addf %389, %390 : vector<16x32xf32>
    %392 = arith.index_cast %c0_i32_142 : i32 to index
    %c0_180 = arith.constant 0 : index
    %c0_181 = arith.constant 0 : index
    %393 = vector.load %arg38[%392, %c0_180, %c0_181] : memref<1x32x32xf32, #tpu.memory_space<vmem>>, vector<1x32x32xf32>
    %394 = vector.shape_cast %393 : vector<1x32x32xf32> to vector<32x32xf32>
    %cst_182 = arith.constant dense<0.000000e+00> : vector<16x32xf32>
    %395 = tpu.matmul %391, %394, %cst_182 {dimension_numbers = #tpu.dot_dimension_numbers<[1], [0], [0], [1], [0, 0, 1, 1], [], []>} : vector<16x32xf32>, vector<32x32xf32>, vector<16x32xf32> -> vector<16x32xf32>
    %396 = arith.index_cast %c0_i32_142 : i32 to index
    %c0_183 = arith.constant 0 : index
    %c0_184 = arith.constant 0 : index
    %397 = vector.load %arg39[%396, %c0_183, %c0_184] : memref<1x1x32xf32, #tpu.memory_space<vmem>>, vector<1x1x32xf32>
    %398 = vector.shape_cast %397 : vector<1x1x32xf32> to vector<1x32xf32>
    %399 = vector.broadcast %398 : vector<1x32xf32> to vector<16x32xf32>
    %400 = arith.addf %395, %399 : vector<16x32xf32>
    %401 = arith.index_cast %c0_i32_142 : i32 to index
    %c0_185 = arith.constant 0 : index
    %c0_186 = arith.constant 0 : index
    %402 = vector.load %arg40[%401, %c0_185, %c0_186] : memref<1x32x64xf32, #tpu.memory_space<vmem>>, vector<1x32x64xf32>
    %403 = vector.shape_cast %402 : vector<1x32x64xf32> to vector<32x64xf32>
    %cst_187 = arith.constant dense<0.000000e+00> : vector<16x64xf32>
    %404 = tpu.matmul %252, %403, %cst_187 {dimension_numbers = #tpu.dot_dimension_numbers<[1], [0], [0], [1], [0, 0, 1, 1], [], []>} : vector<16x32xf32>, vector<32x64xf32>, vector<16x64xf32> -> vector<16x64xf32>
    %405 = arith.index_cast %c0_i32_142 : i32 to index
    %c0_188 = arith.constant 0 : index
    %c0_189 = arith.constant 0 : index
    %406 = vector.load %arg41[%405, %c0_188, %c0_189] : memref<1x1x64xf32, #tpu.memory_space<vmem>>, vector<1x1x64xf32>
    %407 = vector.shape_cast %406 : vector<1x1x64xf32> to vector<1x64xf32>
    %408 = vector.broadcast %407 : vector<1x64xf32> to vector<16x64xf32>
    %409 = arith.addf %404, %408 : vector<16x64xf32>
    %410 = vector.extract_strided_slice %400 {offsets = [0, 0], sizes = [16, 8], strides = [1, 1]} : vector<16x32xf32> to vector<16x8xf32>
    %411 = vector.extract_strided_slice %409 {offsets = [0, 0], sizes = [16, 8], strides = [1, 1]} : vector<16x64xf32> to vector<16x8xf32>
    %412 = vector.extract_strided_slice %409 {offsets = [0, 32], sizes = [16, 8], strides = [1, 1]} : vector<16x64xf32> to vector<16x8xf32>
    %cst_190 = arith.constant dense<0.000000e+00> : vector<16x16xf32>
    %413 = tpu.matmul %410, %411, %cst_190 {dimension_numbers = #tpu.dot_dimension_numbers<[1], [1], [0], [0], [0, 0, 1, 0], [], []>} : vector<16x8xf32>, vector<16x8xf32>, vector<16x16xf32> -> vector<16x16xf32>
    %414 = vector.broadcast %44 : vector<1x1xf32> to vector<16x16xf32>
    %415 = arith.mulf %413, %414 : vector<16x16xf32>
    %416 = vector.broadcast %42 : vector<1x16xf32> to vector<16x16xf32>
    %417 = arith.addf %415, %416 : vector<16x16xf32>
    %cst_191 = arith.constant dense<0xFF800000> : vector<16xf32>
    %418 = vector.multi_reduction <maximumf>, %417, %cst_191 [1] : vector<16x16xf32> to vector<16xf32>
    %419 = vector.shape_cast %418 : vector<16xf32> to vector<16x1xf32>
    %420 = vector.broadcast %419 : vector<16x1xf32> to vector<16x16xf32>
    %421 = arith.subf %417, %420 : vector<16x16xf32>
    %422 = math.exp %421 : vector<16x16xf32>
    %cst_192 = arith.constant dense<0.000000e+00> : vector<16xf32>
    %423 = vector.multi_reduction <add>, %422, %cst_192 [1] : vector<16x16xf32> to vector<16xf32>
    %424 = vector.shape_cast %423 : vector<16xf32> to vector<16x1xf32>
    %425 = vector.broadcast %424 : vector<16x1xf32> to vector<16x16xf32>
    %426 = arith.divf %422, %425 : vector<16x16xf32>
    %cst_193 = arith.constant dense<0.000000e+00> : vector<16x8xf32>
    %427 = tpu.matmul %426, %412, %cst_193 {dimension_numbers = #tpu.dot_dimension_numbers<[1], [0], [0], [1], [0, 0, 1, 1], [], []>} : vector<16x16xf32>, vector<16x8xf32>, vector<16x8xf32> -> vector<16x8xf32>
    %428 = vector.extract_strided_slice %400 {offsets = [0, 8], sizes = [16, 8], strides = [1, 1]} : vector<16x32xf32> to vector<16x8xf32>
    %429 = vector.extract_strided_slice %409 {offsets = [0, 8], sizes = [16, 8], strides = [1, 1]} : vector<16x64xf32> to vector<16x8xf32>
    %430 = vector.extract_strided_slice %409 {offsets = [0, 40], sizes = [16, 8], strides = [1, 1]} : vector<16x64xf32> to vector<16x8xf32>
    %cst_194 = arith.constant dense<0.000000e+00> : vector<16x16xf32>
    %431 = tpu.matmul %428, %429, %cst_194 {dimension_numbers = #tpu.dot_dimension_numbers<[1], [1], [0], [0], [0, 0, 1, 0], [], []>} : vector<16x8xf32>, vector<16x8xf32>, vector<16x16xf32> -> vector<16x16xf32>
    %432 = vector.broadcast %44 : vector<1x1xf32> to vector<16x16xf32>
    %433 = arith.mulf %431, %432 : vector<16x16xf32>
    %434 = vector.broadcast %42 : vector<1x16xf32> to vector<16x16xf32>
    %435 = arith.addf %433, %434 : vector<16x16xf32>
    %cst_195 = arith.constant dense<0xFF800000> : vector<16xf32>
    %436 = vector.multi_reduction <maximumf>, %435, %cst_195 [1] : vector<16x16xf32> to vector<16xf32>
    %437 = vector.shape_cast %436 : vector<16xf32> to vector<16x1xf32>
    %438 = vector.broadcast %437 : vector<16x1xf32> to vector<16x16xf32>
    %439 = arith.subf %435, %438 : vector<16x16xf32>
    %440 = math.exp %439 : vector<16x16xf32>
    %cst_196 = arith.constant dense<0.000000e+00> : vector<16xf32>
    %441 = vector.multi_reduction <add>, %440, %cst_196 [1] : vector<16x16xf32> to vector<16xf32>
    %442 = vector.shape_cast %441 : vector<16xf32> to vector<16x1xf32>
    %443 = vector.broadcast %442 : vector<16x1xf32> to vector<16x16xf32>
    %444 = arith.divf %440, %443 : vector<16x16xf32>
    %cst_197 = arith.constant dense<0.000000e+00> : vector<16x8xf32>
    %445 = tpu.matmul %444, %430, %cst_197 {dimension_numbers = #tpu.dot_dimension_numbers<[1], [0], [0], [1], [0, 0, 1, 1], [], []>} : vector<16x16xf32>, vector<16x8xf32>, vector<16x8xf32> -> vector<16x8xf32>
    %446 = vector.extract_strided_slice %400 {offsets = [0, 16], sizes = [16, 8], strides = [1, 1]} : vector<16x32xf32> to vector<16x8xf32>
    %447 = vector.extract_strided_slice %409 {offsets = [0, 16], sizes = [16, 8], strides = [1, 1]} : vector<16x64xf32> to vector<16x8xf32>
    %448 = vector.extract_strided_slice %409 {offsets = [0, 48], sizes = [16, 8], strides = [1, 1]} : vector<16x64xf32> to vector<16x8xf32>
    %cst_198 = arith.constant dense<0.000000e+00> : vector<16x16xf32>
    %449 = tpu.matmul %446, %447, %cst_198 {dimension_numbers = #tpu.dot_dimension_numbers<[1], [1], [0], [0], [0, 0, 1, 0], [], []>} : vector<16x8xf32>, vector<16x8xf32>, vector<16x16xf32> -> vector<16x16xf32>
    %450 = vector.broadcast %44 : vector<1x1xf32> to vector<16x16xf32>
    %451 = arith.mulf %449, %450 : vector<16x16xf32>
    %452 = vector.broadcast %42 : vector<1x16xf32> to vector<16x16xf32>
    %453 = arith.addf %451, %452 : vector<16x16xf32>
    %cst_199 = arith.constant dense<0xFF800000> : vector<16xf32>
    %454 = vector.multi_reduction <maximumf>, %453, %cst_199 [1] : vector<16x16xf32> to vector<16xf32>
    %455 = vector.shape_cast %454 : vector<16xf32> to vector<16x1xf32>
    %456 = vector.broadcast %455 : vector<16x1xf32> to vector<16x16xf32>
    %457 = arith.subf %453, %456 : vector<16x16xf32>
    %458 = math.exp %457 : vector<16x16xf32>
    %cst_200 = arith.constant dense<0.000000e+00> : vector<16xf32>
    %459 = vector.multi_reduction <add>, %458, %cst_200 [1] : vector<16x16xf32> to vector<16xf32>
    %460 = vector.shape_cast %459 : vector<16xf32> to vector<16x1xf32>
    %461 = vector.broadcast %460 : vector<16x1xf32> to vector<16x16xf32>
    %462 = arith.divf %458, %461 : vector<16x16xf32>
    %cst_201 = arith.constant dense<0.000000e+00> : vector<16x8xf32>
    %463 = tpu.matmul %462, %448, %cst_201 {dimension_numbers = #tpu.dot_dimension_numbers<[1], [0], [0], [1], [0, 0, 1, 1], [], []>} : vector<16x16xf32>, vector<16x8xf32>, vector<16x8xf32> -> vector<16x8xf32>
    %464 = vector.extract_strided_slice %400 {offsets = [0, 24], sizes = [16, 8], strides = [1, 1]} : vector<16x32xf32> to vector<16x8xf32>
    %465 = vector.extract_strided_slice %409 {offsets = [0, 24], sizes = [16, 8], strides = [1, 1]} : vector<16x64xf32> to vector<16x8xf32>
    %466 = vector.extract_strided_slice %409 {offsets = [0, 56], sizes = [16, 8], strides = [1, 1]} : vector<16x64xf32> to vector<16x8xf32>
    %cst_202 = arith.constant dense<0.000000e+00> : vector<16x16xf32>
    %467 = tpu.matmul %464, %465, %cst_202 {dimension_numbers = #tpu.dot_dimension_numbers<[1], [1], [0], [0], [0, 0, 1, 0], [], []>} : vector<16x8xf32>, vector<16x8xf32>, vector<16x16xf32> -> vector<16x16xf32>
    %468 = vector.broadcast %44 : vector<1x1xf32> to vector<16x16xf32>
    %469 = arith.mulf %467, %468 : vector<16x16xf32>
    %470 = vector.broadcast %42 : vector<1x16xf32> to vector<16x16xf32>
    %471 = arith.addf %469, %470 : vector<16x16xf32>
    %cst_203 = arith.constant dense<0xFF800000> : vector<16xf32>
    %472 = vector.multi_reduction <maximumf>, %471, %cst_203 [1] : vector<16x16xf32> to vector<16xf32>
    %473 = vector.shape_cast %472 : vector<16xf32> to vector<16x1xf32>
    %474 = vector.broadcast %473 : vector<16x1xf32> to vector<16x16xf32>
    %475 = arith.subf %471, %474 : vector<16x16xf32>
    %476 = math.exp %475 : vector<16x16xf32>
    %cst_204 = arith.constant dense<0.000000e+00> : vector<16xf32>
    %477 = vector.multi_reduction <add>, %476, %cst_204 [1] : vector<16x16xf32> to vector<16xf32>
    %478 = vector.shape_cast %477 : vector<16xf32> to vector<16x1xf32>
    %479 = vector.broadcast %478 : vector<16x1xf32> to vector<16x16xf32>
    %480 = arith.divf %476, %479 : vector<16x16xf32>
    %cst_205 = arith.constant dense<0.000000e+00> : vector<16x8xf32>
    %481 = tpu.matmul %480, %466, %cst_205 {dimension_numbers = #tpu.dot_dimension_numbers<[1], [0], [0], [1], [0, 0, 1, 1], [], []>} : vector<16x16xf32>, vector<16x8xf32>, vector<16x8xf32> -> vector<16x8xf32>
    %482 = tpu.concatenate %427, %445, %463, %481 in 1 : vector<16x8xf32>, vector<16x8xf32>, vector<16x8xf32>, vector<16x8xf32> -> vector<16x32xf32>
    %483 = arith.index_cast %c0_i32_142 : i32 to index
    %c0_206 = arith.constant 0 : index
    %c0_207 = arith.constant 0 : index
    %484 = vector.load %arg42[%483, %c0_206, %c0_207] : memref<1x32x32xf32, #tpu.memory_space<vmem>>, vector<1x32x32xf32>
    %485 = vector.shape_cast %484 : vector<1x32x32xf32> to vector<32x32xf32>
    %cst_208 = arith.constant dense<0.000000e+00> : vector<16x32xf32>
    %486 = tpu.matmul %482, %485, %cst_208 {dimension_numbers = #tpu.dot_dimension_numbers<[1], [0], [0], [1], [0, 0, 1, 1], [], []>} : vector<16x32xf32>, vector<32x32xf32>, vector<16x32xf32> -> vector<16x32xf32>
    %487 = arith.index_cast %c0_i32_142 : i32 to index
    %c0_209 = arith.constant 0 : index
    %c0_210 = arith.constant 0 : index
    %488 = vector.load %arg43[%487, %c0_209, %c0_210] : memref<1x1x32xf32, #tpu.memory_space<vmem>>, vector<1x1x32xf32>
    %489 = vector.shape_cast %488 : vector<1x1x32xf32> to vector<1x32xf32>
    %490 = vector.broadcast %489 : vector<1x32xf32> to vector<16x32xf32>
    %491 = arith.addf %486, %490 : vector<16x32xf32>
    %492 = arith.index_cast %c0_i32_142 : i32 to index
    %c0_211 = arith.constant 0 : index
    %c0_212 = arith.constant 0 : index
    %493 = vector.load %arg49[%492, %c0_211, %c0_212] : memref<1x2x32xf32, #tpu.memory_space<vmem>>, vector<1x2x32xf32>
    %494 = vector.shape_cast %493 : vector<1x2x32xf32> to vector<2x32xf32>
    %495 = arith.addf %391, %491 : vector<16x32xf32>
    %496 = vector.extract_strided_slice %494 {offsets = [0, 0], sizes = [1, 32], strides = [1, 1]} : vector<2x32xf32> to vector<1x32xf32>
    %497 = vector.extract_strided_slice %494 {offsets = [1, 0], sizes = [1, 32], strides = [1, 1]} : vector<2x32xf32> to vector<1x32xf32>
    %cst_213 = arith.constant dense<0.000000e+00> : vector<16xf32>
    %498 = vector.multi_reduction <add>, %495, %cst_213 [1] : vector<16x32xf32> to vector<16xf32>
    %499 = vector.shape_cast %498 : vector<16xf32> to vector<16x1xf32>
    %cst_214 = arith.constant 3.200000e+01 : f32
    %500 = vector.broadcast %cst_214 : f32 to vector<16x1xf32>
    %501 = arith.divf %499, %500 : vector<16x1xf32>
    %502 = vector.broadcast %501 : vector<16x1xf32> to vector<16x32xf32>
    %503 = arith.subf %495, %502 : vector<16x32xf32>
    %504 = arith.mulf %503, %503 : vector<16x32xf32>
    %cst_215 = arith.constant dense<0.000000e+00> : vector<16xf32>
    %505 = vector.multi_reduction <add>, %504, %cst_215 [1] : vector<16x32xf32> to vector<16xf32>
    %506 = vector.shape_cast %505 : vector<16xf32> to vector<16x1xf32>
    %cst_216 = arith.constant 3.200000e+01 : f32
    %507 = vector.broadcast %cst_216 : f32 to vector<16x1xf32>
    %508 = arith.divf %506, %507 : vector<16x1xf32>
    %509 = vector.broadcast %501 : vector<16x1xf32> to vector<16x32xf32>
    %510 = arith.subf %495, %509 : vector<16x32xf32>
    %cst_217 = arith.constant 9.99999974E-6 : f32
    %511 = vector.broadcast %cst_217 : f32 to vector<16x1xf32>
    %512 = arith.addf %508, %511 : vector<16x1xf32>
    %513 = math.rsqrt %512 : vector<16x1xf32>
    %514 = vector.broadcast %513 : vector<16x1xf32> to vector<16x32xf32>
    %515 = arith.mulf %510, %514 : vector<16x32xf32>
    %516 = vector.broadcast %496 : vector<1x32xf32> to vector<16x32xf32>
    %517 = arith.mulf %515, %516 : vector<16x32xf32>
    %518 = vector.broadcast %497 : vector<1x32xf32> to vector<16x32xf32>
    %519 = arith.addf %517, %518 : vector<16x32xf32>
    %520 = arith.index_cast %c0_i32_142 : i32 to index
    %c0_218 = arith.constant 0 : index
    %c0_219 = arith.constant 0 : index
    %521 = vector.load %arg44[%520, %c0_218, %c0_219] : memref<1x32x64xf32, #tpu.memory_space<vmem>>, vector<1x32x64xf32>
    %522 = vector.shape_cast %521 : vector<1x32x64xf32> to vector<32x64xf32>
    %cst_220 = arith.constant dense<0.000000e+00> : vector<16x64xf32>
    %523 = tpu.matmul %519, %522, %cst_220 {dimension_numbers = #tpu.dot_dimension_numbers<[1], [0], [0], [1], [0, 0, 1, 1], [], []>} : vector<16x32xf32>, vector<32x64xf32>, vector<16x64xf32> -> vector<16x64xf32>
    %524 = arith.index_cast %c0_i32_142 : i32 to index
    %c0_221 = arith.constant 0 : index
    %c0_222 = arith.constant 0 : index
    %525 = vector.load %arg45[%524, %c0_221, %c0_222] : memref<1x1x64xf32, #tpu.memory_space<vmem>>, vector<1x1x64xf32>
    %526 = vector.shape_cast %525 : vector<1x1x64xf32> to vector<1x64xf32>
    %527 = vector.broadcast %526 : vector<1x64xf32> to vector<16x64xf32>
    %528 = arith.addf %523, %527 : vector<16x64xf32>
    %cst_223 = arith.constant 0.000000e+00 : f32
    %529 = vector.broadcast %cst_223 : f32 to vector<16x64xf32>
    %530 = arith.maximumf %528, %529 : vector<16x64xf32>
    %531 = arith.index_cast %c0_i32_142 : i32 to index
    %c0_224 = arith.constant 0 : index
    %c0_225 = arith.constant 0 : index
    %532 = vector.load %arg46[%531, %c0_224, %c0_225] : memref<1x64x32xf32, #tpu.memory_space<vmem>>, vector<1x64x32xf32>
    %533 = vector.shape_cast %532 : vector<1x64x32xf32> to vector<64x32xf32>
    %cst_226 = arith.constant dense<0.000000e+00> : vector<16x32xf32>
    %534 = tpu.matmul %530, %533, %cst_226 {dimension_numbers = #tpu.dot_dimension_numbers<[1], [0], [0], [1], [0, 0, 1, 1], [], []>} : vector<16x64xf32>, vector<64x32xf32>, vector<16x32xf32> -> vector<16x32xf32>
    %535 = arith.index_cast %c0_i32_142 : i32 to index
    %c0_227 = arith.constant 0 : index
    %c0_228 = arith.constant 0 : index
    %536 = vector.load %arg47[%535, %c0_227, %c0_228] : memref<1x1x32xf32, #tpu.memory_space<vmem>>, vector<1x1x32xf32>
    %537 = vector.shape_cast %536 : vector<1x1x32xf32> to vector<1x32xf32>
    %538 = vector.broadcast %537 : vector<1x32xf32> to vector<16x32xf32>
    %539 = arith.addf %534, %538 : vector<16x32xf32>
    %540 = arith.index_cast %c0_i32_142 : i32 to index
    %c0_229 = arith.constant 0 : index
    %c0_230 = arith.constant 0 : index
    %541 = vector.load %arg50[%540, %c0_229, %c0_230] : memref<1x2x32xf32, #tpu.memory_space<vmem>>, vector<1x2x32xf32>
    %542 = vector.shape_cast %541 : vector<1x2x32xf32> to vector<2x32xf32>
    %543 = arith.addf %519, %539 : vector<16x32xf32>
    %544 = vector.extract_strided_slice %542 {offsets = [0, 0], sizes = [1, 32], strides = [1, 1]} : vector<2x32xf32> to vector<1x32xf32>
    %545 = vector.extract_strided_slice %542 {offsets = [1, 0], sizes = [1, 32], strides = [1, 1]} : vector<2x32xf32> to vector<1x32xf32>
    %cst_231 = arith.constant dense<0.000000e+00> : vector<16xf32>
    %546 = vector.multi_reduction <add>, %543, %cst_231 [1] : vector<16x32xf32> to vector<16xf32>
    %547 = vector.shape_cast %546 : vector<16xf32> to vector<16x1xf32>
    %cst_232 = arith.constant 3.200000e+01 : f32
    %548 = vector.broadcast %cst_232 : f32 to vector<16x1xf32>
    %549 = arith.divf %547, %548 : vector<16x1xf32>
    %550 = vector.broadcast %549 : vector<16x1xf32> to vector<16x32xf32>
    %551 = arith.subf %543, %550 : vector<16x32xf32>
    %552 = arith.mulf %551, %551 : vector<16x32xf32>
    %cst_233 = arith.constant dense<0.000000e+00> : vector<16xf32>
    %553 = vector.multi_reduction <add>, %552, %cst_233 [1] : vector<16x32xf32> to vector<16xf32>
    %554 = vector.shape_cast %553 : vector<16xf32> to vector<16x1xf32>
    %cst_234 = arith.constant 3.200000e+01 : f32
    %555 = vector.broadcast %cst_234 : f32 to vector<16x1xf32>
    %556 = arith.divf %554, %555 : vector<16x1xf32>
    %557 = vector.broadcast %549 : vector<16x1xf32> to vector<16x32xf32>
    %558 = arith.subf %543, %557 : vector<16x32xf32>
    %cst_235 = arith.constant 9.99999974E-6 : f32
    %559 = vector.broadcast %cst_235 : f32 to vector<16x1xf32>
    %560 = arith.addf %556, %559 : vector<16x1xf32>
    %561 = math.rsqrt %560 : vector<16x1xf32>
    %562 = vector.broadcast %561 : vector<16x1xf32> to vector<16x32xf32>
    %563 = arith.mulf %558, %562 : vector<16x32xf32>
    %564 = vector.broadcast %544 : vector<1x32xf32> to vector<16x32xf32>
    %565 = arith.mulf %563, %564 : vector<16x32xf32>
    %566 = vector.broadcast %545 : vector<1x32xf32> to vector<16x32xf32>
    %567 = arith.addf %565, %566 : vector<16x32xf32>
    %c1_i32_236 = arith.constant 1 : i32
    %c0_237 = arith.constant 0 : index
    %c0_238 = arith.constant 0 : index
    %568 = vector.load %arg51[%c0_237, %c0_238] : memref<2x32xf32, #tpu.memory_space<vmem>>, vector<1x32xf32>
    %c1_239 = arith.constant 1 : index
    %c0_240 = arith.constant 0 : index
    %569 = vector.load %arg51[%c1_239, %c0_240] : memref<2x32xf32, #tpu.memory_space<vmem>>, vector<1x32xf32>
    %cst_241 = arith.constant dense<0.000000e+00> : vector<16xf32>
    %570 = vector.multi_reduction <add>, %567, %cst_241 [1] : vector<16x32xf32> to vector<16xf32>
    %571 = vector.shape_cast %570 : vector<16xf32> to vector<16x1xf32>
    %cst_242 = arith.constant 3.200000e+01 : f32
    %572 = vector.broadcast %cst_242 : f32 to vector<16x1xf32>
    %573 = arith.divf %571, %572 : vector<16x1xf32>
    %574 = vector.broadcast %573 : vector<16x1xf32> to vector<16x32xf32>
    %575 = arith.subf %567, %574 : vector<16x32xf32>
    %576 = arith.mulf %575, %575 : vector<16x32xf32>
    %cst_243 = arith.constant dense<0.000000e+00> : vector<16xf32>
    %577 = vector.multi_reduction <add>, %576, %cst_243 [1] : vector<16x32xf32> to vector<16xf32>
    %578 = vector.shape_cast %577 : vector<16xf32> to vector<16x1xf32>
    %cst_244 = arith.constant 3.200000e+01 : f32
    %579 = vector.broadcast %cst_244 : f32 to vector<16x1xf32>
    %580 = arith.divf %578, %579 : vector<16x1xf32>
    %581 = vector.broadcast %573 : vector<16x1xf32> to vector<16x32xf32>
    %582 = arith.subf %567, %581 : vector<16x32xf32>
    %cst_245 = arith.constant 9.99999974E-6 : f32
    %583 = vector.broadcast %cst_245 : f32 to vector<16x1xf32>
    %584 = arith.addf %580, %583 : vector<16x1xf32>
    %585 = math.rsqrt %584 : vector<16x1xf32>
    %586 = vector.broadcast %585 : vector<16x1xf32> to vector<16x32xf32>
    %587 = arith.mulf %582, %586 : vector<16x32xf32>
    %588 = vector.broadcast %568 : vector<1x32xf32> to vector<16x32xf32>
    %589 = arith.mulf %587, %588 : vector<16x32xf32>
    %590 = vector.broadcast %569 : vector<1x32xf32> to vector<16x32xf32>
    %591 = arith.addf %589, %590 : vector<16x32xf32>
    %c0_246 = arith.constant 0 : index
    %c0_247 = arith.constant 0 : index
    %592 = vector.load %arg52[%c0_246, %c0_247] : memref<32x128xf32, #tpu.memory_space<vmem>>, vector<32x128xf32>
    %cst_248 = arith.constant dense<0.000000e+00> : vector<16x128xf32>
    %593 = tpu.matmul %591, %592, %cst_248 {dimension_numbers = #tpu.dot_dimension_numbers<[1], [0], [0], [1], [0, 0, 1, 1], [], []>} : vector<16x32xf32>, vector<32x128xf32>, vector<16x128xf32> -> vector<16x128xf32>
    %c0_249 = arith.constant 0 : index
    %c0_250 = arith.constant 0 : index
    %594 = vector.load %arg53[%c0_249, %c0_250] : memref<1x128xf32, #tpu.memory_space<vmem>>, vector<1x128xf32>
    %595 = vector.broadcast %594 : vector<1x128xf32> to vector<16x128xf32>
    %596 = arith.addf %593, %595 : vector<16x128xf32>
    %c0_251 = arith.constant 0 : index
    %c0_252 = arith.constant 0 : index
    %c0_253 = arith.constant 0 : index
    %597 = vector.load %arg54[%c0_251, %c0_252, %c0_253] : memref<1x16x128xf32, #tpu.memory_space<vmem>>, vector<1x16x128xf32>
    %598 = vector.shape_cast %597 : vector<1x16x128xf32> to vector<16x128xf32>
    %599 = vector.shape_cast %596 : vector<16x128xf32> to vector<1x16x128xf32>
    tpu.vector_store %arg54[%c0_251, %c0_252, %c0_253], %599 {strides = array<i32>} : memref<1x16x128xf32, #tpu.memory_space<vmem>>, vector<1x16x128xf32>,
    return
  }
  func.func @transform_0(%arg0: i32) -> (i32, i32, i32) {
    %c0_i32 = arith.constant 0 : i32
    %c0_i32_0 = arith.constant 0 : i32
    %c0_i32_1 = arith.constant 0 : i32
    return %arg0, %c0_i32, %c0_i32_0 : i32, i32, i32
  }
  func.func @transform_1(%arg0: i32) -> (i32, i32, i32) {
    %c0_i32 = arith.constant 0 : i32
    %c0_i32_0 = arith.constant 0 : i32
    %c0_i32_1 = arith.constant 0 : i32
    return %arg0, %c0_i32, %c0_i32_0 : i32, i32, i32
  }
  func.func @transform_2(%arg0: i32) -> (i32, i32, i32) {
    %c0_i32 = arith.constant 0 : i32
    %c0_i32_0 = arith.constant 0 : i32
    %c0_i32_1 = arith.constant 0 : i32
    return %arg0, %c0_i32, %c0_i32_0 : i32, i32, i32
  }
  func.func @transform_3(%arg0: i32) -> (i32, i32, i32) {
    %c0_i32 = arith.constant 0 : i32
    %c0_i32_0 = arith.constant 0 : i32
    %c0_i32_1 = arith.constant 0 : i32
    return %arg0, %c0_i32, %c0_i32_0 : i32, i32, i32
  }
  func.func @transform_4(%arg0: i32) -> (i32, i32, i32) {
    %c0_i32 = arith.constant 0 : i32
    %c0_i32_0 = arith.constant 0 : i32
    %c0_i32_1 = arith.constant 0 : i32
    return %arg0, %c0_i32, %c0_i32_0 : i32, i32, i32
  }
  func.func @transform_5(%arg0: i32) -> (i32, i32, i32) {
    %c0_i32 = arith.constant 0 : i32
    %c0_i32_0 = arith.constant 0 : i32
    %c0_i32_1 = arith.constant 0 : i32
    return %arg0, %c0_i32, %c0_i32_0 : i32, i32, i32
  }
  func.func @transform_6(%arg0: i32) -> (i32, i32) {
    %c0_i32 = arith.constant 0 : i32
    %c0_i32_0 = arith.constant 0 : i32
    %c0_i32_1 = arith.constant 0 : i32
    return %c0_i32, %c0_i32_0 : i32, i32
  }
  func.func @transform_7(%arg0: i32) -> (i32, i32) {
    %c0_i32 = arith.constant 0 : i32
    %c0_i32_0 = arith.constant 0 : i32
    %c0_i32_1 = arith.constant 0 : i32
    return %c0_i32, %c0_i32_0 : i32, i32
  }
  func.func @transform_8(%arg0: i32) -> (i32, i32) {
    %c0_i32 = arith.constant 0 : i32
    %c0_i32_0 = arith.constant 0 : i32
    %c0_i32_1 = arith.constant 0 : i32
    return %c0_i32, %c0_i32_0 : i32, i32
  }
  func.func @transform_9(%arg0: i32) -> (i32, i32) {
    %c0_i32 = arith.constant 0 : i32
    %c0_i32_0 = arith.constant 0 : i32
    %c0_i32_1 = arith.constant 0 : i32
    return %c0_i32, %c0_i32_0 : i32, i32
  }
  func.func @transform_10(%arg0: i32) -> (i32, i32) {
    %c0_i32 = arith.constant 0 : i32
    %c0_i32_0 = arith.constant 0 : i32
    %c0_i32_1 = arith.constant 0 : i32
    return %c0_i32, %c0_i32_0 : i32, i32
  }
  func.func @transform_11(%arg0: i32) -> (i32, i32) {
    %c0_i32 = arith.constant 0 : i32
    %c0_i32_0 = arith.constant 0 : i32
    %c0_i32_1 = arith.constant 0 : i32
    return %c0_i32, %c0_i32_0 : i32, i32
  }
  func.func @transform_12(%arg0: i32) -> (i32, i32) {
    %c0_i32 = arith.constant 0 : i32
    %c0_i32_0 = arith.constant 0 : i32
    %c0_i32_1 = arith.constant 0 : i32
    return %c0_i32, %c0_i32_0 : i32, i32
  }
  func.func @transform_13(%arg0: i32) -> (i32, i32) {
    %c0_i32 = arith.constant 0 : i32
    %c0_i32_0 = arith.constant 0 : i32
    %c0_i32_1 = arith.constant 0 : i32
    return %c0_i32, %c0_i32_0 : i32, i32
  }
  func.func @transform_14(%arg0: i32) -> (i32, i32) {
    %c0_i32 = arith.constant 0 : i32
    %c0_i32_0 = arith.constant 0 : i32
    %c0_i32_1 = arith.constant 0 : i32
    return %c0_i32, %c0_i32_0 : i32, i32
  }
  func.func @transform_15(%arg0: i32) -> (i32, i32) {
    %c0_i32 = arith.constant 0 : i32
    %c0_i32_0 = arith.constant 0 : i32
    %c0_i32_1 = arith.constant 0 : i32
    return %c0_i32, %c0_i32_0 : i32, i32
  }
  func.func @transform_16(%arg0: i32) -> (i32, i32) {
    %c0_i32 = arith.constant 0 : i32
    %c0_i32_0 = arith.constant 0 : i32
    %c0_i32_1 = arith.constant 0 : i32
    return %c0_i32, %c0_i32_0 : i32, i32
  }
  func.func @transform_17(%arg0: i32) -> (i32, i32) {
    %c0_i32 = arith.constant 0 : i32
    %c0_i32_0 = arith.constant 0 : i32
    %c0_i32_1 = arith.constant 0 : i32
    return %c0_i32, %c0_i32_0 : i32, i32
  }
  func.func @transform_18(%arg0: i32) -> (i32, i32, i32) {
    %c0_i32 = arith.constant 0 : i32
    %c0_i32_0 = arith.constant 0 : i32
    %c0_i32_1 = arith.constant 0 : i32
    %c0_i32_2 = arith.constant 0 : i32
    return %c0_i32, %c0_i32_0, %c0_i32_1 : i32, i32, i32
  }
  func.func @transform_19(%arg0: i32) -> (i32, i32) {
    %c0_i32 = arith.constant 0 : i32
    %c0_i32_0 = arith.constant 0 : i32
    %c0_i32_1 = arith.constant 0 : i32
    return %c0_i32, %c0_i32_0 : i32, i32
  }
  func.func @transform_20(%arg0: i32) -> (i32, i32, i32) {
    %c0_i32 = arith.constant 0 : i32
    %c0_i32_0 = arith.constant 0 : i32
    %c0_i32_1 = arith.constant 0 : i32
    %c0_i32_2 = arith.constant 0 : i32
    return %c0_i32, %c0_i32_0, %c0_i32_1 : i32, i32, i32
  }
  func.func @transform_21(%arg0: i32) -> (i32, i32, i32) {
    %c0_i32 = arith.constant 0 : i32
    %c0_i32_0 = arith.constant 0 : i32
    %c0_i32_1 = arith.constant 0 : i32
    %c0_i32_2 = arith.constant 0 : i32
    return %c0_i32, %c0_i32_0, %c0_i32_1 : i32, i32, i32
  }
  func.func @transform_22(%arg0: i32) -> (i32, i32, i32) {
    %c0_i32 = arith.constant 0 : i32
    %c0_i32_0 = arith.constant 0 : i32
    %c0_i32_1 = arith.constant 0 : i32
    %c0_i32_2 = arith.constant 0 : i32
    return %c0_i32, %c0_i32_0, %c0_i32_1 : i32, i32, i32
  }
  func.func @transform_23(%arg0: i32) -> (i32, i32, i32) {
    %c0_i32 = arith.constant 0 : i32
    %c0_i32_0 = arith.constant 0 : i32
    %c0_i32_1 = arith.constant 0 : i32
    %c0_i32_2 = arith.constant 0 : i32
    return %c0_i32, %c0_i32_0, %c0_i32_1 : i32, i32, i32
  }
  func.func @transform_24(%arg0: i32) -> (i32, i32, i32) {
    %c0_i32 = arith.constant 0 : i32
    %c0_i32_0 = arith.constant 0 : i32
    %c0_i32_1 = arith.constant 0 : i32
    %c0_i32_2 = arith.constant 0 : i32
    return %c0_i32, %c0_i32_0, %c0_i32_1 : i32, i32, i32
  }
  func.func @transform_25(%arg0: i32) -> (i32, i32, i32) {
    %c0_i32 = arith.constant 0 : i32
    %c0_i32_0 = arith.constant 0 : i32
    %c0_i32_1 = arith.constant 0 : i32
    %c0_i32_2 = arith.constant 0 : i32
    return %c0_i32, %c0_i32_0, %c0_i32_1 : i32, i32, i32
  }
  func.func @transform_26(%arg0: i32) -> (i32, i32, i32) {
    %c0_i32 = arith.constant 0 : i32
    %c0_i32_0 = arith.constant 0 : i32
    %c0_i32_1 = arith.constant 0 : i32
    %c0_i32_2 = arith.constant 0 : i32
    return %c0_i32, %c0_i32_0, %c0_i32_1 : i32, i32, i32
  }
  func.func @transform_27(%arg0: i32) -> (i32, i32, i32) {
    %c0_i32 = arith.constant 0 : i32
    %c0_i32_0 = arith.constant 0 : i32
    %c0_i32_1 = arith.constant 0 : i32
    %c0_i32_2 = arith.constant 0 : i32
    return %c0_i32, %c0_i32_0, %c0_i32_1 : i32, i32, i32
  }
  func.func @transform_28(%arg0: i32) -> (i32, i32, i32) {
    %c0_i32 = arith.constant 0 : i32
    %c0_i32_0 = arith.constant 0 : i32
    %c0_i32_1 = arith.constant 0 : i32
    %c0_i32_2 = arith.constant 0 : i32
    return %c0_i32, %c0_i32_0, %c0_i32_1 : i32, i32, i32
  }
  func.func @transform_29(%arg0: i32) -> (i32, i32, i32) {
    %c0_i32 = arith.constant 0 : i32
    %c0_i32_0 = arith.constant 0 : i32
    %c0_i32_1 = arith.constant 0 : i32
    %c0_i32_2 = arith.constant 0 : i32
    return %c0_i32, %c0_i32_0, %c0_i32_1 : i32, i32, i32
  }
  func.func @transform_30(%arg0: i32) -> (i32, i32) {
    %c0_i32 = arith.constant 0 : i32
    %c0_i32_0 = arith.constant 0 : i32
    %c0_i32_1 = arith.constant 0 : i32
    return %c0_i32, %c0_i32_0 : i32, i32
  }
  func.func @transform_31(%arg0: i32) -> (i32, i32, i32) {
    %c0_i32 = arith.constant 0 : i32
    %c0_i32_0 = arith.constant 0 : i32
    %c0_i32_1 = arith.constant 0 : i32
    %c0_i32_2 = arith.constant 0 : i32
    return %c0_i32, %c0_i32_0, %c0_i32_1 : i32, i32, i32
  }
  func.func @transform_32(%arg0: i32) -> (i32, i32) {
    %c0_i32 = arith.constant 0 : i32
    %c0_i32_0 = arith.constant 0 : i32
    %c0_i32_1 = arith.constant 0 : i32
    return %c0_i32, %c0_i32_0 : i32, i32
  }
  func.func @transform_33(%arg0: i32) -> (i32, i32, i32) {
    %c0_i32 = arith.constant 0 : i32
    %c0_i32_0 = arith.constant 0 : i32
    %c0_i32_1 = arith.constant 0 : i32
    %c0_i32_2 = arith.constant 0 : i32
    return %c0_i32, %c0_i32_0, %c0_i32_1 : i32, i32, i32
  }
  func.func @transform_34(%arg0: i32) -> (i32, i32, i32) {
    %c0_i32 = arith.constant 0 : i32
    %c0_i32_0 = arith.constant 0 : i32
    %c0_i32_1 = arith.constant 0 : i32
    %c0_i32_2 = arith.constant 0 : i32
    return %c0_i32, %c0_i32_0, %c0_i32_1 : i32, i32, i32
  }
  func.func @transform_35(%arg0: i32) -> (i32, i32, i32) {
    %c0_i32 = arith.constant 0 : i32
    %c0_i32_0 = arith.constant 0 : i32
    %c0_i32_1 = arith.constant 0 : i32
    %c0_i32_2 = arith.constant 0 : i32
    return %c0_i32, %c0_i32_0, %c0_i32_1 : i32, i32, i32
  }
  func.func @transform_36(%arg0: i32) -> (i32, i32, i32) {
    %c0_i32 = arith.constant 0 : i32
    %c0_i32_0 = arith.constant 0 : i32
    %c0_i32_1 = arith.constant 0 : i32
    %c0_i32_2 = arith.constant 0 : i32
    return %c0_i32, %c0_i32_0, %c0_i32_1 : i32, i32, i32
  }
  func.func @transform_37(%arg0: i32) -> (i32, i32, i32) {
    %c0_i32 = arith.constant 0 : i32
    %c0_i32_0 = arith.constant 0 : i32
    %c0_i32_1 = arith.constant 0 : i32
    %c0_i32_2 = arith.constant 0 : i32
    return %c0_i32, %c0_i32_0, %c0_i32_1 : i32, i32, i32
  }
  func.func @transform_38(%arg0: i32) -> (i32, i32, i32) {
    %c0_i32 = arith.constant 0 : i32
    %c0_i32_0 = arith.constant 0 : i32
    %c0_i32_1 = arith.constant 0 : i32
    %c0_i32_2 = arith.constant 0 : i32
    return %c0_i32, %c0_i32_0, %c0_i32_1 : i32, i32, i32
  }
  func.func @transform_39(%arg0: i32) -> (i32, i32, i32) {
    %c0_i32 = arith.constant 0 : i32
    %c0_i32_0 = arith.constant 0 : i32
    %c0_i32_1 = arith.constant 0 : i32
    %c0_i32_2 = arith.constant 0 : i32
    return %c0_i32, %c0_i32_0, %c0_i32_1 : i32, i32, i32
  }
  func.func @transform_40(%arg0: i32) -> (i32, i32, i32) {
    %c0_i32 = arith.constant 0 : i32
    %c0_i32_0 = arith.constant 0 : i32
    %c0_i32_1 = arith.constant 0 : i32
    %c0_i32_2 = arith.constant 0 : i32
    return %c0_i32, %c0_i32_0, %c0_i32_1 : i32, i32, i32
  }
  func.func @transform_41(%arg0: i32) -> (i32, i32, i32) {
    %c0_i32 = arith.constant 0 : i32
    %c0_i32_0 = arith.constant 0 : i32
    %c0_i32_1 = arith.constant 0 : i32
    %c0_i32_2 = arith.constant 0 : i32
    return %c0_i32, %c0_i32_0, %c0_i32_1 : i32, i32, i32
  }
  func.func @transform_42(%arg0: i32) -> (i32, i32, i32) {
    %c0_i32 = arith.constant 0 : i32
    %c0_i32_0 = arith.constant 0 : i32
    %c0_i32_1 = arith.constant 0 : i32
    %c0_i32_2 = arith.constant 0 : i32
    return %c0_i32, %c0_i32_0, %c0_i32_1 : i32, i32, i32
  }
  func.func @transform_43(%arg0: i32) -> (i32, i32, i32) {
    %c0_i32 = arith.constant 0 : i32
    %c0_i32_0 = arith.constant 0 : i32
    %c0_i32_1 = arith.constant 0 : i32
    %c0_i32_2 = arith.constant 0 : i32
    return %c0_i32, %c0_i32_0, %c0_i32_1 : i32, i32, i32
  }
  func.func @transform_44(%arg0: i32) -> (i32, i32, i32) {
    %c0_i32 = arith.constant 0 : i32
    %c0_i32_0 = arith.constant 0 : i32
    %c0_i32_1 = arith.constant 0 : i32
    %c0_i32_2 = arith.constant 0 : i32
    return %c0_i32, %c0_i32_0, %c0_i32_1 : i32, i32, i32
  }
  func.func @transform_45(%arg0: i32) -> (i32, i32, i32) {
    %c0_i32 = arith.constant 0 : i32
    %c0_i32_0 = arith.constant 0 : i32
    %c0_i32_1 = arith.constant 0 : i32
    %c0_i32_2 = arith.constant 0 : i32
    return %c0_i32, %c0_i32_0, %c0_i32_1 : i32, i32, i32
  }
  func.func @transform_46(%arg0: i32) -> (i32, i32, i32) {
    %c0_i32 = arith.constant 0 : i32
    %c0_i32_0 = arith.constant 0 : i32
    %c0_i32_1 = arith.constant 0 : i32
    %c0_i32_2 = arith.constant 0 : i32
    return %c0_i32, %c0_i32_0, %c0_i32_1 : i32, i32, i32
  }
  func.func @transform_47(%arg0: i32) -> (i32, i32, i32) {
    %c0_i32 = arith.constant 0 : i32
    %c0_i32_0 = arith.constant 0 : i32
    %c0_i32_1 = arith.constant 0 : i32
    %c0_i32_2 = arith.constant 0 : i32
    return %c0_i32, %c0_i32_0, %c0_i32_1 : i32, i32, i32
  }
  func.func @transform_48(%arg0: i32) -> (i32, i32, i32) {
    %c0_i32 = arith.constant 0 : i32
    %c0_i32_0 = arith.constant 0 : i32
    %c0_i32_1 = arith.constant 0 : i32
    %c0_i32_2 = arith.constant 0 : i32
    return %c0_i32, %c0_i32_0, %c0_i32_1 : i32, i32, i32
  }
  func.func @transform_49(%arg0: i32) -> (i32, i32, i32) {
    %c0_i32 = arith.constant 0 : i32
    %c0_i32_0 = arith.constant 0 : i32
    %c0_i32_1 = arith.constant 0 : i32
    %c0_i32_2 = arith.constant 0 : i32
    return %c0_i32, %c0_i32_0, %c0_i32_1 : i32, i32, i32
  }
  func.func @transform_50(%arg0: i32) -> (i32, i32) {
    %c0_i32 = arith.constant 0 : i32
    %c0_i32_0 = arith.constant 0 : i32
    %c0_i32_1 = arith.constant 0 : i32
    return %c0_i32, %c0_i32_0 : i32, i32
  }
  func.func @transform_51(%arg0: i32) -> (i32, i32) {
    %c0_i32 = arith.constant 0 : i32
    %c0_i32_0 = arith.constant 0 : i32
    %c0_i32_1 = arith.constant 0 : i32
    return %c0_i32, %c0_i32_0 : i32, i32
  }
  func.func @transform_52(%arg0: i32) -> (i32, i32) {
    %c0_i32 = arith.constant 0 : i32
    %c0_i32_0 = arith.constant 0 : i32
    %c0_i32_1 = arith.constant 0 : i32
    return %c0_i32, %c0_i32_0 : i32, i32
  }
  func.func @transform_53(%arg0: i32) -> (i32, i32, i32) {
    %c0_i32 = arith.constant 0 : i32
    %c0_i32_0 = arith.constant 0 : i32
    %c0_i32_1 = arith.constant 0 : i32
    return %arg0, %c0_i32, %c0_i32_0 : i32, i32, i32
  }
}

</mosaic_0001>

<bundles_post_ra>
// kernel: _lambda_.1
= control target key start
LH: loop header
LB: loop body
LE: loop exit
PB: predicated region body
PF: predicated region fallthrough
CT: control target
= control target key end

     0   :  { %s8613_s6 = smov 1   ;;  %s8614_s10 = smov 2   ;;  %s9809_s0 = inlined_call_operand.smem [shape: u32[54], index: -1, kind: input, shape index: {}] }
   0x1   :  { %s8696_s5 = sld [smem:[%s9809_s0]]   ;;  %s8615_s14 = smov 3  }
   0x2   :  { %s8701_s9 = sld [smem:[%s9809_s0 + %s8613_s6]]   ;;  %s8616_s18 = smov 4  }
   0x3   :  { %s8706_s13 = sld [smem:[%s9809_s0 + %s8614_s10]]   ;;  %s8617_s22 = smov 5  }
   0x4   :  { %s8711_s17 = sld [smem:[%s9809_s0 + %s8615_s14]]   ;;  %s8618_s26 = smov 6  }
   0x5   :  { %s8716_s21 = sld [smem:[%s9809_s0 + %s8616_s18]]   ;;  %s8619_s30 = smov 7  }
   0x6   :  { %s8721_s25 = sld [smem:[%s9809_s0 + %s8617_s22]]   ;;  %s8620_s4 = smov 8  }
   0x7   :  { %9864 = sst [smem:[#allocation13_spill]] %s8696_s5  ;;  %s8621_s10 = smov 9  }
   0x8   :  { %9865 = sst [smem:[#allocation14_spill]] %s8701_s9  ;;  %s8622_s15 = smov 10  }
   0x9   :  { %9866 = sst [smem:[#allocation15_spill]] %s8706_s13  ;;  %s8623_s20 = smov 11  }
   0xa   :  { %s8726_s29 = sld [smem:[%s9809_s0 + %s8618_s26]]   ;;  %s8624_s26 = smov 12  }
   0xb   :  { %9867 = sst [smem:[#allocation16_spill]] %s8716_s21  ;;  %s8625_s1 = smov 13  }
   0xc   :  { %9868 = sst [smem:[#allocation17_spill]] %s8721_s25  ;;  %s8626_s7 = smov 14  }
   0xd   :  { %s8731_s3 = sld [smem:[%s9809_s0 + %s8619_s30]]   ;;  %s8628_s22 = smov 16  }
   0xe   :  { %s8736_s8 = sld [smem:[%s9809_s0 + %s8620_s4]]   ;;  %s8629_s28 = smov 17  }
   0xf   :  { %s8741_s14 = sld [smem:[%s9809_s0 + %s8621_s10]]  }
  0x10   :  { %s8746_s19 = sld [smem:[%s9809_s0 + %s8622_s15]]   ;;  %s8627_s15 = smov 15  }
  0x11   :  { %s8751_s24 = sld [smem:[%s9809_s0 + %s8623_s20]]  }
  0x12   :  { %s8756_s30 = sld [smem:[%s9809_s0 + %s8624_s26]]  }
  0x13   :  { %9869 = sst [smem:[#allocation18_spill]] %s8731_s3 }
  0x14   :  { %9870 = sst [smem:[#allocation19_spill]] %s8736_s8 }
  0x15   :  { %9871 = sst [smem:[#allocation20_spill]] %s8741_s14 }
  0x16   :  { %9872 = sst [smem:[#allocation21_spill]] %s8746_s19 }
  0x17   :  { %s8761_s6 = sld [smem:[%s9809_s0 + %s8625_s1]]  }
  0x18   :  { %9873 = sst [smem:[#allocation22_spill]] %s8756_s30 }
  0x19   :  { %s8766_s12 = sld [smem:[%s9809_s0 + %s8626_s7]]   ;;  %s8630_s7 = smov 18  }
  0x1a   :  { %s8771_s20 = sld [smem:[%s9809_s0 + %s8627_s15]]   ;;  %s8631_s15 = smov 19  }
  0x1b   :  { %s8776_s27 = sld [smem:[%s9809_s0 + %s8628_s22]]   ;;  %s8632_s22 = smov 20  }
  0x1c   :  { %s8781_s4 = sld [smem:[%s9809_s0 + %s8629_s28]]   ;;  %s8633_s28 = smov 21  }
  0x1d   :  { %9874 = sst [smem:[#allocation23_spill]] %s8761_s6 }
  0x1e   :  { %s8786_s25 = sld [smem:[%s9809_s0 + %s8630_s7]]   ;;  %s8634_s7 = smov 22  }
  0x1f   :  { %9875 = sst [smem:[#allocation24_spill]] %s8766_s12 }
  0x20   :  { %9876 = sst [smem:[#allocation25_spill]] %s8771_s20 }
  0x21   :  { %9877 = sst [smem:[#allocation26_spill]] %s8776_s27 }
  0x22   :  { %9878 = sst [smem:[#allocation27_spill]] %s8781_s4 }
  0x23   :  { %s8791_s21 = sld [smem:[%s9809_s0 + %s8631_s15]]   ;;  %s8635_s15 = smov 23  }
  0x24   :  { %9879 = sst [smem:[#allocation28_spill]] %s8786_s25 }
  0x25   :  { %s8796_s27 = sld [smem:[%s9809_s0 + %s8632_s22]]   ;;  %s8636_s22 = smov 24  }
  0x26   :  { %s8801_s4 = sld [smem:[%s9809_s0 + %s8633_s28]]   ;;  %s8637_s28 = smov 25  }
  0x27   :  { %s8806_s12 = sld [smem:[%s9809_s0 + %s8634_s7]]   ;;  %s8638_s7 = smov 26  }
  0x29   :  { %9880 = sst [smem:[#allocation29_spill]] %s8791_s21 }
  0x2a   :  { %s8811_s21 = sld [smem:[%s9809_s0 + %s8635_s15]]   ;;  %s8639_s15 = smov 27  }
  0x2b   :  { %9881 = sst [smem:[#allocation30_spill]] %s8796_s27 }
  0x2c   :  { %9882 = sst [smem:[#allocation31_spill]] %s8801_s4 }
  0x2d   :  { %9883 = sst [smem:[#allocation32_spill]] %s8806_s12 }
  0x2e   :  { %s8816_s27 = sld [smem:[%s9809_s0 + %s8636_s22]]   ;;  %s8640_s22 = smov 28  }
  0x2f   :  { %s8821_s4 = sld [smem:[%s9809_s0 + %s8637_s28]]   ;;  %s8641_s28 = smov 29  }
  0x30   :  { %9884 = sst [smem:[#allocation33_spill]] %s8811_s21 }
  0x31   :  { %s8826_s12 = sld [smem:[%s9809_s0 + %s8638_s7]]   ;;  %s8642_s7 = smov 30  }
  0x32   :  { %s8831_s21 = sld [smem:[%s9809_s0 + %s8639_s15]]   ;;  %s8643_s15 = smov 31  }
  0x34   :  { %9885 = sst [smem:[#allocation34_spill]] %s8816_s27 }
  0x35   :  { %9886 = sst [smem:[#allocation35_spill]] %s8821_s4 }
  0x36   :  { %s8836_s27 = sld [smem:[%s9809_s0 + %s8640_s22]]   ;;  %s8644_s22 = smov 32  }
  0x37   :  { %9887 = sst [smem:[#allocation36_spill]] %s8826_s12 }
  0x38   :  { %9888 = sst [smem:[#allocation37_spill]] %s8831_s21 }
  0x39   :  { %s8841_s4 = sld [smem:[%s9809_s0 + %s8641_s28]]   ;;  %s8645_s28 = smov 33  }
  0x3a   :  { %s8846_s12 = sld [smem:[%s9809_s0 + %s8642_s7]]   ;;  %s8646_s7 = smov 34  }
  0x3b   :  { %s8851_s21 = sld [smem:[%s9809_s0 + %s8643_s15]]   ;;  %s8647_s15 = smov 35  }
  0x3c   :  { %9889 = sst [smem:[#allocation38_spill]] %s8836_s27 }
  0x3d   :  { %s8856_s27 = sld [smem:[%s9809_s0 + %s8644_s22]]   ;;  %s8648_s22 = smov 36  }
  0x3f   :  { %9890 = sst [smem:[#allocation39_spill]] %s8841_s4 }
  0x40   :  { %9891 = sst [smem:[#allocation40_spill]] %s8846_s12 }
  0x41   :  { %9892 = sst [smem:[#allocation41_spill]] %s8851_s21 }
  0x42   :  { %s8861_s4 = sld [smem:[%s9809_s0 + %s8645_s28]]   ;;  %s8649_s28 = smov 37  }
  0x43   :  { %9893 = sst [smem:[#allocation42_spill]] %s8856_s27 }
  0x44   :  { %s8866_s12 = sld [smem:[%s9809_s0 + %s8646_s7]]   ;;  %s8650_s7 = smov 38  }
  0x45   :  { %s8871_s21 = sld [smem:[%s9809_s0 + %s8647_s15]]   ;;  %s8651_s15 = smov 39  }
  0x46   :  { %s8876_s27 = sld [smem:[%s9809_s0 + %s8648_s22]]   ;;  %s8652_s22 = smov 40  }
  0x48   :  { %9894 = sst [smem:[#allocation43_spill]] %s8861_s4 }
  0x49   :  { %s8881_s4 = sld [smem:[%s9809_s0 + %s8649_s28]]   ;;  %s8653_s28 = smov 41  }
  0x4a   :  { %9895 = sst [smem:[#allocation44_spill]] %s8866_s12 }
  0x4b   :  { %9896 = sst [smem:[#allocation45_spill]] %s8871_s21 }
  0x4c   :  { %9897 = sst [smem:[#allocation46_spill]] %s8876_s27 }
  0x4d   :  { %s8886_s12 = sld [smem:[%s9809_s0 + %s8650_s7]]   ;;  %s8654_s7 = smov 42  }
  0x4e   :  { %s8891_s21 = sld [smem:[%s9809_s0 + %s8651_s15]]   ;;  %s8655_s15 = smov 43  }
  0x4f   :  { %9898 = sst [smem:[#allocation47_spill]] %s8881_s4 }
  0x50   :  { %s8896_s27 = sld [smem:[%s9809_s0 + %s8652_s22]]   ;;  %s8656_s22 = smov 44  }
  0x51   :  { %s8901_s4 = sld [smem:[%s9809_s0 + %s8653_s28]]   ;;  %s8657_s28 = smov 45  }
  0x52   :  { %s8906_s25 = sld [smem:[%s9809_s0 + %s8654_s7]]   ;;  %s8658_s7 = smov 46  }
  0x53   :  { %9899 = sst [smem:[#allocation48_spill]] %s8886_s12 }
  0x54   :  { %9900 = sst [smem:[#allocation49_spill]] %s8891_s21 }
  0x55   :  { %s8911_s21 = sld [smem:[%s9809_s0 + %s8655_s15]]   ;;  %s8659_s15 = smov 47  }
  0x56   :  { %s8916_s20 = sld [smem:[%s9809_s0 + %s8656_s22]]   ;;  %s8660_s22 = smov 48  }
  0x57   :  { %9901 = sst [smem:[#allocation50_spill]] %s8901_s4 }
  0x58   :  { %s8921_s4 = sld [smem:[%s9809_s0 + %s8657_s28]]   ;;  %s8661_s28 = smov 49  }
  0x59   :  { %s8926_s9 = sld [smem:[%s9809_s0 + %s8658_s7]]   ;;  %s8662_s7 = smov 50  }
  0x5a   :  { %s8936_s30 = sld [smem:[%s9809_s0 + %s8660_s22]]   ;;  %s8664_s22 = smov 52  }
  0x5b   :  { %9902 = sst [smem:[#allocation51_spill]] %s8911_s21 }
  0x5c   :  { %s8931_s21 = sld [smem:[%s9809_s0 + %s8659_s15]]   ;;  %s8663_s15 = smov 51  }
  0x5d   :  { %s8946_s19 = sld [smem:[%s9809_s0 + %s8662_s7]]  }
  0x5e   :  { %9903 = sst [smem:[#allocation52_spill]] %s8921_s4 }
  0x5f   :  { %9904 = sst [smem:[#allocation53_spill]] %s8926_s9 }
  0x60   :  { %9906 = sst [smem:[#allocation55_spill]] %s8936_s30 }
  0x61   :  { %s8941_s4 = sld [smem:[%s9809_s0 + %s8661_s28]]   ;;  %s8665_s28 = smov 53  }
  0x62   :  { %9905 = sst [smem:[#allocation54_spill]] %s8931_s21 }
  0x63   :  { %s8951_s21 = sld [smem:[%s9809_s0 + %s8663_s15]]  }
  0x64   :  { %s8956_s30 = sld [smem:[%s9809_s0 + %s8664_s22]]  }
  0x67   :  { %9907 = sst [smem:[#allocation56_spill]] %s8941_s4 }
  0x68   :  { %s8961_s4 = sld [smem:[%s9809_s0 + %s8665_s28]]  }
  0x69   :  { %112 = vsyncpa [#allocation3], 0 }
  0x6a   :  { %113 = vsyncpa [#allocation5], 0 }
  0x6b   :  { %114 = vsyncpa [#allocation8], 0  ;;  %s8963_s7 = smov 0  }
  0x6c LB: > { %s9908_s14 = sld [smem:[#allocation20_spill]]  ;;  %s9909_s12 = sld [smem:[#allocation48_spill]]  ;;  %s8611_s7 = sphi %s8963_s7, %s120_s7  }
  0x6d   : > { %s9910_s9 = sld [smem:[#allocation53_spill]]  ;;  %s8666_s10 = smov [#allocation4]  }
  0x6e   : > { %s1417_s11 = sshll.u32 %s8666_s10, 4  ;;  %s8969_s15 = sadd.s32 4294967295, %s8611_s7   ;;  %s8974_s11 = int_to_ptr.vmem [resolvable:$true] %s1417_s11 }
  0x6f   : > { %p7051_p0 = scmp.ge.s32.totalorder %s8611_s7, 1  ;;  %p1294_p1 = scmp.lt.s32.totalorder %s8611_s7, 3 }
  0x70   : > { %p9828_p2 = scmp.eq.s32.totalorder %s8969_s15, 0  ;;  %s8667_s16 = smov [#allocation7]  }
  0x71   : > { %p8976_p3 = pnand %p7051_p0, %p1294_p1  ;;  %s1445_s18 = sshll.u32 %s8667_s16, 4  ;;  %s8982_s18 = int_to_ptr.vmem [resolvable:$true] %s1445_s18 }
  0x72   : > { %s8668_s22 = smov [#allocation2]   ;;  %s8669_s28 = smov [#allocation6]  }
  0x73   : > { %s9911_s0 = scalar_select %p8976_p3, 1, 0 }
  0x74   : > { %p8103_p4 = pneg %p8976_p3  ;;  %s1403_s23 = sshll.u32 %s8668_s22, 4  ;;  %s8990_s23 = int_to_ptr.vmem [resolvable:$true] %s1403_s23 }
  0x75   : > { %s1431_s1 = sshll.u32 %s8669_s28, 4  ;;  %s8453_s2 = scalar_lea.hbm %s8896_s27, 16  ;;  %s8992_s1 = int_to_ptr.vmem [resolvable:$true] %s1431_s1 }
  0x76   : > { %p8986_p5 = pnand %p9828_p2, %p8103_p4  ;;  %p8454_p6 = scmp.ne.s32.totalorder %s8896_s27, %s8453_s2 }
  0x77   : > { %p8460_p10 = scmp.lt.u32.totalorder %s8453_s2, %s8896_s27 }
  0x78   : > { %p8998_p7 = pneg %p8986_p5 }
  0x7a   : > { %p8456_p8 = pnand %p8998_p7, %p8454_p6 }
  0x7c   : > { %p8457_p9 = pneg %p8456_p8 }
  0x7e   : > { %p8462_p11 = pnand %p8460_p10, %p8457_p9 }
  0x80   : > { %8465 = shalt.err (!%p8462_p11)
}
  0x81   : > { %s8466_s16 = scalar_lea.vmem %s8974_s11, 16  ;;  %s8473_s22 = scalar_lea.vmem %s8974_s11, 32 }
  0x82   : > { %p8467_p12 = scmp.ne.s32.totalorder %s8974_s11, %s8466_s16  ;;  %p8474_p1 = scmp.lt.s32.totalorder %s8974_s11, %s8974_s11 }
  0x83   : > { %p8475_p4 = scmp.lt.s32.totalorder %s8473_s22, %s8466_s16 }
  0x84   : > { %p8469_p13 = pnand %p8467_p12, %p8998_p7 }
  0x85   : > { %p8476_p2 = por %p8475_p4, %p8474_p1 }
  0x86   : > { %p8470_p0 = pneg %p8469_p13 }
  0x88   : > { %p8477_p6 = pnand %p8476_p2, %p8470_p0 }
  0x8a   : > { %8480 = shalt.err (!%p8477_p6)
}
  0x8b   : > { %8109 = dma.hbm_to_vmem [thread:$0]  (!%p8986_p5), %s8896_s27, 16, %s8974_s11, [#allocation5]  }
  0x8c   : > { %s8481_s28 = scalar_lea.hbm %s8916_s20, 16 }
  0x8d   : > { %p8482_p8 = scmp.ne.s32.totalorder %s8916_s20, %s8481_s28  ;;  %p8488_p11 = scmp.lt.u32.totalorder %s8481_s28, %s8916_s20 }
  0x8f   : > { %p8484_p9 = pnand %p8482_p8, %p8998_p7 }
  0x91   : > { %p8485_p10 = pneg %p8484_p9 }
  0x93   : > { %p8490_p12 = pnand %p8488_p11, %p8485_p10 }
  0x95   : > { %8493 = shalt.err (!%p8490_p12)
}
  0x96   : > { %s8494_s2 = scalar_lea.vmem %s8982_s18, 16  ;;  %s8501_s16 = scalar_lea.vmem %s8982_s18, 32 }
  0x97   : > { %p8495_p2 = scmp.ne.s32.totalorder %s8982_s18, %s8494_s2  ;;  %p8502_p1 = scmp.lt.s32.totalorder %s8982_s18, %s8982_s18 }
  0x98   : > { %p8503_p4 = scmp.lt.s32.totalorder %s8501_s16, %s8494_s2 }
  0x99   : > { %p8497_p13 = pnand %p8495_p2, %p8998_p7 }
  0x9a   : > { %p8504_p6 = por %p8503_p4, %p8502_p1 }
  0x9b   : > { %p8498_p0 = pneg %p8497_p13 }
  0x9d   : > { %p8505_p8 = pnand %p8504_p6, %p8498_p0 }
  0x9f   : > { %8508 = shalt.err (!%p8505_p8)
}
  0xa0   : > { %8115 = dma.hbm_to_vmem [thread:$0]  (!%p8986_p5), %s8916_s20, 16, %s8982_s18, [#allocation8]  }
  0xa1   : > { %s8509_s11 = scalar_lea.hbm %s9909_s12, 16 }
  0xa2   : > { %p8510_p9 = scmp.ne.s32.totalorder %s9909_s12, %s8509_s11  ;;  %p8516_p12 = scmp.lt.u32.totalorder %s8509_s11, %s9909_s12 }
  0xa4   : > { %p8512_p10 = pnand %p8510_p9, %p8998_p7 }
  0xa6   : > { %p8513_p11 = pneg %p8512_p10 }
  0xa8   : > { %p8518_p2 = pnand %p8516_p12, %p8513_p11 }
  0xaa   : > { %8521 = shalt.err (!%p8518_p2)
}
  0xab   : > { %s8522_s22 = scalar_lea.vmem %s8990_s23, 16  ;;  %s8529_s28 = scalar_lea.vmem %s8990_s23, 32 }
  0xac   : > { %p8523_p13 = scmp.ne.s32.totalorder %s8990_s23, %s8522_s22  ;;  %p8530_p4 = scmp.lt.s32.totalorder %s8990_s23, %s8990_s23 }
  0xad   : > { %p8531_p6 = scmp.lt.s32.totalorder %s8529_s28, %s8522_s22 }
  0xae   : > { %p8525_p0 = pnand %p8523_p13, %p8998_p7 }
  0xaf   : > { %p8532_p8 = por %p8531_p6, %p8530_p4 }
  0xb0   : > { %p8526_p1 = pneg %p8525_p0 }
  0xb2   : > { %p8533_p9 = pnand %p8532_p8, %p8526_p1 }
  0xb4   : > { %8536 = shalt.err (!%p8533_p9)
}
  0xb5   : > { %8106 = dma.hbm_to_vmem [thread:$0]  (!%p8986_p5), %s9909_s12, 16, %s8990_s23, [#allocation3]  }
  0xb6   : > { %s8537_s18 = scalar_lea.hbm %s8906_s25, 16 }
  0xb7   : > { %p8538_p10 = scmp.ne.s32.totalorder %s8906_s25, %s8537_s18  ;;  %p8544_p2 = scmp.lt.u32.totalorder %s8537_s18, %s8906_s25 }
  0xb9   : > { %p8540_p11 = pnand %p8538_p10, %p8998_p7 }
  0xbb   : > { %p8541_p12 = pneg %p8540_p11 }
  0xbd   : > { %p8546_p13 = pnand %p8544_p2, %p8541_p12 }
  0xbf   : > { %8549 = shalt.err (!%p8546_p13)
}
  0xc0   : > { %s8550_s2 = scalar_lea.vmem %s8992_s1, 16  ;;  %s8557_s16 = scalar_lea.vmem %s8992_s1, 32 }
  0xc1   : > { %p8551_p0 = scmp.ne.s32.totalorder %s8992_s1, %s8550_s2  ;;  %p8558_p6 = scmp.lt.s32.totalorder %s8992_s1, %s8992_s1 }
  0xc2   : > { %p8559_p8 = scmp.lt.s32.totalorder %s8557_s16, %s8550_s2 }
  0xc3   : > { %p8553_p1 = pnand %p8551_p0, %p8998_p7 }
  0xc4   : > { %p8560_p9 = por %p8559_p8, %p8558_p6 }
  0xc5   : > { %p8554_p4 = pneg %p8553_p1 }
  0xc7   : > { %p8561_p10 = pnand %p8560_p9, %p8554_p4 }
  0xc9   : > { %8564 = shalt.err (!%p8561_p10)
}
  0xca   : > { %8112 = dma.hbm_to_vmem [thread:$0]  (!%p8986_p5), %s8906_s25, 16, %s8992_s1, [#allocation5]  }
  0xcb   : > { %s8670_s23 = smov [#allocation9]   ;;  %s8565_s22 = scalar_lea.hbm %s9910_s9, 16 }
  0xcc   : > { %s1459_s11 = sshll.u32 %s8670_s23, 4  ;;  %p8566_p11 = scmp.ne.s32.totalorder %s9910_s9, %s8565_s22  ;;  %s1460_s11 = int_to_ptr.vmem [resolvable:$true] %s1459_s11 }
  0xcd   : > { %p8572_p13 = scmp.lt.u32.totalorder %s8565_s22, %s9910_s9 }
  0xce   : > { %p8568_p12 = pnand %p8566_p11, %p8998_p7 }
  0xd0   : > { %p8569_p2 = pneg %p8568_p12 }
  0xd2   : > { %p8574_p0 = pnand %p8572_p13, %p8569_p2 }
  0xd4   : > { %8577 = shalt.err (!%p8574_p0)
}
  0xd5   : > { %s8578_s28 = scalar_lea.vmem %s1460_s11, 16  ;;  %s8585_s18 = scalar_lea.vmem %s1460_s11, 32 }
  0xd6   : > { %p8579_p1 = scmp.ne.s32.totalorder %s1460_s11, %s8578_s28  ;;  %p8586_p8 = scmp.lt.s32.totalorder %s1460_s11, %s1460_s11 }
  0xd7   : > { %p8587_p9 = scmp.lt.s32.totalorder %s8585_s18, %s8578_s28 }
  0xd8   : > { %p8581_p4 = pnand %p8579_p1, %p8998_p7 }
  0xd9   : > { %p8588_p10 = por %p8587_p9, %p8586_p8 }
  0xda   : > { %p8582_p6 = pneg %p8581_p4 }
  0xdc   : > { %p8589_p3 = pnand %p8588_p10, %p8582_p6 }
  0xde   : > { %8592 = shalt.err (!%p8589_p3)
}
  0xdf   : > { %8118 = dma.hbm_to_vmem [thread:$0]  (!%p8986_p5), %s9910_s9, 16, %s1460_s11, [#allocation8]  }
  0xe0   : > { %p9914_p11 = scmp.ne.s32.totalorder %s9911_s0, 0 }
  0xe1   : > { %p9915_p12 = scmp.eq.s32.totalorder (!%p9914_p11), %s8969_s15, 0 }
  0xe2   : > { %1530 = sbr.rel (%p9914_p11) target bundleno = 11739 (0x2ddb), region = 232 }
  0xe9   : > { %8598 = dma.done.wait (%p9915_p12), [#allocation3], 16   ;;  %p9916_p2 = pmov %p9915_p12 }
  0xeb   : > { %8600 = vsyncadd (%p9916_p2), [#allocation3], 4294967280  ;;  %p9917_p7 = pmov %p9916_p2 }
  0xec   : > { %p9918_p13 = pmov %p9916_p2 }
  0xed   : > { %8602 = dma.done.wait (%p9917_p7), [#allocation5], 32  }
  0xee   : > { %8604 = vsyncadd (%p9918_p13), [#allocation5], 4294967264  ;;  %p9919_p3 = pmov %p9916_p2 }
  0xef   : > { %p9920_p5 = pmov %p9916_p2 }
  0xf0   : > { %8606 = dma.done.wait (%p9919_p3), [#allocation8], 32  }
  0xf1   : > { %8608 = vsyncadd (%p9920_p5), [#allocation8], 4294967264  ;;  %s9921_s13 = sld [smem:[#allocation15_spill]]  ;;  %s9922_s5 = sld [smem:[#allocation13_spill]]  ;;  %v8671_v0 = vmov 0.0   ;;  %vm8672_vm0 = vmmov 0   ;;  %v2346_v38 = vlaneseq }
  0xf2   : > { %s9923_s3 = sld [smem:[#allocation18_spill]]  ;;  %p1687_p0 = scmp.lt.s32.totalorder %s8969_s15, 1  ;;  %7435 = vmatprep.subr.mxu0 %v8671_v0  ;;  %7440 = vmatprep.subr.mxu1 %v8671_v0  ;;  %vm1724_vm1 = vcmask 1043456   ;;  %vm1720_vm2 = vcmask 31744   ;;  %v1718_v2 = vld [vmem:[%s8726_s29] sm:$0xf] }
  0xf3   : > { %7437 = vmatprep.mubr.msk.f32.mxu0 %vm8672_vm0, %v8671_v0  ;;  %7442 = vmatprep.mubr.msk.f32.mxu1 %vm8672_vm0, %v8671_v0  ;;  %s9924_s8 = sld [smem:[#allocation19_spill]]  ;;  %v1877_v5 = vld [vmem:[%s9908_s14] sm:$0xff]  ;;  %v1878_v6 = vld [vmem:[%s9908_s14 + $0x8] sm:$0xff]  ;;  %v8673_v8 = vmov 0.0|0.0   ;;  %s9925_s6 = sld [smem:[#allocation23_spill]]  ;;  %vm1880_vm3 = vcmask 130048  }
  0xf4   : > { %s9979_s15 = smov (!%p1687_p0, %s8969_s15), 1  ;;  %7441 = vmatpush3.msk.msra.mxu1 %vm1724_vm1, %v1718_v2  ;;  %v7830_v7 = vpack.c.bf16 %v1878_v6, %v1877_v5  ;;  %s9926_s1 = sld [smem:[#allocation21_spill]]  ;;  %v1955_v17 = vld [vmem:[%s8751_s24] sm:$0xff]  ;;  %v1956_v18 = vld [vmem:[%s8751_s24 + $0x8] sm:$0xff]  ;;  %v9151_v43 = vshrl.u32 %v2346_v38, 7  ;;  %vm2630_vm6 = vcmask 261120  }
  0xf5   : > { %7829 = vmatprep.subr.bf16.mxu1 %v8673_v8  ;;  %s9927_s10 = sld [smem:[#allocation22_spill]]  ;;  %v7833_v19 = vpack.c.bf16 %v1956_v18, %v1955_v17  ;;  %s1698_s16 = scalar_lea.vmem %s8711_s17, %s9979_s15  ;;  %vm2718_vm7 = vcmask 64512   ;;  %vm3563_vm9 = vcmask 195584   ;;  %vm3809_vm10 = vcmask 523264  }
  0xf6   : > { %s9928_s2 = sld [smem:[#allocation14_spill]]  ;;  %v1717_v21 = vld [vmem:[%s1698_s16] sm:$0x1]  ;;  %s9929_s23 = sld [smem:[#allocation25_spill]]  ;;  %vm2348_vm4 = vcmp.lt.s32.totalorder %v9151_v43, 1  ;;  %vm2353_vm5 = vcmp.lt.s32.totalorder %v9151_v43, 7  ;;  %vm9210_vm8 = vmpackc.low %vm2718_vm7, %vm2718_vm7 }
  0xf7   : > { %s1695_s0 = scalar_lea.vmem %s9921_s13, %s9979_s15  ;;  %s1689_s26 = scalar_lea.vmem %s9922_s5, %s9979_s15 }
  0xf8   : > { %v1719_v1 = vld [vmem:[%s9923_s3] sm:$0xf]  ;;  %s9930_s11 = sld [smem:[#allocation28_spill]]  ;;  %s9931_s28 = sld [smem:[#allocation24_spill]] }
  0xf9   : > { %v1716_v3 = vld [vmem:[%s1695_s0] sm:$0x1]  ;;  %7436 = vmatpush3.msk.msra.mxu0 %vm1724_vm1, %v1719_v1  ;;  %s9932_s18 = sld [smem:[#allocation16_spill]]  ;;  %s9145_s0 = sshll.u32 %s9979_s15, 4 }
  0xfa   : > { %v1714_v4 = vld [vmem:[%s1689_s26] sm:$0x1]  ;;  %7438 = vmatmul.mubr.msk.f32.vlgmr.msra.gmra.mrb[0].mxu0 %vm1720_vm2, %v1716_v3  ;;  %7459 = vmatprep.subr.mxu0 %v8671_v0  ;;  %s9937_s16 = sld [smem:[#allocation31_spill]]  ;;  %s9954_s3 = smov 64  }
  0xfb   : > { %7443 = vmatmul.mubr.msk.f32.vlgmr.msra.gmra.mrb[0].mxu1 %vm1720_vm2, %v1714_v4  ;;  %7461 = vmatprep.mubr.msk.f32.mxu0 %vm8672_vm0, %v8671_v0  ;;  %v1874_v11 = vld [vmem:[%s9924_s8] sm:$0x1]  ;;  %s9956_s5 = smov 56   ;;  %s9959_s8 = smov 104  }
  0xfc   : > { %7449 = vmatprep.mubr.msk.f32.mxu1 %vm8672_vm0, %v8671_v0  ;;  %7831 = vmatpush3.bf16.msra.mxu1 %v7830_v7  ;;  %v2033_v20 = vld [vmem:[%s9925_s6] sm:$0xf]  ;;  %s1692_s22 = scalar_lea.vmem %s9928_s2, %s9979_s15  ;;  %v2190_v32 = vld [vmem:[%s9929_s23 + $0x8] sm:$0xff]  ;;  %s9933_s15 = sld [smem:[#allocation27_spill]] }
  0xfd   : > { %7832 = vmatprep.subr.bf16.mxu1 %v8673_v8  ;;  %7460 = vmatpush3.msk.msra.mxu0 %vm1724_vm1, %v2033_v20  ;;  %v1879_v22 = vld [vmem:[%s9926_s1] sm:$0x1]  ;;  %s9934_s1 = sld [smem:[#allocation30_spill]]  ;;  %s9936_s2 = sld [smem:[#allocation29_spill]] }
  0xfe   : > { %7835 = vmatprep.subr.bf16.mxu0 %v8673_v8  ;;  %7462 = vmatmul.mubr.msk.f32.vlgmr.msra.gmra.mrb[2].mxu0 %vm1720_vm2, %v1717_v21  ;;  %v2032_v27 = vld [vmem:[%s9927_s10] sm:$0xf]  ;;  %v7082_v34 = vld [vmem:[%s9930_s11 + $0x4] sm:$0xf]  ;;  %v7089_v54 = vld [vmem:[%s9930_s11 + $0x8] sm:$0xf] }
  0xff   : > { %7473 = vmatprep.mubr.msk.f32.mxu0 %vm8672_vm0, %v8671_v0  ;;  %v1715_v28 = vld [vmem:[%s1692_s22] sm:$0x1]  ;;  %s1703_s26 = scalar_lea.vmem %s9932_s18, %s9145_s0  ;;  %s9935_s10 = sld [smem:[#allocation26_spill]] }
 0x100   : > { %v2189_v31 = vld [vmem:[%s9929_s23] sm:$0xff]  ;;  %v2343_v46 = vld [vmem:[%s1703_s26 + $0x8] sm:$0xff]  ;;  %s9850_s22 = smov 96   ;;  %s9830_s18 = smov 64  }
 0x101   : > { %v7836_v33 = vpack.c.bf16 %v2190_v32, %v2189_v31  ;;  %v2186_v40 = vld [vmem:[%s9931_s28] sm:$0x1]  ;;  %v2345_v49 = vrot.slane %v2343_v46, 7  ;;  %v2352_v56 = vrot.slane %v2343_v46, 1  ;;  %s9957_s6 = smov 112   ;;  %s9960_s9 = smov 48  }
 0x102   : > { %v2342_v45 = vld [vmem:[%s1703_s26] sm:$0xff]  ;;  %v2267_v61 = vld [vmem:[%s9933_s15 + $0x8] sm:$0xff]  ;;  %s9852_s26 = smov 88   ;;  %s9964_s12 = sld [smem:[#allocation45_spill]] }
 0x103   : > { %7837 = vmatpush3.bf16.msra.mxu0 %v7836_v33  ;;  %v2344_v48 = vrot.slane %v2342_v45, 7  ;;  %v2356_v50 = vld [vmem:[%s9930_s11] sm:$0xf]  ;;  %v2351_v55 = vrot.slane %v2342_v45, 1  ;;  %v2621_v4 = vld [vmem:[%s9934_s1 + $0x10] sm:$0xff]  ;;  %v2622_v5 = vld [vmem:[%s9934_s1 + $0x18] sm:$0xff] }
 0x104   : > { %7483 = vmatprep.subr.msk.mxu0 %vm1724_vm1, %v7082_v34  ;;  %v2266_v60 = vld [vmem:[%s9933_s15] sm:$0xff]  ;;  %s9963_s11 = smov 16   ;;  %s9966_s13 = smov 24  }
 0x105   : > { %v2350_v52 = vsel %vm2348_vm4, %v2345_v49, %v2344_v48  ;;  %v2349_v57 = vsel %vm2348_vm4, %v2344_v48, %v2345_v49  ;;  %v2354_v58 = vsel %vm2353_vm5, %v2351_v55, %v2352_v56  ;;  %v2355_v59 = vsel %vm2353_vm5, %v2352_v56, %v2351_v55  ;;  %v2619_v63 = vld [vmem:[%s9934_s1] sm:$0xff]  ;;  %s9971_s14 = sld [smem:[#allocation40_spill]]  ;;  %s9972_s15 = sld [smem:[#allocation54_spill]] }
 0x106   : > { %v7839_v62 = vpack.c.bf16 %v2267_v61, %v2266_v60  ;;  %v2191_v2 = vld [vmem:[%s9935_s10] sm:$0x1]  ;;  %s9841_s10 = smov 120  }
 0x107   : > { %v7093_v18 = vld [vmem:[%s9937_s16] ss:$0 sm:$0xff]  ;;  %s9833_s16 = smov 56  }
 0x1cd   : > { %v1794_v9 = vpop.f32.mrb[0].mxu0 }
 0x1ce   : > { %v1870_v10 = vpop.f32.mrb[0].mxu1  ;;  %v7439_v13 = vpop.f32.mrb[1].mxu0 }
 0x1cf   : > { %v1871_v12 = vadd.f32 %v1870_v10, %v1794_v9  ;;  %v7444_v14 = vpop.f32.mrb[1].mxu1  ;;  %v7845_v9 = vpack.c.bf16 %v2622_v5, %v2621_v4  ;;  %v2615_v10 = vld [vmem:[%s9936_s2] sm:$0xff] }
 0x1d1   : > { %v1875_v15 = vadd.f32 %v1874_v11, %v1871_v12  ;;  %v2106_v29 = vpop.f32.mrb[2].mxu0  ;;  %v2616_v12 = vld [vmem:[%s9936_s2 + $0x8] sm:$0xff]  ;;  %s9950_s2 = sld [smem:[#allocation44_spill]] }
 0x1d2   : > { %v7463_v30 = vpop.f32.mrb[3].mxu0 }
 0x1d3   : > { %v1876_v16 = vmax.f32 %v1875_v15, 0.0 }
 0x1d5   : > { %7450 = vmatmul.mubr.msk.f32.vlgmr.msra.gmra.mrb[2].mxu1 %vm1880_vm3, %v1876_v16 }
 0x1d6   : > { %7456 = vmatprep.mubr.msk.f32.mxu1 %vm8672_vm0, %v8671_v0  ;;  %7834 = vmatpush3.bf16.msra.mxu1 %v7833_v19 }
 0x1d7   : > { %7464 = vmatprep.subr.mxu1 %v8671_v0 }
 0x2a8   : > { %v1950_v23 = vpop.f32.mrb[2].mxu1 }
 0x2a9   : > { %v1951_v24 = vadd.f32 %v1950_v23, %v1879_v22  ;;  %v7451_v25 = vpop.f32.mrb[3].mxu1 }
 0x2ab   : > { %v1954_v26 = vmax.f32 %v1951_v24, 0.0 }
 0x2ad   : > { %7457 = vmatmul.mubr.msk.f32.vlgmr.msra.gmra.mrb[4].mxu1 %vm1880_vm3, %v1954_v26 }
 0x2ae   : > { %7465 = vmatpush3.msk.msra.mxu1 %vm1724_vm1, %v2032_v27  ;;  %7466 = vmatprep.mubr.msk.f32.mxu1 %vm8672_vm0, %v8671_v0 }
 0x2af   : > { %7838 = vmatprep.subr.bf16.mxu1 %v8673_v8 }
 0x2b1   : > { %7467 = vmatmul.mubr.msk.f32.vlgmr.msra.gmra.mrb[6].mxu1 %vm1720_vm2, %v1715_v28 }
 0x2b2   : > { %7480 = vmatprep.mubr.msk.f32.mxu1 %vm8672_vm0, %v8671_v0  ;;  %7840 = vmatpush3.bf16.msra.mxu1 %v7839_v62  ;;  %v2620_v0 = vld [vmem:[%s9934_s1 + $0x8] sm:$0xff] }
 0x2b3   : > { %v7841_v1 = vpack.c.bf16 %v2620_v0, %v2619_v63 }
 0x2b5   : > { %7842 = vmatprep.subr.bf16.mxu1 %v7841_v1 }
 0x380   : > { %v2026_v35 = vpop.f32.mrb[4].mxu1 }
 0x381   : > { %v2030_v36 = vmul.f32 1.442695, %v2026_v35  ;;  %v7458_v37 = vpop.f32.mrb[5].mxu1 }
 0x383   : > { %8327 = vpow2.f32 %v2030_v36 }
 0x384   : > { %v2182_v39 = vpop.f32.mrb[6].mxu1 }
 0x385   : > { %v2183_v41 = vadd.f32 %v2182_v39, %v2106_v29  ;;  %v7468_v42 = vpop.f32.mrb[7].mxu1  ;;  %v9221_v29 = vsub.s32 0, %v9151_v43 }
 0x387   : > { %v2187_v44 = vadd.f32 %v2186_v40, %v2183_v41 }
 0x389   : > { %v2188_v47 = vmax.f32 %v2187_v44, 0.0 }
 0x38b   : > { %7474 = vmatmul.mubr.msk.f32.vlgmr.msra.gmra.mrb[4].mxu0 %vm1880_vm3, %v2188_v47 }
 0x38c   : > { %7484 = vmatpush3.msk.msra.mxu0 %vm1724_vm1, %v7082_v34  ;;  %7485 = vmatprep.mubr.msk.f32.mxu0 %vm1720_vm2, %v2342_v45 }
 0x38d   : > { %v8328_v51 = vpop.eup %8327  ;;  %7488 = vmatprep.subr.msk.mxu0 %vm1724_vm1, %v2356_v50 }
 0x38e   : > { %v2341_v53 = vmul.f32 0.35355338, %v8328_v51 }
 0x38f   : > { %7486 = vmatmul.mubr.msk.f32.vlgmr.msra.gmra.mrb[6].mxu0 %vm1720_vm2, %v2343_v46 }
 0x390   : > { %7489 = vmatpush3.msk.msra.mxu0 %vm1724_vm1, %v2356_v50  ;;  %8081 = vpush %v2341_v53  ;;  %7490 = vmatprep.mubr.msk.f32.mxu0 %vm1720_vm2, %v2350_v52 }
 0x391   : > { %7493 = vmatprep.subr.msk.mxu0 %vm1724_vm1, %v7089_v54 }
 0x397   : > { %7491 = vmatmul.mubr.msk.f32.vlgmr.msra.gmra.mrb[6].mxu0 %vm1720_vm2, %v2349_v57 }
 0x398   : > { %7494 = vmatpush3.msk.msra.mxu0 %vm1724_vm1, %v7089_v54  ;;  %7495 = vmatprep.mubr.msk.f32.mxu0 %vm1720_vm2, %v2354_v58 }
 0x39f   : > { %7496 = vmatmul.mubr.msk.f32.vlgmr.msra.gmra.mrb[6].mxu0 %vm1720_vm2, %v2355_v59 }
 0x3c1   : > { %s8082_s28 = spop %8081 }
 0x3c2   : > { %v9223_v30 = vstv %s8082_s28  ;;  %s9834_s28 = smov 80  }
 0x45e   : > { %v2261_v3 = vpop.f32.mrb[4].mxu0 }
 0x45f   : > { %v2262_v6 = vadd.f32 %v2261_v3, %v2191_v2  ;;  %v7475_v7 = vpop.f32.mrb[5].mxu0 }
 0x461   : > { %v2265_v8 = vmax.f32 %v2262_v6, 0.0 }
 0x463   : > { %7481 = vmatmul.mubr.msk.f32.vlgmr.msra.gmra.mrb[8].mxu1 %vm1880_vm3, %v2265_v8 }
 0x464   : > { %7844 = vmatpush3.bf16.msra.mxu1 %v7841_v1 }
 0x465   : > { %7846 = vmatprep.subr.bf16.mxu1 %v7845_v9 }
 0x468   : > { %7848 = vmatpush3.bf16.msra.mxu1 %v7845_v9 }
 0x472   : > { %v7497_v11 = vpop.f32.mrb[6].mxu0 }
 0x473   : > { %v2604_v13 = vpop.f32.mrb[7].mxu0  ;;  %v9189_v15 = vadd.f32 %v7497_v11, %v2616_v12 }
 0x474   : > { %v9187_v14 = vadd.f32 %v2615_v10, %v2604_v13 }
 0x476   : > { %7506 = vmatprep.mubr.msk.f32.mxu1 %vm2630_vm6, %v9187_v14 }
 0x477   : > { %7507 = vmatmul.mubr.msk.f32.vlgmr.msra.gmra.mrb[10].mxu1 %vm2630_vm6, %v9189_v15 }
 0x536   : > { %v2337_v16 = vpop.f32.mrb[8].mxu1 }
 0x537   : > { %v7482_v17 = vpop.f32.mrb[9].mxu1  ;;  %v9226_v32 = vrot.slane %v2337_v16, %v9221_v29 }
 0x54a   : > { %v7508_v19 = vpop.f32.mrb[10].mxu1 }
 0x54b   : > { %v9196_v20 = vadd.f32 %v7508_v19, %v7093_v18  ;;  %v2703_v21 = vpop.f32.mrb[11].mxu1 }
 0x54c   : > { %v9198_v22 = vadd.f32 %v7093_v18, %v2703_v21 }
 0x54e   : > { %7513 = vmatprep.mubr.msk.f32.mxu1 %vm2718_vm7, %v9198_v22  ;;  %v9204_v23 = vpack.i.bf16 %v9196_v20, %v9198_v22 }
 0x550   : > { %8213 = vrot.lane.b32.xlu0 %v9204_v23, %s9850_s22  ;;  %s9945_s22 = sld [smem:[#allocation38_spill]] }
 0x5c2   : > { %v8214_v24 = vpop.permute.xlu0 %8213 }
 0x5c3   : > { %v8216_v25 = vunpack.i.h.bf16 %v8214_v24  ;;  %v8215_v26 = vunpack.i.l.bf16 %v8214_v24 }
 0x5c5   : > { %v7849_v28 = vpack.c.bf16 %v8216_v25, %v8215_v26 }
 0x5c7   : > { %7851 = vmatprep.subr.msk.bf16.mxu1 %vm9210_vm8, %v7849_v28 }
 0x5c8   : > { %7854 = vmatpush3.bf16.xpose.msk.msra.mxu1 %vm9210_vm8, %v7849_v28 }
 0x5cf   : > { %7514 = vmatmul.mubr.msk.f32.vlgmr.msra.gmra.mrb[12].mxu1 %vm2718_vm7, %v9196_v20 }
 0x6a2   : > { %v7515_v31 = vpop.f32.mrb[12].mxu1 }
 0x6a3   : > { %v2807_v33 = vmul.f32 %v7515_v31, %v9223_v30  ;;  %v2793_v34 = vpop.f32.mrb[13].mxu1 }
 0x6a4   : > { %v2806_v35 = vmul.f32 %v9223_v30, %v2793_v34 }
 0x6a5   : > { %v2813_v36 = vadd.f32 %v9226_v32, %v2807_v33 }
 0x6a6   : > { %v2812_v37 = vadd.f32 %v9226_v32, %v2806_v35 }
 0x6a7   : > { %v2817_v39 = vsel %vm1880_vm3, %v2813_v36, -inf }
 0x6a8   : > { %2818 = vmax.xlane.f32.xlu1 %v2817_v39  ;;  %v2814_v40 = vsel %vm1880_vm3, %v2812_v37, -inf }
 0x6a9   : > { %2815 = vmax.xlane.f32.xlu0 %v2814_v40 }
 0x6b9   : > { %8218 = vrot.lane.b32.xlu1 %v9204_v23, %s9830_s18  ;;  %s9831_s18 = smov 112  }
 0x6bd   : > { %8223 = vrot.lane.b32.xlu1 %v9204_v23, %s9852_s26  ;;  %s9946_s26 = sld [smem:[#allocation17_spill]] }
 0x6bf   : > { %2925 = vrot.lane.b32.xlu0 %v9196_v20, %s9841_s10 }
 0x6c3   : > { %s1708_s1 = scalar_lea.vmem %s9946_s26, %s9145_s0  ;;  %s9949_s26 = sld [smem:[#allocation42_spill]] }
 0x735   : > { %v2819_v41 = vpop.xlane.xlu1 %2818 }
 0x736   : > { %v2821_v42 = vsub.f32 %v2813_v36, %v2819_v41  ;;  %v2816_v44 = vpop.xlane.xlu0 %2815 }
 0x737   : > { %v2820_v45 = vsub.f32 %v2812_v37, %v2816_v44 }
 0x738   : > { %v2824_v46 = vmul.f32 1.442695, %v2821_v42 }
 0x739   : > { %v2822_v47 = vmul.f32 1.442695, %v2820_v45  ;;  %v8219_v48 = vpop.permute.xlu1 %8218 }
 0x73a   : > { %8329 = vpow2.f32 %v2824_v46  ;;  %v8221_v49 = vunpack.i.h.bf16 %v8219_v48  ;;  %v8220_v50 = vunpack.i.l.bf16 %v8219_v48  ;;  %v2926_v3 = vpop.permute.xlu0 %2925 }
 0x73b   : > { %8331 = vpow2.f32 %v2822_v47 }
 0x73c   : > { %v7855_v51 = vpack.c.bf16 %v8221_v49, %v8220_v50 }
 0x73d   : > { %v8224_v52 = vpop.permute.xlu1 %8223 }
 0x73e   : > { %v8226_v53 = vunpack.i.h.bf16 %v8224_v52  ;;  %v8225_v54 = vunpack.i.l.bf16 %v8224_v52  ;;  %7856 = vmatprep.subr.bf16.mxu0 %v7855_v51 }
 0x73f   : > { %7858 = vmatpush3.bf16.msra.mxu0 %v7855_v51 }
 0x740   : > { %v7859_v55 = vpack.c.bf16 %v8226_v53, %v8225_v54 }
 0x742   : > { %7861 = vmatprep.subr.msk.bf16.mxu0 %vm9210_vm8, %v7859_v55 }
 0x744   : > { %v8330_v56 = vpop.eup %8329 }
 0x745   : > { %v2829_v57 = vsel %vm1880_vm3, %v8330_v56, 0.0  ;;  %v8332_v58 = vpop.eup %8331 }
 0x746   : > { %2830 = vadd.xlane.f32.xlu1 %v2829_v57  ;;  %v2826_v59 = vsel %vm1880_vm3, %v8332_v58, 0.0 }
 0x74a   : > { %2827 = vadd.xlane.f32.xlu1 %v2826_v59 }
 0x75b   : > { %2923 = vrot.lane.b32.xlu1 %v9198_v22, %s9841_s10  ;;  %s9940_s10 = sld [smem:[#allocation32_spill]] }
 0x7d3   : > { %v2831_v60 = vpop.xlane.xlu1 %2830 }
 0x7d4   : > { %8333 = vrcp.f32 %v2831_v60 }
 0x7d7   : > { %v2828_v61 = vpop.xlane.xlu1 %2827 }
 0x7d8   : > { %8335 = vrcp.f32 %v2828_v61 }
 0x7db   : > { %v2924_v2 = vpop.permute.xlu1 %2923 }
 0x7de   : > { %v8334_v62 = vpop.eup %8333 }
 0x7df   : > { %v2835_v1 = vmul.f32 %v8334_v62, %v8330_v56 }
 0x7e2   : > { %v8336_v63 = vpop.eup %8335 }
 0x7e3   : > { %v2833_v0 = vmul.f32 %v8336_v63, %v8332_v58 }
 0x7e5   : > { %7520 = vmatprep.mubr.msk.f32.mxu0 %vm1880_vm3, %v2833_v0 }
 0x7e6   : > { %7521 = vmatmul.mubr.msk.f32.vlgmr.msra.gmra.mrb[8].mxu0 %vm1880_vm3, %v2835_v1 }
 0x7e7   : > { %7864 = vmatpush3.bf16.xpose.msk.msra.mxu0 %vm9210_vm8, %v7859_v55  ;;  %7527 = vmatprep.mubr.msk.f32.mxu0 %vm2718_vm7, %v2924_v2 }
 0x7ee   : > { %7528 = vmatmul.mubr.msk.f32.vlgmr.msra.gmra.mrb[10].mxu0 %vm2718_vm7, %v2926_v3 }
 0x8b9   : > { %v9252_v4 = vpop.f32.mrb[8].mxu0 }
 0x8ba   : > { %v9254_v5 = vpop.f32.mrb[9].mxu0 }
 0x8c1   : > { %v7529_v6 = vpop.f32.mrb[10].mxu0 }
 0x8c2   : > { %v3015_v7 = vmul.f32 %v7529_v6, %v9223_v30  ;;  %v3005_v8 = vpop.f32.mrb[11].mxu0 }
 0x8c3   : > { %v3014_v9 = vmul.f32 %v3005_v8, %v9223_v30 }
 0x8c4   : > { %v3017_v10 = vadd.f32 %v3015_v7, %v9226_v32 }
 0x8c5   : > { %v3016_v11 = vadd.f32 %v3014_v9, %v9226_v32 }
 0x8c6   : > { %v3021_v12 = vsel %vm1880_vm3, %v3017_v10, -inf }
 0x8c7   : > { %3022 = vmax.xlane.f32.xlu0 %v3021_v12  ;;  %v3018_v13 = vsel %vm1880_vm3, %v3016_v11, -inf }
 0x8c8   : > { %3019 = vmax.xlane.f32.xlu1 %v3018_v13 }
 0x8d9   : > { %8228 = vrot.lane.b32.xlu1 %v9204_v23, %s9833_s16  ;;  %s9837_s16 = smov 104  }
 0x8dd   : > { %8233 = vrot.lane.b32.xlu0 %v9204_v23, %s9834_s28  ;;  %3127 = vrot.lane.b32.xlu1 %v9198_v22, %s9831_s18  ;;  %s9836_s28 = smov 48  }
 0x954   : > { %v3023_v16 = vpop.xlane.xlu0 %3022 }
 0x955   : > { %v3025_v17 = vsub.f32 %v3017_v10, %v3023_v16  ;;  %v3020_v18 = vpop.xlane.xlu1 %3019 }
 0x956   : > { %v3024_v19 = vsub.f32 %v3016_v11, %v3020_v18 }
 0x957   : > { %v3028_v21 = vmul.f32 1.442695, %v3025_v17 }
 0x958   : > { %v3026_v24 = vmul.f32 1.442695, %v3024_v19  ;;  %v8234_v25 = vpop.permute.xlu0 %8233 }
 0x959   : > { %8337 = vpow2.f32 %v3028_v21  ;;  %v8229_v26 = vpop.permute.xlu1 %8228  ;;  %v8236_v28 = vunpack.i.h.bf16 %v8234_v25  ;;  %v8235_v31 = vunpack.i.l.bf16 %v8234_v25 }
 0x95a   : > { %v8231_v33 = vunpack.i.h.bf16 %v8229_v26  ;;  %v8230_v34 = vunpack.i.l.bf16 %v8229_v26  ;;  %8339 = vpow2.f32 %v3026_v24 }
 0x95b   : > { %v7869_v36 = vpack.c.bf16 %v8236_v28, %v8235_v31 }
 0x95c   : > { %v7865_v35 = vpack.c.bf16 %v8231_v33, %v8230_v34 }
 0x95d   : > { %v3128_v42 = vpop.permute.xlu1 %3127 }
 0x95e   : > { %7866 = vmatprep.subr.bf16.mxu1 %v7865_v35 }
 0x95f   : > { %7868 = vmatpush3.bf16.msra.mxu1 %v7865_v35 }
 0x960   : > { %7871 = vmatprep.subr.msk.bf16.mxu1 %vm9210_vm8, %v7869_v36 }
 0x963   : > { %v8338_v37 = vpop.eup %8337 }
 0x964   : > { %v3033_v39 = vsel %vm1880_vm3, %v8338_v37, 0.0  ;;  %v8340_v40 = vpop.eup %8339 }
 0x965   : > { %3034 = vadd.xlane.f32.xlu1 %v3033_v39  ;;  %v3030_v41 = vsel %vm1880_vm3, %v8340_v40, 0.0 }
 0x969   : > { %3031 = vadd.xlane.f32.xlu1 %v3030_v41 }
 0x97a   : > { %3129 = vrot.lane.b32.xlu1 %v9196_v20, %s9831_s18  ;;  %s9839_s18 = smov 72  }
 0x9f2   : > { %v3035_v44 = vpop.xlane.xlu1 %3034 }
 0x9f3   : > { %8341 = vrcp.f32 %v3035_v44 }
 0x9f6   : > { %v3032_v45 = vpop.xlane.xlu1 %3031 }
 0x9f7   : > { %8343 = vrcp.f32 %v3032_v45 }
 0x9fa   : > { %v3130_v50 = vpop.permute.xlu1 %3129 }
 0x9fd   : > { %v8342_v46 = vpop.eup %8341 }
 0x9fe   : > { %v3039_v49 = vmul.f32 %v8342_v46, %v8338_v37 }
 0xa01   : > { %v8344_v47 = vpop.eup %8343 }
 0xa02   : > { %v3037_v48 = vmul.f32 %v8344_v47, %v8340_v40 }
 0xa04   : > { %7534 = vmatprep.mubr.msk.f32.mxu1 %vm1880_vm3, %v3037_v48 }
 0xa05   : > { %7535 = vmatmul.mubr.msk.f32.vlgmr.msra.gmra.mrb[14].mxu1 %vm1880_vm3, %v3039_v49 }
 0xa06   : > { %7874 = vmatpush3.bf16.xpose.msk.msra.mxu1 %vm9210_vm8, %v7869_v36  ;;  %7541 = vmatprep.mubr.msk.f32.mxu1 %vm2718_vm7, %v3128_v42 }
 0xa0d   : > { %7542 = vmatmul.mubr.msk.f32.vlgmr.msra.gmra.mrb[16].mxu1 %vm2718_vm7, %v3130_v50 }
 0xad8   : > { %v9280_v51 = vpop.f32.mrb[14].mxu1 }
 0xad9   : > { %v9282_v52 = vpop.f32.mrb[15].mxu1 }
 0xae0   : > { %v7543_v53 = vpop.f32.mrb[16].mxu1 }
 0xae1   : > { %v3219_v54 = vmul.f32 %v7543_v53, %v9223_v30  ;;  %v3209_v55 = vpop.f32.mrb[17].mxu1 }
 0xae2   : > { %v3218_v56 = vmul.f32 %v3209_v55, %v9223_v30 }
 0xae3   : > { %v3221_v57 = vadd.f32 %v3219_v54, %v9226_v32 }
 0xae4   : > { %v3220_v58 = vadd.f32 %v3218_v56, %v9226_v32 }
 0xae5   : > { %v3225_v59 = vsel %vm1880_vm3, %v3221_v57, -inf }
 0xae6   : > { %3226 = vmax.xlane.f32.xlu0 %v3225_v59  ;;  %v3222_v60 = vsel %vm1880_vm3, %v3220_v58, -inf }
 0xae7   : > { %3223 = vmax.xlane.f32.xlu1 %v3222_v60 }
 0xb73   : > { %v3227_v61 = vpop.xlane.xlu0 %3226 }
 0xb74   : > { %v3229_v62 = vsub.f32 %v3221_v57, %v3227_v61  ;;  %v3224_v63 = vpop.xlane.xlu1 %3223 }
 0xb75   : > { %v3228_v0 = vsub.f32 %v3220_v58, %v3224_v63  ;;  %v3566_v63 = vld [vmem:[%s9940_s10] sm:$0xff] }
 0xb76   : > { %v3232_v1 = vmul.f32 1.442695, %v3229_v62 }
 0xb77   : > { %v3230_v2 = vmul.f32 1.442695, %v3228_v0  ;;  %v3567_v0 = vld [vmem:[%s9940_s10 + $0x8] sm:$0xff] }
 0xb78   : > { %8345 = vpow2.f32 %v3232_v1  ;;  %v3568_v1 = vld [vmem:[%s9940_s10 + $0x10] sm:$0xff] }
 0xb79   : > { %8347 = vpow2.f32 %v3230_v2  ;;  %v7889_v2 = vpack.c.bf16 %v3567_v0, %v3566_v63 }
 0xb82   : > { %v8346_v3 = vpop.eup %8345 }
 0xb83   : > { %v8348_v6 = vpop.eup %8347  ;;  %v3237_v7 = vsel %vm1880_vm3, %v8346_v3, 0.0 }
 0xb84   : > { %3238 = vadd.xlane.f32.xlu1 %v3237_v7  ;;  %v3234_v8 = vsel %vm1880_vm3, %v8348_v6, 0.0 }
 0xb85   : > { %3235 = vadd.xlane.f32.xlu0 %v3234_v8 }
 0xb95   : > { %8243 = vrot.lane.b32.xlu1 %v9204_v23, %s9839_s18  ;;  %s9843_s18 = smov 16  }
 0xb99   : > { %3331 = vrot.lane.b32.xlu1 %v9198_v22, %s9837_s16 }
 0xb9b   : > { %8238 = vrot.lane.b32.xlu0 %v9204_v23, %s9836_s28  ;;  %s9848_s28 = smov 8  }
 0xb9f   : > { %3333 = vrot.lane.b32.xlu0 %v9196_v20, %s9837_s16  ;;  %s9845_s16 = smov 40  }
 0xc11   : > { %v3239_v9 = vpop.xlane.xlu1 %3238 }
 0xc12   : > { %8349 = vrcp.f32 %v3239_v9  ;;  %v3236_v10 = vpop.xlane.xlu0 %3235 }
 0xc13   : > { %8351 = vrcp.f32 %v3236_v10 }
 0xc15   : > { %v8244_v11 = vpop.permute.xlu1 %8243 }
 0xc16   : > { %v8239_v12 = vpop.permute.xlu0 %8238  ;;  %v8246_v13 = vunpack.i.h.bf16 %v8244_v11  ;;  %v8245_v16 = vunpack.i.l.bf16 %v8244_v11 }
 0xc17   : > { %v8241_v17 = vunpack.i.h.bf16 %v8239_v12  ;;  %v8240_v18 = vunpack.i.l.bf16 %v8239_v12 }
 0xc18   : > { %v7879_v21 = vpack.c.bf16 %v8246_v13, %v8245_v16 }
 0xc19   : > { %v7875_v19 = vpack.c.bf16 %v8241_v17, %v8240_v18  ;;  %v3332_v26 = vpop.permute.xlu1 %3331 }
 0xc1a   : > { %v3334_v28 = vpop.permute.xlu0 %3333 }
 0xc1b   : > { %7876 = vmatprep.subr.bf16.mxu0 %v7875_v19 }
 0xc1c   : > { %v8350_v22 = vpop.eup %8349  ;;  %7878 = vmatpush3.bf16.msra.mxu0 %v7875_v19 }
 0xc1d   : > { %v8352_v24 = vpop.eup %8351  ;;  %7881 = vmatprep.subr.msk.bf16.mxu0 %vm9210_vm8, %v7879_v21  ;;  %v3243_v25 = vmul.f32 %v8350_v22, %v8346_v3  ;;  %v3569_v3 = vld [vmem:[%s9940_s10 + $0x18] sm:$0xff]  ;;  %s9962_s10 = smov 40  }
 0xc1e   : > { %v3241_v20 = vmul.f32 %v8352_v24, %v8348_v6  ;;  %v7893_v6 = vpack.c.bf16 %v3569_v3, %v3568_v1  ;;  %v9363_v3 = vsub.s32 1, %v9151_v43 }
 0xc20   : > { %7548 = vmatprep.mubr.msk.f32.mxu0 %vm1880_vm3, %v3241_v20 }
 0xc21   : > { %7549 = vmatmul.mubr.msk.f32.vlgmr.msra.gmra.mrb[12].mxu0 %vm1880_vm3, %v3243_v25 }
 0xc22   : > { %7555 = vmatprep.mubr.msk.f32.mxu0 %vm2718_vm7, %v3332_v26 }
 0xc25   : > { %7884 = vmatpush3.bf16.xpose.msk.msra.mxu0 %vm9210_vm8, %v7879_v21 }
 0xc2c   : > { %7556 = vmatmul.mubr.msk.f32.vlgmr.msra.gmra.mrb[14].mxu0 %vm2718_vm7, %v3334_v28 }
 0xcf4   : > { %v7550_v31 = vpop.f32.mrb[12].mxu0 }
 0xcf5   : > { %v3322_v33 = vpop.f32.mrb[13].mxu0 }
 0xcff   : > { %v7557_v34 = vpop.f32.mrb[14].mxu0 }
 0xd00   : > { %v3423_v35 = vmul.f32 %v7557_v34, %v9223_v30  ;;  %v3413_v36 = vpop.f32.mrb[15].mxu0 }
 0xd01   : > { %v3422_v37 = vmul.f32 %v3413_v36, %v9223_v30 }
 0xd02   : > { %v3425_v39 = vadd.f32 %v3423_v35, %v9226_v32 }
 0xd03   : > { %v3424_v40 = vadd.f32 %v3422_v37, %v9226_v32 }
 0xd04   : > { %v3429_v41 = vsel %vm1880_vm3, %v3425_v39, -inf }
 0xd05   : > { %3430 = vmax.xlane.f32.xlu0 %v3429_v41  ;;  %v3426_v42 = vsel %vm1880_vm3, %v3424_v40, -inf }
 0xd06   : > { %3427 = vmax.xlane.f32.xlu1 %v3426_v42 }
 0xd92   : > { %v3431_v44 = vpop.xlane.xlu0 %3430 }
 0xd93   : > { %v3433_v45 = vsub.f32 %v3425_v39, %v3431_v44  ;;  %v3428_v46 = vpop.xlane.xlu1 %3427 }
 0xd94   : > { %v3432_v47 = vsub.f32 %v3424_v40, %v3428_v46 }
 0xd95   : > { %v3436_v48 = vmul.f32 1.442695, %v3433_v45 }
 0xd96   : > { %v3434_v49 = vmul.f32 1.442695, %v3432_v47 }
 0xd97   : > { %8353 = vpow2.f32 %v3436_v48 }
 0xd98   : > { %8355 = vpow2.f32 %v3434_v49 }
 0xda1   : > { %v8354_v50 = vpop.eup %8353 }
 0xda2   : > { %v8356_v53 = vpop.eup %8355  ;;  %v3441_v54 = vsel %vm1880_vm3, %v8354_v50, 0.0 }
 0xda3   : > { %3442 = vadd.xlane.f32.xlu1 %v3441_v54  ;;  %v3438_v55 = vsel %vm1880_vm3, %v8356_v53, 0.0 }
 0xda4   : > { %3439 = vadd.xlane.f32.xlu0 %v3438_v55 }
 0xdb4   : > { %3537 = vrot.lane.b32.xlu1 %v9282_v52, %s9848_s28 }
 0xdb8   : > { %3539 = vrot.lane.b32.xlu1 %v9280_v51, %s9848_s28  ;;  %s9944_s28 = sld [smem:[#allocation36_spill]] }
 0xdba   : > { %8248 = vrot.lane.b32.xlu0 %v9204_v23, %s9845_s16  ;;  %s9941_s16 = sld [smem:[#allocation33_spill]] }
 0xdbc   : > { %3547 = vrot.lane.b32.xlu1 %v7550_v31, %s9843_s18 }
 0xdbe   : > { %3545 = vrot.lane.b32.xlu0 %v3322_v33, %s9843_s18  ;;  %s9846_s18 = smov 24   ;;  %v3794_v54 = vld [vmem:[%s9944_s28] sm:$0xff]  ;;  %v3795_v55 = vld [vmem:[%s9944_s28 + $0x8] sm:$0xff] }
 0xdc0   : > { %v7120_v20 = vld [vmem:[%s9941_s16] ss:$0 sm:$0xff]  ;;  %s9943_s16 = sld [smem:[#allocation41_spill]] }
 0xe30   : > { %v3443_v56 = vpop.xlane.xlu1 %3442 }
 0xe31   : > { %8357 = vrcp.f32 %v3443_v56  ;;  %v3440_v57 = vpop.xlane.xlu0 %3439  ;;  %v3796_v56 = vld [vmem:[%s9944_s28 + $0x10] sm:$0xff] }
 0xe32   : > { %8359 = vrcp.f32 %v3440_v57  ;;  %v7905_v57 = vpack.c.bf16 %v3795_v55, %v3794_v54 }
 0xe34   : > { %v3538_v9 = vpop.permute.xlu1 %3537 }
 0xe35   : > { %v8249_v52 = vpop.permute.xlu0 %8248  ;;  %v3559_v13 = vsel %vm2718_vm7, %v9254_v5, %v3538_v9 }
 0xe36   : > { %v8251_v58 = vunpack.i.h.bf16 %v8249_v52  ;;  %v8250_v51 = vunpack.i.l.bf16 %v8249_v52  ;;  %v3797_v52 = vld [vmem:[%s9944_s28 + $0x18] sm:$0xff] }
 0xe38   : > { %v7885_v59 = vpack.c.bf16 %v8251_v58, %v8250_v51  ;;  %v3540_v10 = vpop.permute.xlu1 %3539  ;;  %v7909_v58 = vpack.c.bf16 %v3797_v52, %v3796_v56  ;;  %v3798_v51 = vld [vmem:[%s9944_s28 + $0x20] sm:$0xff] }
 0xe39   : > { %v3546_v12 = vpop.permute.xlu0 %3545  ;;  %v3560_v17 = vsel %vm2718_vm7, %v9252_v4, %v3540_v10 }
 0xe3a   : > { %7886 = vmatprep.subr.bf16.mxu1 %v7885_v59  ;;  %v3561_v18 = vsel %vm1880_vm3, %v3559_v13, %v3546_v12 }
 0xe3b   : > { %v8358_v60 = vpop.eup %8357  ;;  %7888 = vmatpush3.bf16.msra.mxu1 %v7885_v59  ;;  %v3799_v59 = vld [vmem:[%s9944_s28 + $0x28] sm:$0xff] }
 0xe3c   : > { %v8360_v23 = vpop.eup %8359  ;;  %v3447_v62 = vmul.f32 %v8358_v60, %v8354_v50  ;;  %7890 = vmatprep.subr.bf16.mxu1 %v7889_v2  ;;  %v3548_v11 = vpop.permute.xlu1 %3547  ;;  %v7913_v60 = vpack.c.bf16 %v3799_v59, %v3798_v51 }
 0xe3d   : > { %v3445_v61 = vmul.f32 %v8360_v23, %v8356_v53  ;;  %v3562_v21 = vsel %vm1880_vm3, %v3560_v17, %v3548_v11  ;;  %v7131_v53 = vld [vmem:[%s9943_s16 + $0x4] sm:$0xf] }
 0xe3e   : > { %v3972_v17 = vld [vmem:[%s1708_s1] sm:$0xff] }
 0xe3f   : > { %7562 = vmatprep.mubr.msk.f32.mxu1 %vm1880_vm3, %v3445_v61 }
 0xe40   : > { %7563 = vmatmul.mubr.msk.f32.vlgmr.msra.gmra.mrb[18].mxu1 %vm1880_vm3, %v3447_v62 }
 0xe41   : > { %7892 = vmatpush3.bf16.msra.mxu1 %v7889_v2  ;;  %v3658_v2 = vld [vmem:[%s9945_s22] sm:$0x3]  ;;  %s9948_s22 = sld [smem:[#allocation35_spill]] }
 0xe42   : > { %7894 = vmatprep.subr.bf16.mxu1 %v7893_v6  ;;  %v3697_v9 = vrot.slane %v3658_v2, %v9363_v3 }
 0xe45   : > { %7896 = vmatpush3.bf16.msra.mxu1 %v7893_v6  ;;  %v3691_v6 = vrot.slane %v3658_v2, %v9221_v29 }
 0xe46   : > { %7906 = vmatprep.subr.bf16.mxu1 %v7905_v57 }
 0xf13   : > { %v7564_v7 = vpop.f32.mrb[18].mxu1 }
 0xf14   : > { %3555 = vrot.lane.b32.xlu1 %v7564_v7, %s9846_s18  ;;  %v3526_v8 = vpop.f32.mrb[19].mxu1 }
 0xf15   : > { %3553 = vrot.lane.b32.xlu0 %v3526_v8, %s9846_s18  ;;  %s9942_s18 = sld [smem:[#allocation34_spill]] }
 0xf1b   : > { %v3700_v45 = vld [vmem:[%s9942_s18] sm:$0xff]  ;;  %v3701_v46 = vld [vmem:[%s9942_s18 + $0x8] sm:$0xff]  ;;  %v3702_v48 = vld [vmem:[%s9942_s18 + $0x10] sm:$0xff] }
 0xf1c   : > { %v7897_v47 = vpack.c.bf16 %v3701_v46, %v3700_v45  ;;  %v3703_v49 = vld [vmem:[%s9942_s18 + $0x18] sm:$0xff] }
 0xf1d   : > { %v7901_v50 = vpack.c.bf16 %v3703_v49, %v3702_v48  ;;  %v4241_v49 = vld [vmem:[%s9949_s26] sm:$0xff] }
 0xf1e   : > { %7898 = vmatprep.subr.bf16.mxu0 %v7897_v47 }
 0xf1f   : > { %7900 = vmatpush3.bf16.msra.mxu0 %v7897_v47 }
 0xf20   : > { %7902 = vmatprep.subr.bf16.mxu0 %v7901_v50 }
 0xf23   : > { %7904 = vmatpush3.bf16.msra.mxu0 %v7901_v50 }
 0xf24   : > { %7606 = vmatprep.subr.msk.mxu0 %vm1724_vm1, %v7131_v53 }
 0xf86   : > { %v3556_v16 = vpop.permute.xlu1 %3555 }
 0xf87   : > { %v3554_v19 = vpop.permute.xlu0 %3553  ;;  %v3565_v24 = vsel %vm3563_vm9, %v3562_v21, %v3556_v16  ;;  %v3974_v21 = vrot.slane %v3972_v17, 7 }
 0xf88   : > { %v3564_v22 = vsel %vm3563_vm9, %v3561_v18, %v3554_v19  ;;  %v3973_v18 = vld [vmem:[%s1708_s1 + $0x8] sm:$0xff]  ;;  %s9947_s1 = sld [smem:[#allocation43_spill]] }
 0xf89   : > { %7573 = vmatprep.mubr.msk.f32.mxu1 %vm2630_vm6, %v3564_v22  ;;  %v3975_v22 = vrot.slane %v3973_v18, 7 }
 0xf8a   : > { %7574 = vmatmul.mubr.msk.f32.vlgmr.msra.gmra.mrb[20].mxu1 %vm2630_vm6, %v3565_v24  ;;  %v3982_v24 = vld [vmem:[%s9943_s16] sm:$0xf] }
 0xf8b   : > { %7908 = vmatpush3.bf16.msra.mxu1 %v7905_v57 }
 0xf8c   : > { %7910 = vmatprep.subr.bf16.mxu1 %v7909_v58 }
 0xf8f   : > { %7912 = vmatpush3.bf16.msra.mxu1 %v7909_v58  ;;  %v7142_v58 = vld [vmem:[%s9950_s2] ss:$0 sm:$0xff]  ;;  %s9953_s2 = smov 120  }
 0xf90   : > { %7914 = vmatprep.subr.bf16.mxu1 %v7913_v60 }
 0xf93   : > { %7916 = vmatpush3.bf16.msra.mxu1 %v7913_v60 }
0x105d   : > { %v7575_v25 = vpop.f32.mrb[20].mxu1 }
0x105e   : > { %v3655_v5 = vadd.f32 %v7575_v25, %v7120_v20  ;;  %v3649_v26 = vpop.f32.mrb[21].mxu1  ;;  %v7138_v25 = vld [vmem:[%s9943_s16 + $0x8] sm:$0xf] }
0x105f   : > { %v3650_v28 = vadd.f32 %v7120_v20, %v3649_v26  ;;  %v3977_v20 = vsel %vm2348_vm4, %v3975_v22, %v3974_v21  ;;  %v3979_v26 = vrot.slane %v3973_v18, 1 }
0x1060   : > { %v3660_v4 = vadd.f32 %v3655_v5, %v9189_v15  ;;  %v3978_v5 = vrot.slane %v3972_v17, 1 }
0x1061   : > { %v3659_v31 = vadd.f32 %v3650_v28, %v9187_v14  ;;  %v3976_v28 = vsel %vm2348_vm4, %v3974_v21, %v3975_v22 }
0x1062   : > { %v3664_v33 = vsel %vm2630_vm6, %v3660_v4, 0.0 }
0x1063   : > { %3665 = vadd.xlane.f32.xlu1 %v3664_v33  ;;  %v3661_v34 = vsel %vm2630_vm6, %v3659_v31, 0.0  ;;  %v3800_v33 = vld [vmem:[%s9944_s28 + $0x30] sm:$0xff] }
0x1064   : > { %3662 = vadd.xlane.f32.xlu0 %v3661_v34  ;;  %v3801_v34 = vld [vmem:[%s9944_s28 + $0x38] sm:$0xff] }
0x10f0   : > { %v3666_v35 = vpop.xlane.xlu1 %3665 }
0x10f1   : > { %v3669_v36 = vmul.f32 0.03125, %v3666_v35  ;;  %v3663_v37 = vpop.xlane.xlu0 %3662  ;;  %v7917_v35 = vpack.c.bf16 %v3801_v34, %v3800_v33 }
0x10f2   : > { %v3668_v39 = vmul.f32 0.03125, %v3663_v37  ;;  %v4251_v37 = vld [vmem:[%s9947_s1 + $0x8] sm:$0xff] }
0x10f3   : > { %v3671_v40 = vsub.f32 %v3660_v4, %v3669_v36  ;;  %v3980_v4 = vsel %vm2353_vm5, %v3978_v5, %v3979_v26  ;;  %7918 = vmatprep.subr.bf16.mxu1 %v7917_v35  ;;  %v4250_v36 = vld [vmem:[%s9947_s1] sm:$0xff] }
0x10f4   : > { %v3670_v41 = vsub.f32 %v3659_v31, %v3668_v39  ;;  %v3981_v31 = vsel %vm2353_vm5, %v3979_v26, %v3978_v5  ;;  %7920 = vmatpush3.bf16.msra.mxu1 %v7917_v35  ;;  %v7921_v39 = vpack.c.bf16 %v4251_v37, %v4250_v36 }
0x10f5   : > { %v3673_v15 = vmul.f32 %v3671_v40, %v3671_v40 }
0x10f6   : > { %v3672_v42 = vmul.f32 %v3670_v41, %v3670_v41 }
0x10f7   : > { %v3677_v44 = vsel %vm2630_vm6, %v3673_v15, 0.0 }
0x10f8   : > { %v3674_v14 = vsel %vm2630_vm6, %v3672_v42, 0.0 }
0x10f9   : > { %3675 = vadd.xlane.f32.xlu0 %v3674_v14  ;;  %v7123_v14 = vld [vmem:[%s9948_s22] ss:$0 sm:$0xff]  ;;  %s9951_s22 = smov 88  }
0x10fd   : > { %3678 = vadd.xlane.f32.xlu0 %v3677_v44 }
0x1186   : > { %v3676_v23 = vpop.xlane.xlu0 %3675 }
0x1187   : > { %v3680_v61 = vmul.f32 0.03125, %v3676_v23 }
0x1189   : > { %v3682_v62 = vadd.f32 1e-05, %v3680_v61 }
0x118a   : > { %v3679_v63 = vpop.xlane.xlu0 %3678 }
0x118b   : > { %8361 = vrsqrt.f32 %v3682_v62  ;;  %v3681_v0 = vmul.f32 0.03125, %v3679_v63 }
0x118d   : > { %v3683_v1 = vadd.f32 1e-05, %v3681_v0 }
0x118f   : > { %8363 = vrsqrt.f32 %v3683_v1 }
0x1195   : > { %v8362_v7 = vpop.eup %8361 }
0x1196   : > { %v3686_v8 = vmul.f32 %v8362_v7, %v3670_v41  ;;  %v4253_v41 = vld [vmem:[%s9947_s1 + $0x18] sm:$0xff] }
0x1198   : > { %v3692_v10 = vmul.f32 %v3691_v6, %v3686_v8 }
0x1199   : > { %v8364_v11 = vpop.eup %8363 }
0x119a   : > { %v3687_v12 = vmul.f32 %v8364_v11, %v3671_v40  ;;  %v9367_v13 = vadd.f32 %v3697_v9, %v3692_v10  ;;  %v4252_v40 = vld [vmem:[%s9947_s1 + $0x10] sm:$0xff]  ;;  %s9952_s1 = smov 96   ;;  %v9453_v11 = vadd.s32 8, %v9151_v43 }
0x119b   : > { %v7925_v42 = vpack.c.bf16 %v4253_v41, %v4252_v40 }
0x119c   : > { %v3693_v16 = vmul.f32 %v3691_v6, %v3687_v12  ;;  %7584 = vmatprep.mubr.msk.f32.mxu0 %vm2630_vm6, %v9367_v13  ;;  %v9456_v12 = vand.u32 127, %v2346_v38 }
0x119e   : > { %v9373_v19 = vadd.f32 %v3697_v9, %v3693_v16  ;;  %vm4249_vm11 = vcmp.gt.s32.totalorder %v9456_v12, %v9453_v11  ;;  %vm4248_vm12 = vcmp.gt.s32.totalorder %v9456_v12, %v9151_v43 }
0x11a0   : > { %7585 = vmatmul.mubr.msk.f32.vlgmr.msra.gmra.mrb[16].mxu0 %vm2630_vm6, %v9373_v19 }
0x11a1   : > { %7607 = vmatpush3.msk.msra.mxu0 %vm1724_vm1, %v7131_v53  ;;  %7608 = vmatprep.mubr.msk.f32.mxu0 %vm1720_vm2, %v3972_v17  ;;  %v4242_v53 = vld [vmem:[%s9949_s26 + $0x8] sm:$0xff] }
0x11a2   : > { %7611 = vmatprep.subr.msk.mxu0 %vm1724_vm1, %v3982_v24 }
0x11a4   : > { %7609 = vmatmul.mubr.msk.f32.vlgmr.msra.gmra.mrb[18].mxu0 %vm1720_vm2, %v3973_v18 }
0x11a5   : > { %7612 = vmatpush3.msk.msra.mxu0 %vm1724_vm1, %v3982_v24  ;;  %7613 = vmatprep.mubr.msk.f32.mxu0 %vm1720_vm2, %v3977_v20 }
0x11a6   : > { %7616 = vmatprep.subr.msk.mxu0 %vm1724_vm1, %v7138_v25 }
0x11ac   : > { %7614 = vmatmul.mubr.msk.f32.vlgmr.msra.gmra.mrb[18].mxu0 %vm1720_vm2, %v3976_v28 }
0x11ad   : > { %7617 = vmatpush3.msk.msra.mxu0 %vm1724_vm1, %v7138_v25  ;;  %7618 = vmatprep.mubr.msk.f32.mxu0 %vm1720_vm2, %v3980_v4 }
0x11ae   : > { %7922 = vmatprep.subr.bf16.mxu0 %v7921_v39 }
0x11b4   : > { %7619 = vmatmul.mubr.msk.f32.vlgmr.msra.gmra.mrb[18].mxu0 %vm1720_vm2, %v3981_v31 }
0x11b5   : > { %7924 = vmatpush3.bf16.msra.mxu0 %v7921_v39 }
0x11b6   : > { %7926 = vmatprep.subr.bf16.mxu0 %v7925_v42 }
0x11b9   : > { %7928 = vmatpush3.bf16.msra.mxu0 %v7925_v42 }
0x1273   : > { %v7586_v15 = vpop.f32.mrb[16].mxu0 }
0x1274   : > { %v3789_v44 = vadd.f32 %v7586_v15, %v7123_v14  ;;  %v3783_v45 = vpop.f32.mrb[17].mxu0 }
0x1275   : > { %v3784_v46 = vadd.f32 %v7123_v14, %v3783_v45 }
0x1276   : > { %v3793_v48 = vmax.f32 %v3789_v44, 0.0 }
0x1277   : > { %v3792_v47 = vmax.f32 %v3784_v46, 0.0 }
0x1279   : > { %7603 = vmatprep.mubr.msk.f32.mxu1 %vm3809_vm10, %v3792_v47 }
0x127a   : > { %7604 = vmatmul.mubr.msk.f32.vlgmr.msra.gmra.mrb[22].mxu1 %vm3809_vm10, %v3793_v48 }
0x1287   : > { %v7620_v50 = vpop.f32.mrb[18].mxu0 }
0x1288   : > { %v4230_v54 = vpop.f32.mrb[19].mxu0  ;;  %v9411_v56 = vadd.f32 %v7620_v50, %v4242_v53 }
0x1289   : > { %v9409_v55 = vadd.f32 %v4241_v49, %v4230_v54 }
0x128b   : > { %7629 = vmatprep.mubr.msk.f32.mxu0 %vm2630_vm6, %v9409_v55 }
0x128c   : > { %7630 = vmatmul.mubr.msk.f32.vlgmr.msra.gmra.mrb[20].mxu0 %vm2630_vm6, %v9411_v56 }
0x134d   : > { %v9417_v57 = vpop.f32.mrb[22].mxu1 }
0x134e   : > { %v9419_v52 = vpop.f32.mrb[23].mxu1 }
0x135f   : > { %v7631_v51 = vpop.f32.mrb[20].mxu0 }
0x1360   : > { %v9422_v59 = vadd.f32 %v7631_v51, %v7142_v58  ;;  %v4333_v60 = vpop.f32.mrb[21].mxu0 }
0x1361   : > { %v9424_v23 = vadd.f32 %v7142_v58, %v4333_v60 }
0x1363   : > { %7636 = vmatprep.mubr.msk.f32.mxu1 %vm2718_vm7, %v9424_v23  ;;  %v9430_v61 = vpack.i.bf16 %v9422_v59, %v9424_v23 }
0x1365   : > { %8258 = vrot.lane.b32.xlu0 %v9430_v61, %s9951_s22  ;;  %8253 = vrot.lane.b32.xlu1 %v9430_v61, %s9952_s1 }
0x1369   : > { %4544 = vrot.lane.b32.xlu1 %v9424_v23, %s9953_s2 }
0x136d   : > { %4546 = vrot.lane.b32.xlu1 %v9422_v59, %s9953_s2 }
0x13d7   : > { %v8259_v62 = vpop.permute.xlu0 %8258  ;;  %v8254_v63 = vpop.permute.xlu1 %8253 }
0x13d8   : > { %v8261_v0 = vunpack.i.h.bf16 %v8259_v62  ;;  %v8260_v1 = vunpack.i.l.bf16 %v8259_v62  ;;  %v8256_v2 = vunpack.i.h.bf16 %v8254_v63  ;;  %v8255_v6 = vunpack.i.l.bf16 %v8254_v63 }
0x13da   : > { %v7929_v7 = vpack.c.bf16 %v8256_v2, %v8255_v6  ;;  %v7939_v8 = vpack.c.bf16 %v8261_v0, %v8260_v1 }
0x13db   : > { %v4545_v9 = vpop.permute.xlu1 %4544 }
0x13dc   : > { %7931 = vmatprep.subr.msk.bf16.mxu1 %vm9210_vm8, %v7929_v7 }
0x13dd   : > { %7934 = vmatpush3.bf16.xpose.msk.msra.mxu1 %vm9210_vm8, %v7929_v7 }
0x13de   : > { %7941 = vmatprep.subr.msk.bf16.mxu1 %vm9210_vm8, %v7939_v8 }
0x13df   : > { %v4547_v10 = vpop.permute.xlu1 %4546 }
0x13e4   : > { %7637 = vmatmul.mubr.msk.f32.vlgmr.msra.gmra.mrb[24].mxu1 %vm2718_vm7, %v9422_v59 }
0x13e5   : > { %7944 = vmatpush3.bf16.xpose.msk.msra.mxu1 %vm9210_vm8, %v7939_v8  ;;  %7650 = vmatprep.mubr.msk.f32.mxu1 %vm2718_vm7, %v4545_v9 }
0x13ec   : > { %7651 = vmatmul.mubr.msk.f32.vlgmr.msra.gmra.mrb[26].mxu1 %vm2718_vm7, %v4547_v10 }
0x14b7   : > { %v7638_v16 = vpop.f32.mrb[24].mxu1 }
0x14b8   : > { %v4432_v17 = vmul.f32 %v7638_v16, %v9223_v30  ;;  %v4422_v18 = vpop.f32.mrb[25].mxu1 }
0x14b9   : > { %v4431_v21 = vmul.f32 %v4422_v18, %v9223_v30 }
0x14ba   : > { %v4434_v22 = vsel %vm4249_vm11, -1e+30, %v4432_v17 }
0x14bb   : > { %v4438_v24 = vsel %vm1880_vm3, %v4434_v22, -inf  ;;  %v4433_v38 = vsel %vm4248_vm12, -1e+30, %v4431_v21 }
0x14bc   : > { %4439 = vmax.xlane.f32.xlu1 %v4438_v24  ;;  %v4435_v20 = vsel %vm1880_vm3, %v4433_v38, -inf }
0x14bd   : > { %4436 = vmax.xlane.f32.xlu0 %v4435_v20 }
0x14bf   : > { %v7652_v25 = vpop.f32.mrb[26].mxu1 }
0x14c0   : > { %v4626_v5 = vpop.f32.mrb[27].mxu1  ;;  %v4636_v26 = vmul.f32 %v7652_v25, %v9223_v30 }
0x14c1   : > { %v4635_v28 = vmul.f32 %v4626_v5, %v9223_v30 }
0x14c2   : > { %v4638_v33 = vsel %vm4249_vm11, -1e+30, %v4636_v26 }
0x14c3   : > { %v4637_v4 = vsel %vm4248_vm12, -1e+30, %v4635_v28  ;;  %v4642_v34 = vsel %vm1880_vm3, %v4638_v33, -inf }
0x14c4   : > { %v4639_v31 = vsel %vm1880_vm3, %v4637_v4, -inf }
0x14c5   : > { %4640 = vmax.xlane.f32.xlu0 %v4639_v31 }
0x14c9   : > { %4643 = vmax.xlane.f32.xlu0 %v4642_v34 }
0x14cd   : > { %8263 = vrot.lane.b32.xlu1 %v9430_v61, %s9954_s3  ;;  %s9955_s3 = smov 80  }
0x1549   : > { %v4440_v35 = vpop.xlane.xlu1 %4439 }
0x154a   : > { %v4442_v36 = vsub.f32 %v4434_v22, %v4440_v35  ;;  %v4437_v37 = vpop.xlane.xlu0 %4436 }
0x154b   : > { %v4441_v39 = vsub.f32 %v4433_v38, %v4437_v37 }
0x154c   : > { %v4445_v40 = vmul.f32 1.442695, %v4442_v36 }
0x154d   : > { %v4443_v41 = vmul.f32 1.442695, %v4441_v39  ;;  %v8264_v42 = vpop.permute.xlu1 %8263 }
0x154e   : > { %8365 = vpow2.f32 %v4445_v40  ;;  %v8266_v14 = vunpack.i.h.bf16 %v8264_v42  ;;  %v8265_v15 = vunpack.i.l.bf16 %v8264_v42 }
0x154f   : > { %8367 = vpow2.f32 %v4443_v41 }
0x1550   : > { %v7935_v44 = vpack.c.bf16 %v8266_v14, %v8265_v15 }
0x1552   : > { %7936 = vmatprep.subr.bf16.mxu0 %v7935_v44  ;;  %v4641_v45 = vpop.xlane.xlu0 %4640 }
0x1553   : > { %7938 = vmatpush3.bf16.msra.mxu0 %v7935_v44  ;;  %v4645_v60 = vsub.f32 %v4637_v4, %v4641_v45 }
0x1555   : > { %v4647_v62 = vmul.f32 1.442695, %v4645_v60 }
0x1556   : > { %v4644_v46 = vpop.xlane.xlu0 %4643 }
0x1557   : > { %v4646_v47 = vsub.f32 %v4638_v33, %v4644_v46 }
0x1558   : > { %v8366_v48 = vpop.eup %8365 }
0x1559   : > { %v8368_v49 = vpop.eup %8367  ;;  %v4649_v50 = vmul.f32 1.442695, %v4646_v47  ;;  %v4450_v53 = vsel %vm1880_vm3, %v8366_v48, 0.0 }
0x155a   : > { %4451 = vadd.xlane.f32.xlu0 %v4450_v53  ;;  %v4447_v54 = vsel %vm1880_vm3, %v8368_v49, 0.0 }
0x155b   : > { %8369 = vpow2.f32 %v4649_v50  ;;  %4448 = vadd.xlane.f32.xlu1 %v4447_v54 }
0x155c   : > { %8371 = vpow2.f32 %v4647_v62 }
0x1565   : > { %v8370_v58 = vpop.eup %8369 }
0x1566   : > { %v4654_v51 = vsel %vm1880_vm3, %v8370_v58, 0.0  ;;  %v8372_v63 = vpop.eup %8371 }
0x1567   : > { %4655 = vadd.xlane.f32.xlu0 %v4654_v51  ;;  %v4651_v0 = vsel %vm1880_vm3, %v8372_v63, 0.0 }
0x156c   : > { %8273 = vrot.lane.b32.xlu1 %v9430_v61, %s9955_s3 }
0x157d   : > { %8268 = vrot.lane.b32.xlu0 %v9430_v61, %s9956_s5  ;;  %s9958_s5 = smov 72  }
0x1581   : > { %4750 = vrot.lane.b32.xlu0 %v9422_v59, %s9957_s6 }
0x1590   : > { %4652 = vadd.xlane.f32.xlu1 %v4651_v0 }
0x15a1   : > { %4748 = vrot.lane.b32.xlu1 %v9424_v23, %s9957_s6 }
0x15e7   : > { %v4452_v1 = vpop.xlane.xlu0 %4451 }
0x15e8   : > { %8373 = vrcp.f32 %v4452_v1  ;;  %v4449_v2 = vpop.xlane.xlu1 %4448 }
0x15e9   : > { %8375 = vrcp.f32 %v4449_v2 }
0x15ec   : > { %v8274_v16 = vpop.permute.xlu1 %8273 }
0x15ed   : > { %v8276_v18 = vunpack.i.h.bf16 %v8274_v16  ;;  %v8275_v21 = vunpack.i.l.bf16 %v8274_v16 }
0x15ef   : > { %v7949_v20 = vpack.c.bf16 %v8276_v18, %v8275_v21 }
0x15f2   : > { %v8374_v6 = vpop.eup %8373 }
0x15f3   : > { %v8376_v7 = vpop.eup %8375  ;;  %v4456_v10 = vmul.f32 %v8374_v6, %v8366_v48 }
0x15f4   : > { %v4656_v8 = vpop.xlane.xlu0 %4655  ;;  %v4454_v9 = vmul.f32 %v8376_v7, %v8368_v49 }
0x15f5   : > { %8377 = vrcp.f32 %v4656_v8 }
0x15f6   : > { %7643 = vmatprep.mubr.msk.f32.mxu0 %vm1880_vm3, %v4454_v9 }
0x15f7   : > { %7644 = vmatmul.mubr.msk.f32.vlgmr.msra.gmra.mrb[22].mxu0 %vm1880_vm3, %v4456_v10 }
0x15f8   : > { %v8269_v17 = vpop.permute.xlu0 %8268 }
0x15f9   : > { %v8271_v22 = vunpack.i.h.bf16 %v8269_v17  ;;  %v8270_v24 = vunpack.i.l.bf16 %v8269_v17 }
0x15fb   : > { %v7945_v38 = vpack.c.bf16 %v8271_v22, %v8270_v24 }
0x15fc   : > { %v4751_v33 = vpop.permute.xlu0 %4750 }
0x15fd   : > { %7946 = vmatprep.subr.bf16.mxu0 %v7945_v38 }
0x15fe   : > { %7948 = vmatpush3.bf16.msra.mxu0 %v7945_v38 }
0x15ff   : > { %7951 = vmatprep.subr.msk.bf16.mxu0 %vm9210_vm8, %v7949_v20  ;;  %v8378_v5 = vpop.eup %8377 }
0x1600   : > { %v4660_v4 = vmul.f32 %v8378_v5, %v8370_v58 }
0x161d   : > { %v4653_v25 = vpop.xlane.xlu1 %4652 }
0x161e   : > { %8379 = vrcp.f32 %v4653_v25 }
0x1621   : > { %v4749_v31 = vpop.permute.xlu1 %4748 }
0x1628   : > { %v8380_v26 = vpop.eup %8379 }
0x1629   : > { %v4658_v28 = vmul.f32 %v8380_v26, %v8372_v63 }
0x162b   : > { %7657 = vmatprep.mubr.msk.f32.mxu0 %vm1880_vm3, %v4658_v28 }
0x162c   : > { %7658 = vmatmul.mubr.msk.f32.vlgmr.msra.gmra.mrb[24].mxu0 %vm1880_vm3, %v4660_v4 }
0x162d   : > { %7954 = vmatpush3.bf16.xpose.msk.msra.mxu0 %vm9210_vm8, %v7949_v20  ;;  %7664 = vmatprep.mubr.msk.f32.mxu0 %vm2718_vm7, %v4749_v31 }
0x1634   : > { %7665 = vmatmul.mubr.msk.f32.vlgmr.msra.gmra.mrb[26].mxu0 %vm2718_vm7, %v4751_v33 }
0x16ca   : > { %v9506_v34 = vpop.f32.mrb[22].mxu0 }
0x16cb   : > { %v9508_v35 = vpop.f32.mrb[23].mxu0 }
0x16ff   : > { %v9510_v36 = vpop.f32.mrb[24].mxu0 }
0x1700   : > { %v9512_v37 = vpop.f32.mrb[25].mxu0 }
0x1707   : > { %v7666_v39 = vpop.f32.mrb[26].mxu0 }
0x1708   : > { %v4840_v40 = vmul.f32 %v7666_v39, %v9223_v30  ;;  %v4830_v41 = vpop.f32.mrb[27].mxu0 }
0x1709   : > { %v4839_v42 = vmul.f32 %v4830_v41, %v9223_v30 }
0x170a   : > { %v4842_v14 = vsel %vm4249_vm11, -1e+30, %v4840_v40 }
0x170b   : > { %v4846_v15 = vsel %vm1880_vm3, %v4842_v14, -inf  ;;  %v4841_v44 = vsel %vm4248_vm12, -1e+30, %v4839_v42 }
0x170c   : > { %4847 = vmax.xlane.f32.xlu0 %v4846_v15  ;;  %v4843_v45 = vsel %vm1880_vm3, %v4841_v44, -inf }
0x170d   : > { %4844 = vmax.xlane.f32.xlu1 %v4843_v45 }
0x1799   : > { %v4848_v46 = vpop.xlane.xlu0 %4847 }
0x179a   : > { %v4850_v47 = vsub.f32 %v4842_v14, %v4848_v46  ;;  %v4845_v48 = vpop.xlane.xlu1 %4844 }
0x179b   : > { %v4849_v49 = vsub.f32 %v4841_v44, %v4845_v48 }
0x179c   : > { %v4853_v50 = vmul.f32 1.442695, %v4850_v47 }
0x179d   : > { %v4851_v53 = vmul.f32 1.442695, %v4849_v49 }
0x179e   : > { %8381 = vpow2.f32 %v4853_v50 }
0x179f   : > { %8383 = vpow2.f32 %v4851_v53  ;;  %v5186_v53 = vld [vmem:[%s9964_s12] sm:$0xff] }
0x17a8   : > { %v8382_v54 = vpop.eup %8381 }
0x17a9   : > { %v8384_v58 = vpop.eup %8383  ;;  %v4858_v51 = vsel %vm1880_vm3, %v8382_v54, 0.0 }
0x17aa   : > { %4859 = vadd.xlane.f32.xlu1 %v4858_v51  ;;  %v4855_v60 = vsel %vm1880_vm3, %v8384_v58, 0.0 }
0x17ab   : > { %4856 = vadd.xlane.f32.xlu0 %v4855_v60  ;;  %v5189_v60 = vld [vmem:[%s9964_s12 + $0x18] sm:$0xff] }
0x17bb   : > { %8283 = vrot.lane.b32.xlu1 %v9430_v61, %s9958_s5 }
0x17bf   : > { %4952 = vrot.lane.b32.xlu1 %v9424_v23, %s9959_s8 }
0x17c1   : > { %8278 = vrot.lane.b32.xlu0 %v9430_v61, %s9960_s9  ;;  %s9961_s9 = smov 8  }
0x17c5   : > { %4954 = vrot.lane.b32.xlu0 %v9422_v59, %s9959_s8 }
0x1837   : > { %v4860_v62 = vpop.xlane.xlu1 %4859 }
0x1838   : > { %8385 = vrcp.f32 %v4860_v62  ;;  %v4857_v63 = vpop.xlane.xlu0 %4856 }
0x1839   : > { %8387 = vrcp.f32 %v4857_v63 }
0x183b   : > { %v8284_v0 = vpop.permute.xlu1 %8283 }
0x183c   : > { %v8279_v1 = vpop.permute.xlu0 %8278  ;;  %v8286_v2 = vunpack.i.h.bf16 %v8284_v0  ;;  %v8285_v6 = vunpack.i.l.bf16 %v8284_v0 }
0x183d   : > { %v8281_v7 = vunpack.i.h.bf16 %v8279_v1  ;;  %v8280_v8 = vunpack.i.l.bf16 %v8279_v1 }
0x183e   : > { %v7959_v10 = vpack.c.bf16 %v8286_v2, %v8285_v6 }
0x183f   : > { %v7955_v9 = vpack.c.bf16 %v8281_v7, %v8280_v8  ;;  %v4953_v18 = vpop.permute.xlu1 %4952 }
0x1840   : > { %v4955_v21 = vpop.permute.xlu0 %4954 }
0x1841   : > { %7956 = vmatprep.subr.bf16.mxu1 %v7955_v9 }
0x1842   : > { %v8386_v23 = vpop.eup %8385  ;;  %7958 = vmatpush3.bf16.msra.mxu1 %v7955_v9 }
0x1843   : > { %v8388_v16 = vpop.eup %8387  ;;  %7961 = vmatprep.subr.msk.bf16.mxu1 %vm9210_vm8, %v7959_v10  ;;  %v4864_v17 = vmul.f32 %v8386_v23, %v8382_v54  ;;  %v5187_v54 = vld [vmem:[%s9964_s12 + $0x8] sm:$0xff] }
0x1844   : > { %v4862_v59 = vmul.f32 %v8388_v16, %v8384_v58  ;;  %v5188_v58 = vld [vmem:[%s9964_s12 + $0x10] sm:$0xff]  ;;  %v7969_v51 = vpack.c.bf16 %v5187_v54, %v5186_v53  ;;  %s9968_s12 = sld [smem:[#allocation46_spill]] }
0x1845   : > { %v7973_v62 = vpack.c.bf16 %v5189_v60, %v5188_v58 }
0x1846   : > { %7671 = vmatprep.mubr.msk.f32.mxu1 %vm1880_vm3, %v4862_v59 }
0x1847   : > { %7672 = vmatmul.mubr.msk.f32.vlgmr.msra.gmra.mrb[28].mxu1 %vm1880_vm3, %v4864_v17 }
0x1848   : > { %7678 = vmatprep.mubr.msk.f32.mxu1 %vm2718_vm7, %v4953_v18 }
0x184b   : > { %7964 = vmatpush3.bf16.xpose.msk.msra.mxu1 %vm9210_vm8, %v7959_v10 }
0x1852   : > { %7679 = vmatmul.mubr.msk.f32.vlgmr.msra.gmra.mrb[30].mxu1 %vm2718_vm7, %v4955_v21 }
0x191a   : > { %v7673_v22 = vpop.f32.mrb[28].mxu1 }
0x191b   : > { %v4943_v24 = vpop.f32.mrb[29].mxu1 }
0x1925   : > { %v7680_v38 = vpop.f32.mrb[30].mxu1 }
0x1926   : > { %v5044_v20 = vmul.f32 %v7680_v38, %v9223_v30  ;;  %v5034_v25 = vpop.f32.mrb[31].mxu1 }
0x1927   : > { %v5043_v5 = vmul.f32 %v5034_v25, %v9223_v30 }
0x1928   : > { %v5046_v26 = vsel %vm4249_vm11, -1e+30, %v5044_v20 }
0x1929   : > { %v5050_v28 = vsel %vm1880_vm3, %v5046_v26, -inf  ;;  %v5045_v4 = vsel %vm4248_vm12, -1e+30, %v5043_v5 }
0x192a   : > { %5051 = vmax.xlane.f32.xlu0 %v5050_v28  ;;  %v5047_v31 = vsel %vm1880_vm3, %v5045_v4, -inf }
0x192b   : > { %5048 = vmax.xlane.f32.xlu1 %v5047_v31 }
0x19b7   : > { %v5052_v33 = vpop.xlane.xlu0 %5051 }
0x19b8   : > { %v5054_v39 = vsub.f32 %v5046_v26, %v5052_v33  ;;  %v5049_v40 = vpop.xlane.xlu1 %5048 }
0x19b9   : > { %v5053_v41 = vsub.f32 %v5045_v4, %v5049_v40 }
0x19ba   : > { %v5057_v42 = vmul.f32 1.442695, %v5054_v39 }
0x19bb   : > { %v5055_v14 = vmul.f32 1.442695, %v5053_v41 }
0x19bc   : > { %8389 = vpow2.f32 %v5057_v42 }
0x19bd   : > { %8391 = vpow2.f32 %v5055_v14 }
0x19c6   : > { %v8390_v11 = vpop.eup %8389 }
0x19c7   : > { %v8392_v15 = vpop.eup %8391  ;;  %v5062_v44 = vsel %vm1880_vm3, %v8390_v11, 0.0 }
0x19c8   : > { %5063 = vadd.xlane.f32.xlu1 %v5062_v44  ;;  %v5059_v43 = vsel %vm1880_vm3, %v8392_v15, 0.0 }
0x19c9   : > { %5060 = vadd.xlane.f32.xlu0 %v5059_v43 }
0x19d9   : > { %5158 = vrot.lane.b32.xlu1 %v9512_v37, %s9961_s9 }
0x19dd   : > { %5160 = vrot.lane.b32.xlu1 %v9510_v36, %s9961_s9 }
0x19df   : > { %8288 = vrot.lane.b32.xlu0 %v9430_v61, %s9962_s10  ;;  %s9965_s10 = sld [smem:[#allocation37_spill]] }
0x19e1   : > { %5168 = vrot.lane.b32.xlu1 %v7673_v22, %s9963_s11 }
0x19e3   : > { %5166 = vrot.lane.b32.xlu0 %v4943_v24, %s9963_s11 }
0x19e5   : > { %v7126_v1 = vld [vmem:[%s9965_s10] ss:$0 sm:$0xff]  ;;  %s9967_s10 = sld [smem:[#allocation39_spill]] }
0x19e6   : > { %v3883_v2 = vadd.f32 %v7126_v1, %v9419_v52  ;;  %v3888_v6 = vadd.f32 %v9417_v57, %v7126_v1 }
0x19e8   : > { %v3892_v7 = vadd.f32 %v3883_v2, %v9367_v13  ;;  %v3893_v9 = vadd.f32 %v3888_v6, %v9373_v19 }
0x19ea   : > { %v3894_v8 = vsel %vm2630_vm6, %v3892_v7, 0.0  ;;  %v3897_v10 = vsel %vm2630_vm6, %v3893_v9, 0.0 }
0x19eb   : > { %v3891_v44 = vld [vmem:[%s9967_s10] sm:$0x3]  ;;  %s9970_s10 = sld [smem:[#allocation47_spill]] }
0x19ec   : > { %v3923_v43 = vrot.slane %v3891_v44, %v9221_v29 }
0x1a55   : > { %v5064_v12 = vpop.xlane.xlu1 %5063 }
0x1a56   : > { %8393 = vrcp.f32 %v5064_v12  ;;  %v5061_v45 = vpop.xlane.xlu0 %5060 }
0x1a57   : > { %8395 = vrcp.f32 %v5061_v45  ;;  %v7169_v45 = vld [vmem:[%s9968_s12] ss:$0 sm:$0xff]  ;;  %s9969_s12 = sld [smem:[#allocation49_spill]] }
0x1a59   : > { %v5159_v23 = vpop.permute.xlu1 %5158 }
0x1a5a   : > { %v8289_v46 = vpop.permute.xlu0 %8288  ;;  %v5180_v18 = vsel %vm2718_vm7, %v9508_v35, %v5159_v23 }
0x1a5b   : > { %v8291_v37 = vunpack.i.h.bf16 %v8289_v46  ;;  %v8290_v47 = vunpack.i.l.bf16 %v8289_v46 }
0x1a5d   : > { %v7965_v48 = vpack.c.bf16 %v8291_v37, %v8290_v47  ;;  %v5161_v16 = vpop.permute.xlu1 %5160  ;;  %v3929_v37 = vrot.slane %v3891_v44, %v9363_v3 }
0x1a5e   : > { %v5167_v17 = vpop.permute.xlu0 %5166  ;;  %v5181_v57 = vsel %vm2718_vm7, %v9506_v34, %v5161_v16 }
0x1a5f   : > { %7966 = vmatprep.subr.bf16.mxu0 %v7965_v48  ;;  %v5182_v13 = vsel %vm1880_vm3, %v5180_v18, %v5167_v17 }
0x1a60   : > { %v8394_v36 = vpop.eup %8393  ;;  %7968 = vmatpush3.bf16.msra.mxu0 %v7965_v48 }
0x1a61   : > { %v8396_v61 = vpop.eup %8395  ;;  %v5068_v50 = vmul.f32 %v8394_v36, %v8390_v11  ;;  %7970 = vmatprep.subr.bf16.mxu0 %v7969_v51  ;;  %v5169_v59 = vpop.permute.xlu1 %5168 }
0x1a62   : > { %v5066_v49 = vmul.f32 %v8396_v61, %v8392_v15  ;;  %v5183_v19 = vsel %vm1880_vm3, %v5181_v57, %v5169_v59 }
0x1a64   : > { %7685 = vmatprep.mubr.msk.f32.mxu0 %vm1880_vm3, %v5066_v49 }
0x1a65   : > { %7686 = vmatmul.mubr.msk.f32.vlgmr.msra.gmra.mrb[28].mxu0 %vm1880_vm3, %v5068_v50 }
0x1a66   : > { %7972 = vmatpush3.bf16.msra.mxu0 %v7969_v51 }
0x1a67   : > { %7974 = vmatprep.subr.bf16.mxu0 %v7973_v62 }
0x1a6a   : > { %7976 = vmatpush3.bf16.msra.mxu0 %v7973_v62 }
0x1b38   : > { %v7687_v63 = vpop.f32.mrb[28].mxu0 }
0x1b39   : > { %5176 = vrot.lane.b32.xlu1 %v7687_v63, %s9966_s13  ;;  %v5147_v0 = vpop.f32.mrb[29].mxu0 }
0x1b3a   : > { %5174 = vrot.lane.b32.xlu0 %v5147_v0, %s9966_s13 }
0x1b59   : > { %3895 = vadd.xlane.f32.xlu0 %v3894_v8 }
0x1b5d   : > { %3898 = vadd.xlane.f32.xlu1 %v3897_v10 }
0x1bab   : > { %v5177_v52 = vpop.permute.xlu1 %5176 }
0x1bac   : > { %v5175_v21 = vpop.permute.xlu0 %5174  ;;  %v5185_v24 = vsel %vm3563_vm9, %v5183_v19, %v5177_v52 }
0x1bad   : > { %v5184_v22 = vsel %vm3563_vm9, %v5182_v13, %v5175_v21 }
0x1bae   : > { %7696 = vmatprep.mubr.msk.f32.mxu0 %vm2630_vm6, %v5184_v22 }
0x1baf   : > { %7697 = vmatmul.mubr.msk.f32.vlgmr.msra.gmra.mrb[30].mxu0 %vm2630_vm6, %v5185_v24  ;;  %v5411_v24 = vld [vmem:[%s9969_s12] sm:$0xff] }
0x1be6   : > { %v3896_v38 = vpop.xlane.xlu0 %3895 }
0x1be7   : > { %v3900_v20 = vmul.f32 0.03125, %v3896_v38  ;;  %v5412_v38 = vld [vmem:[%s9969_s12 + $0x8] sm:$0xff] }
0x1be9   : > { %v3902_v35 = vsub.f32 %v3892_v7, %v3900_v20  ;;  %v7985_v20 = vpack.c.bf16 %v5412_v38, %v5411_v24 }
0x1bea   : > { %v3899_v25 = vpop.xlane.xlu1 %3898 }
0x1beb   : > { %v3901_v5 = vmul.f32 0.03125, %v3899_v25  ;;  %v3904_v26 = vmul.f32 %v3902_v35, %v3902_v35  ;;  %7986 = vmatprep.subr.bf16.mxu0 %v7985_v20  ;;  %v5320_v25 = vld [vmem:[%s9970_s10 + $0x8] sm:$0xff] }
0x1bec   : > { %7988 = vmatpush3.bf16.msra.mxu0 %v7985_v20 }
0x1bed   : > { %v3903_v34 = vsub.f32 %v3893_v9, %v3901_v5  ;;  %v3906_v28 = vsel %vm2630_vm6, %v3904_v26, 0.0  ;;  %v5413_v5 = vld [vmem:[%s9969_s12 + $0x10] sm:$0xff] }
0x1bee   : > { %3907 = vadd.xlane.f32.xlu0 %v3906_v28 }
0x1bef   : > { %v3905_v4 = vmul.f32 %v3903_v34, %v3903_v34 }
0x1bf1   : > { %v3909_v31 = vsel %vm2630_vm6, %v3905_v4, 0.0  ;;  %v5321_v4 = vld [vmem:[%s9970_s10 + $0x10] sm:$0xff] }
0x1bf2   : > { %3910 = vadd.xlane.f32.xlu0 %v3909_v31  ;;  %v5322_v31 = vld [vmem:[%s9970_s10 + $0x18] sm:$0xff] }
0x1c7b   : > { %v3908_v33 = vpop.xlane.xlu0 %3907 }
0x1c7c   : > { %v3912_v39 = vmul.f32 0.03125, %v3908_v33  ;;  %v7981_v33 = vpack.c.bf16 %v5322_v31, %v5321_v4 }
0x1c7e   : > { %v3914_v40 = vadd.f32 1e-05, %v3912_v39 }
0x1c7f   : > { %v3911_v41 = vpop.xlane.xlu0 %3910 }
0x1c80   : > { %8397 = vrsqrt.f32 %v3914_v40  ;;  %v3913_v42 = vmul.f32 0.03125, %v3911_v41 }
0x1c82   : > { %v3915_v14 = vadd.f32 1e-05, %v3913_v42  ;;  %v7698_v11 = vpop.f32.mrb[30].mxu0 }
0x1c83   : > { %v5269_v15 = vpop.f32.mrb[31].mxu0  ;;  %v5275_v50 = vadd.f32 %v7698_v11, %v7169_v45 }
0x1c84   : > { %8399 = vrsqrt.f32 %v3915_v14  ;;  %v5270_v47 = vadd.f32 %v7169_v45, %v5269_v15 }
0x1c85   : > { %v5280_v63 = vadd.f32 %v5275_v50, %v9411_v56 }
0x1c86   : > { %v5279_v54 = vadd.f32 %v5270_v47, %v9409_v55  ;;  %v7129_v47 = vld [vmem:[%s9971_s14] ss:$0 sm:$0xff] }
0x1c87   : > { %v5284_v0 = vsel %vm2630_vm6, %v5280_v63, 0.0 }
0x1c88   : > { %v5281_v60 = vsel %vm2630_vm6, %v5279_v54, 0.0 }
0x1c8a   : > { %v8398_v12 = vpop.eup %8397 }
0x1c8b   : > { %v3918_v46 = vmul.f32 %v8398_v12, %v3902_v35  ;;  %v5319_v35 = vld [vmem:[%s9970_s10] sm:$0xff] }
0x1c8c   : > { %v7977_v26 = vpack.c.bf16 %v5320_v25, %v5319_v35 }
0x1c8d   : > { %v3924_v48 = vmul.f32 %v3923_v43, %v3918_v46 }
0x1c8e   : > { %v8400_v36 = vpop.eup %8399  ;;  %7978 = vmatprep.subr.bf16.mxu1 %v7977_v26 }
0x1c8f   : > { %v3930_v61 = vadd.f32 %v3929_v37, %v3924_v48  ;;  %v3919_v49 = vmul.f32 %v8400_v36, %v3903_v34  ;;  %v5414_v34 = vld [vmem:[%s9969_s12 + $0x18] sm:$0xff]  ;;  %7980 = vmatpush3.bf16.msra.mxu1 %v7977_v26  ;;  %v5278_v48 = vld [vmem:[%s9972_s15] sm:$0x3]  ;;  %s9977_s15 = sld [smem:[#allocation56_spill]] }
0x1c90   : > { %v7989_v28 = vpack.c.bf16 %v5414_v34, %v5413_v5  ;;  %7982 = vmatprep.subr.bf16.mxu1 %v7981_v33  ;;  %v5310_v50 = vrot.slane %v5278_v48, %v9221_v29 }
0x1c91   : > { %v3934_v53 = vsel %vm2630_vm6, %v3930_v61, 0.0  ;;  %v3925_v58 = vmul.f32 %v3923_v43, %v3919_v49 }
0x1c92   : > { %3935 = vadd.xlane.f32.xlu1 %v3934_v53  ;;  %7990 = vmatprep.subr.bf16.mxu0 %v7989_v28 }
0x1c93   : > { %v3931_v51 = vadd.f32 %v3929_v37, %v3925_v58  ;;  %7992 = vmatpush3.bf16.msra.mxu0 %v7989_v28  ;;  %7984 = vmatpush3.bf16.msra.mxu1 %v7981_v33 }
0x1c95   : > { %v3937_v62 = vsel %vm2630_vm6, %v3931_v51, 0.0 }
0x1c96   : > { %5282 = vadd.xlane.f32.xlu1 %v5281_v60  ;;  %3938 = vadd.xlane.f32.xlu0 %v3937_v62  ;;  %v5316_v60 = vrot.slane %v5278_v48, %v9363_v3 }
0x1c9a   : > { %5285 = vadd.xlane.f32.xlu0 %v5284_v0 }
0x1d1f   : > { %v3936_v1 = vpop.xlane.xlu1 %3935 }
0x1d20   : > { %v3940_v2 = vmul.f32 0.03125, %v3936_v1 }
0x1d22   : > { %v3942_v6 = vsub.f32 %v3930_v61, %v3940_v2  ;;  %v7130_v61 = vld [vmem:[%s9971_s14 + $0x1] ss:$0 sm:$0xff] }
0x1d23   : > { %v5283_v7 = vpop.xlane.xlu1 %5282  ;;  %v3939_v8 = vpop.xlane.xlu0 %3938 }
0x1d24   : > { %v5287_v55 = vmul.f32 0.03125, %v5283_v7  ;;  %v3941_v9 = vmul.f32 0.03125, %v3939_v8  ;;  %v3944_v10 = vmul.f32 %v3942_v6, %v3942_v6 }
0x1d26   : > { %v5289_v23 = vsub.f32 %v5279_v54, %v5287_v55  ;;  %v9599_v16 = vsub.f32 %v3931_v51, %v3941_v9  ;;  %v3946_v56 = vsel %vm2630_vm6, %v3944_v10, 0.0  ;;  %v7175_v9 = vld [vmem:[#allocation4] ss:$0 sm:$0xff] }
0x1d27   : > { %3947 = vadd.xlane.f32.xlu1 %v3946_v56  ;;  %v5286_v59 = vpop.xlane.xlu0 %5285 }
0x1d28   : > { %v5288_v17 = vmul.f32 0.03125, %v5286_v59  ;;  %v5291_v18 = vmul.f32 %v5289_v23, %v5289_v23  ;;  %v3945_v52 = vmul.f32 %v9599_v16, %v9599_v16  ;;  %v7172_v59 = vld [vmem:[#allocation2] ss:$0 sm:$0xff] }
0x1d2a   : > { %v5290_v57 = vsub.f32 %v5280_v63, %v5288_v17  ;;  %v5293_v13 = vsel %vm2630_vm6, %v5291_v18, 0.0  ;;  %v3949_v21 = vsel %vm2630_vm6, %v3945_v52, 0.0 }
0x1d2b   : > { %5294 = vadd.xlane.f32.xlu1 %v5293_v13  ;;  %3950 = vadd.xlane.f32.xlu0 %v3949_v21 }
0x1d2c   : > { %v5292_v19 = vmul.f32 %v5290_v57, %v5290_v57 }
0x1d2e   : > { %v5296_v22 = vsel %vm2630_vm6, %v5292_v19, 0.0 }
0x1d2f   : > { %5297 = vadd.xlane.f32.xlu0 %v5296_v22 }
0x1db4   : > { %v3948_v39 = vpop.xlane.xlu1 %3947 }
0x1db5   : > { %v3952_v40 = vmul.f32 0.03125, %v3948_v39 }
0x1db7   : > { %v3954_v41 = vadd.f32 1e-05, %v3952_v40 }
0x1db8   : > { %v5295_v42 = vpop.xlane.xlu1 %5294  ;;  %v3951_v14 = vpop.xlane.xlu0 %3950 }
0x1db9   : > { %8401 = vrsqrt.f32 %v3954_v41  ;;  %v5299_v11 = vmul.f32 0.03125, %v5295_v42  ;;  %v3953_v15 = vmul.f32 0.03125, %v3951_v14 }
0x1dbb   : > { %v5301_v44 = vadd.f32 1e-05, %v5299_v11  ;;  %v3955_v43 = vadd.f32 1e-05, %v3953_v15 }
0x1dbc   : > { %v5298_v12 = vpop.xlane.xlu0 %5297 }
0x1dbd   : > { %8403 = vrsqrt.f32 %v5301_v44  ;;  %v5300_v45 = vmul.f32 0.03125, %v5298_v12 }
0x1dbe   : > { %8405 = vrsqrt.f32 %v3955_v43 }
0x1dbf   : > { %v5302_v46 = vadd.f32 1e-05, %v5300_v45 }
0x1dc1   : > { %8407 = vrsqrt.f32 %v5302_v46 }
0x1dc3   : > { %v8402_v37 = vpop.eup %8401 }
0x1dc4   : > { %v3958_v36 = vmul.f32 %v8402_v37, %v3942_v6 }
0x1dc6   : > { %v3964_v49 = vmul.f32 %v7129_v47, %v3958_v36 }
0x1dc7   : > { %v8404_v53 = vpop.eup %8403 }
0x1dc8   : > { %v8406_v54 = vpop.eup %8405  ;;  %v3970_v58 = vadd.f32 %v7130_v61, %v3964_v49  ;;  %v5305_v51 = vmul.f32 %v8404_v53, %v5289_v23 }
0x1dc9   : > { %v3959_v62 = vmul.f32 %v8406_v54, %v9599_v16 }
0x1dca   : > { %7718 = vmatprep.mubr.msk.f32.mxu0 %vm2630_vm6, %v3970_v58  ;;  %v5311_v63 = vmul.f32 %v5310_v50, %v5305_v51 }
0x1dcb   : > { %v8408_v0 = vpop.eup %8407  ;;  %v3965_v1 = vmul.f32 %v7129_v47, %v3959_v62 }
0x1dcc   : > { %v5306_v2 = vmul.f32 %v8408_v0, %v5290_v57  ;;  %v9622_v7 = vadd.f32 %v5316_v60, %v5311_v63 }
0x1dcd   : > { %v3971_v6 = vadd.f32 %v7130_v61, %v3965_v1 }
0x1dce   : > { %v5312_v8 = vmul.f32 %v5310_v50, %v5306_v2  ;;  %7707 = vmatprep.mubr.msk.f32.mxu1 %vm2630_vm6, %v9622_v7 }
0x1dcf   : > { %7719 = vmatmul.mubr.msk.f32.vlgmr.msra.gmra.mrb[32].mxu0 %vm2630_vm6, %v3971_v6 }
0x1dd0   : > { %v9627_v55 = vadd.f32 %v5316_v60, %v5312_v8 }
0x1dd2   : > { %7708 = vmatmul.mubr.msk.f32.vlgmr.msra.gmra.mrb[32].mxu1 %vm2630_vm6, %v9627_v55 }
0x1ea2   : > { %v7720_v10 = vpop.f32.mrb[32].mxu0 }
0x1ea3   : > { %v5500_v23 = vadd.f32 %v7720_v10, %v7175_v9  ;;  %v5494_v16 = vpop.f32.mrb[33].mxu0 }
0x1ea4   : > { %v5495_v56 = vadd.f32 %v7175_v9, %v5494_v16 }
0x1ea5   : > { %v7709_v17 = vpop.f32.mrb[32].mxu1 }
0x1ea6   : > { %v5402_v18 = vpop.f32.mrb[33].mxu1  ;;  %v9631_v52 = vpack.i.bf16 %v5500_v23, %v5495_v56  ;;  %v7993_v57 = vpack.c.bf16 %v5500_v23, %v5495_v56  ;;  %v9643_v21 = vadd.f32 %v7709_v17, %v7172_v59 }
0x1ea7   : > { %v9633_v13 = vadd.f32 %v7172_v59, %v5402_v18 }
0x1ea8   : > { %8293 = vrot.lane.b32.xlu1 %v9631_v52, %s9953_s2  ;;  %7995 = vmatprep.subr.msk.bf16.mxu1 %vm9210_vm8, %v7993_v57 }
0x1ea9   : > { %7998 = vmatpush3.bf16.xpose.msk.msra.mxu1 %vm9210_vm8, %v7993_v57  ;;  %5703 = vrot.lane.b32.xlu0 %v9633_v13, %s9953_s2 }
0x1eaa   : > { %7725 = vmatprep.mubr.msk.f32.mxu1 %vm2718_vm7, %v9633_v13 }
0x1eac   : > { %5705 = vrot.lane.b32.xlu1 %v9643_v21, %s9953_s2 }
0x1eb0   : > { %7726 = vmatmul.mubr.msk.f32.vlgmr.msra.gmra.mrb[34].mxu1 %vm2718_vm7, %v9643_v21 }
0x1f1a   : > { %v8294_v19 = vpop.permute.xlu1 %8293 }
0x1f1b   : > { %v8296_v22 = vunpack.i.h.bf16 %v8294_v19  ;;  %v8295_v24 = vunpack.i.l.bf16 %v8294_v19  ;;  %v5704_v38 = vpop.permute.xlu0 %5703 }
0x1f1c   : > { %7739 = vmatprep.mubr.msk.f32.mxu1 %vm2718_vm7, %v5704_v38 }
0x1f1d   : > { %v8003_v20 = vpack.c.bf16 %v8296_v22, %v8295_v24 }
0x1f1e   : > { %v5706_v35 = vpop.permute.xlu1 %5705 }
0x1f1f   : > { %8005 = vmatprep.subr.msk.bf16.mxu1 %vm9210_vm8, %v8003_v20 }
0x1f20   : > { %8008 = vmatpush3.bf16.xpose.msk.msra.mxu1 %vm9210_vm8, %v8003_v20 }
0x1f27   : > { %7740 = vmatmul.mubr.msk.f32.vlgmr.msra.gmra.mrb[36].mxu1 %vm2718_vm7, %v5706_v35 }
0x1f83   : > { %v7727_v25 = vpop.f32.mrb[34].mxu1 }
0x1f84   : > { %v5591_v5 = vmul.f32 %v7727_v25, %v9223_v30  ;;  %v5581_v26 = vpop.f32.mrb[35].mxu1 }
0x1f85   : > { %v5590_v34 = vmul.f32 %v5581_v26, %v9223_v30 }
0x1f86   : > { %v5593_v28 = vadd.f32 %v5591_v5, %v9226_v32 }
0x1f87   : > { %v5592_v4 = vadd.f32 %v5590_v34, %v9226_v32 }
0x1f88   : > { %v5597_v31 = vsel %vm1880_vm3, %v5593_v28, -inf }
0x1f89   : > { %5598 = vmax.xlane.f32.xlu0 %v5597_v31  ;;  %v5594_v33 = vsel %vm1880_vm3, %v5592_v4, -inf }
0x1f8a   : > { %5595 = vmax.xlane.f32.xlu1 %v5594_v33 }
0x1ffa   : > { %v7741_v39 = vpop.f32.mrb[36].mxu1 }
0x1ffb   : > { %v5795_v40 = vmul.f32 %v7741_v39, %v9223_v30  ;;  %v5785_v41 = vpop.f32.mrb[37].mxu1 }
0x1ffc   : > { %v5794_v42 = vmul.f32 %v5785_v41, %v9223_v30 }
0x1ffd   : > { %v5797_v14 = vadd.f32 %v5795_v40, %v9226_v32 }
0x1ffe   : > { %v5796_v11 = vadd.f32 %v5794_v42, %v9226_v32 }
0x1fff   : > { %v5801_v15 = vsel %vm1880_vm3, %v5797_v14, -inf }
0x2000   : > { %5802 = vmax.xlane.f32.xlu1 %v5801_v15  ;;  %v5798_v44 = vsel %vm1880_vm3, %v5796_v11, -inf }
0x2001   : > { %5799 = vmax.xlane.f32.xlu0 %v5798_v44 }
0x2016   : > { %v5599_v43 = vpop.xlane.xlu0 %5598 }
0x2017   : > { %v5601_v12 = vsub.f32 %v5593_v28, %v5599_v43  ;;  %v5596_v45 = vpop.xlane.xlu1 %5595 }
0x2018   : > { %v5600_v46 = vsub.f32 %v5592_v4, %v5596_v45 }
0x2019   : > { %v5604_v37 = vmul.f32 1.442695, %v5601_v12 }
0x201a   : > { %v5602_v47 = vmul.f32 1.442695, %v5600_v46 }
0x201b   : > { %8409 = vpow2.f32 %v5604_v37 }
0x201c   : > { %8411 = vpow2.f32 %v5602_v47 }
0x2025   : > { %v8410_v48 = vpop.eup %8409 }
0x2026   : > { %v8412_v36 = vpop.eup %8411  ;;  %v5609_v61 = vsel %vm1880_vm3, %v8410_v48, 0.0 }
0x2027   : > { %5610 = vadd.xlane.f32.xlu1 %v5609_v61  ;;  %v5606_v49 = vsel %vm1880_vm3, %v8412_v36, 0.0 }
0x2028   : > { %5607 = vadd.xlane.f32.xlu0 %v5606_v49 }
0x208d   : > { %v5803_v50 = vpop.xlane.xlu1 %5802 }
0x208e   : > { %v5805_v53 = vsub.f32 %v5797_v14, %v5803_v50  ;;  %v5800_v54 = vpop.xlane.xlu0 %5799 }
0x208f   : > { %v5804_v58 = vsub.f32 %v5796_v11, %v5800_v54 }
0x2090   : > { %v5808_v51 = vmul.f32 1.442695, %v5805_v53 }
0x2091   : > { %v5806_v60 = vmul.f32 1.442695, %v5804_v58 }
0x2092   : > { %8413 = vpow2.f32 %v5808_v51 }
0x2093   : > { %8415 = vpow2.f32 %v5806_v60 }
0x209c   : > { %v8414_v62 = vpop.eup %8413 }
0x209d   : > { %v8416_v63 = vpop.eup %8415  ;;  %v5813_v0 = vsel %vm1880_vm3, %v8414_v62, 0.0 }
0x209e   : > { %5814 = vadd.xlane.f32.xlu1 %v5813_v0  ;;  %v5810_v1 = vsel %vm1880_vm3, %v8416_v63, 0.0 }
0x209f   : > { %5811 = vadd.xlane.f32.xlu0 %v5810_v1 }
0x20af   : > { %8303 = vrot.lane.b32.xlu1 %v9631_v52, %s9951_s22 }
0x20b3   : > { %8308 = vrot.lane.b32.xlu1 %v9631_v52, %s9957_s6 }
0x20b4   : > { %v5611_v9 = vpop.xlane.xlu1 %5610 }
0x20b5   : > { %8298 = vrot.lane.b32.xlu0 %v9631_v52, %s9952_s1  ;;  %v5608_v2 = vpop.xlane.xlu0 %5607  ;;  %s1713_s1 = scalar_lea.vmem %s8961_s4, %s9145_s0 }
0x20b6   : > { %8417 = vrcp.f32 %v5608_v2 }
0x20b7   : > { %5909 = vrot.lane.b32.xlu1 %v9643_v21, %s9957_s6  ;;  %8419 = vrcp.f32 %v5611_v9 }
0x20b9   : > { %5907 = vrot.lane.b32.xlu0 %v9633_v13, %s9957_s6  ;;  %s9975_s6 = sld [smem:[#allocation52_spill]] }
0x20c0   : > { %v8418_v6 = vpop.eup %8417 }
0x20c1   : > { %v5613_v8 = vmul.f32 %v8418_v6, %v8412_v36  ;;  %v8420_v24 = vpop.eup %8419 }
0x20c2   : > { %v5615_v5 = vmul.f32 %v8420_v24, %v8410_v48 }
0x20c3   : > { %7732 = vmatprep.mubr.msk.f32.mxu0 %vm1880_vm3, %v5613_v8 }
0x212b   : > { %v5815_v10 = vpop.xlane.xlu1 %5814 }
0x212c   : > { %v5812_v23 = vpop.xlane.xlu0 %5811 }
0x212d   : > { %8421 = vrcp.f32 %v5812_v23 }
0x212e   : > { %8423 = vrcp.f32 %v5815_v10 }
0x212f   : > { %v8304_v16 = vpop.permute.xlu1 %8303 }
0x2130   : > { %v8299_v56 = vpop.permute.xlu0 %8298  ;;  %v8306_v59 = vunpack.i.h.bf16 %v8304_v16  ;;  %v8305_v17 = vunpack.i.l.bf16 %v8304_v16 }
0x2131   : > { %v8301_v18 = vunpack.i.h.bf16 %v8299_v56  ;;  %v8300_v57 = vunpack.i.l.bf16 %v8299_v56 }
0x2132   : > { %v8009_v38 = vpack.c.bf16 %v8306_v59, %v8305_v17 }
0x2133   : > { %v7999_v19 = vpack.c.bf16 %v8301_v18, %v8300_v57  ;;  %v8309_v22 = vpop.permute.xlu1 %8308 }
0x2134   : > { %v8311_v20 = vunpack.i.h.bf16 %v8309_v22  ;;  %v8310_v35 = vunpack.i.l.bf16 %v8309_v22  ;;  %v5908_v31 = vpop.permute.xlu0 %5907 }
0x2135   : > { %8000 = vmatprep.subr.bf16.mxu0 %v7999_v19 }
0x2136   : > { %8002 = vmatpush3.bf16.msra.mxu0 %v7999_v19  ;;  %v8013_v28 = vpack.c.bf16 %v8311_v20, %v8310_v35 }
0x2137   : > { %v8422_v25 = vpop.eup %8421  ;;  %8010 = vmatprep.subr.bf16.mxu0 %v8009_v38  ;;  %v5910_v33 = vpop.permute.xlu1 %5909 }
0x2138   : > { %v8424_v26 = vpop.eup %8423  ;;  %v5817_v34 = vmul.f32 %v8422_v25, %v8416_v63 }
0x2139   : > { %7733 = vmatmul.mubr.msk.f32.vlgmr.msra.gmra.mrb[34].mxu0 %vm1880_vm3, %v5615_v5  ;;  %v5819_v4 = vmul.f32 %v8424_v26, %v8414_v62 }
0x213a   : > { %8012 = vmatpush3.bf16.msra.mxu0 %v8009_v38  ;;  %7746 = vmatprep.mubr.msk.f32.mxu0 %vm1880_vm3, %v5817_v34 }
0x213b   : > { %8015 = vmatprep.subr.msk.bf16.mxu0 %vm9210_vm8, %v8013_v28 }
0x213d   : > { %7747 = vmatmul.mubr.msk.f32.vlgmr.msra.gmra.mrb[36].mxu0 %vm1880_vm3, %v5819_v4 }
0x213e   : > { %7753 = vmatprep.mubr.msk.f32.mxu0 %vm2718_vm7, %v5908_v31 }
0x2143   : > { %8018 = vmatpush3.bf16.xpose.msk.msra.mxu0 %vm9210_vm8, %v8013_v28 }
0x214a   : > { %7754 = vmatmul.mubr.msk.f32.vlgmr.msra.gmra.mrb[38].mxu0 %vm2718_vm7, %v5910_v33 }
0x220c   : > { %v9693_v39 = vpop.f32.mrb[34].mxu0 }
0x220d   : > { %v9695_v40 = vpop.f32.mrb[35].mxu0 }
0x2210   : > { %v9697_v41 = vpop.f32.mrb[36].mxu0 }
0x2211   : > { %v9699_v42 = vpop.f32.mrb[37].mxu0 }
0x221d   : > { %v7755_v14 = vpop.f32.mrb[38].mxu0 }
0x221e   : > { %v5999_v11 = vmul.f32 %v7755_v14, %v9223_v30  ;;  %v5989_v15 = vpop.f32.mrb[39].mxu0 }
0x221f   : > { %v5998_v44 = vmul.f32 %v5989_v15, %v9223_v30 }
0x2220   : > { %v6001_v43 = vadd.f32 %v5999_v11, %v9226_v32 }
0x2221   : > { %v6000_v12 = vadd.f32 %v5998_v44, %v9226_v32 }
0x2222   : > { %v6005_v45 = vsel %vm1880_vm3, %v6001_v43, -inf }
0x2223   : > { %6006 = vmax.xlane.f32.xlu1 %v6005_v45  ;;  %v6002_v46 = vsel %vm1880_vm3, %v6000_v12, -inf }
0x2224   : > { %6003 = vmax.xlane.f32.xlu0 %v6002_v46 }
0x2234   : > { %8313 = vrot.lane.b32.xlu1 %v9631_v52, %s9955_s3 }
0x2238   : > { %6111 = vrot.lane.b32.xlu1 %v9633_v13, %s9959_s8 }
0x223c   : > { %6113 = vrot.lane.b32.xlu1 %v9643_v21, %s9959_s8 }
0x22b0   : > { %v6007_v37 = vpop.xlane.xlu1 %6006 }
0x22b1   : > { %v6009_v47 = vsub.f32 %v6001_v43, %v6007_v37  ;;  %v6004_v48 = vpop.xlane.xlu0 %6003 }
0x22b2   : > { %v6008_v36 = vsub.f32 %v6000_v12, %v6004_v48 }
0x22b3   : > { %v6012_v61 = vmul.f32 1.442695, %v6009_v47 }
0x22b4   : > { %v6010_v49 = vmul.f32 1.442695, %v6008_v36  ;;  %v8314_v50 = vpop.permute.xlu1 %8313 }
0x22b5   : > { %8425 = vpow2.f32 %v6012_v61  ;;  %v8316_v53 = vunpack.i.h.bf16 %v8314_v50  ;;  %v8315_v54 = vunpack.i.l.bf16 %v8314_v50 }
0x22b6   : > { %8427 = vpow2.f32 %v6010_v49 }
0x22b7   : > { %v8019_v58 = vpack.c.bf16 %v8316_v53, %v8315_v54 }
0x22b8   : > { %v6112_v16 = vpop.permute.xlu1 %6111 }
0x22b9   : > { %8020 = vmatprep.subr.bf16.mxu1 %v8019_v58 }
0x22ba   : > { %8022 = vmatpush3.bf16.msra.mxu1 %v8019_v58 }
0x22bc   : > { %v6114_v56 = vpop.permute.xlu1 %6113 }
0x22bf   : > { %v8426_v51 = vpop.eup %8425 }
0x22c0   : > { %v6017_v13 = vsel %vm1880_vm3, %v8426_v51, 0.0  ;;  %v8428_v60 = vpop.eup %8427 }
0x22c1   : > { %6018 = vadd.xlane.f32.xlu0 %v6017_v13  ;;  %v6014_v21 = vsel %vm1880_vm3, %v8428_v60, 0.0 }
0x22c5   : > { %6015 = vadd.xlane.f32.xlu0 %v6014_v21 }
0x22db   : > { %8318 = vrot.lane.b32.xlu0 %v9631_v52, %s9959_s8  ;;  %s9973_s8 = sld [smem:[#allocation50_spill]] }
0x22e1   : > { %v6345_v46 = vld [vmem:[%s9973_s8] sm:$0xff]  ;;  %v6346_v37 = vld [vmem:[%s9973_s8 + $0x8] sm:$0xff]  ;;  %v6347_v47 = vld [vmem:[%s9973_s8 + $0x10] sm:$0xff] }
0x22e2   : > { %v8033_v48 = vpack.c.bf16 %v6346_v37, %v6345_v46 }
0x234e   : > { %v6019_v62 = vpop.xlane.xlu0 %6018 }
0x234f   : > { %8429 = vrcp.f32 %v6019_v62 }
0x2352   : > { %v6016_v63 = vpop.xlane.xlu0 %6015 }
0x2353   : > { %8431 = vrcp.f32 %v6016_v63 }
0x2356   : > { %v8319_v0 = vpop.permute.xlu0 %8318 }
0x2357   : > { %v8321_v1 = vunpack.i.h.bf16 %v8319_v0  ;;  %v8320_v2 = vunpack.i.l.bf16 %v8319_v0 }
0x2359   : > { %v8023_v6 = vpack.c.bf16 %v8321_v1, %v8320_v2  ;;  %v8430_v8 = vpop.eup %8429  ;;  %v7202_v2 = vld [vmem:[#allocation6] ss:$0 sm:$0xff] }
0x235a   : > { %v6023_v23 = vmul.f32 %v8430_v8, %v8426_v51 }
0x235b   : > { %8025 = vmatprep.subr.msk.bf16.mxu1 %vm9210_vm8, %v8023_v6 }
0x235d   : > { %v8432_v9 = vpop.eup %8431 }
0x235e   : > { %v6021_v10 = vmul.f32 %v8432_v9, %v8428_v60 }
0x2360   : > { %7760 = vmatprep.mubr.msk.f32.mxu1 %vm1880_vm3, %v6021_v10 }
0x2361   : > { %7761 = vmatmul.mubr.msk.f32.vlgmr.msra.gmra.mrb[38].mxu1 %vm1880_vm3, %v6023_v23 }
0x2362   : > { %8028 = vmatpush3.bf16.xpose.msk.msra.mxu1 %vm9210_vm8, %v8023_v6  ;;  %7767 = vmatprep.mubr.msk.f32.mxu1 %vm2718_vm7, %v6112_v16 }
0x2369   : > { %7768 = vmatmul.mubr.msk.f32.vlgmr.msra.gmra.mrb[40].mxu1 %vm2718_vm7, %v6114_v56 }
0x2434   : > { %v7762_v59 = vpop.f32.mrb[38].mxu1 }
0x2435   : > { %v6102_v17 = vpop.f32.mrb[39].mxu1 }
0x243c   : > { %v7769_v18 = vpop.f32.mrb[40].mxu1 }
0x243d   : > { %v6203_v57 = vmul.f32 %v7769_v18, %v9223_v30  ;;  %v6193_v19 = vpop.f32.mrb[41].mxu1 }
0x243e   : > { %v6202_v22 = vmul.f32 %v6193_v19, %v9223_v30 }
0x243f   : > { %v6205_v24 = vadd.f32 %v6203_v57, %v9226_v32 }
0x2440   : > { %v6204_v38 = vadd.f32 %v6202_v22, %v9226_v32 }
0x2441   : > { %v6209_v27 = vsel %vm1880_vm3, %v6205_v24, -inf }
0x2442   : > { %6210 = vmax.xlane.f32.xlu1 %v6209_v27  ;;  %v6206_v20 = vsel %vm1880_vm3, %v6204_v38, -inf }
0x2443   : > { %6207 = vmax.xlane.f32.xlu0 %v6206_v20 }
0x2453   : > { %8323 = vrot.lane.b32.xlu1 %v9631_v52, %s9958_s5 }
0x2457   : > { %6319 = vrot.lane.b32.xlu1 %v9697_v41, %s9961_s9 }
0x245b   : > { %6325 = vrot.lane.b32.xlu1 %v6102_v17, %s9963_s11 }
0x24cf   : > { %v6211_v35 = vpop.xlane.xlu1 %6210 }
0x24d0   : > { %v6213_v30 = vsub.f32 %v6205_v24, %v6211_v35  ;;  %v6208_v25 = vpop.xlane.xlu0 %6207 }
0x24d1   : > { %v6212_v5 = vsub.f32 %v6204_v38, %v6208_v25 }
0x24d2   : > { %v6216_v26 = vmul.f32 1.442695, %v6213_v30 }
0x24d3   : > { %v6214_v32 = vmul.f32 1.442695, %v6212_v5  ;;  %v8324_v34 = vpop.permute.xlu1 %8323  ;;  %v6572_v5 = vld [vmem:[%s9975_s6] sm:$0xff] }
0x24d4   : > { %v8326_v28 = vunpack.i.h.bf16 %v8324_v34  ;;  %v8325_v4 = vunpack.i.l.bf16 %v8324_v34 }
0x24d5   : > { %8433 = vpow2.f32 %v6214_v32  ;;  %v6574_v32 = vld [vmem:[%s9975_s6 + $0x10] sm:$0xff] }
0x24d6   : > { %v8029_v31 = vpack.c.bf16 %v8326_v28, %v8325_v4  ;;  %8435 = vpow2.f32 %v6216_v26  ;;  %v6573_v26 = vld [vmem:[%s9975_s6 + $0x8] sm:$0xff]  ;;  %v6575_v28 = vld [vmem:[%s9975_s6 + $0x18] sm:$0xff] }
0x24d7   : > { %v6320_v53 = vpop.permute.xlu1 %6319  ;;  %v8049_v34 = vpack.c.bf16 %v6573_v26, %v6572_v5  ;;  %v8053_v4 = vpack.c.bf16 %v6575_v28, %v6574_v32 }
0x24d8   : > { %8030 = vmatprep.subr.bf16.mxu0 %v8029_v31  ;;  %v6340_v60 = vsel %vm2718_vm7, %v9693_v39, %v6320_v53  ;;  %v6578_v53 = vld [vmem:[%s9975_s6 + $0x30] sm:$0xff] }
0x24d9   : > { %8032 = vmatpush3.bf16.msra.mxu0 %v8029_v31  ;;  %v6576_v31 = vld [vmem:[%s9975_s6 + $0x20] sm:$0xff] }
0x24da   : > { %8034 = vmatprep.subr.bf16.mxu0 %v8033_v48 }
0x24db   : > { %v6326_v58 = vpop.permute.xlu1 %6325 }
0x24df   : > { %v8434_v52 = vpop.eup %8433 }
0x24e0   : > { %v6218_v33 = vsel %vm1880_vm3, %v8434_v52, 0.0  ;;  %v8436_v41 = vpop.eup %8435 }
0x24e1   : > { %6219 = vadd.xlane.f32.xlu0 %v6218_v33  ;;  %v6221_v14 = vsel %vm1880_vm3, %v8436_v41, 0.0 }
0x24e5   : > { %6222 = vadd.xlane.f32.xlu0 %v6221_v14 }
0x24fb   : > { %6317 = vrot.lane.b32.xlu0 %v9699_v42, %s9961_s9  ;;  %v6348_v42 = vld [vmem:[%s9973_s8 + $0x18] sm:$0xff] }
0x24fc   : > { %v8037_v36 = vpack.c.bf16 %v6348_v42, %v6347_v47 }
0x24ff   : > { %6327 = vrot.lane.b32.xlu0 %v7762_v59, %s9963_s11  ;;  %s9976_s11 = sld [smem:[#allocation55_spill]] }
0x256e   : > { %v6220_v11 = vpop.xlane.xlu0 %6219 }
0x256f   : > { %8437 = vrcp.f32 %v6220_v11 }
0x2572   : > { %v6223_v15 = vpop.xlane.xlu0 %6222 }
0x2573   : > { %8439 = vrcp.f32 %v6223_v15 }
0x2576   : > { %v6318_v50 = vpop.permute.xlu0 %6317 }
0x2577   : > { %v6339_v51 = vsel %vm2718_vm7, %v9695_v40, %v6318_v50 }
0x2578   : > { %v6341_v62 = vsel %vm1880_vm3, %v6339_v51, %v6326_v58  ;;  %v7205_v51 = vld [vmem:[#allocation7] ss:$0 sm:$0xff] }
0x2579   : > { %v8438_v44 = vpop.eup %8437 }
0x257a   : > { %v6225_v43 = vmul.f32 %v8438_v44, %v8434_v52  ;;  %v6328_v54 = vpop.permute.xlu0 %6327  ;;  %v6577_v52 = vld [vmem:[%s9975_s6 + $0x28] sm:$0xff] }
0x257b   : > { %v6342_v63 = vsel %vm1880_vm3, %v6340_v60, %v6328_v54  ;;  %v8057_v33 = vpack.c.bf16 %v6577_v52, %v6576_v31  ;;  %v6579_v54 = vld [vmem:[%s9975_s6 + $0x38] sm:$0xff] }
0x257c   : > { %7774 = vmatprep.mubr.msk.f32.mxu0 %vm1880_vm3, %v6225_v43  ;;  %v8061_v58 = vpack.c.bf16 %v6579_v54, %v6578_v53 }
0x257d   : > { %v8440_v12 = vpop.eup %8439 }
0x257e   : > { %v6227_v45 = vmul.f32 %v8440_v12, %v8436_v41  ;;  %v6437_v12 = vld [vmem:[%s9976_s11] sm:$0x3] }
0x257f   : > { %v6475_v42 = vrot.slane %v6437_v12, %v9363_v3 }
0x2580   : > { %7775 = vmatmul.mubr.msk.f32.vlgmr.msra.gmra.mrb[40].mxu0 %vm1880_vm3, %v6227_v45  ;;  %v6469_v45 = vrot.slane %v6437_v12, %v9221_v29 }
0x2581   : > { %8036 = vmatpush3.bf16.msra.mxu0 %v8033_v48 }
0x2582   : > { %8038 = vmatprep.subr.bf16.mxu0 %v8037_v36 }
0x2585   : > { %8040 = vmatpush3.bf16.msra.mxu0 %v8037_v36 }
0x2586   : > { %8050 = vmatprep.subr.bf16.mxu0 %v8049_v34 }
0x2653   : > { %v7776_v61 = vpop.f32.mrb[40].mxu0 }
0x2654   : > { %6335 = vrot.lane.b32.xlu0 %v7776_v61, %s9966_s13  ;;  %v6306_v49 = vpop.f32.mrb[41].mxu0 }
0x2655   : > { %6333 = vrot.lane.b32.xlu1 %v6306_v49, %s9966_s13  ;;  %s9974_s13 = sld [smem:[#allocation51_spill]] }
0x265b   : > { %v6478_v38 = vld [vmem:[%s9974_s13] sm:$0xff]  ;;  %v6479_v27 = vld [vmem:[%s9974_s13 + $0x8] sm:$0xff]  ;;  %v6480_v35 = vld [vmem:[%s9974_s13 + $0x10] sm:$0xff] }
0x265c   : > { %v8041_v20 = vpack.c.bf16 %v6479_v27, %v6478_v38  ;;  %v6481_v30 = vld [vmem:[%s9974_s13 + $0x18] sm:$0xff] }
0x265d   : > { %v8045_v25 = vpack.c.bf16 %v6481_v30, %v6480_v35 }
0x265e   : > { %8042 = vmatprep.subr.bf16.mxu1 %v8041_v20 }
0x265f   : > { %8044 = vmatpush3.bf16.msra.mxu1 %v8041_v20 }
0x2660   : > { %8046 = vmatprep.subr.bf16.mxu1 %v8045_v25 }
0x2663   : > { %8048 = vmatpush3.bf16.msra.mxu1 %v8045_v25  ;;  %v6668_v25 = vld [vmem:[%s9977_s15] sm:$0x3] }
0x2664   : > { %v6700_v5 = vrot.slane %v6668_v25, %v9221_v29  ;;  %v6706_v28 = vrot.slane %v6668_v25, %v9363_v3 }
0x26c6   : > { %v6336_v13 = vpop.permute.xlu0 %6335 }
0x26c7   : > { %v6334_v21 = vpop.permute.xlu1 %6333  ;;  %v6344_v1 = vsel %vm3563_vm9, %v6342_v63, %v6336_v13 }
0x26c8   : > { %v6343_v0 = vsel %vm3563_vm9, %v6341_v62, %v6334_v21 }
0x26c9   : > { %7785 = vmatprep.mubr.msk.f32.mxu0 %vm2630_vm6, %v6343_v0 }
0x26ca   : > { %7786 = vmatmul.mubr.msk.f32.vlgmr.msra.gmra.mrb[42].mxu0 %vm2630_vm6, %v6344_v1  ;;  %v7208_v1 = vld [vmem:[#allocation9] ss:$0 sm:$0xff] }
0x26cb   : > { %8052 = vmatpush3.bf16.msra.mxu0 %v8049_v34 }
0x26cc   : > { %8054 = vmatprep.subr.bf16.mxu0 %v8053_v4 }
0x26cf   : > { %8056 = vmatpush3.bf16.msra.mxu0 %v8053_v4 }
0x26d0   : > { %8058 = vmatprep.subr.bf16.mxu0 %v8057_v33 }
0x26d3   : > { %8060 = vmatpush3.bf16.msra.mxu0 %v8057_v33 }
0x26d4   : > { %8062 = vmatprep.subr.bf16.mxu0 %v8061_v58 }
0x26d7   : > { %8064 = vmatpush3.bf16.msra.mxu0 %v8061_v58 }
0x279d   : > { %v7787_v6 = vpop.f32.mrb[42].mxu0 }
0x279e   : > { %v6434_v40 = vadd.f32 %v7787_v6, %v7202_v2  ;;  %v6428_v8 = vpop.f32.mrb[43].mxu0 }
0x279f   : > { %v6429_v9 = vadd.f32 %v7202_v2, %v6428_v8 }
0x27a0   : > { %v6439_v39 = vadd.f32 %v6434_v40, %v9627_v55 }
0x27a1   : > { %v6438_v10 = vadd.f32 %v6429_v9, %v9622_v7 }
0x27a2   : > { %v6443_v23 = vsel %vm2630_vm6, %v6439_v39, 0.0 }
0x27a3   : > { %6444 = vadd.xlane.f32.xlu0 %v6443_v23  ;;  %v6440_v16 = vsel %vm2630_vm6, %v6438_v10, 0.0 }
0x27a4   : > { %6441 = vadd.xlane.f32.xlu1 %v6440_v16 }
0x2830   : > { %v6445_v56 = vpop.xlane.xlu0 %6444 }
0x2831   : > { %v6447_v59 = vmul.f32 0.03125, %v6445_v56  ;;  %v6442_v17 = vpop.xlane.xlu1 %6441 }
0x2832   : > { %v6446_v18 = vmul.f32 0.03125, %v6442_v17 }
0x2833   : > { %v6449_v57 = vsub.f32 %v6439_v39, %v6447_v59 }
0x2834   : > { %v6448_v19 = vsub.f32 %v6438_v10, %v6446_v18 }
0x2835   : > { %v6451_v22 = vmul.f32 %v6449_v57, %v6449_v57 }
0x2836   : > { %v6450_v55 = vmul.f32 %v6448_v19, %v6448_v19 }
0x2837   : > { %v6455_v7 = vsel %vm2630_vm6, %v6451_v22, 0.0 }
0x2838   : > { %6456 = vadd.xlane.f32.xlu1 %v6455_v7  ;;  %v6452_v24 = vsel %vm2630_vm6, %v6450_v55, 0.0 }
0x2839   : > { %6453 = vadd.xlane.f32.xlu0 %v6452_v24 }
0x28c5   : > { %v6457_v41 = vpop.xlane.xlu1 %6456 }
0x28c6   : > { %v6459_v14 = vmul.f32 0.03125, %v6457_v41  ;;  %v6454_v11 = vpop.xlane.xlu0 %6453 }
0x28c7   : > { %v6458_v15 = vmul.f32 0.03125, %v6454_v11 }
0x28c8   : > { %v6461_v44 = vadd.f32 1e-05, %v6459_v14 }
0x28c9   : > { %v6460_v43 = vadd.f32 1e-05, %v6458_v15 }
0x28ca   : > { %8441 = vrsqrt.f32 %v6461_v44 }
0x28cb   : > { %8443 = vrsqrt.f32 %v6460_v43 }
0x28d4   : > { %v8442_v46 = vpop.eup %8441 }
0x28d5   : > { %v8444_v37 = vpop.eup %8443  ;;  %v6465_v47 = vmul.f32 %v8442_v46, %v6449_v57 }
0x28d6   : > { %v6464_v48 = vmul.f32 %v8444_v37, %v6448_v19 }
0x28d7   : > { %v6471_v36 = vmul.f32 %v6469_v45, %v6465_v47 }
0x28d8   : > { %v6470_v61 = vmul.f32 %v6469_v45, %v6464_v48  ;;  %v6749_v48 = vld [vmem:[%s8951_s21] sm:$0xff] }
0x28d9   : > { %v6477_v50 = vadd.f32 %v6475_v42, %v6471_v36 }
0x28da   : > { %v6476_v49 = vadd.f32 %v6475_v42, %v6470_v61  ;;  %v6750_v42 = vld [vmem:[%s8951_s21 + $0x8] sm:$0xff]  ;;  %v6751_v61 = vld [vmem:[%s8951_s21 + $0x10] sm:$0xff] }
0x28db   : > { %v8065_v36 = vpack.c.bf16 %v6750_v42, %v6749_v48 }
0x28dc   : > { %7796 = vmatprep.mubr.msk.f32.mxu1 %vm2630_vm6, %v6476_v49 }
0x28dd   : > { %7797 = vmatmul.mubr.msk.f32.vlgmr.msra.gmra.mrb[42].mxu1 %vm2630_vm6, %v6477_v50  ;;  %8066 = vmatprep.subr.bf16.mxu1 %v8065_v36 }
0x28de   : > { %8068 = vmatpush3.bf16.msra.mxu1 %v8065_v36 }
0x29b0   : > { %v7798_v13 = vpop.f32.mrb[42].mxu1 }
0x29b1   : > { %v6567_v60 = vadd.f32 %v7798_v13, %v7205_v51  ;;  %v6561_v21 = vpop.f32.mrb[43].mxu1 }
0x29b2   : > { %v6562_v62 = vadd.f32 %v7205_v51, %v6561_v21 }
0x29b3   : > { %v6571_v0 = vmax.f32 %v6567_v60, 0.0 }
0x29b4   : > { %v6570_v63 = vmax.f32 %v6562_v62, 0.0  ;;  %v7211_v62 = vld [vmem:[%s8946_s19] ss:$0 sm:$0xff] }
0x29b6   : > { %7815 = vmatprep.mubr.msk.f32.mxu0 %vm3809_vm10, %v6570_v63 }
0x29b7   : > { %7816 = vmatmul.mubr.msk.f32.vlgmr.msra.gmra.mrb[44].mxu0 %vm3809_vm10, %v6571_v0 }
0x2a8a   : > { %v7817_v2 = vpop.f32.mrb[44].mxu0 }
0x2a8b   : > { %v6665_v6 = vadd.f32 %v7817_v2, %v7208_v1  ;;  %v6659_v40 = vpop.f32.mrb[45].mxu0  ;;  %v7212_v2 = vld [vmem:[%s8946_s19 + $0x1] ss:$0 sm:$0xff] }
0x2a8c   : > { %v6660_v8 = vadd.f32 %v7208_v1, %v6659_v40 }
0x2a8d   : > { %v6670_v9 = vadd.f32 %v6665_v6, %v6477_v50 }
0x2a8e   : > { %v6669_v39 = vadd.f32 %v6660_v8, %v6476_v49  ;;  %v6752_v49 = vld [vmem:[%s8951_s21 + $0x18] sm:$0xff] }
0x2a8f   : > { %v6674_v10 = vsel %vm2630_vm6, %v6670_v9, 0.0  ;;  %v8069_v50 = vpack.c.bf16 %v6752_v49, %v6751_v61 }
0x2a90   : > { %6675 = vadd.xlane.f32.xlu1 %v6674_v10  ;;  %v6671_v23 = vsel %vm2630_vm6, %v6669_v39, 0.0 }
0x2a91   : > { %6672 = vadd.xlane.f32.xlu0 %v6671_v23  ;;  %8070 = vmatprep.subr.bf16.mxu1 %v8069_v50 }
0x2a92   : > { %8072 = vmatpush3.bf16.msra.mxu1 %v8069_v50 }
0x2b1d   : > { %v6676_v16 = vpop.xlane.xlu1 %6675 }
0x2b1e   : > { %v6678_v56 = vmul.f32 0.03125, %v6676_v16  ;;  %v6673_v59 = vpop.xlane.xlu0 %6672 }
0x2b1f   : > { %v6677_v17 = vmul.f32 0.03125, %v6673_v59 }
0x2b20   : > { %v6680_v18 = vsub.f32 %v6670_v9, %v6678_v56 }
0x2b21   : > { %v6679_v57 = vsub.f32 %v6669_v39, %v6677_v17  ;;  %v7213_v39 = vld [vmem:[%s8956_s30] ss:$0 sm:$0xff] }
0x2b22   : > { %v6682_v19 = vmul.f32 %v6680_v18, %v6680_v18 }
0x2b23   : > { %v6681_v22 = vmul.f32 %v6679_v57, %v6679_v57 }
0x2b24   : > { %v6686_v55 = vsel %vm2630_vm6, %v6682_v19, 0.0 }
0x2b25   : > { %6687 = vadd.xlane.f32.xlu1 %v6686_v55  ;;  %v6683_v7 = vsel %vm2630_vm6, %v6681_v22, 0.0 }
0x2b26   : > { %6684 = vadd.xlane.f32.xlu0 %v6683_v7 }
0x2bb2   : > { %v6688_v24 = vpop.xlane.xlu1 %6687 }
0x2bb3   : > { %v6690_v38 = vmul.f32 0.03125, %v6688_v24  ;;  %v6685_v27 = vpop.xlane.xlu0 %6684 }
0x2bb4   : > { %v6689_v20 = vmul.f32 0.03125, %v6685_v27 }
0x2bb5   : > { %v6692_v35 = vadd.f32 1e-05, %v6690_v38 }
0x2bb6   : > { %v6691_v30 = vadd.f32 1e-05, %v6689_v20 }
0x2bb7   : > { %8445 = vrsqrt.f32 %v6692_v35 }
0x2bb8   : > { %8447 = vrsqrt.f32 %v6691_v30 }
0x2bc1   : > { %v8446_v26 = vpop.eup %8445 }
0x2bc2   : > { %v8448_v32 = vpop.eup %8447  ;;  %v6696_v34 = vmul.f32 %v8446_v26, %v6680_v18 }
0x2bc3   : > { %v6695_v4 = vmul.f32 %v8448_v32, %v6679_v57 }
0x2bc4   : > { %v6702_v31 = vmul.f32 %v6700_v5, %v6696_v34 }
0x2bc5   : > { %v6701_v52 = vmul.f32 %v6700_v5, %v6695_v4 }
0x2bc6   : > { %v6708_v33 = vadd.f32 %v6706_v28, %v6702_v31 }
0x2bc7   : > { %v6707_v41 = vadd.f32 %v6706_v28, %v6701_v52 }
0x2bc8   : > { %v6714_v14 = vsel %vm2630_vm6, %v6708_v33, 0.0 }
0x2bc9   : > { %6715 = vadd.xlane.f32.xlu1 %v6714_v14  ;;  %v6711_v11 = vsel %vm2630_vm6, %v6707_v41, 0.0 }
0x2bca   : > { %6712 = vadd.xlane.f32.xlu0 %v6711_v11 }
0x2c56   : > { %v6716_v29 = vpop.xlane.xlu1 %6715 }
0x2c57   : > { %v6718_v15 = vmul.f32 0.03125, %v6716_v29  ;;  %v6713_v44 = vpop.xlane.xlu0 %6712 }
0x2c58   : > { %v6717_v43 = vmul.f32 0.03125, %v6713_v44 }
0x2c59   : > { %v6720_v3 = vsub.f32 %v6708_v33, %v6718_v15 }
0x2c5a   : > { %v6719_v12 = vsub.f32 %v6707_v41, %v6717_v43 }
0x2c5b   : > { %v6722_v45 = vmul.f32 %v6720_v3, %v6720_v3 }
0x2c5c   : > { %v6721_v46 = vmul.f32 %v6719_v12, %v6719_v12 }
0x2c5d   : > { %v6726_v37 = vsel %vm2630_vm6, %v6722_v45, 0.0 }
0x2c5e   : > { %6727 = vadd.xlane.f32.xlu1 %v6726_v37  ;;  %v6723_v47 = vsel %vm2630_vm6, %v6721_v46, 0.0 }
0x2c5f   : > { %6724 = vadd.xlane.f32.xlu0 %v6723_v47 }
0x2ceb   : > { %v6728_v53 = vpop.xlane.xlu1 %6727 }
0x2cec   : > { %v6730_v54 = vmul.f32 0.03125, %v6728_v53  ;;  %v6725_v58 = vpop.xlane.xlu0 %6724 }
0x2ced   : > { %v6729_v51 = vmul.f32 0.03125, %v6725_v58 }
0x2cee   : > { %v6732_v13 = vadd.f32 1e-05, %v6730_v54 }
0x2cef   : > { %v6731_v60 = vadd.f32 1e-05, %v6729_v51 }
0x2cf0   : > { %8449 = vrsqrt.f32 %v6732_v13 }
0x2cf1   : > { %8451 = vrsqrt.f32 %v6731_v60 }
0x2cfa   : > { %v8450_v21 = vpop.eup %8449 }
0x2cfb   : > { %v8452_v63 = vpop.eup %8451  ;;  %v6736_v0 = vmul.f32 %v8450_v21, %v6720_v3 }
0x2cfc   : > { %v6735_v1 = vmul.f32 %v8452_v63, %v6719_v12 }
0x2cfd   : > { %v6742_v6 = vmul.f32 %v7211_v62, %v6736_v0 }
0x2cfe   : > { %v6741_v40 = vmul.f32 %v7211_v62, %v6735_v1 }
0x2cff   : > { %v6748_v9 = vadd.f32 %v7212_v2, %v6742_v6 }
0x2d00   : > { %v6747_v8 = vadd.f32 %v7212_v2, %v6741_v40 }
0x2d02   : > { %7826 = vmatprep.mubr.msk.f32.mxu1 %vm2630_vm6, %v6747_v8 }
0x2d03   : > { %7827 = vmatmul.mubr.msk.f32.vlgmr.msra.gmra.mrb[44].mxu1 %vm2630_vm6, %v6748_v9 }
0x2dd6   : > { %v7828_v10 = vpop.f32.mrb[44].mxu1 }
0x2dd7   : > { %v6838_v23 = vadd.f32 %v7828_v10, %v7213_v39  ;;  %v6832_v16 = vpop.f32.mrb[45].mxu1 }
0x2dd8   : > { %v6833_v56 = vadd.f32 %v7213_v39, %v6832_v16 }
0x2dd9   : > { %6842 = vst [vmem:[%s1713_s1 + $0x8] sm:$0xff] %v6838_v23 }
0x2dda   : > { %6841 = vst [vmem:[%s1713_s1] sm:$0xff] %v6833_v56 }
0x2ddb PF: > { %s120_s7 = sadd.s32 1, %s8611_s7  }
0x2ddc   : > { %p117_p1 = scmp.ge.s32.totalorder %s120_s7, 4  }
0x2dde   :  { %119 = sbr.rel (!%p117_p1) target bundleno = 108 (0x6c), region = 355 }
0x2de5   :  { %6864 = vsyncpa [#allocation3], 1 }
0x2de6   :  { %6866 = vsyncpa [#allocation3 + $0x1], 1 }
0x2de7   :  { %6867 = vsyncpa [#allocation5], 1 }
0x2de8   :  { %6868 = vsyncpa [#allocation8], 1 }

// kernel: _lambda_.1
= control target key start
LH: loop header
LB: loop body
LE: loop exit
PB: predicated region body
PF: predicated region fallthrough
CT: control target
= control target key end

     0   :  { %s8613_s6 = smov 1   ;;  %s8614_s10 = smov 2   ;;  %s9809_s0 = inlined_call_operand.smem [shape: u32[54], index: -1, kind: input, shape index: {}] }
   0x1   :  { %s8696_s5 = sld [smem:[%s9809_s0]]   ;;  %s8615_s14 = smov 3  }
   0x2   :  { %s8701_s9 = sld [smem:[%s9809_s0 + %s8613_s6]]   ;;  %s8616_s18 = smov 4  }
   0x3   :  { %s8706_s13 = sld [smem:[%s9809_s0 + %s8614_s10]]   ;;  %s8617_s22 = smov 5  }
   0x4   :  { %s8711_s17 = sld [smem:[%s9809_s0 + %s8615_s14]]   ;;  %s8618_s26 = smov 6  }
   0x5   :  { %s8716_s21 = sld [smem:[%s9809_s0 + %s8616_s18]]   ;;  %s8619_s30 = smov 7  }
   0x6   :  { %s8721_s25 = sld [smem:[%s9809_s0 + %s8617_s22]]   ;;  %s8620_s4 = smov 8  }
   0x7   :  { %9864 = sst [smem:[#allocation13_spill]] %s8696_s5  ;;  %s8621_s10 = smov 9  }
   0x8   :  { %9865 = sst [smem:[#allocation14_spill]] %s8701_s9  ;;  %s8622_s15 = smov 10  }
   0x9   :  { %9866 = sst [smem:[#allocation15_spill]] %s8706_s13  ;;  %s8623_s20 = smov 11  }
   0xa   :  { %s8726_s29 = sld [smem:[%s9809_s0 + %s8618_s26]]   ;;  %s8624_s26 = smov 12  }
   0xb   :  { %9867 = sst [smem:[#allocation16_spill]] %s8716_s21  ;;  %s8625_s1 = smov 13  }
   0xc   :  { %9868 = sst [smem:[#allocation17_spill]] %s8721_s25  ;;  %s8626_s7 = smov 14  }
   0xd   :  { %s8731_s3 = sld [smem:[%s9809_s0 + %s8619_s30]]   ;;  %s8628_s22 = smov 16  }
   0xe   :  { %s8736_s8 = sld [smem:[%s9809_s0 + %s8620_s4]]   ;;  %s8629_s28 = smov 17  }
   0xf   :  { %s8741_s14 = sld [smem:[%s9809_s0 + %s8621_s10]]  }
  0x10   :  { %s8746_s19 = sld [smem:[%s9809_s0 + %s8622_s15]]   ;;  %s8627_s15 = smov 15  }
  0x11   :  { %s8751_s24 = sld [smem:[%s9809_s0 + %s8623_s20]]  }
  0x12   :  { %s8756_s30 = sld [smem:[%s9809_s0 + %s8624_s26]]  }
  0x13   :  { %9869 = sst [smem:[#allocation18_spill]] %s8731_s3 }
  0x14   :  { %9870 = sst [smem:[#allocation19_spill]] %s8736_s8 }
  0x15   :  { %9871 = sst [smem:[#allocation20_spill]] %s8741_s14 }
  0x16   :  { %9872 = sst [smem:[#allocation21_spill]] %s8746_s19 }
  0x17   :  { %s8761_s6 = sld [smem:[%s9809_s0 + %s8625_s1]]  }
  0x18   :  { %9873 = sst [smem:[#allocation22_spill]] %s8756_s30 }
  0x19   :  { %s8766_s12 = sld [smem:[%s9809_s0 + %s8626_s7]]   ;;  %s8630_s7 = smov 18  }
  0x1a   :  { %s8771_s20 = sld [smem:[%s9809_s0 + %s8627_s15]]   ;;  %s8631_s15 = smov 19  }
  0x1b   :  { %s8776_s27 = sld [smem:[%s9809_s0 + %s8628_s22]]   ;;  %s8632_s22 = smov 20  }
  0x1c   :  { %s8781_s4 = sld [smem:[%s9809_s0 + %s8629_s28]]   ;;  %s8633_s28 = smov 21  }
  0x1d   :  { %9874 = sst [smem:[#allocation23_spill]] %s8761_s6 }
  0x1e   :  { %s8786_s25 = sld [smem:[%s9809_s0 + %s8630_s7]]   ;;  %s8634_s7 = smov 22  }
  0x1f   :  { %9875 = sst [smem:[#allocation24_spill]] %s8766_s12 }
  0x20   :  { %9876 = sst [smem:[#allocation25_spill]] %s8771_s20 }
  0x21   :  { %9877 = sst [smem:[#allocation26_spill]] %s8776_s27 }
  0x22   :  { %9878 = sst [smem:[#allocation27_spill]] %s8781_s4 }
  0x23   :  { %s8791_s21 = sld [smem:[%s9809_s0 + %s8631_s15]]   ;;  %s8635_s15 = smov 23  }
  0x24   :  { %9879 = sst [smem:[#allocation28_spill]] %s8786_s25 }
  0x25   :  { %s8796_s27 = sld [smem:[%s9809_s0 + %s8632_s22]]   ;;  %s8636_s22 = smov 24  }
  0x26   :  { %s8801_s4 = sld [smem:[%s9809_s0 + %s8633_s28]]   ;;  %s8637_s28 = smov 25  }
  0x27   :  { %s8806_s12 = sld [smem:[%s9809_s0 + %s8634_s7]]   ;;  %s8638_s7 = smov 26  }
  0x29   :  { %9880 = sst [smem:[#allocation29_spill]] %s8791_s21 }
  0x2a   :  { %s8811_s21 = sld [smem:[%s9809_s0 + %s8635_s15]]   ;;  %s8639_s15 = smov 27  }
  0x2b   :  { %9881 = sst [smem:[#allocation30_spill]] %s8796_s27 }
  0x2c   :  { %9882 = sst [smem:[#allocation31_spill]] %s8801_s4 }
  0x2d   :  { %9883 = sst [smem:[#allocation32_spill]] %s8806_s12 }
  0x2e   :  { %s8816_s27 = sld [smem:[%s9809_s0 + %s8636_s22]]   ;;  %s8640_s22 = smov 28  }
  0x2f   :  { %s8821_s4 = sld [smem:[%s9809_s0 + %s8637_s28]]   ;;  %s8641_s28 = smov 29  }
  0x30   :  { %9884 = sst [smem:[#allocation33_spill]] %s8811_s21 }
  0x31   :  { %s8826_s12 = sld [smem:[%s9809_s0 + %s8638_s7]]   ;;  %s8642_s7 = smov 30  }
  0x32   :  { %s8831_s21 = sld [smem:[%s9809_s0 + %s8639_s15]]   ;;  %s8643_s15 = smov 31  }
  0x34   :  { %9885 = sst [smem:[#allocation34_spill]] %s8816_s27 }
  0x35   :  { %9886 = sst [smem:[#allocation35_spill]] %s8821_s4 }
  0x36   :  { %s8836_s27 = sld [smem:[%s9809_s0 + %s8640_s22]]   ;;  %s8644_s22 = smov 32  }
  0x37   :  { %9887 = sst [smem:[#allocation36_spill]] %s8826_s12 }
  0x38   :  { %9888 = sst [smem:[#allocation37_spill]] %s8831_s21 }
  0x39   :  { %s8841_s4 = sld [smem:[%s9809_s0 + %s8641_s28]]   ;;  %s8645_s28 = smov 33  }
  0x3a   :  { %s8846_s12 = sld [smem:[%s9809_s0 + %s8642_s7]]   ;;  %s8646_s7 = smov 34  }
  0x3b   :  { %s8851_s21 = sld [smem:[%s9809_s0 + %s8643_s15]]   ;;  %s8647_s15 = smov 35  }
  0x3c   :  { %9889 = sst [smem:[#allocation38_spill]] %s8836_s27 }
  0x3d   :  { %s8856_s27 = sld [smem:[%s9809_s0 + %s8644_s22]]   ;;  %s8648_s22 = smov 36  }
  0x3f   :  { %9890 = sst [smem:[#allocation39_spill]] %s8841_s4 }
  0x40   :  { %9891 = sst [smem:[#allocation40_spill]] %s8846_s12 }
  0x41   :  { %9892 = sst [smem:[#allocation41_spill]] %s8851_s21 }
  0x42   :  { %s8861_s4 = sld [smem:[%s9809_s0 + %s8645_s28]]   ;;  %s8649_s28 = smov 37  }
  0x43   :  { %9893 = sst [smem:[#allocation42_spill]] %s8856_s27 }
  0x44   :  { %s8866_s12 = sld [smem:[%s9809_s0 + %s8646_s7]]   ;;  %s8650_s7 = smov 38  }
  0x45   :  { %s8871_s21 = sld [smem:[%s9809_s0 + %s8647_s15]]   ;;  %s8651_s15 = smov 39  }
  0x46   :  { %s8876_s27 = sld [smem:[%s9809_s0 + %s8648_s22]]   ;;  %s8652_s22 = smov 40  }
  0x48   :  { %9894 = sst [smem:[#allocation43_spill]] %s8861_s4 }
  0x49   :  { %s8881_s4 = sld [smem:[%s9809_s0 + %s8649_s28]]   ;;  %s8653_s28 = smov 41  }
  0x4a   :  { %9895 = sst [smem:[#allocation44_spill]] %s8866_s12 }
  0x4b   :  { %9896 = sst [smem:[#allocation45_spill]] %s8871_s21 }
  0x4c   :  { %9897 = sst [smem:[#allocation46_spill]] %s8876_s27 }
  0x4d   :  { %s8886_s12 = sld [smem:[%s9809_s0 + %s8650_s7]]   ;;  %s8654_s7 = smov 42  }
  0x4e   :  { %s8891_s21 = sld [smem:[%s9809_s0 + %s8651_s15]]   ;;  %s8655_s15 = smov 43  }
  0x4f   :  { %9898 = sst [smem:[#allocation47_spill]] %s8881_s4 }
  0x50   :  { %s8896_s27 = sld [smem:[%s9809_s0 + %s8652_s22]]   ;;  %s8656_s22 = smov 44  }
  0x51   :  { %s8901_s4 = sld [smem:[%s9809_s0 + %s8653_s28]]   ;;  %s8657_s28 = smov 45  }
  0x52   :  { %s8906_s25 = sld [smem:[%s9809_s0 + %s8654_s7]]   ;;  %s8658_s7 = smov 46  }
  0x53   :  { %9899 = sst [smem:[#allocation48_spill]] %s8886_s12 }
  0x54   :  { %9900 = sst [smem:[#allocation49_spill]] %s8891_s21 }
  0x55   :  { %s8911_s21 = sld [smem:[%s9809_s0 + %s8655_s15]]   ;;  %s8659_s15 = smov 47  }
  0x56   :  { %s8916_s20 = sld [smem:[%s9809_s0 + %s8656_s22]]   ;;  %s8660_s22 = smov 48  }
  0x57   :  { %9901 = sst [smem:[#allocation50_spill]] %s8901_s4 }
  0x58   :  { %s8921_s4 = sld [smem:[%s9809_s0 + %s8657_s28]]   ;;  %s8661_s28 = smov 49  }
  0x59   :  { %s8926_s9 = sld [smem:[%s9809_s0 + %s8658_s7]]   ;;  %s8662_s7 = smov 50  }
  0x5a   :  { %s8936_s30 = sld [smem:[%s9809_s0 + %s8660_s22]]   ;;  %s8664_s22 = smov 52  }
  0x5b   :  { %9902 = sst [smem:[#allocation51_spill]] %s8911_s21 }
  0x5c   :  { %s8931_s21 = sld [smem:[%s9809_s0 + %s8659_s15]]   ;;  %s8663_s15 = smov 51  }
  0x5d   :  { %s8946_s19 = sld [smem:[%s9809_s0 + %s8662_s7]]  }
  0x5e   :  { %9903 = sst [smem:[#allocation52_spill]] %s8921_s4 }
  0x5f   :  { %9904 = sst [smem:[#allocation53_spill]] %s8926_s9 }
  0x60   :  { %9906 = sst [smem:[#allocation55_spill]] %s8936_s30 }
  0x61   :  { %s8941_s4 = sld [smem:[%s9809_s0 + %s8661_s28]]   ;;  %s8665_s28 = smov 53  }
  0x62   :  { %9905 = sst [smem:[#allocation54_spill]] %s8931_s21 }
  0x63   :  { %s8951_s21 = sld [smem:[%s9809_s0 + %s8663_s15]]  }
  0x64   :  { %s8956_s30 = sld [smem:[%s9809_s0 + %s8664_s22]]  }
  0x67   :  { %9907 = sst [smem:[#allocation56_spill]] %s8941_s4 }
  0x68   :  { %s8961_s4 = sld [smem:[%s9809_s0 + %s8665_s28]]  }
  0x69   :  { %112 = vsyncpa [#allocation3], 0 }
  0x6a   :  { %113 = vsyncpa [#allocation5], 0 }
  0x6b   :  { %114 = vsyncpa [#allocation8], 0  ;;  %s8963_s7 = smov 0  }
  0x6c LB: > { %s9908_s14 = sld [smem:[#allocation20_spill]]  ;;  %s9909_s12 = sld [smem:[#allocation48_spill]]  ;;  %s8611_s7 = sphi %s8963_s7, %s120_s7  }
  0x6d   : > { %s9910_s9 = sld [smem:[#allocation53_spill]]  ;;  %s8666_s10 = smov [#allocation4]  }
  0x6e   : > { %s1417_s11 = sshll.u32 %s8666_s10, 4  ;;  %s8969_s15 = sadd.s32 4294967295, %s8611_s7   ;;  %s8974_s11 = int_to_ptr.vmem [resolvable:$true] %s1417_s11 }
  0x6f   : > { %p7051_p0 = scmp.ge.s32.totalorder %s8611_s7, 1  ;;  %p1294_p1 = scmp.lt.s32.totalorder %s8611_s7, 3 }
  0x70   : > { %p9828_p2 = scmp.eq.s32.totalorder %s8969_s15, 0  ;;  %s8667_s16 = smov [#allocation7]  }
  0x71   : > { %p8976_p3 = pnand %p7051_p0, %p1294_p1  ;;  %s1445_s18 = sshll.u32 %s8667_s16, 4  ;;  %s8982_s18 = int_to_ptr.vmem [resolvable:$true] %s1445_s18 }
  0x72   : > { %s8668_s22 = smov [#allocation2]   ;;  %s8669_s28 = smov [#allocation6]  }
  0x73   : > { %s9911_s0 = scalar_select %p8976_p3, 1, 0 }
  0x74   : > { %p8103_p4 = pneg %p8976_p3  ;;  %s1403_s23 = sshll.u32 %s8668_s22, 4  ;;  %s8990_s23 = int_to_ptr.vmem [resolvable:$true] %s1403_s23 }
  0x75   : > { %s1431_s1 = sshll.u32 %s8669_s28, 4  ;;  %s8453_s2 = scalar_lea.hbm %s8896_s27, 16  ;;  %s8992_s1 = int_to_ptr.vmem [resolvable:$true] %s1431_s1 }
  0x76   : > { %p8986_p5 = pnand %p9828_p2, %p8103_p4  ;;  %p8454_p6 = scmp.ne.s32.totalorder %s8896_s27, %s8453_s2 }
  0x77   : > { %p8460_p10 = scmp.lt.u32.totalorder %s8453_s2, %s8896_s27 }
  0x78   : > { %p8998_p7 = pneg %p8986_p5 }
  0x7a   : > { %p8456_p8 = pnand %p8998_p7, %p8454_p6 }
  0x7c   : > { %p8457_p9 = pneg %p8456_p8 }
  0x7e   : > { %p8462_p11 = pnand %p8460_p10, %p8457_p9 }
  0x80   : > { %8465 = shalt.err (!%p8462_p11)
}
  0x81   : > { %s8466_s16 = scalar_lea.vmem %s8974_s11, 16  ;;  %s8473_s22 = scalar_lea.vmem %s8974_s11, 32 }
  0x82   : > { %p8467_p12 = scmp.ne.s32.totalorder %s8974_s11, %s8466_s16  ;;  %p8474_p1 = scmp.lt.s32.totalorder %s8974_s11, %s8974_s11 }
  0x83   : > { %p8475_p4 = scmp.lt.s32.totalorder %s8473_s22, %s8466_s16 }
  0x84   : > { %p8469_p13 = pnand %p8467_p12, %p8998_p7 }
  0x85   : > { %p8476_p2 = por %p8475_p4, %p8474_p1 }
  0x86   : > { %p8470_p0 = pneg %p8469_p13 }
  0x88   : > { %p8477_p6 = pnand %p8476_p2, %p8470_p0 }
  0x8a   : > { %8480 = shalt.err (!%p8477_p6)
}
  0x8b   : > { %8109 = dma.hbm_to_vmem [thread:$0]  (!%p8986_p5), %s8896_s27, 16, %s8974_s11, [#allocation5]  }
  0x8c   : > { %s8481_s28 = scalar_lea.hbm %s8916_s20, 16 }
  0x8d   : > { %p8482_p8 = scmp.ne.s32.totalorder %s8916_s20, %s8481_s28  ;;  %p8488_p11 = scmp.lt.u32.totalorder %s8481_s28, %s8916_s20 }
  0x8f   : > { %p8484_p9 = pnand %p8482_p8, %p8998_p7 }
  0x91   : > { %p8485_p10 = pneg %p8484_p9 }
  0x93   : > { %p8490_p12 = pnand %p8488_p11, %p8485_p10 }
  0x95   : > { %8493 = shalt.err (!%p8490_p12)
}
  0x96   : > { %s8494_s2 = scalar_lea.vmem %s8982_s18, 16  ;;  %s8501_s16 = scalar_lea.vmem %s8982_s18, 32 }
  0x97   : > { %p8495_p2 = scmp.ne.s32.totalorder %s8982_s18, %s8494_s2  ;;  %p8502_p1 = scmp.lt.s32.totalorder %s8982_s18, %s8982_s18 }
  0x98   : > { %p8503_p4 = scmp.lt.s32.totalorder %s8501_s16, %s8494_s2 }
  0x99   : > { %p8497_p13 = pnand %p8495_p2, %p8998_p7 }
  0x9a   : > { %p8504_p6 = por %p8503_p4, %p8502_p1 }
  0x9b   : > { %p8498_p0 = pneg %p8497_p13 }
  0x9d   : > { %p8505_p8 = pnand %p8504_p6, %p8498_p0 }
  0x9f   : > { %8508 = shalt.err (!%p8505_p8)
}
  0xa0   : > { %8115 = dma.hbm_to_vmem [thread:$0]  (!%p8986_p5), %s8916_s20, 16, %s8982_s18, [#allocation8]  }
  0xa1   : > { %s8509_s11 = scalar_lea.hbm %s9909_s12, 16 }
  0xa2   : > { %p8510_p9 = scmp.ne.s32.totalorder %s9909_s12, %s8509_s11  ;;  %p8516_p12 = scmp.lt.u32.totalorder %s8509_s11, %s9909_s12 }
  0xa4   : > { %p8512_p10 = pnand %p8510_p9, %p8998_p7 }
  0xa6   : > { %p8513_p11 = pneg %p8512_p10 }
  0xa8   : > { %p8518_p2 = pnand %p8516_p12, %p8513_p11 }
  0xaa   : > { %8521 = shalt.err (!%p8518_p2)
}
  0xab   : > { %s8522_s22 = scalar_lea.vmem %s8990_s23, 16  ;;  %s8529_s28 = scalar_lea.vmem %s8990_s23, 32 }
  0xac   : > { %p8523_p13 = scmp.ne.s32.totalorder %s8990_s23, %s8522_s22  ;;  %p8530_p4 = scmp.lt.s32.totalorder %s8990_s23, %s8990_s23 }
  0xad   : > { %p8531_p6 = scmp.lt.s32.totalorder %s8529_s28, %s8522_s22 }
  0xae   : > { %p8525_p0 = pnand %p8523_p13, %p8998_p7 }
  0xaf   : > { %p8532_p8 = por %p8531_p6, %p8530_p4 }
  0xb0   : > { %p8526_p1 = pneg %p8525_p0 }
  0xb2   : > { %p8533_p9 = pnand %p8532_p8, %p8526_p1 }
  0xb4   : > { %8536 = shalt.err (!%p8533_p9)
}
  0xb5   : > { %8106 = dma.hbm_to_vmem [thread:$0]  (!%p8986_p5), %s9909_s12, 16, %s8990_s23, [#allocation3]  }
  0xb6   : > { %s8537_s18 = scalar_lea.hbm %s8906_s25, 16 }
  0xb7   : > { %p8538_p10 = scmp.ne.s32.totalorder %s8906_s25, %s8537_s18  ;;  %p8544_p2 = scmp.lt.u32.totalorder %s8537_s18, %s8906_s25 }
  0xb9   : > { %p8540_p11 = pnand %p8538_p10, %p8998_p7 }
  0xbb   : > { %p8541_p12 = pneg %p8540_p11 }
  0xbd   : > { %p8546_p13 = pnand %p8544_p2, %p8541_p12 }
  0xbf   : > { %8549 = shalt.err (!%p8546_p13)
}
  0xc0   : > { %s8550_s2 = scalar_lea.vmem %s8992_s1, 16  ;;  %s8557_s16 = scalar_lea.vmem %s8992_s1, 32 }
  0xc1   : > { %p8551_p0 = scmp.ne.s32.totalorder %s8992_s1, %s8550_s2  ;;  %p8558_p6 = scmp.lt.s32.totalorder %s8992_s1, %s8992_s1 }
  0xc2   : > { %p8559_p8 = scmp.lt.s32.totalorder %s8557_s16, %s8550_s2 }
  0xc3   : > { %p8553_p1 = pnand %p8551_p0, %p8998_p7 }
  0xc4   : > { %p8560_p9 = por %p8559_p8, %p8558_p6 }
  0xc5   : > { %p8554_p4 = pneg %p8553_p1 }
  0xc7   : > { %p8561_p10 = pnand %p8560_p9, %p8554_p4 }
  0xc9   : > { %8564 = shalt.err (!%p8561_p10)
}
  0xca   : > { %8112 = dma.hbm_to_vmem [thread:$0]  (!%p8986_p5), %s8906_s25, 16, %s8992_s1, [#allocation5]  }
  0xcb   : > { %s8670_s23 = smov [#allocation9]   ;;  %s8565_s22 = scalar_lea.hbm %s9910_s9, 16 }
  0xcc   : > { %s1459_s11 = sshll.u32 %s8670_s23, 4  ;;  %p8566_p11 = scmp.ne.s32.totalorder %s9910_s9, %s8565_s22  ;;  %s1460_s11 = int_to_ptr.vmem [resolvable:$true] %s1459_s11 }
  0xcd   : > { %p8572_p13 = scmp.lt.u32.totalorder %s8565_s22, %s9910_s9 }
  0xce   : > { %p8568_p12 = pnand %p8566_p11, %p8998_p7 }
  0xd0   : > { %p8569_p2 = pneg %p8568_p12 }
  0xd2   : > { %p8574_p0 = pnand %p8572_p13, %p8569_p2 }
  0xd4   : > { %8577 = shalt.err (!%p8574_p0)
}
  0xd5   : > { %s8578_s28 = scalar_lea.vmem %s1460_s11, 16  ;;  %s8585_s18 = scalar_lea.vmem %s1460_s11, 32 }
  0xd6   : > { %p8579_p1 = scmp.ne.s32.totalorder %s1460_s11, %s8578_s28  ;;  %p8586_p8 = scmp.lt.s32.totalorder %s1460_s11, %s1460_s11 }
  0xd7   : > { %p8587_p9 = scmp.lt.s32.totalorder %s8585_s18, %s8578_s28 }
  0xd8   : > { %p8581_p4 = pnand %p8579_p1, %p8998_p7 }
  0xd9   : > { %p8588_p10 = por %p8587_p9, %p8586_p8 }
  0xda   : > { %p8582_p6 = pneg %p8581_p4 }
  0xdc   : > { %p8589_p3 = pnand %p8588_p10, %p8582_p6 }
  0xde   : > { %8592 = shalt.err (!%p8589_p3)
}
  0xdf   : > { %8118 = dma.hbm_to_vmem [thread:$0]  (!%p8986_p5), %s9910_s9, 16, %s1460_s11, [#allocation8]  }
  0xe0   : > { %p9914_p11 = scmp.ne.s32.totalorder %s9911_s0, 0 }
  0xe1   : > { %p9915_p12 = scmp.eq.s32.totalorder (!%p9914_p11), %s8969_s15, 0 }
  0xe2   : > { %1530 = sbr.rel (%p9914_p11) target bundleno = 11739 (0x2ddb), region = 232 }
  0xe9   : > { %8598 = dma.done.wait (%p9915_p12), [#allocation3], 16   ;;  %p9916_p2 = pmov %p9915_p12 }
  0xeb   : > { %8600 = vsyncadd (%p9916_p2), [#allocation3], 4294967280  ;;  %p9917_p7 = pmov %p9916_p2 }
  0xec   : > { %p9918_p13 = pmov %p9916_p2 }
  0xed   : > { %8602 = dma.done.wait (%p9917_p7), [#allocation5], 32  }
  0xee   : > { %8604 = vsyncadd (%p9918_p13), [#allocation5], 4294967264  ;;  %p9919_p3 = pmov %p9916_p2 }
  0xef   : > { %p9920_p5 = pmov %p9916_p2 }
  0xf0   : > { %8606 = dma.done.wait (%p9919_p3), [#allocation8], 32  }
  0xf1   : > { %8608 = vsyncadd (%p9920_p5), [#allocation8], 4294967264  ;;  %s9921_s13 = sld [smem:[#allocation15_spill]]  ;;  %s9922_s5 = sld [smem:[#allocation13_spill]]  ;;  %v8671_v0 = vmov 0.0   ;;  %vm8672_vm0 = vmmov 0   ;;  %v2346_v38 = vlaneseq }
  0xf2   : > { %s9923_s3 = sld [smem:[#allocation18_spill]]  ;;  %p1687_p0 = scmp.lt.s32.totalorder %s8969_s15, 1  ;;  %7435 = vmatprep.subr.mxu0 %v8671_v0  ;;  %7440 = vmatprep.subr.mxu1 %v8671_v0  ;;  %vm1724_vm1 = vcmask 1043456   ;;  %vm1720_vm2 = vcmask 31744   ;;  %v1718_v2 = vld [vmem:[%s8726_s29] sm:$0xf] }
  0xf3   : > { %7437 = vmatprep.mubr.msk.f32.mxu0 %vm8672_vm0, %v8671_v0  ;;  %7442 = vmatprep.mubr.msk.f32.mxu1 %vm8672_vm0, %v8671_v0  ;;  %s9924_s8 = sld [smem:[#allocation19_spill]]  ;;  %v1877_v5 = vld [vmem:[%s9908_s14] sm:$0xff]  ;;  %v1878_v6 = vld [vmem:[%s9908_s14 + $0x8] sm:$0xff]  ;;  %v8673_v8 = vmov 0.0|0.0   ;;  %s9925_s6 = sld [smem:[#allocation23_spill]]  ;;  %vm1880_vm3 = vcmask 130048  }
  0xf4   : > { %s9979_s15 = smov (!%p1687_p0, %s8969_s15), 1  ;;  %7441 = vmatpush3.msk.msra.mxu1 %vm1724_vm1, %v1718_v2  ;;  %v7830_v7 = vpack.c.bf16 %v1878_v6, %v1877_v5  ;;  %s9926_s1 = sld [smem:[#allocation21_spill]]  ;;  %v1955_v17 = vld [vmem:[%s8751_s24] sm:$0xff]  ;;  %v1956_v18 = vld [vmem:[%s8751_s24 + $0x8] sm:$0xff]  ;;  %v9151_v43 = vshrl.u32 %v2346_v38, 7  ;;  %vm2630_vm6 = vcmask 261120  }
  0xf5   : > { %7829 = vmatprep.subr.bf16.mxu1 %v8673_v8  ;;  %s9927_s10 = sld [smem:[#allocation22_spill]]  ;;  %v7833_v19 = vpack.c.bf16 %v1956_v18, %v1955_v17  ;;  %s1698_s16 = scalar_lea.vmem %s8711_s17, %s9979_s15  ;;  %vm2718_vm7 = vcmask 64512   ;;  %vm3563_vm9 = vcmask 195584   ;;  %vm3809_vm10 = vcmask 523264  }
  0xf6   : > { %s9928_s2 = sld [smem:[#allocation14_spill]]  ;;  %v1717_v21 = vld [vmem:[%s1698_s16] sm:$0x1]  ;;  %s9929_s23 = sld [smem:[#allocation25_spill]]  ;;  %vm2348_vm4 = vcmp.lt.s32.totalorder %v9151_v43, 1  ;;  %vm2353_vm5 = vcmp.lt.s32.totalorder %v9151_v43, 7  ;;  %vm9210_vm8 = vmpackc.low %vm2718_vm7, %vm2718_vm7 }
  0xf7   : > { %s1695_s0 = scalar_lea.vmem %s9921_s13, %s9979_s15  ;;  %s1689_s26 = scalar_lea.vmem %s9922_s5, %s9979_s15 }
  0xf8   : > { %v1719_v1 = vld [vmem:[%s9923_s3] sm:$0xf]  ;;  %s9930_s11 = sld [smem:[#allocation28_spill]]  ;;  %s9931_s28 = sld [smem:[#allocation24_spill]] }
  0xf9   : > { %v1716_v3 = vld [vmem:[%s1695_s0] sm:$0x1]  ;;  %7436 = vmatpush3.msk.msra.mxu0 %vm1724_vm1, %v1719_v1  ;;  %s9932_s18 = sld [smem:[#allocation16_spill]]  ;;  %s9145_s0 = sshll.u32 %s9979_s15, 4 }
  0xfa   : > { %v1714_v4 = vld [vmem:[%s1689_s26] sm:$0x1]  ;;  %7438 = vmatmul.mubr.msk.f32.vlgmr.msra.gmra.mrb[0].mxu0 %vm1720_vm2, %v1716_v3  ;;  %7459 = vmatprep.subr.mxu0 %v8671_v0  ;;  %s9937_s16 = sld [smem:[#allocation31_spill]]  ;;  %s9954_s3 = smov 64  }
  0xfb   : > { %7443 = vmatmul.mubr.msk.f32.vlgmr.msra.gmra.mrb[0].mxu1 %vm1720_vm2, %v1714_v4  ;;  %7461 = vmatprep.mubr.msk.f32.mxu0 %vm8672_vm0, %v8671_v0  ;;  %v1874_v11 = vld [vmem:[%s9924_s8] sm:$0x1]  ;;  %s9956_s5 = smov 56   ;;  %s9959_s8 = smov 104  }
  0xfc   : > { %7449 = vmatprep.mubr.msk.f32.mxu1 %vm8672_vm0, %v8671_v0  ;;  %7831 = vmatpush3.bf16.msra.mxu1 %v7830_v7  ;;  %v2033_v20 = vld [vmem:[%s9925_s6] sm:$0xf]  ;;  %s1692_s22 = scalar_lea.vmem %s9928_s2, %s9979_s15  ;;  %v2190_v32 = vld [vmem:[%s9929_s23 + $0x8] sm:$0xff]  ;;  %s9933_s15 = sld [smem:[#allocation27_spill]] }
  0xfd   : > { %7832 = vmatprep.subr.bf16.mxu1 %v8673_v8  ;;  %7460 = vmatpush3.msk.msra.mxu0 %vm1724_vm1, %v2033_v20  ;;  %v1879_v22 = vld [vmem:[%s9926_s1] sm:$0x1]  ;;  %s9934_s1 = sld [smem:[#allocation30_spill]]  ;;  %s9936_s2 = sld [smem:[#allocation29_spill]] }
  0xfe   : > { %7835 = vmatprep.subr.bf16.mxu0 %v8673_v8  ;;  %7462 = vmatmul.mubr.msk.f32.vlgmr.msra.gmra.mrb[2].mxu0 %vm1720_vm2, %v1717_v21  ;;  %v2032_v27 = vld [vmem:[%s9927_s10] sm:$0xf]  ;;  %v7082_v34 = vld [vmem:[%s9930_s11 + $0x4] sm:$0xf]  ;;  %v7089_v54 = vld [vmem:[%s9930_s11 + $0x8] sm:$0xf] }
  0xff   : > { %7473 = vmatprep.mubr.msk.f32.mxu0 %vm8672_vm0, %v8671_v0  ;;  %v1715_v28 = vld [vmem:[%s1692_s22] sm:$0x1]  ;;  %s1703_s26 = scalar_lea.vmem %s9932_s18, %s9145_s0  ;;  %s9935_s10 = sld [smem:[#allocation26_spill]] }
 0x100   : > { %v2189_v31 = vld [vmem:[%s9929_s23] sm:$0xff]  ;;  %v2343_v46 = vld [vmem:[%s1703_s26 + $0x8] sm:$0xff]  ;;  %s9850_s22 = smov 96   ;;  %s9830_s18 = smov 64  }
 0x101   : > { %v7836_v33 = vpack.c.bf16 %v2190_v32, %v2189_v31  ;;  %v2186_v40 = vld [vmem:[%s9931_s28] sm:$0x1]  ;;  %v2345_v49 = vrot.slane %v2343_v46, 7  ;;  %v2352_v56 = vrot.slane %v2343_v46, 1  ;;  %s9957_s6 = smov 112   ;;  %s9960_s9 = smov 48  }
 0x102   : > { %v2342_v45 = vld [vmem:[%s1703_s26] sm:$0xff]  ;;  %v2267_v61 = vld [vmem:[%s9933_s15 + $0x8] sm:$0xff]  ;;  %s9852_s26 = smov 88   ;;  %s9964_s12 = sld [smem:[#allocation45_spill]] }
 0x103   : > { %7837 = vmatpush3.bf16.msra.mxu0 %v7836_v33  ;;  %v2344_v48 = vrot.slane %v2342_v45, 7  ;;  %v2356_v50 = vld [vmem:[%s9930_s11] sm:$0xf]  ;;  %v2351_v55 = vrot.slane %v2342_v45, 1  ;;  %v2621_v4 = vld [vmem:[%s9934_s1 + $0x10] sm:$0xff]  ;;  %v2622_v5 = vld [vmem:[%s9934_s1 + $0x18] sm:$0xff] }
 0x104   : > { %7483 = vmatprep.subr.msk.mxu0 %vm1724_vm1, %v7082_v34  ;;  %v2266_v60 = vld [vmem:[%s9933_s15] sm:$0xff]  ;;  %s9963_s11 = smov 16   ;;  %s9966_s13 = smov 24  }
 0x105   : > { %v2350_v52 = vsel %vm2348_vm4, %v2345_v49, %v2344_v48  ;;  %v2349_v57 = vsel %vm2348_vm4, %v2344_v48, %v2345_v49  ;;  %v2354_v58 = vsel %vm2353_vm5, %v2351_v55, %v2352_v56  ;;  %v2355_v59 = vsel %vm2353_vm5, %v2352_v56, %v2351_v55  ;;  %v2619_v63 = vld [vmem:[%s9934_s1] sm:$0xff]  ;;  %s9971_s14 = sld [smem:[#allocation40_spill]]  ;;  %s9972_s15 = sld [smem:[#allocation54_spill]] }
 0x106   : > { %v7839_v62 = vpack.c.bf16 %v2267_v61, %v2266_v60  ;;  %v2191_v2 = vld [vmem:[%s9935_s10] sm:$0x1]  ;;  %s9841_s10 = smov 120  }
 0x107   : > { %v7093_v18 = vld [vmem:[%s9937_s16] ss:$0 sm:$0xff]  ;;  %s9833_s16 = smov 56  }
 0x1cd   : > { %v1794_v9 = vpop.f32.mrb[0].mxu0 }
 0x1ce   : > { %v1870_v10 = vpop.f32.mrb[0].mxu1  ;;  %v7439_v13 = vpop.f32.mrb[1].mxu0 }
 0x1cf   : > { %v1871_v12 = vadd.f32 %v1870_v10, %v1794_v9  ;;  %v7444_v14 = vpop.f32.mrb[1].mxu1  ;;  %v7845_v9 = vpack.c.bf16 %v2622_v5, %v2621_v4  ;;  %v2615_v10 = vld [vmem:[%s9936_s2] sm:$0xff] }
 0x1d1   : > { %v1875_v15 = vadd.f32 %v1874_v11, %v1871_v12  ;;  %v2106_v29 = vpop.f32.mrb[2].mxu0  ;;  %v2616_v12 = vld [vmem:[%s9936_s2 + $0x8] sm:$0xff]  ;;  %s9950_s2 = sld [smem:[#allocation44_spill]] }
 0x1d2   : > { %v7463_v30 = vpop.f32.mrb[3].mxu0 }
 0x1d3   : > { %v1876_v16 = vmax.f32 %v1875_v15, 0.0 }
 0x1d5   : > { %7450 = vmatmul.mubr.msk.f32.vlgmr.msra.gmra.mrb[2].mxu1 %vm1880_vm3, %v1876_v16 }
 0x1d6   : > { %7456 = vmatprep.mubr.msk.f32.mxu1 %vm8672_vm0, %v8671_v0  ;;  %7834 = vmatpush3.bf16.msra.mxu1 %v7833_v19 }
 0x1d7   : > { %7464 = vmatprep.subr.mxu1 %v8671_v0 }
 0x2a8   : > { %v1950_v23 = vpop.f32.mrb[2].mxu1 }
 0x2a9   : > { %v1951_v24 = vadd.f32 %v1950_v23, %v1879_v22  ;;  %v7451_v25 = vpop.f32.mrb[3].mxu1 }
 0x2ab   : > { %v1954_v26 = vmax.f32 %v1951_v24, 0.0 }
 0x2ad   : > { %7457 = vmatmul.mubr.msk.f32.vlgmr.msra.gmra.mrb[4].mxu1 %vm1880_vm3, %v1954_v26 }
 0x2ae   : > { %7465 = vmatpush3.msk.msra.mxu1 %vm1724_vm1, %v2032_v27  ;;  %7466 = vmatprep.mubr.msk.f32.mxu1 %vm8672_vm0, %v8671_v0 }
 0x2af   : > { %7838 = vmatprep.subr.bf16.mxu1 %v8673_v8 }
 0x2b1   : > { %7467 = vmatmul.mubr.msk.f32.vlgmr.msra.gmra.mrb[6].mxu1 %vm1720_vm2, %v1715_v28 }
 0x2b2   : > { %7480 = vmatprep.mubr.msk.f32.mxu1 %vm8672_vm0, %v8671_v0  ;;  %7840 = vmatpush3.bf16.msra.mxu1 %v7839_v62  ;;  %v2620_v0 = vld [vmem:[%s9934_s1 + $0x8] sm:$0xff] }
 0x2b3   : > { %v7841_v1 = vpack.c.bf16 %v2620_v0, %v2619_v63 }
 0x2b5   : > { %7842 = vmatprep.subr.bf16.mxu1 %v7841_v1 }
 0x380   : > { %v2026_v35 = vpop.f32.mrb[4].mxu1 }
 0x381   : > { %v2030_v36 = vmul.f32 1.442695, %v2026_v35  ;;  %v7458_v37 = vpop.f32.mrb[5].mxu1 }
 0x383   : > { %8327 = vpow2.f32 %v2030_v36 }
 0x384   : > { %v2182_v39 = vpop.f32.mrb[6].mxu1 }
 0x385   : > { %v2183_v41 = vadd.f32 %v2182_v39, %v2106_v29  ;;  %v7468_v42 = vpop.f32.mrb[7].mxu1  ;;  %v9221_v29 = vsub.s32 0, %v9151_v43 }
 0x387   : > { %v2187_v44 = vadd.f32 %v2186_v40, %v2183_v41 }
 0x389   : > { %v2188_v47 = vmax.f32 %v2187_v44, 0.0 }
 0x38b   : > { %7474 = vmatmul.mubr.msk.f32.vlgmr.msra.gmra.mrb[4].mxu0 %vm1880_vm3, %v2188_v47 }
 0x38c   : > { %7484 = vmatpush3.msk.msra.mxu0 %vm1724_vm1, %v7082_v34  ;;  %7485 = vmatprep.mubr.msk.f32.mxu0 %vm1720_vm2, %v2342_v45 }
 0x38d   : > { %v8328_v51 = vpop.eup %8327  ;;  %7488 = vmatprep.subr.msk.mxu0 %vm1724_vm1, %v2356_v50 }
 0x38e   : > { %v2341_v53 = vmul.f32 0.35355338, %v8328_v51 }
 0x38f   : > { %7486 = vmatmul.mubr.msk.f32.vlgmr.msra.gmra.mrb[6].mxu0 %vm1720_vm2, %v2343_v46 }
 0x390   : > { %7489 = vmatpush3.msk.msra.mxu0 %vm1724_vm1, %v2356_v50  ;;  %8081 = vpush %v2341_v53  ;;  %7490 = vmatprep.mubr.msk.f32.mxu0 %vm1720_vm2, %v2350_v52 }
 0x391   : > { %7493 = vmatprep.subr.msk.mxu0 %vm1724_vm1, %v7089_v54 }
 0x397   : > { %7491 = vmatmul.mubr.msk.f32.vlgmr.msra.gmra.mrb[6].mxu0 %vm1720_vm2, %v2349_v57 }
 0x398   : > { %7494 = vmatpush3.msk.msra.mxu0 %vm1724_vm1, %v7089_v54  ;;  %7495 = vmatprep.mubr.msk.f32.mxu0 %vm1720_vm2, %v2354_v58 }
 0x39f   : > { %7496 = vmatmul.mubr.msk.f32.vlgmr.msra.gmra.mrb[6].mxu0 %vm1720_vm2, %v2355_v59 }
 0x3c1   : > { %s8082_s28 = spop %8081 }
 0x3c2   : > { %v9223_v30 = vstv %s8082_s28  ;;  %s9834_s28 = smov 80  }
 0x45e   : > { %v2261_v3 = vpop.f32.mrb[4].mxu0 }
 0x45f   : > { %v2262_v6 = vadd.f32 %v2261_v3, %v2191_v2  ;;  %v7475_v7 = vpop.f32.mrb[5].mxu0 }
 0x461   : > { %v2265_v8 = vmax.f32 %v2262_v6, 0.0 }
 0x463   : > { %7481 = vmatmul.mubr.msk.f32.vlgmr.msra.gmra.mrb[8].mxu1 %vm1880_vm3, %v2265_v8 }
 0x464   : > { %7844 = vmatpush3.bf16.msra.mxu1 %v7841_v1 }
 0x465   : > { %7846 = vmatprep.subr.bf16.mxu1 %v7845_v9 }
 0x468   : > { %7848 = vmatpush3.bf16.msra.mxu1 %v7845_v9 }
 0x472   : > { %v7497_v11 = vpop.f32.mrb[6].mxu0 }
 0x473   : > { %v2604_v13 = vpop.f32.mrb[7].mxu0  ;;  %v9189_v15 = vadd.f32 %v7497_v11, %v2616_v12 }
 0x474   : > { %v9187_v14 = vadd.f32 %v2615_v10, %v2604_v13 }
 0x476   : > { %7506 = vmatprep.mubr.msk.f32.mxu1 %vm2630_vm6, %v9187_v14 }
 0x477   : > { %7507 = vmatmul.mubr.msk.f32.vlgmr.msra.gmra.mrb[10].mxu1 %vm2630_vm6, %v9189_v15 }
 0x536   : > { %v2337_v16 = vpop.f32.mrb[8].mxu1 }
 0x537   : > { %v7482_v17 = vpop.f32.mrb[9].mxu1  ;;  %v9226_v32 = vrot.slane %v2337_v16, %v9221_v29 }
 0x54a   : > { %v7508_v19 = vpop.f32.mrb[10].mxu1 }
 0x54b   : > { %v9196_v20 = vadd.f32 %v7508_v19, %v7093_v18  ;;  %v2703_v21 = vpop.f32.mrb[11].mxu1 }
 0x54c   : > { %v9198_v22 = vadd.f32 %v7093_v18, %v2703_v21 }
 0x54e   : > { %7513 = vmatprep.mubr.msk.f32.mxu1 %vm2718_vm7, %v9198_v22  ;;  %v9204_v23 = vpack.i.bf16 %v9196_v20, %v9198_v22 }
 0x550   : > { %8213 = vrot.lane.b32.xlu0 %v9204_v23, %s9850_s22  ;;  %s9945_s22 = sld [smem:[#allocation38_spill]] }
 0x5c2   : > { %v8214_v24 = vpop.permute.xlu0 %8213 }
 0x5c3   : > { %v8216_v25 = vunpack.i.h.bf16 %v8214_v24  ;;  %v8215_v26 = vunpack.i.l.bf16 %v8214_v24 }
 0x5c5   : > { %v7849_v28 = vpack.c.bf16 %v8216_v25, %v8215_v26 }
 0x5c7   : > { %7851 = vmatprep.subr.msk.bf16.mxu1 %vm9210_vm8, %v7849_v28 }
 0x5c8   : > { %7854 = vmatpush3.bf16.xpose.msk.msra.mxu1 %vm9210_vm8, %v7849_v28 }
 0x5cf   : > { %7514 = vmatmul.mubr.msk.f32.vlgmr.msra.gmra.mrb[12].mxu1 %vm2718_vm7, %v9196_v20 }
 0x6a2   : > { %v7515_v31 = vpop.f32.mrb[12].mxu1 }
 0x6a3   : > { %v2807_v33 = vmul.f32 %v7515_v31, %v9223_v30  ;;  %v2793_v34 = vpop.f32.mrb[13].mxu1 }
 0x6a4   : > { %v2806_v35 = vmul.f32 %v9223_v30, %v2793_v34 }
 0x6a5   : > { %v2813_v36 = vadd.f32 %v9226_v32, %v2807_v33 }
 0x6a6   : > { %v2812_v37 = vadd.f32 %v9226_v32, %v2806_v35 }
 0x6a7   : > { %v2817_v39 = vsel %vm1880_vm3, %v2813_v36, -inf }
 0x6a8   : > { %2818 = vmax.xlane.f32.xlu1 %v2817_v39  ;;  %v2814_v40 = vsel %vm1880_vm3, %v2812_v37, -inf }
 0x6a9   : > { %2815 = vmax.xlane.f32.xlu0 %v2814_v40 }
 0x6b9   : > { %8218 = vrot.lane.b32.xlu1 %v9204_v23, %s9830_s18  ;;  %s9831_s18 = smov 112  }
 0x6bd   : > { %8223 = vrot.lane.b32.xlu1 %v9204_v23, %s9852_s26  ;;  %s9946_s26 = sld [smem:[#allocation17_spill]] }
 0x6bf   : > { %2925 = vrot.lane.b32.xlu0 %v9196_v20, %s9841_s10 }
 0x6c3   : > { %s1708_s1 = scalar_lea.vmem %s9946_s26, %s9145_s0  ;;  %s9949_s26 = sld [smem:[#allocation42_spill]] }
 0x735   : > { %v2819_v41 = vpop.xlane.xlu1 %2818 }
 0x736   : > { %v2821_v42 = vsub.f32 %v2813_v36, %v2819_v41  ;;  %v2816_v44 = vpop.xlane.xlu0 %2815 }
 0x737   : > { %v2820_v45 = vsub.f32 %v2812_v37, %v2816_v44 }
 0x738   : > { %v2824_v46 = vmul.f32 1.442695, %v2821_v42 }
 0x739   : > { %v2822_v47 = vmul.f32 1.442695, %v2820_v45  ;;  %v8219_v48 = vpop.permute.xlu1 %8218 }
 0x73a   : > { %8329 = vpow2.f32 %v2824_v46  ;;  %v8221_v49 = vunpack.i.h.bf16 %v8219_v48  ;;  %v8220_v50 = vunpack.i.l.bf16 %v8219_v48  ;;  %v2926_v3 = vpop.permute.xlu0 %2925 }
 0x73b   : > { %8331 = vpow2.f32 %v2822_v47 }
 0x73c   : > { %v7855_v51 = vpack.c.bf16 %v8221_v49, %v8220_v50 }
 0x73d   : > { %v8224_v52 = vpop.permute.xlu1 %8223 }
 0x73e   : > { %v8226_v53 = vunpack.i.h.bf16 %v8224_v52  ;;  %v8225_v54 = vunpack.i.l.bf16 %v8224_v52  ;;  %7856 = vmatprep.subr.bf16.mxu0 %v7855_v51 }
 0x73f   : > { %7858 = vmatpush3.bf16.msra.mxu0 %v7855_v51 }
 0x740   : > { %v7859_v55 = vpack.c.bf16 %v8226_v53, %v8225_v54 }
 0x742   : > { %7861 = vmatprep.subr.msk.bf16.mxu0 %vm9210_vm8, %v7859_v55 }
 0x744   : > { %v8330_v56 = vpop.eup %8329 }
 0x745   : > { %v2829_v57 = vsel %vm1880_vm3, %v8330_v56, 0.0  ;;  %v8332_v58 = vpop.eup %8331 }
 0x746   : > { %2830 = vadd.xlane.f32.xlu1 %v2829_v57  ;;  %v2826_v59 = vsel %vm1880_vm3, %v8332_v58, 0.0 }
 0x74a   : > { %2827 = vadd.xlane.f32.xlu1 %v2826_v59 }
 0x75b   : > { %2923 = vrot.lane.b32.xlu1 %v9198_v22, %s9841_s10  ;;  %s9940_s10 = sld [smem:[#allocation32_spill]] }
 0x7d3   : > { %v2831_v60 = vpop.xlane.xlu1 %2830 }
 0x7d4   : > { %8333 = vrcp.f32 %v2831_v60 }
 0x7d7   : > { %v2828_v61 = vpop.xlane.xlu1 %2827 }
 0x7d8   : > { %8335 = vrcp.f32 %v2828_v61 }
 0x7db   : > { %v2924_v2 = vpop.permute.xlu1 %2923 }
 0x7de   : > { %v8334_v62 = vpop.eup %8333 }
 0x7df   : > { %v2835_v1 = vmul.f32 %v8334_v62, %v8330_v56 }
 0x7e2   : > { %v8336_v63 = vpop.eup %8335 }
 0x7e3   : > { %v2833_v0 = vmul.f32 %v8336_v63, %v8332_v58 }
 0x7e5   : > { %7520 = vmatprep.mubr.msk.f32.mxu0 %vm1880_vm3, %v2833_v0 }
 0x7e6   : > { %7521 = vmatmul.mubr.msk.f32.vlgmr.msra.gmra.mrb[8].mxu0 %vm1880_vm3, %v2835_v1 }
 0x7e7   : > { %7864 = vmatpush3.bf16.xpose.msk.msra.mxu0 %vm9210_vm8, %v7859_v55  ;;  %7527 = vmatprep.mubr.msk.f32.mxu0 %vm2718_vm7, %v2924_v2 }
 0x7ee   : > { %7528 = vmatmul.mubr.msk.f32.vlgmr.msra.gmra.mrb[10].mxu0 %vm2718_vm7, %v2926_v3 }
 0x8b9   : > { %v9252_v4 = vpop.f32.mrb[8].mxu0 }
 0x8ba   : > { %v9254_v5 = vpop.f32.mrb[9].mxu0 }
 0x8c1   : > { %v7529_v6 = vpop.f32.mrb[10].mxu0 }
 0x8c2   : > { %v3015_v7 = vmul.f32 %v7529_v6, %v9223_v30  ;;  %v3005_v8 = vpop.f32.mrb[11].mxu0 }
 0x8c3   : > { %v3014_v9 = vmul.f32 %v3005_v8, %v9223_v30 }
 0x8c4   : > { %v3017_v10 = vadd.f32 %v3015_v7, %v9226_v32 }
 0x8c5   : > { %v3016_v11 = vadd.f32 %v3014_v9, %v9226_v32 }
 0x8c6   : > { %v3021_v12 = vsel %vm1880_vm3, %v3017_v10, -inf }
 0x8c7   : > { %3022 = vmax.xlane.f32.xlu0 %v3021_v12  ;;  %v3018_v13 = vsel %vm1880_vm3, %v3016_v11, -inf }
 0x8c8   : > { %3019 = vmax.xlane.f32.xlu1 %v3018_v13 }
 0x8d9   : > { %8228 = vrot.lane.b32.xlu1 %v9204_v23, %s9833_s16  ;;  %s9837_s16 = smov 104  }
 0x8dd   : > { %8233 = vrot.lane.b32.xlu0 %v9204_v23, %s9834_s28  ;;  %3127 = vrot.lane.b32.xlu1 %v9198_v22, %s9831_s18  ;;  %s9836_s28 = smov 48  }
 0x954   : > { %v3023_v16 = vpop.xlane.xlu0 %3022 }
 0x955   : > { %v3025_v17 = vsub.f32 %v3017_v10, %v3023_v16  ;;  %v3020_v18 = vpop.xlane.xlu1 %3019 }
 0x956   : > { %v3024_v19 = vsub.f32 %v3016_v11, %v3020_v18 }
 0x957   : > { %v3028_v21 = vmul.f32 1.442695, %v3025_v17 }
 0x958   : > { %v3026_v24 = vmul.f32 1.442695, %v3024_v19  ;;  %v8234_v25 = vpop.permute.xlu0 %8233 }
 0x959   : > { %8337 = vpow2.f32 %v3028_v21  ;;  %v8229_v26 = vpop.permute.xlu1 %8228  ;;  %v8236_v28 = vunpack.i.h.bf16 %v8234_v25  ;;  %v8235_v31 = vunpack.i.l.bf16 %v8234_v25 }
 0x95a   : > { %v8231_v33 = vunpack.i.h.bf16 %v8229_v26  ;;  %v8230_v34 = vunpack.i.l.bf16 %v8229_v26  ;;  %8339 = vpow2.f32 %v3026_v24 }
 0x95b   : > { %v7869_v36 = vpack.c.bf16 %v8236_v28, %v8235_v31 }
 0x95c   : > { %v7865_v35 = vpack.c.bf16 %v8231_v33, %v8230_v34 }
 0x95d   : > { %v3128_v42 = vpop.permute.xlu1 %3127 }
 0x95e   : > { %7866 = vmatprep.subr.bf16.mxu1 %v7865_v35 }
 0x95f   : > { %7868 = vmatpush3.bf16.msra.mxu1 %v7865_v35 }
 0x960   : > { %7871 = vmatprep.subr.msk.bf16.mxu1 %vm9210_vm8, %v7869_v36 }
 0x963   : > { %v8338_v37 = vpop.eup %8337 }
 0x964   : > { %v3033_v39 = vsel %vm1880_vm3, %v8338_v37, 0.0  ;;  %v8340_v40 = vpop.eup %8339 }
 0x965   : > { %3034 = vadd.xlane.f32.xlu1 %v3033_v39  ;;  %v3030_v41 = vsel %vm1880_vm3, %v8340_v40, 0.0 }
 0x969   : > { %3031 = vadd.xlane.f32.xlu1 %v3030_v41 }
 0x97a   : > { %3129 = vrot.lane.b32.xlu1 %v9196_v20, %s9831_s18  ;;  %s9839_s18 = smov 72  }
 0x9f2   : > { %v3035_v44 = vpop.xlane.xlu1 %3034 }
 0x9f3   : > { %8341 = vrcp.f32 %v3035_v44 }
 0x9f6   : > { %v3032_v45 = vpop.xlane.xlu1 %3031 }
 0x9f7   : > { %8343 = vrcp.f32 %v3032_v45 }
 0x9fa   : > { %v3130_v50 = vpop.permute.xlu1 %3129 }
 0x9fd   : > { %v8342_v46 = vpop.eup %8341 }
 0x9fe   : > { %v3039_v49 = vmul.f32 %v8342_v46, %v8338_v37 }
 0xa01   : > { %v8344_v47 = vpop.eup %8343 }
 0xa02   : > { %v3037_v48 = vmul.f32 %v8344_v47, %v8340_v40 }
 0xa04   : > { %7534 = vmatprep.mubr.msk.f32.mxu1 %vm1880_vm3, %v3037_v48 }
 0xa05   : > { %7535 = vmatmul.mubr.msk.f32.vlgmr.msra.gmra.mrb[14].mxu1 %vm1880_vm3, %v3039_v49 }
 0xa06   : > { %7874 = vmatpush3.bf16.xpose.msk.msra.mxu1 %vm9210_vm8, %v7869_v36  ;;  %7541 = vmatprep.mubr.msk.f32.mxu1 %vm2718_vm7, %v3128_v42 }
 0xa0d   : > { %7542 = vmatmul.mubr.msk.f32.vlgmr.msra.gmra.mrb[16].mxu1 %vm2718_vm7, %v3130_v50 }
 0xad8   : > { %v9280_v51 = vpop.f32.mrb[14].mxu1 }
 0xad9   : > { %v9282_v52 = vpop.f32.mrb[15].mxu1 }
 0xae0   : > { %v7543_v53 = vpop.f32.mrb[16].mxu1 }
 0xae1   : > { %v3219_v54 = vmul.f32 %v7543_v53, %v9223_v30  ;;  %v3209_v55 = vpop.f32.mrb[17].mxu1 }
 0xae2   : > { %v3218_v56 = vmul.f32 %v3209_v55, %v9223_v30 }
 0xae3   : > { %v3221_v57 = vadd.f32 %v3219_v54, %v9226_v32 }
 0xae4   : > { %v3220_v58 = vadd.f32 %v3218_v56, %v9226_v32 }
 0xae5   : > { %v3225_v59 = vsel %vm1880_vm3, %v3221_v57, -inf }
 0xae6   : > { %3226 = vmax.xlane.f32.xlu0 %v3225_v59  ;;  %v3222_v60 = vsel %vm1880_vm3, %v3220_v58, -inf }
 0xae7   : > { %3223 = vmax.xlane.f32.xlu1 %v3222_v60 }
 0xb73   : > { %v3227_v61 = vpop.xlane.xlu0 %3226 }
 0xb74   : > { %v3229_v62 = vsub.f32 %v3221_v57, %v3227_v61  ;;  %v3224_v63 = vpop.xlane.xlu1 %3223 }
 0xb75   : > { %v3228_v0 = vsub.f32 %v3220_v58, %v3224_v63  ;;  %v3566_v63 = vld [vmem:[%s9940_s10] sm:$0xff] }
 0xb76   : > { %v3232_v1 = vmul.f32 1.442695, %v3229_v62 }
 0xb77   : > { %v3230_v2 = vmul.f32 1.442695, %v3228_v0  ;;  %v3567_v0 = vld [vmem:[%s9940_s10 + $0x8] sm:$0xff] }
 0xb78   : > { %8345 = vpow2.f32 %v3232_v1  ;;  %v3568_v1 = vld [vmem:[%s9940_s10 + $0x10] sm:$0xff] }
 0xb79   : > { %8347 = vpow2.f32 %v3230_v2  ;;  %v7889_v2 = vpack.c.bf16 %v3567_v0, %v3566_v63 }
 0xb82   : > { %v8346_v3 = vpop.eup %8345 }
 0xb83   : > { %v8348_v6 = vpop.eup %8347  ;;  %v3237_v7 = vsel %vm1880_vm3, %v8346_v3, 0.0 }
 0xb84   : > { %3238 = vadd.xlane.f32.xlu1 %v3237_v7  ;;  %v3234_v8 = vsel %vm1880_vm3, %v8348_v6, 0.0 }
 0xb85   : > { %3235 = vadd.xlane.f32.xlu0 %v3234_v8 }
 0xb95   : > { %8243 = vrot.lane.b32.xlu1 %v9204_v23, %s9839_s18  ;;  %s9843_s18 = smov 16  }
 0xb99   : > { %3331 = vrot.lane.b32.xlu1 %v9198_v22, %s9837_s16 }
 0xb9b   : > { %8238 = vrot.lane.b32.xlu0 %v9204_v23, %s9836_s28  ;;  %s9848_s28 = smov 8  }
 0xb9f   : > { %3333 = vrot.lane.b32.xlu0 %v9196_v20, %s9837_s16  ;;  %s9845_s16 = smov 40  }
 0xc11   : > { %v3239_v9 = vpop.xlane.xlu1 %3238 }
 0xc12   : > { %8349 = vrcp.f32 %v3239_v9  ;;  %v3236_v10 = vpop.xlane.xlu0 %3235 }
 0xc13   : > { %8351 = vrcp.f32 %v3236_v10 }
 0xc15   : > { %v8244_v11 = vpop.permute.xlu1 %8243 }
 0xc16   : > { %v8239_v12 = vpop.permute.xlu0 %8238  ;;  %v8246_v13 = vunpack.i.h.bf16 %v8244_v11  ;;  %v8245_v16 = vunpack.i.l.bf16 %v8244_v11 }
 0xc17   : > { %v8241_v17 = vunpack.i.h.bf16 %v8239_v12  ;;  %v8240_v18 = vunpack.i.l.bf16 %v8239_v12 }
 0xc18   : > { %v7879_v21 = vpack.c.bf16 %v8246_v13, %v8245_v16 }
 0xc19   : > { %v7875_v19 = vpack.c.bf16 %v8241_v17, %v8240_v18  ;;  %v3332_v26 = vpop.permute.xlu1 %3331 }
 0xc1a   : > { %v3334_v28 = vpop.permute.xlu0 %3333 }
 0xc1b   : > { %7876 = vmatprep.subr.bf16.mxu0 %v7875_v19 }
 0xc1c   : > { %v8350_v22 = vpop.eup %8349  ;;  %7878 = vmatpush3.bf16.msra.mxu0 %v7875_v19 }
 0xc1d   : > { %v8352_v24 = vpop.eup %8351  ;;  %7881 = vmatprep.subr.msk.bf16.mxu0 %vm9210_vm8, %v7879_v21  ;;  %v3243_v25 = vmul.f32 %v8350_v22, %v8346_v3  ;;  %v3569_v3 = vld [vmem:[%s9940_s10 + $0x18] sm:$0xff]  ;;  %s9962_s10 = smov 40  }
 0xc1e   : > { %v3241_v20 = vmul.f32 %v8352_v24, %v8348_v6  ;;  %v7893_v6 = vpack.c.bf16 %v3569_v3, %v3568_v1  ;;  %v9363_v3 = vsub.s32 1, %v9151_v43 }
 0xc20   : > { %7548 = vmatprep.mubr.msk.f32.mxu0 %vm1880_vm3, %v3241_v20 }
 0xc21   : > { %7549 = vmatmul.mubr.msk.f32.vlgmr.msra.gmra.mrb[12].mxu0 %vm1880_vm3, %v3243_v25 }
 0xc22   : > { %7555 = vmatprep.mubr.msk.f32.mxu0 %vm2718_vm7, %v3332_v26 }
 0xc25   : > { %7884 = vmatpush3.bf16.xpose.msk.msra.mxu0 %vm9210_vm8, %v7879_v21 }
 0xc2c   : > { %7556 = vmatmul.mubr.msk.f32.vlgmr.msra.gmra.mrb[14].mxu0 %vm2718_vm7, %v3334_v28 }
 0xcf4   : > { %v7550_v31 = vpop.f32.mrb[12].mxu0 }
 0xcf5   : > { %v3322_v33 = vpop.f32.mrb[13].mxu0 }
 0xcff   : > { %v7557_v34 = vpop.f32.mrb[14].mxu0 }
 0xd00   : > { %v3423_v35 = vmul.f32 %v7557_v34, %v9223_v30  ;;  %v3413_v36 = vpop.f32.mrb[15].mxu0 }
 0xd01   : > { %v3422_v37 = vmul.f32 %v3413_v36, %v9223_v30 }
 0xd02   : > { %v3425_v39 = vadd.f32 %v3423_v35, %v9226_v32 }
 0xd03   : > { %v3424_v40 = vadd.f32 %v3422_v37, %v9226_v32 }
 0xd04   : > { %v3429_v41 = vsel %vm1880_vm3, %v3425_v39, -inf }
 0xd05   : > { %3430 = vmax.xlane.f32.xlu0 %v3429_v41  ;;  %v3426_v42 = vsel %vm1880_vm3, %v3424_v40, -inf }
 0xd06   : > { %3427 = vmax.xlane.f32.xlu1 %v3426_v42 }
 0xd92   : > { %v3431_v44 = vpop.xlane.xlu0 %3430 }
 0xd93   : > { %v3433_v45 = vsub.f32 %v3425_v39, %v3431_v44  ;;  %v3428_v46 = vpop.xlane.xlu1 %3427 }
 0xd94   : > { %v3432_v47 = vsub.f32 %v3424_v40, %v3428_v46 }
 0xd95   : > { %v3436_v48 = vmul.f32 1.442695, %v3433_v45 }
 0xd96   : > { %v3434_v49 = vmul.f32 1.442695, %v3432_v47 }
 0xd97   : > { %8353 = vpow2.f32 %v3436_v48 }
 0xd98   : > { %8355 = vpow2.f32 %v3434_v49 }
 0xda1   : > { %v8354_v50 = vpop.eup %8353 }
 0xda2   : > { %v8356_v53 = vpop.eup %8355  ;;  %v3441_v54 = vsel %vm1880_vm3, %v8354_v50, 0.0 }
 0xda3   : > { %3442 = vadd.xlane.f32.xlu1 %v3441_v54  ;;  %v3438_v55 = vsel %vm1880_vm3, %v8356_v53, 0.0 }
 0xda4   : > { %3439 = vadd.xlane.f32.xlu0 %v3438_v55 }
 0xdb4   : > { %3537 = vrot.lane.b32.xlu1 %v9282_v52, %s9848_s28 }
 0xdb8   : > { %3539 = vrot.lane.b32.xlu1 %v9280_v51, %s9848_s28  ;;  %s9944_s28 = sld [smem:[#allocation36_spill]] }
 0xdba   : > { %8248 = vrot.lane.b32.xlu0 %v9204_v23, %s9845_s16  ;;  %s9941_s16 = sld [smem:[#allocation33_spill]] }
 0xdbc   : > { %3547 = vrot.lane.b32.xlu1 %v7550_v31, %s9843_s18 }
 0xdbe   : > { %3545 = vrot.lane.b32.xlu0 %v3322_v33, %s9843_s18  ;;  %s9846_s18 = smov 24   ;;  %v3794_v54 = vld [vmem:[%s9944_s28] sm:$0xff]  ;;  %v3795_v55 = vld [vmem:[%s9944_s28 + $0x8] sm:$0xff] }
 0xdc0   : > { %v7120_v20 = vld [vmem:[%s9941_s16] ss:$0 sm:$0xff]  ;;  %s9943_s16 = sld [smem:[#allocation41_spill]] }
 0xe30   : > { %v3443_v56 = vpop.xlane.xlu1 %3442 }
 0xe31   : > { %8357 = vrcp.f32 %v3443_v56  ;;  %v3440_v57 = vpop.xlane.xlu0 %3439  ;;  %v3796_v56 = vld [vmem:[%s9944_s28 + $0x10] sm:$0xff] }
 0xe32   : > { %8359 = vrcp.f32 %v3440_v57  ;;  %v7905_v57 = vpack.c.bf16 %v3795_v55, %v3794_v54 }
 0xe34   : > { %v3538_v9 = vpop.permute.xlu1 %3537 }
 0xe35   : > { %v8249_v52 = vpop.permute.xlu0 %8248  ;;  %v3559_v13 = vsel %vm2718_vm7, %v9254_v5, %v3538_v9 }
 0xe36   : > { %v8251_v58 = vunpack.i.h.bf16 %v8249_v52  ;;  %v8250_v51 = vunpack.i.l.bf16 %v8249_v52  ;;  %v3797_v52 = vld [vmem:[%s9944_s28 + $0x18] sm:$0xff] }
 0xe38   : > { %v7885_v59 = vpack.c.bf16 %v8251_v58, %v8250_v51  ;;  %v3540_v10 = vpop.permute.xlu1 %3539  ;;  %v7909_v58 = vpack.c.bf16 %v3797_v52, %v3796_v56  ;;  %v3798_v51 = vld [vmem:[%s9944_s28 + $0x20] sm:$0xff] }
 0xe39   : > { %v3546_v12 = vpop.permute.xlu0 %3545  ;;  %v3560_v17 = vsel %vm2718_vm7, %v9252_v4, %v3540_v10 }
 0xe3a   : > { %7886 = vmatprep.subr.bf16.mxu1 %v7885_v59  ;;  %v3561_v18 = vsel %vm1880_vm3, %v3559_v13, %v3546_v12 }
 0xe3b   : > { %v8358_v60 = vpop.eup %8357  ;;  %7888 = vmatpush3.bf16.msra.mxu1 %v7885_v59  ;;  %v3799_v59 = vld [vmem:[%s9944_s28 + $0x28] sm:$0xff] }
 0xe3c   : > { %v8360_v23 = vpop.eup %8359  ;;  %v3447_v62 = vmul.f32 %v8358_v60, %v8354_v50  ;;  %7890 = vmatprep.subr.bf16.mxu1 %v7889_v2  ;;  %v3548_v11 = vpop.permute.xlu1 %3547  ;;  %v7913_v60 = vpack.c.bf16 %v3799_v59, %v3798_v51 }
 0xe3d   : > { %v3445_v61 = vmul.f32 %v8360_v23, %v8356_v53  ;;  %v3562_v21 = vsel %vm1880_vm3, %v3560_v17, %v3548_v11  ;;  %v7131_v53 = vld [vmem:[%s9943_s16 + $0x4] sm:$0xf] }
 0xe3e   : > { %v3972_v17 = vld [vmem:[%s1708_s1] sm:$0xff] }
 0xe3f   : > { %7562 = vmatprep.mubr.msk.f32.mxu1 %vm1880_vm3, %v3445_v61 }
 0xe40   : > { %7563 = vmatmul.mubr.msk.f32.vlgmr.msra.gmra.mrb[18].mxu1 %vm1880_vm3, %v3447_v62 }
 0xe41   : > { %7892 = vmatpush3.bf16.msra.mxu1 %v7889_v2  ;;  %v3658_v2 = vld [vmem:[%s9945_s22] sm:$0x3]  ;;  %s9948_s22 = sld [smem:[#allocation35_spill]] }
 0xe42   : > { %7894 = vmatprep.subr.bf16.mxu1 %v7893_v6  ;;  %v3697_v9 = vrot.slane %v3658_v2, %v9363_v3 }
 0xe45   : > { %7896 = vmatpush3.bf16.msra.mxu1 %v7893_v6  ;;  %v3691_v6 = vrot.slane %v3658_v2, %v9221_v29 }
 0xe46   : > { %7906 = vmatprep.subr.bf16.mxu1 %v7905_v57 }
 0xf13   : > { %v7564_v7 = vpop.f32.mrb[18].mxu1 }
 0xf14   : > { %3555 = vrot.lane.b32.xlu1 %v7564_v7, %s9846_s18  ;;  %v3526_v8 = vpop.f32.mrb[19].mxu1 }
 0xf15   : > { %3553 = vrot.lane.b32.xlu0 %v3526_v8, %s9846_s18  ;;  %s9942_s18 = sld [smem:[#allocation34_spill]] }
 0xf1b   : > { %v3700_v45 = vld [vmem:[%s9942_s18] sm:$0xff]  ;;  %v3701_v46 = vld [vmem:[%s9942_s18 + $0x8] sm:$0xff]  ;;  %v3702_v48 = vld [vmem:[%s9942_s18 + $0x10] sm:$0xff] }
 0xf1c   : > { %v7897_v47 = vpack.c.bf16 %v3701_v46, %v3700_v45  ;;  %v3703_v49 = vld [vmem:[%s9942_s18 + $0x18] sm:$0xff] }
 0xf1d   : > { %v7901_v50 = vpack.c.bf16 %v3703_v49, %v3702_v48  ;;  %v4241_v49 = vld [vmem:[%s9949_s26] sm:$0xff] }
 0xf1e   : > { %7898 = vmatprep.subr.bf16.mxu0 %v7897_v47 }
 0xf1f   : > { %7900 = vmatpush3.bf16.msra.mxu0 %v7897_v47 }
 0xf20   : > { %7902 = vmatprep.subr.bf16.mxu0 %v7901_v50 }
 0xf23   : > { %7904 = vmatpush3.bf16.msra.mxu0 %v7901_v50 }
 0xf24   : > { %7606 = vmatprep.subr.msk.mxu0 %vm1724_vm1, %v7131_v53 }
 0xf86   : > { %v3556_v16 = vpop.permute.xlu1 %3555 }
 0xf87   : > { %v3554_v19 = vpop.permute.xlu0 %3553  ;;  %v3565_v24 = vsel %vm3563_vm9, %v3562_v21, %v3556_v16  ;;  %v3974_v21 = vrot.slane %v3972_v17, 7 }
 0xf88   : > { %v3564_v22 = vsel %vm3563_vm9, %v3561_v18, %v3554_v19  ;;  %v3973_v18 = vld [vmem:[%s1708_s1 + $0x8] sm:$0xff]  ;;  %s9947_s1 = sld [smem:[#allocation43_spill]] }
 0xf89   : > { %7573 = vmatprep.mubr.msk.f32.mxu1 %vm2630_vm6, %v3564_v22  ;;  %v3975_v22 = vrot.slane %v3973_v18, 7 }
 0xf8a   : > { %7574 = vmatmul.mubr.msk.f32.vlgmr.msra.gmra.mrb[20].mxu1 %vm2630_vm6, %v3565_v24  ;;  %v3982_v24 = vld [vmem:[%s9943_s16] sm:$0xf] }
 0xf8b   : > { %7908 = vmatpush3.bf16.msra.mxu1 %v7905_v57 }
 0xf8c   : > { %7910 = vmatprep.subr.bf16.mxu1 %v7909_v58 }
 0xf8f   : > { %7912 = vmatpush3.bf16.msra.mxu1 %v7909_v58  ;;  %v7142_v58 = vld [vmem:[%s9950_s2] ss:$0 sm:$0xff]  ;;  %s9953_s2 = smov 120  }
 0xf90   : > { %7914 = vmatprep.subr.bf16.mxu1 %v7913_v60 }
 0xf93   : > { %7916 = vmatpush3.bf16.msra.mxu1 %v7913_v60 }
0x105d   : > { %v7575_v25 = vpop.f32.mrb[20].mxu1 }
0x105e   : > { %v3655_v5 = vadd.f32 %v7575_v25, %v7120_v20  ;;  %v3649_v26 = vpop.f32.mrb[21].mxu1  ;;  %v7138_v25 = vld [vmem:[%s9943_s16 + $0x8] sm:$0xf] }
0x105f   : > { %v3650_v28 = vadd.f32 %v7120_v20, %v3649_v26  ;;  %v3977_v20 = vsel %vm2348_vm4, %v3975_v22, %v3974_v21  ;;  %v3979_v26 = vrot.slane %v3973_v18, 1 }
0x1060   : > { %v3660_v4 = vadd.f32 %v3655_v5, %v9189_v15  ;;  %v3978_v5 = vrot.slane %v3972_v17, 1 }
0x1061   : > { %v3659_v31 = vadd.f32 %v3650_v28, %v9187_v14  ;;  %v3976_v28 = vsel %vm2348_vm4, %v3974_v21, %v3975_v22 }
0x1062   : > { %v3664_v33 = vsel %vm2630_vm6, %v3660_v4, 0.0 }
0x1063   : > { %3665 = vadd.xlane.f32.xlu1 %v3664_v33  ;;  %v3661_v34 = vsel %vm2630_vm6, %v3659_v31, 0.0  ;;  %v3800_v33 = vld [vmem:[%s9944_s28 + $0x30] sm:$0xff] }
0x1064   : > { %3662 = vadd.xlane.f32.xlu0 %v3661_v34  ;;  %v3801_v34 = vld [vmem:[%s9944_s28 + $0x38] sm:$0xff] }
0x10f0   : > { %v3666_v35 = vpop.xlane.xlu1 %3665 }
0x10f1   : > { %v3669_v36 = vmul.f32 0.03125, %v3666_v35  ;;  %v3663_v37 = vpop.xlane.xlu0 %3662  ;;  %v7917_v35 = vpack.c.bf16 %v3801_v34, %v3800_v33 }
0x10f2   : > { %v3668_v39 = vmul.f32 0.03125, %v3663_v37  ;;  %v4251_v37 = vld [vmem:[%s9947_s1 + $0x8] sm:$0xff] }
0x10f3   : > { %v3671_v40 = vsub.f32 %v3660_v4, %v3669_v36  ;;  %v3980_v4 = vsel %vm2353_vm5, %v3978_v5, %v3979_v26  ;;  %7918 = vmatprep.subr.bf16.mxu1 %v7917_v35  ;;  %v4250_v36 = vld [vmem:[%s9947_s1] sm:$0xff] }
0x10f4   : > { %v3670_v41 = vsub.f32 %v3659_v31, %v3668_v39  ;;  %v3981_v31 = vsel %vm2353_vm5, %v3979_v26, %v3978_v5  ;;  %7920 = vmatpush3.bf16.msra.mxu1 %v7917_v35  ;;  %v7921_v39 = vpack.c.bf16 %v4251_v37, %v4250_v36 }
0x10f5   : > { %v3673_v15 = vmul.f32 %v3671_v40, %v3671_v40 }
0x10f6   : > { %v3672_v42 = vmul.f32 %v3670_v41, %v3670_v41 }
0x10f7   : > { %v3677_v44 = vsel %vm2630_vm6, %v3673_v15, 0.0 }
0x10f8   : > { %v3674_v14 = vsel %vm2630_vm6, %v3672_v42, 0.0 }
0x10f9   : > { %3675 = vadd.xlane.f32.xlu0 %v3674_v14  ;;  %v7123_v14 = vld [vmem:[%s9948_s22] ss:$0 sm:$0xff]  ;;  %s9951_s22 = smov 88  }
0x10fd   : > { %3678 = vadd.xlane.f32.xlu0 %v3677_v44 }
0x1186   : > { %v3676_v23 = vpop.xlane.xlu0 %3675 }
0x1187   : > { %v3680_v61 = vmul.f32 0.03125, %v3676_v23 }
0x1189   : > { %v3682_v62 = vadd.f32 1e-05, %v3680_v61 }
0x118a   : > { %v3679_v63 = vpop.xlane.xlu0 %3678 }
0x118b   : > { %8361 = vrsqrt.f32 %v3682_v62  ;;  %v3681_v0 = vmul.f32 0.03125, %v3679_v63 }
0x118d   : > { %v3683_v1 = vadd.f32 1e-05, %v3681_v0 }
0x118f   : > { %8363 = vrsqrt.f32 %v3683_v1 }
0x1195   : > { %v8362_v7 = vpop.eup %8361 }
0x1196   : > { %v3686_v8 = vmul.f32 %v8362_v7, %v3670_v41  ;;  %v4253_v41 = vld [vmem:[%s9947_s1 + $0x18] sm:$0xff] }
0x1198   : > { %v3692_v10 = vmul.f32 %v3691_v6, %v3686_v8 }
0x1199   : > { %v8364_v11 = vpop.eup %8363 }
0x119a   : > { %v3687_v12 = vmul.f32 %v8364_v11, %v3671_v40  ;;  %v9367_v13 = vadd.f32 %v3697_v9, %v3692_v10  ;;  %v4252_v40 = vld [vmem:[%s9947_s1 + $0x10] sm:$0xff]  ;;  %s9952_s1 = smov 96   ;;  %v9453_v11 = vadd.s32 8, %v9151_v43 }
0x119b   : > { %v7925_v42 = vpack.c.bf16 %v4253_v41, %v4252_v40 }
0x119c   : > { %v3693_v16 = vmul.f32 %v3691_v6, %v3687_v12  ;;  %7584 = vmatprep.mubr.msk.f32.mxu0 %vm2630_vm6, %v9367_v13  ;;  %v9456_v12 = vand.u32 127, %v2346_v38 }
0x119e   : > { %v9373_v19 = vadd.f32 %v3697_v9, %v3693_v16  ;;  %vm4249_vm11 = vcmp.gt.s32.totalorder %v9456_v12, %v9453_v11  ;;  %vm4248_vm12 = vcmp.gt.s32.totalorder %v9456_v12, %v9151_v43 }
0x11a0   : > { %7585 = vmatmul.mubr.msk.f32.vlgmr.msra.gmra.mrb[16].mxu0 %vm2630_vm6, %v9373_v19 }
0x11a1   : > { %7607 = vmatpush3.msk.msra.mxu0 %vm1724_vm1, %v7131_v53  ;;  %7608 = vmatprep.mubr.msk.f32.mxu0 %vm1720_vm2, %v3972_v17  ;;  %v4242_v53 = vld [vmem:[%s9949_s26 + $0x8] sm:$0xff] }
0x11a2   : > { %7611 = vmatprep.subr.msk.mxu0 %vm1724_vm1, %v3982_v24 }
0x11a4   : > { %7609 = vmatmul.mubr.msk.f32.vlgmr.msra.gmra.mrb[18].mxu0 %vm1720_vm2, %v3973_v18 }
0x11a5   : > { %7612 = vmatpush3.msk.msra.mxu0 %vm1724_vm1, %v3982_v24  ;;  %7613 = vmatprep.mubr.msk.f32.mxu0 %vm1720_vm2, %v3977_v20 }
0x11a6   : > { %7616 = vmatprep.subr.msk.mxu0 %vm1724_vm1, %v7138_v25 }
0x11ac   : > { %7614 = vmatmul.mubr.msk.f32.vlgmr.msra.gmra.mrb[18].mxu0 %vm1720_vm2, %v3976_v28 }
0x11ad   : > { %7617 = vmatpush3.msk.msra.mxu0 %vm1724_vm1, %v7138_v25  ;;  %7618 = vmatprep.mubr.msk.f32.mxu0 %vm1720_vm2, %v3980_v4 }
0x11ae   : > { %7922 = vmatprep.subr.bf16.mxu0 %v7921_v39 }
0x11b4   : > { %7619 = vmatmul.mubr.msk.f32.vlgmr.msra.gmra.mrb[18].mxu0 %vm1720_vm2, %v3981_v31 }
0x11b5   : > { %7924 = vmatpush3.bf16.msra.mxu0 %v7921_v39 }
0x11b6   : > { %7926 = vmatprep.subr.bf16.mxu0 %v7925_v42 }
0x11b9   : > { %7928 = vmatpush3.bf16.msra.mxu0 %v7925_v42 }
0x1273   : > { %v7586_v15 = vpop.f32.mrb[16].mxu0 }
0x1274   : > { %v3789_v44 = vadd.f32 %v7586_v15, %v7123_v14  ;;  %v3783_v45 = vpop.f32.mrb[17].mxu0 }
0x1275   : > { %v3784_v46 = vadd.f32 %v7123_v14, %v3783_v45 }
0x1276   : > { %v3793_v48 = vmax.f32 %v3789_v44, 0.0 }
0x1277   : > { %v3792_v47 = vmax.f32 %v3784_v46, 0.0 }
0x1279   : > { %7603 = vmatprep.mubr.msk.f32.mxu1 %vm3809_vm10, %v3792_v47 }
0x127a   : > { %7604 = vmatmul.mubr.msk.f32.vlgmr.msra.gmra.mrb[22].mxu1 %vm3809_vm10, %v3793_v48 }
0x1287   : > { %v7620_v50 = vpop.f32.mrb[18].mxu0 }
0x1288   : > { %v4230_v54 = vpop.f32.mrb[19].mxu0  ;;  %v9411_v56 = vadd.f32 %v7620_v50, %v4242_v53 }
0x1289   : > { %v9409_v55 = vadd.f32 %v4241_v49, %v4230_v54 }
0x128b   : > { %7629 = vmatprep.mubr.msk.f32.mxu0 %vm2630_vm6, %v9409_v55 }
0x128c   : > { %7630 = vmatmul.mubr.msk.f32.vlgmr.msra.gmra.mrb[20].mxu0 %vm2630_vm6, %v9411_v56 }
0x134d   : > { %v9417_v57 = vpop.f32.mrb[22].mxu1 }
0x134e   : > { %v9419_v52 = vpop.f32.mrb[23].mxu1 }
0x135f   : > { %v7631_v51 = vpop.f32.mrb[20].mxu0 }
0x1360   : > { %v9422_v59 = vadd.f32 %v7631_v51, %v7142_v58  ;;  %v4333_v60 = vpop.f32.mrb[21].mxu0 }
0x1361   : > { %v9424_v23 = vadd.f32 %v7142_v58, %v4333_v60 }
0x1363   : > { %7636 = vmatprep.mubr.msk.f32.mxu1 %vm2718_vm7, %v9424_v23  ;;  %v9430_v61 = vpack.i.bf16 %v9422_v59, %v9424_v23 }
0x1365   : > { %8258 = vrot.lane.b32.xlu0 %v9430_v61, %s9951_s22  ;;  %8253 = vrot.lane.b32.xlu1 %v9430_v61, %s9952_s1 }
0x1369   : > { %4544 = vrot.lane.b32.xlu1 %v9424_v23, %s9953_s2 }
0x136d   : > { %4546 = vrot.lane.b32.xlu1 %v9422_v59, %s9953_s2 }
0x13d7   : > { %v8259_v62 = vpop.permute.xlu0 %8258  ;;  %v8254_v63 = vpop.permute.xlu1 %8253 }
0x13d8   : > { %v8261_v0 = vunpack.i.h.bf16 %v8259_v62  ;;  %v8260_v1 = vunpack.i.l.bf16 %v8259_v62  ;;  %v8256_v2 = vunpack.i.h.bf16 %v8254_v63  ;;  %v8255_v6 = vunpack.i.l.bf16 %v8254_v63 }
0x13da   : > { %v7929_v7 = vpack.c.bf16 %v8256_v2, %v8255_v6  ;;  %v7939_v8 = vpack.c.bf16 %v8261_v0, %v8260_v1 }
0x13db   : > { %v4545_v9 = vpop.permute.xlu1 %4544 }
0x13dc   : > { %7931 = vmatprep.subr.msk.bf16.mxu1 %vm9210_vm8, %v7929_v7 }
0x13dd   : > { %7934 = vmatpush3.bf16.xpose.msk.msra.mxu1 %vm9210_vm8, %v7929_v7 }
0x13de   : > { %7941 = vmatprep.subr.msk.bf16.mxu1 %vm9210_vm8, %v7939_v8 }
0x13df   : > { %v4547_v10 = vpop.permute.xlu1 %4546 }
0x13e4   : > { %7637 = vmatmul.mubr.msk.f32.vlgmr.msra.gmra.mrb[24].mxu1 %vm2718_vm7, %v9422_v59 }
0x13e5   : > { %7944 = vmatpush3.bf16.xpose.msk.msra.mxu1 %vm9210_vm8, %v7939_v8  ;;  %7650 = vmatprep.mubr.msk.f32.mxu1 %vm2718_vm7, %v4545_v9 }
0x13ec   : > { %7651 = vmatmul.mubr.msk.f32.vlgmr.msra.gmra.mrb[26].mxu1 %vm2718_vm7, %v4547_v10 }
0x14b7   : > { %v7638_v16 = vpop.f32.mrb[24].mxu1 }
0x14b8   : > { %v4432_v17 = vmul.f32 %v7638_v16, %v9223_v30  ;;  %v4422_v18 = vpop.f32.mrb[25].mxu1 }
0x14b9   : > { %v4431_v21 = vmul.f32 %v4422_v18, %v9223_v30 }
0x14ba   : > { %v4434_v22 = vsel %vm4249_vm11, -1e+30, %v4432_v17 }
0x14bb   : > { %v4438_v24 = vsel %vm1880_vm3, %v4434_v22, -inf  ;;  %v4433_v38 = vsel %vm4248_vm12, -1e+30, %v4431_v21 }
0x14bc   : > { %4439 = vmax.xlane.f32.xlu1 %v4438_v24  ;;  %v4435_v20 = vsel %vm1880_vm3, %v4433_v38, -inf }
0x14bd   : > { %4436 = vmax.xlane.f32.xlu0 %v4435_v20 }
0x14bf   : > { %v7652_v25 = vpop.f32.mrb[26].mxu1 }
0x14c0   : > { %v4626_v5 = vpop.f32.mrb[27].mxu1  ;;  %v4636_v26 = vmul.f32 %v7652_v25, %v9223_v30 }
0x14c1   : > { %v4635_v28 = vmul.f32 %v4626_v5, %v9223_v30 }
0x14c2   : > { %v4638_v33 = vsel %vm4249_vm11, -1e+30, %v4636_v26 }
0x14c3   : > { %v4637_v4 = vsel %vm4248_vm12, -1e+30, %v4635_v28  ;;  %v4642_v34 = vsel %vm1880_vm3, %v4638_v33, -inf }
0x14c4   : > { %v4639_v31 = vsel %vm1880_vm3, %v4637_v4, -inf }
0x14c5   : > { %4640 = vmax.xlane.f32.xlu0 %v4639_v31 }
0x14c9   : > { %4643 = vmax.xlane.f32.xlu0 %v4642_v34 }
0x14cd   : > { %8263 = vrot.lane.b32.xlu1 %v9430_v61, %s9954_s3  ;;  %s9955_s3 = smov 80  }
0x1549   : > { %v4440_v35 = vpop.xlane.xlu1 %4439 }
0x154a   : > { %v4442_v36 = vsub.f32 %v4434_v22, %v4440_v35  ;;  %v4437_v37 = vpop.xlane.xlu0 %4436 }
0x154b   : > { %v4441_v39 = vsub.f32 %v4433_v38, %v4437_v37 }
0x154c   : > { %v4445_v40 = vmul.f32 1.442695, %v4442_v36 }
0x154d   : > { %v4443_v41 = vmul.f32 1.442695, %v4441_v39  ;;  %v8264_v42 = vpop.permute.xlu1 %8263 }
0x154e   : > { %8365 = vpow2.f32 %v4445_v40  ;;  %v8266_v14 = vunpack.i.h.bf16 %v8264_v42  ;;  %v8265_v15 = vunpack.i.l.bf16 %v8264_v42 }
0x154f   : > { %8367 = vpow2.f32 %v4443_v41 }
0x1550   : > { %v7935_v44 = vpack.c.bf16 %v8266_v14, %v8265_v15 }
0x1552   : > { %7936 = vmatprep.subr.bf16.mxu0 %v7935_v44  ;;  %v4641_v45 = vpop.xlane.xlu0 %4640 }
0x1553   : > { %7938 = vmatpush3.bf16.msra.mxu0 %v7935_v44  ;;  %v4645_v60 = vsub.f32 %v4637_v4, %v4641_v45 }
0x1555   : > { %v4647_v62 = vmul.f32 1.442695, %v4645_v60 }
0x1556   : > { %v4644_v46 = vpop.xlane.xlu0 %4643 }
0x1557   : > { %v4646_v47 = vsub.f32 %v4638_v33, %v4644_v46 }
0x1558   : > { %v8366_v48 = vpop.eup %8365 }
0x1559   : > { %v8368_v49 = vpop.eup %8367  ;;  %v4649_v50 = vmul.f32 1.442695, %v4646_v47  ;;  %v4450_v53 = vsel %vm1880_vm3, %v8366_v48, 0.0 }
0x155a   : > { %4451 = vadd.xlane.f32.xlu0 %v4450_v53  ;;  %v4447_v54 = vsel %vm1880_vm3, %v8368_v49, 0.0 }
0x155b   : > { %8369 = vpow2.f32 %v4649_v50  ;;  %4448 = vadd.xlane.f32.xlu1 %v4447_v54 }
0x155c   : > { %8371 = vpow2.f32 %v4647_v62 }
0x1565   : > { %v8370_v58 = vpop.eup %8369 }
0x1566   : > { %v4654_v51 = vsel %vm1880_vm3, %v8370_v58, 0.0  ;;  %v8372_v63 = vpop.eup %8371 }
0x1567   : > { %4655 = vadd.xlane.f32.xlu0 %v4654_v51  ;;  %v4651_v0 = vsel %vm1880_vm3, %v8372_v63, 0.0 }
0x156c   : > { %8273 = vrot.lane.b32.xlu1 %v9430_v61, %s9955_s3 }
0x157d   : > { %8268 = vrot.lane.b32.xlu0 %v9430_v61, %s9956_s5  ;;  %s9958_s5 = smov 72  }
0x1581   : > { %4750 = vrot.lane.b32.xlu0 %v9422_v59, %s9957_s6 }
0x1590   : > { %4652 = vadd.xlane.f32.xlu1 %v4651_v0 }
0x15a1   : > { %4748 = vrot.lane.b32.xlu1 %v9424_v23, %s9957_s6 }
0x15e7   : > { %v4452_v1 = vpop.xlane.xlu0 %4451 }
0x15e8   : > { %8373 = vrcp.f32 %v4452_v1  ;;  %v4449_v2 = vpop.xlane.xlu1 %4448 }
0x15e9   : > { %8375 = vrcp.f32 %v4449_v2 }
0x15ec   : > { %v8274_v16 = vpop.permute.xlu1 %8273 }
0x15ed   : > { %v8276_v18 = vunpack.i.h.bf16 %v8274_v16  ;;  %v8275_v21 = vunpack.i.l.bf16 %v8274_v16 }
0x15ef   : > { %v7949_v20 = vpack.c.bf16 %v8276_v18, %v8275_v21 }
0x15f2   : > { %v8374_v6 = vpop.eup %8373 }
0x15f3   : > { %v8376_v7 = vpop.eup %8375  ;;  %v4456_v10 = vmul.f32 %v8374_v6, %v8366_v48 }
0x15f4   : > { %v4656_v8 = vpop.xlane.xlu0 %4655  ;;  %v4454_v9 = vmul.f32 %v8376_v7, %v8368_v49 }
0x15f5   : > { %8377 = vrcp.f32 %v4656_v8 }
0x15f6   : > { %7643 = vmatprep.mubr.msk.f32.mxu0 %vm1880_vm3, %v4454_v9 }
0x15f7   : > { %7644 = vmatmul.mubr.msk.f32.vlgmr.msra.gmra.mrb[22].mxu0 %vm1880_vm3, %v4456_v10 }
0x15f8   : > { %v8269_v17 = vpop.permute.xlu0 %8268 }
0x15f9   : > { %v8271_v22 = vunpack.i.h.bf16 %v8269_v17  ;;  %v8270_v24 = vunpack.i.l.bf16 %v8269_v17 }
0x15fb   : > { %v7945_v38 = vpack.c.bf16 %v8271_v22, %v8270_v24 }
0x15fc   : > { %v4751_v33 = vpop.permute.xlu0 %4750 }
0x15fd   : > { %7946 = vmatprep.subr.bf16.mxu0 %v7945_v38 }
0x15fe   : > { %7948 = vmatpush3.bf16.msra.mxu0 %v7945_v38 }
0x15ff   : > { %7951 = vmatprep.subr.msk.bf16.mxu0 %vm9210_vm8, %v7949_v20  ;;  %v8378_v5 = vpop.eup %8377 }
0x1600   : > { %v4660_v4 = vmul.f32 %v8378_v5, %v8370_v58 }
0x161d   : > { %v4653_v25 = vpop.xlane.xlu1 %4652 }
0x161e   : > { %8379 = vrcp.f32 %v4653_v25 }
0x1621   : > { %v4749_v31 = vpop.permute.xlu1 %4748 }
0x1628   : > { %v8380_v26 = vpop.eup %8379 }
0x1629   : > { %v4658_v28 = vmul.f32 %v8380_v26, %v8372_v63 }
0x162b   : > { %7657 = vmatprep.mubr.msk.f32.mxu0 %vm1880_vm3, %v4658_v28 }
0x162c   : > { %7658 = vmatmul.mubr.msk.f32.vlgmr.msra.gmra.mrb[24].mxu0 %vm1880_vm3, %v4660_v4 }
0x162d   : > { %7954 = vmatpush3.bf16.xpose.msk.msra.mxu0 %vm9210_vm8, %v7949_v20  ;;  %7664 = vmatprep.mubr.msk.f32.mxu0 %vm2718_vm7, %v4749_v31 }
0x1634   : > { %7665 = vmatmul.mubr.msk.f32.vlgmr.msra.gmra.mrb[26].mxu0 %vm2718_vm7, %v4751_v33 }
0x16ca   : > { %v9506_v34 = vpop.f32.mrb[22].mxu0 }
0x16cb   : > { %v9508_v35 = vpop.f32.mrb[23].mxu0 }
0x16ff   : > { %v9510_v36 = vpop.f32.mrb[24].mxu0 }
0x1700   : > { %v9512_v37 = vpop.f32.mrb[25].mxu0 }
0x1707   : > { %v7666_v39 = vpop.f32.mrb[26].mxu0 }
0x1708   : > { %v4840_v40 = vmul.f32 %v7666_v39, %v9223_v30  ;;  %v4830_v41 = vpop.f32.mrb[27].mxu0 }
0x1709   : > { %v4839_v42 = vmul.f32 %v4830_v41, %v9223_v30 }
0x170a   : > { %v4842_v14 = vsel %vm4249_vm11, -1e+30, %v4840_v40 }
0x170b   : > { %v4846_v15 = vsel %vm1880_vm3, %v4842_v14, -inf  ;;  %v4841_v44 = vsel %vm4248_vm12, -1e+30, %v4839_v42 }
0x170c   : > { %4847 = vmax.xlane.f32.xlu0 %v4846_v15  ;;  %v4843_v45 = vsel %vm1880_vm3, %v4841_v44, -inf }
0x170d   : > { %4844 = vmax.xlane.f32.xlu1 %v4843_v45 }
0x1799   : > { %v4848_v46 = vpop.xlane.xlu0 %4847 }
0x179a   : > { %v4850_v47 = vsub.f32 %v4842_v14, %v4848_v46  ;;  %v4845_v48 = vpop.xlane.xlu1 %4844 }
0x179b   : > { %v4849_v49 = vsub.f32 %v4841_v44, %v4845_v48 }
0x179c   : > { %v4853_v50 = vmul.f32 1.442695, %v4850_v47 }
0x179d   : > { %v4851_v53 = vmul.f32 1.442695, %v4849_v49 }
0x179e   : > { %8381 = vpow2.f32 %v4853_v50 }
0x179f   : > { %8383 = vpow2.f32 %v4851_v53  ;;  %v5186_v53 = vld [vmem:[%s9964_s12] sm:$0xff] }
0x17a8   : > { %v8382_v54 = vpop.eup %8381 }
0x17a9   : > { %v8384_v58 = vpop.eup %8383  ;;  %v4858_v51 = vsel %vm1880_vm3, %v8382_v54, 0.0 }
0x17aa   : > { %4859 = vadd.xlane.f32.xlu1 %v4858_v51  ;;  %v4855_v60 = vsel %vm1880_vm3, %v8384_v58, 0.0 }
0x17ab   : > { %4856 = vadd.xlane.f32.xlu0 %v4855_v60  ;;  %v5189_v60 = vld [vmem:[%s9964_s12 + $0x18] sm:$0xff] }
0x17bb   : > { %8283 = vrot.lane.b32.xlu1 %v9430_v61, %s9958_s5 }
0x17bf   : > { %4952 = vrot.lane.b32.xlu1 %v9424_v23, %s9959_s8 }
0x17c1   : > { %8278 = vrot.lane.b32.xlu0 %v9430_v61, %s9960_s9  ;;  %s9961_s9 = smov 8  }
0x17c5   : > { %4954 = vrot.lane.b32.xlu0 %v9422_v59, %s9959_s8 }
0x1837   : > { %v4860_v62 = vpop.xlane.xlu1 %4859 }
0x1838   : > { %8385 = vrcp.f32 %v4860_v62  ;;  %v4857_v63 = vpop.xlane.xlu0 %4856 }
0x1839   : > { %8387 = vrcp.f32 %v4857_v63 }
0x183b   : > { %v8284_v0 = vpop.permute.xlu1 %8283 }
0x183c   : > { %v8279_v1 = vpop.permute.xlu0 %8278  ;;  %v8286_v2 = vunpack.i.h.bf16 %v8284_v0  ;;  %v8285_v6 = vunpack.i.l.bf16 %v8284_v0 }
0x183d   : > { %v8281_v7 = vunpack.i.h.bf16 %v8279_v1  ;;  %v8280_v8 = vunpack.i.l.bf16 %v8279_v1 }
0x183e   : > { %v7959_v10 = vpack.c.bf16 %v8286_v2, %v8285_v6 }
0x183f   : > { %v7955_v9 = vpack.c.bf16 %v8281_v7, %v8280_v8  ;;  %v4953_v18 = vpop.permute.xlu1 %4952 }
0x1840   : > { %v4955_v21 = vpop.permute.xlu0 %4954 }
0x1841   : > { %7956 = vmatprep.subr.bf16.mxu1 %v7955_v9 }
0x1842   : > { %v8386_v23 = vpop.eup %8385  ;;  %7958 = vmatpush3.bf16.msra.mxu1 %v7955_v9 }
0x1843   : > { %v8388_v16 = vpop.eup %8387  ;;  %7961 = vmatprep.subr.msk.bf16.mxu1 %vm9210_vm8, %v7959_v10  ;;  %v4864_v17 = vmul.f32 %v8386_v23, %v8382_v54  ;;  %v5187_v54 = vld [vmem:[%s9964_s12 + $0x8] sm:$0xff] }
0x1844   : > { %v4862_v59 = vmul.f32 %v8388_v16, %v8384_v58  ;;  %v5188_v58 = vld [vmem:[%s9964_s12 + $0x10] sm:$0xff]  ;;  %v7969_v51 = vpack.c.bf16 %v5187_v54, %v5186_v53  ;;  %s9968_s12 = sld [smem:[#allocation46_spill]] }
0x1845   : > { %v7973_v62 = vpack.c.bf16 %v5189_v60, %v5188_v58 }
0x1846   : > { %7671 = vmatprep.mubr.msk.f32.mxu1 %vm1880_vm3, %v4862_v59 }
0x1847   : > { %7672 = vmatmul.mubr.msk.f32.vlgmr.msra.gmra.mrb[28].mxu1 %vm1880_vm3, %v4864_v17 }
0x1848   : > { %7678 = vmatprep.mubr.msk.f32.mxu1 %vm2718_vm7, %v4953_v18 }
0x184b   : > { %7964 = vmatpush3.bf16.xpose.msk.msra.mxu1 %vm9210_vm8, %v7959_v10 }
0x1852   : > { %7679 = vmatmul.mubr.msk.f32.vlgmr.msra.gmra.mrb[30].mxu1 %vm2718_vm7, %v4955_v21 }
0x191a   : > { %v7673_v22 = vpop.f32.mrb[28].mxu1 }
0x191b   : > { %v4943_v24 = vpop.f32.mrb[29].mxu1 }
0x1925   : > { %v7680_v38 = vpop.f32.mrb[30].mxu1 }
0x1926   : > { %v5044_v20 = vmul.f32 %v7680_v38, %v9223_v30  ;;  %v5034_v25 = vpop.f32.mrb[31].mxu1 }
0x1927   : > { %v5043_v5 = vmul.f32 %v5034_v25, %v9223_v30 }
0x1928   : > { %v5046_v26 = vsel %vm4249_vm11, -1e+30, %v5044_v20 }
0x1929   : > { %v5050_v28 = vsel %vm1880_vm3, %v5046_v26, -inf  ;;  %v5045_v4 = vsel %vm4248_vm12, -1e+30, %v5043_v5 }
0x192a   : > { %5051 = vmax.xlane.f32.xlu0 %v5050_v28  ;;  %v5047_v31 = vsel %vm1880_vm3, %v5045_v4, -inf }
0x192b   : > { %5048 = vmax.xlane.f32.xlu1 %v5047_v31 }
0x19b7   : > { %v5052_v33 = vpop.xlane.xlu0 %5051 }
0x19b8   : > { %v5054_v39 = vsub.f32 %v5046_v26, %v5052_v33  ;;  %v5049_v40 = vpop.xlane.xlu1 %5048 }
0x19b9   : > { %v5053_v41 = vsub.f32 %v5045_v4, %v5049_v40 }
0x19ba   : > { %v5057_v42 = vmul.f32 1.442695, %v5054_v39 }
0x19bb   : > { %v5055_v14 = vmul.f32 1.442695, %v5053_v41 }
0x19bc   : > { %8389 = vpow2.f32 %v5057_v42 }
0x19bd   : > { %8391 = vpow2.f32 %v5055_v14 }
0x19c6   : > { %v8390_v11 = vpop.eup %8389 }
0x19c7   : > { %v8392_v15 = vpop.eup %8391  ;;  %v5062_v44 = vsel %vm1880_vm3, %v8390_v11, 0.0 }
0x19c8   : > { %5063 = vadd.xlane.f32.xlu1 %v5062_v44  ;;  %v5059_v43 = vsel %vm1880_vm3, %v8392_v15, 0.0 }
0x19c9   : > { %5060 = vadd.xlane.f32.xlu0 %v5059_v43 }
0x19d9   : > { %5158 = vrot.lane.b32.xlu1 %v9512_v37, %s9961_s9 }
0x19dd   : > { %5160 = vrot.lane.b32.xlu1 %v9510_v36, %s9961_s9 }
0x19df   : > { %8288 = vrot.lane.b32.xlu0 %v9430_v61, %s9962_s10  ;;  %s9965_s10 = sld [smem:[#allocation37_spill]] }
0x19e1   : > { %5168 = vrot.lane.b32.xlu1 %v7673_v22, %s9963_s11 }
0x19e3   : > { %5166 = vrot.lane.b32.xlu0 %v4943_v24, %s9963_s11 }
0x19e5   : > { %v7126_v1 = vld [vmem:[%s9965_s10] ss:$0 sm:$0xff]  ;;  %s9967_s10 = sld [smem:[#allocation39_spill]] }
0x19e6   : > { %v3883_v2 = vadd.f32 %v7126_v1, %v9419_v52  ;;  %v3888_v6 = vadd.f32 %v9417_v57, %v7126_v1 }
0x19e8   : > { %v3892_v7 = vadd.f32 %v3883_v2, %v9367_v13  ;;  %v3893_v9 = vadd.f32 %v3888_v6, %v9373_v19 }
0x19ea   : > { %v3894_v8 = vsel %vm2630_vm6, %v3892_v7, 0.0  ;;  %v3897_v10 = vsel %vm2630_vm6, %v3893_v9, 0.0 }
0x19eb   : > { %v3891_v44 = vld [vmem:[%s9967_s10] sm:$0x3]  ;;  %s9970_s10 = sld [smem:[#allocation47_spill]] }
0x19ec   : > { %v3923_v43 = vrot.slane %v3891_v44, %v9221_v29 }
0x1a55   : > { %v5064_v12 = vpop.xlane.xlu1 %5063 }
0x1a56   : > { %8393 = vrcp.f32 %v5064_v12  ;;  %v5061_v45 = vpop.xlane.xlu0 %5060 }
0x1a57   : > { %8395 = vrcp.f32 %v5061_v45  ;;  %v7169_v45 = vld [vmem:[%s9968_s12] ss:$0 sm:$0xff]  ;;  %s9969_s12 = sld [smem:[#allocation49_spill]] }
0x1a59   : > { %v5159_v23 = vpop.permute.xlu1 %5158 }
0x1a5a   : > { %v8289_v46 = vpop.permute.xlu0 %8288  ;;  %v5180_v18 = vsel %vm2718_vm7, %v9508_v35, %v5159_v23 }
0x1a5b   : > { %v8291_v37 = vunpack.i.h.bf16 %v8289_v46  ;;  %v8290_v47 = vunpack.i.l.bf16 %v8289_v46 }
0x1a5d   : > { %v7965_v48 = vpack.c.bf16 %v8291_v37, %v8290_v47  ;;  %v5161_v16 = vpop.permute.xlu1 %5160  ;;  %v3929_v37 = vrot.slane %v3891_v44, %v9363_v3 }
0x1a5e   : > { %v5167_v17 = vpop.permute.xlu0 %5166  ;;  %v5181_v57 = vsel %vm2718_vm7, %v9506_v34, %v5161_v16 }
0x1a5f   : > { %7966 = vmatprep.subr.bf16.mxu0 %v7965_v48  ;;  %v5182_v13 = vsel %vm1880_vm3, %v5180_v18, %v5167_v17 }
0x1a60   : > { %v8394_v36 = vpop.eup %8393  ;;  %7968 = vmatpush3.bf16.msra.mxu0 %v7965_v48 }
0x1a61   : > { %v8396_v61 = vpop.eup %8395  ;;  %v5068_v50 = vmul.f32 %v8394_v36, %v8390_v11  ;;  %7970 = vmatprep.subr.bf16.mxu0 %v7969_v51  ;;  %v5169_v59 = vpop.permute.xlu1 %5168 }
0x1a62   : > { %v5066_v49 = vmul.f32 %v8396_v61, %v8392_v15  ;;  %v5183_v19 = vsel %vm1880_vm3, %v5181_v57, %v5169_v59 }
0x1a64   : > { %7685 = vmatprep.mubr.msk.f32.mxu0 %vm1880_vm3, %v5066_v49 }
0x1a65   : > { %7686 = vmatmul.mubr.msk.f32.vlgmr.msra.gmra.mrb[28].mxu0 %vm1880_vm3, %v5068_v50 }
0x1a66   : > { %7972 = vmatpush3.bf16.msra.mxu0 %v7969_v51 }
0x1a67   : > { %7974 = vmatprep.subr.bf16.mxu0 %v7973_v62 }
0x1a6a   : > { %7976 = vmatpush3.bf16.msra.mxu0 %v7973_v62 }
0x1b38   : > { %v7687_v63 = vpop.f32.mrb[28].mxu0 }
0x1b39   : > { %5176 = vrot.lane.b32.xlu1 %v7687_v63, %s9966_s13  ;;  %v5147_v0 = vpop.f32.mrb[29].mxu0 }
0x1b3a   : > { %5174 = vrot.lane.b32.xlu0 %v5147_v0, %s9966_s13 }
0x1b59   : > { %3895 = vadd.xlane.f32.xlu0 %v3894_v8 }
0x1b5d   : > { %3898 = vadd.xlane.f32.xlu1 %v3897_v10 }
0x1bab   : > { %v5177_v52 = vpop.permute.xlu1 %5176 }
0x1bac   : > { %v5175_v21 = vpop.permute.xlu0 %5174  ;;  %v5185_v24 = vsel %vm3563_vm9, %v5183_v19, %v5177_v52 }
0x1bad   : > { %v5184_v22 = vsel %vm3563_vm9, %v5182_v13, %v5175_v21 }
0x1bae   : > { %7696 = vmatprep.mubr.msk.f32.mxu0 %vm2630_vm6, %v5184_v22 }
0x1baf   : > { %7697 = vmatmul.mubr.msk.f32.vlgmr.msra.gmra.mrb[30].mxu0 %vm2630_vm6, %v5185_v24  ;;  %v5411_v24 = vld [vmem:[%s9969_s12] sm:$0xff] }
0x1be6   : > { %v3896_v38 = vpop.xlane.xlu0 %3895 }
0x1be7   : > { %v3900_v20 = vmul.f32 0.03125, %v3896_v38  ;;  %v5412_v38 = vld [vmem:[%s9969_s12 + $0x8] sm:$0xff] }
0x1be9   : > { %v3902_v35 = vsub.f32 %v3892_v7, %v3900_v20  ;;  %v7985_v20 = vpack.c.bf16 %v5412_v38, %v5411_v24 }
0x1bea   : > { %v3899_v25 = vpop.xlane.xlu1 %3898 }
0x1beb   : > { %v3901_v5 = vmul.f32 0.03125, %v3899_v25  ;;  %v3904_v26 = vmul.f32 %v3902_v35, %v3902_v35  ;;  %7986 = vmatprep.subr.bf16.mxu0 %v7985_v20  ;;  %v5320_v25 = vld [vmem:[%s9970_s10 + $0x8] sm:$0xff] }
0x1bec   : > { %7988 = vmatpush3.bf16.msra.mxu0 %v7985_v20 }
0x1bed   : > { %v3903_v34 = vsub.f32 %v3893_v9, %v3901_v5  ;;  %v3906_v28 = vsel %vm2630_vm6, %v3904_v26, 0.0  ;;  %v5413_v5 = vld [vmem:[%s9969_s12 + $0x10] sm:$0xff] }
0x1bee   : > { %3907 = vadd.xlane.f32.xlu0 %v3906_v28 }
0x1bef   : > { %v3905_v4 = vmul.f32 %v3903_v34, %v3903_v34 }
0x1bf1   : > { %v3909_v31 = vsel %vm2630_vm6, %v3905_v4, 0.0  ;;  %v5321_v4 = vld [vmem:[%s9970_s10 + $0x10] sm:$0xff] }
0x1bf2   : > { %3910 = vadd.xlane.f32.xlu0 %v3909_v31  ;;  %v5322_v31 = vld [vmem:[%s9970_s10 + $0x18] sm:$0xff] }
0x1c7b   : > { %v3908_v33 = vpop.xlane.xlu0 %3907 }
0x1c7c   : > { %v3912_v39 = vmul.f32 0.03125, %v3908_v33  ;;  %v7981_v33 = vpack.c.bf16 %v5322_v31, %v5321_v4 }
0x1c7e   : > { %v3914_v40 = vadd.f32 1e-05, %v3912_v39 }
0x1c7f   : > { %v3911_v41 = vpop.xlane.xlu0 %3910 }
0x1c80   : > { %8397 = vrsqrt.f32 %v3914_v40  ;;  %v3913_v42 = vmul.f32 0.03125, %v3911_v41 }
0x1c82   : > { %v3915_v14 = vadd.f32 1e-05, %v3913_v42  ;;  %v7698_v11 = vpop.f32.mrb[30].mxu0 }
0x1c83   : > { %v5269_v15 = vpop.f32.mrb[31].mxu0  ;;  %v5275_v50 = vadd.f32 %v7698_v11, %v7169_v45 }
0x1c84   : > { %8399 = vrsqrt.f32 %v3915_v14  ;;  %v5270_v47 = vadd.f32 %v7169_v45, %v5269_v15 }
0x1c85   : > { %v5280_v63 = vadd.f32 %v5275_v50, %v9411_v56 }
0x1c86   : > { %v5279_v54 = vadd.f32 %v5270_v47, %v9409_v55  ;;  %v7129_v47 = vld [vmem:[%s9971_s14] ss:$0 sm:$0xff] }
0x1c87   : > { %v5284_v0 = vsel %vm2630_vm6, %v5280_v63, 0.0 }
0x1c88   : > { %v5281_v60 = vsel %vm2630_vm6, %v5279_v54, 0.0 }
0x1c8a   : > { %v8398_v12 = vpop.eup %8397 }
0x1c8b   : > { %v3918_v46 = vmul.f32 %v8398_v12, %v3902_v35  ;;  %v5319_v35 = vld [vmem:[%s9970_s10] sm:$0xff] }
0x1c8c   : > { %v7977_v26 = vpack.c.bf16 %v5320_v25, %v5319_v35 }
0x1c8d   : > { %v3924_v48 = vmul.f32 %v3923_v43, %v3918_v46 }
0x1c8e   : > { %v8400_v36 = vpop.eup %8399  ;;  %7978 = vmatprep.subr.bf16.mxu1 %v7977_v26 }
0x1c8f   : > { %v3930_v61 = vadd.f32 %v3929_v37, %v3924_v48  ;;  %v3919_v49 = vmul.f32 %v8400_v36, %v3903_v34  ;;  %v5414_v34 = vld [vmem:[%s9969_s12 + $0x18] sm:$0xff]  ;;  %7980 = vmatpush3.bf16.msra.mxu1 %v7977_v26  ;;  %v5278_v48 = vld [vmem:[%s9972_s15] sm:$0x3]  ;;  %s9977_s15 = sld [smem:[#allocation56_spill]] }
0x1c90   : > { %v7989_v28 = vpack.c.bf16 %v5414_v34, %v5413_v5  ;;  %7982 = vmatprep.subr.bf16.mxu1 %v7981_v33  ;;  %v5310_v50 = vrot.slane %v5278_v48, %v9221_v29 }
0x1c91   : > { %v3934_v53 = vsel %vm2630_vm6, %v3930_v61, 0.0  ;;  %v3925_v58 = vmul.f32 %v3923_v43, %v3919_v49 }
0x1c92   : > { %3935 = vadd.xlane.f32.xlu1 %v3934_v53  ;;  %7990 = vmatprep.subr.bf16.mxu0 %v7989_v28 }
0x1c93   : > { %v3931_v51 = vadd.f32 %v3929_v37, %v3925_v58  ;;  %7992 = vmatpush3.bf16.msra.mxu0 %v7989_v28  ;;  %7984 = vmatpush3.bf16.msra.mxu1 %v7981_v33 }
0x1c95   : > { %v3937_v62 = vsel %vm2630_vm6, %v3931_v51, 0.0 }
0x1c96   : > { %5282 = vadd.xlane.f32.xlu1 %v5281_v60  ;;  %3938 = vadd.xlane.f32.xlu0 %v3937_v62  ;;  %v5316_v60 = vrot.slane %v5278_v48, %v9363_v3 }
0x1c9a   : > { %5285 = vadd.xlane.f32.xlu0 %v5284_v0 }
0x1d1f   : > { %v3936_v1 = vpop.xlane.xlu1 %3935 }
0x1d20   : > { %v3940_v2 = vmul.f32 0.03125, %v3936_v1 }
0x1d22   : > { %v3942_v6 = vsub.f32 %v3930_v61, %v3940_v2  ;;  %v7130_v61 = vld [vmem:[%s9971_s14 + $0x1] ss:$0 sm:$0xff] }
0x1d23   : > { %v5283_v7 = vpop.xlane.xlu1 %5282  ;;  %v3939_v8 = vpop.xlane.xlu0 %3938 }
0x1d24   : > { %v5287_v55 = vmul.f32 0.03125, %v5283_v7  ;;  %v3941_v9 = vmul.f32 0.03125, %v3939_v8  ;;  %v3944_v10 = vmul.f32 %v3942_v6, %v3942_v6 }
0x1d26   : > { %v5289_v23 = vsub.f32 %v5279_v54, %v5287_v55  ;;  %v9599_v16 = vsub.f32 %v3931_v51, %v3941_v9  ;;  %v3946_v56 = vsel %vm2630_vm6, %v3944_v10, 0.0  ;;  %v7175_v9 = vld [vmem:[#allocation4] ss:$0 sm:$0xff] }
0x1d27   : > { %3947 = vadd.xlane.f32.xlu1 %v3946_v56  ;;  %v5286_v59 = vpop.xlane.xlu0 %5285 }
0x1d28   : > { %v5288_v17 = vmul.f32 0.03125, %v5286_v59  ;;  %v5291_v18 = vmul.f32 %v5289_v23, %v5289_v23  ;;  %v3945_v52 = vmul.f32 %v9599_v16, %v9599_v16  ;;  %v7172_v59 = vld [vmem:[#allocation2] ss:$0 sm:$0xff] }
0x1d2a   : > { %v5290_v57 = vsub.f32 %v5280_v63, %v5288_v17  ;;  %v5293_v13 = vsel %vm2630_vm6, %v5291_v18, 0.0  ;;  %v3949_v21 = vsel %vm2630_vm6, %v3945_v52, 0.0 }
0x1d2b   : > { %5294 = vadd.xlane.f32.xlu1 %v5293_v13  ;;  %3950 = vadd.xlane.f32.xlu0 %v3949_v21 }
0x1d2c   : > { %v5292_v19 = vmul.f32 %v5290_v57, %v5290_v57 }
0x1d2e   : > { %v5296_v22 = vsel %vm2630_vm6, %v5292_v19, 0.0 }
0x1d2f   : > { %5297 = vadd.xlane.f32.xlu0 %v5296_v22 }
0x1db4   : > { %v3948_v39 = vpop.xlane.xlu1 %3947 }
0x1db5   : > { %v3952_v40 = vmul.f32 0.03125, %v3948_v39 }
0x1db7   : > { %v3954_v41 = vadd.f32 1e-05, %v3952_v40 }
0x1db8   : > { %v5295_v42 = vpop.xlane.xlu1 %5294  ;;  %v3951_v14 = vpop.xlane.xlu0 %3950 }
0x1db9   : > { %8401 = vrsqrt.f32 %v3954_v41  ;;  %v5299_v11 = vmul.f32 0.03125, %v5295_v42  ;;  %v3953_v15 = vmul.f32 0.03125, %v3951_v14 }
0x1dbb   : > { %v5301_v44 = vadd.f32 1e-05, %v5299_v11  ;;  %v3955_v43 = vadd.f32 1e-05, %v3953_v15 }
0x1dbc   : > { %v5298_v12 = vpop.xlane.xlu0 %5297 }
0x1dbd   : > { %8403 = vrsqrt.f32 %v5301_v44  ;;  %v5300_v45 = vmul.f32 0.03125, %v5298_v12 }
0x1dbe   : > { %8405 = vrsqrt.f32 %v3955_v43 }
0x1dbf   : > { %v5302_v46 = vadd.f32 1e-05, %v5300_v45 }
0x1dc1   : > { %8407 = vrsqrt.f32 %v5302_v46 }
0x1dc3   : > { %v8402_v37 = vpop.eup %8401 }
0x1dc4   : > { %v3958_v36 = vmul.f32 %v8402_v37, %v3942_v6 }
0x1dc6   : > { %v3964_v49 = vmul.f32 %v7129_v47, %v3958_v36 }
0x1dc7   : > { %v8404_v53 = vpop.eup %8403 }
0x1dc8   : > { %v8406_v54 = vpop.eup %8405  ;;  %v3970_v58 = vadd.f32 %v7130_v61, %v3964_v49  ;;  %v5305_v51 = vmul.f32 %v8404_v53, %v5289_v23 }
0x1dc9   : > { %v3959_v62 = vmul.f32 %v8406_v54, %v9599_v16 }
0x1dca   : > { %7718 = vmatprep.mubr.msk.f32.mxu0 %vm2630_vm6, %v3970_v58  ;;  %v5311_v63 = vmul.f32 %v5310_v50, %v5305_v51 }
0x1dcb   : > { %v8408_v0 = vpop.eup %8407  ;;  %v3965_v1 = vmul.f32 %v7129_v47, %v3959_v62 }
0x1dcc   : > { %v5306_v2 = vmul.f32 %v8408_v0, %v5290_v57  ;;  %v9622_v7 = vadd.f32 %v5316_v60, %v5311_v63 }
0x1dcd   : > { %v3971_v6 = vadd.f32 %v7130_v61, %v3965_v1 }
0x1dce   : > { %v5312_v8 = vmul.f32 %v5310_v50, %v5306_v2  ;;  %7707 = vmatprep.mubr.msk.f32.mxu1 %vm2630_vm6, %v9622_v7 }
0x1dcf   : > { %7719 = vmatmul.mubr.msk.f32.vlgmr.msra.gmra.mrb[32].mxu0 %vm2630_vm6, %v3971_v6 }
0x1dd0   : > { %v9627_v55 = vadd.f32 %v5316_v60, %v5312_v8 }
0x1dd2   : > { %7708 = vmatmul.mubr.msk.f32.vlgmr.msra.gmra.mrb[32].mxu1 %vm2630_vm6, %v9627_v55 }
0x1ea2   : > { %v7720_v10 = vpop.f32.mrb[32].mxu0 }
0x1ea3   : > { %v5500_v23 = vadd.f32 %v7720_v10, %v7175_v9  ;;  %v5494_v16 = vpop.f32.mrb[33].mxu0 }
0x1ea4   : > { %v5495_v56 = vadd.f32 %v7175_v9, %v5494_v16 }
0x1ea5   : > { %v7709_v17 = vpop.f32.mrb[32].mxu1 }
0x1ea6   : > { %v5402_v18 = vpop.f32.mrb[33].mxu1  ;;  %v9631_v52 = vpack.i.bf16 %v5500_v23, %v5495_v56  ;;  %v7993_v57 = vpack.c.bf16 %v5500_v23, %v5495_v56  ;;  %v9643_v21 = vadd.f32 %v7709_v17, %v7172_v59 }
0x1ea7   : > { %v9633_v13 = vadd.f32 %v7172_v59, %v5402_v18 }
0x1ea8   : > { %8293 = vrot.lane.b32.xlu1 %v9631_v52, %s9953_s2  ;;  %7995 = vmatprep.subr.msk.bf16.mxu1 %vm9210_vm8, %v7993_v57 }
0x1ea9   : > { %7998 = vmatpush3.bf16.xpose.msk.msra.mxu1 %vm9210_vm8, %v7993_v57  ;;  %5703 = vrot.lane.b32.xlu0 %v9633_v13, %s9953_s2 }
0x1eaa   : > { %7725 = vmatprep.mubr.msk.f32.mxu1 %vm2718_vm7, %v9633_v13 }
0x1eac   : > { %5705 = vrot.lane.b32.xlu1 %v9643_v21, %s9953_s2 }
0x1eb0   : > { %7726 = vmatmul.mubr.msk.f32.vlgmr.msra.gmra.mrb[34].mxu1 %vm2718_vm7, %v9643_v21 }
0x1f1a   : > { %v8294_v19 = vpop.permute.xlu1 %8293 }
0x1f1b   : > { %v8296_v22 = vunpack.i.h.bf16 %v8294_v19  ;;  %v8295_v24 = vunpack.i.l.bf16 %v8294_v19  ;;  %v5704_v38 = vpop.permute.xlu0 %5703 }
0x1f1c   : > { %7739 = vmatprep.mubr.msk.f32.mxu1 %vm2718_vm7, %v5704_v38 }
0x1f1d   : > { %v8003_v20 = vpack.c.bf16 %v8296_v22, %v8295_v24 }
0x1f1e   : > { %v5706_v35 = vpop.permute.xlu1 %5705 }
0x1f1f   : > { %8005 = vmatprep.subr.msk.bf16.mxu1 %vm9210_vm8, %v8003_v20 }
0x1f20   : > { %8008 = vmatpush3.bf16.xpose.msk.msra.mxu1 %vm9210_vm8, %v8003_v20 }
0x1f27   : > { %7740 = vmatmul.mubr.msk.f32.vlgmr.msra.gmra.mrb[36].mxu1 %vm2718_vm7, %v5706_v35 }
0x1f83   : > { %v7727_v25 = vpop.f32.mrb[34].mxu1 }
0x1f84   : > { %v5591_v5 = vmul.f32 %v7727_v25, %v9223_v30  ;;  %v5581_v26 = vpop.f32.mrb[35].mxu1 }
0x1f85   : > { %v5590_v34 = vmul.f32 %v5581_v26, %v9223_v30 }
0x1f86   : > { %v5593_v28 = vadd.f32 %v5591_v5, %v9226_v32 }
0x1f87   : > { %v5592_v4 = vadd.f32 %v5590_v34, %v9226_v32 }
0x1f88   : > { %v5597_v31 = vsel %vm1880_vm3, %v5593_v28, -inf }
0x1f89   : > { %5598 = vmax.xlane.f32.xlu0 %v5597_v31  ;;  %v5594_v33 = vsel %vm1880_vm3, %v5592_v4, -inf }
0x1f8a   : > { %5595 = vmax.xlane.f32.xlu1 %v5594_v33 }
0x1ffa   : > { %v7741_v39 = vpop.f32.mrb[36].mxu1 }
0x1ffb   : > { %v5795_v40 = vmul.f32 %v7741_v39, %v9223_v30  ;;  %v5785_v41 = vpop.f32.mrb[37].mxu1 }
0x1ffc   : > { %v5794_v42 = vmul.f32 %v5785_v41, %v9223_v30 }
0x1ffd   : > { %v5797_v14 = vadd.f32 %v5795_v40, %v9226_v32 }
0x1ffe   : > { %v5796_v11 = vadd.f32 %v5794_v42, %v9226_v32 }
0x1fff   : > { %v5801_v15 = vsel %vm1880_vm3, %v5797_v14, -inf }
0x2000   : > { %5802 = vmax.xlane.f32.xlu1 %v5801_v15  ;;  %v5798_v44 = vsel %vm1880_vm3, %v5796_v11, -inf }
0x2001   : > { %5799 = vmax.xlane.f32.xlu0 %v5798_v44 }
0x2016   : > { %v5599_v43 = vpop.xlane.xlu0 %5598 }
0x2017   : > { %v5601_v12 = vsub.f32 %v5593_v28, %v5599_v43  ;;  %v5596_v45 = vpop.xlane.xlu1 %5595 }
0x2018   : > { %v5600_v46 = vsub.f32 %v5592_v4, %v5596_v45 }
0x2019   : > { %v5604_v37 = vmul.f32 1.442695, %v5601_v12 }
0x201a   : > { %v5602_v47 = vmul.f32 1.442695, %v5600_v46 }
0x201b   : > { %8409 = vpow2.f32 %v5604_v37 }
0x201c   : > { %8411 = vpow2.f32 %v5602_v47 }
0x2025   : > { %v8410_v48 = vpop.eup %8409 }
0x2026   : > { %v8412_v36 = vpop.eup %8411  ;;  %v5609_v61 = vsel %vm1880_vm3, %v8410_v48, 0.0 }
0x2027   : > { %5610 = vadd.xlane.f32.xlu1 %v5609_v61  ;;  %v5606_v49 = vsel %vm1880_vm3, %v8412_v36, 0.0 }
0x2028   : > { %5607 = vadd.xlane.f32.xlu0 %v5606_v49 }
0x208d   : > { %v5803_v50 = vpop.xlane.xlu1 %5802 }
0x208e   : > { %v5805_v53 = vsub.f32 %v5797_v14, %v5803_v50  ;;  %v5800_v54 = vpop.xlane.xlu0 %5799 }
0x208f   : > { %v5804_v58 = vsub.f32 %v5796_v11, %v5800_v54 }
0x2090   : > { %v5808_v51 = vmul.f32 1.442695, %v5805_v53 }
0x2091   : > { %v5806_v60 = vmul.f32 1.442695, %v5804_v58 }
0x2092   : > { %8413 = vpow2.f32 %v5808_v51 }
0x2093   : > { %8415 = vpow2.f32 %v5806_v60 }
0x209c   : > { %v8414_v62 = vpop.eup %8413 }
0x209d   : > { %v8416_v63 = vpop.eup %8415  ;;  %v5813_v0 = vsel %vm1880_vm3, %v8414_v62, 0.0 }
0x209e   : > { %5814 = vadd.xlane.f32.xlu1 %v5813_v0  ;;  %v5810_v1 = vsel %vm1880_vm3, %v8416_v63, 0.0 }
0x209f   : > { %5811 = vadd.xlane.f32.xlu0 %v5810_v1 }
0x20af   : > { %8303 = vrot.lane.b32.xlu1 %v9631_v52, %s9951_s22 }
0x20b3   : > { %8308 = vrot.lane.b32.xlu1 %v9631_v52, %s9957_s6 }
0x20b4   : > { %v5611_v9 = vpop.xlane.xlu1 %5610 }
0x20b5   : > { %8298 = vrot.lane.b32.xlu0 %v9631_v52, %s9952_s1  ;;  %v5608_v2 = vpop.xlane.xlu0 %5607  ;;  %s1713_s1 = scalar_lea.vmem %s8961_s4, %s9145_s0 }
0x20b6   : > { %8417 = vrcp.f32 %v5608_v2 }
0x20b7   : > { %5909 = vrot.lane.b32.xlu1 %v9643_v21, %s9957_s6  ;;  %8419 = vrcp.f32 %v5611_v9 }
0x20b9   : > { %5907 = vrot.lane.b32.xlu0 %v9633_v13, %s9957_s6  ;;  %s9975_s6 = sld [smem:[#allocation52_spill]] }
0x20c0   : > { %v8418_v6 = vpop.eup %8417 }
0x20c1   : > { %v5613_v8 = vmul.f32 %v8418_v6, %v8412_v36  ;;  %v8420_v24 = vpop.eup %8419 }
0x20c2   : > { %v5615_v5 = vmul.f32 %v8420_v24, %v8410_v48 }
0x20c3   : > { %7732 = vmatprep.mubr.msk.f32.mxu0 %vm1880_vm3, %v5613_v8 }
0x212b   : > { %v5815_v10 = vpop.xlane.xlu1 %5814 }
0x212c   : > { %v5812_v23 = vpop.xlane.xlu0 %5811 }
0x212d   : > { %8421 = vrcp.f32 %v5812_v23 }
0x212e   : > { %8423 = vrcp.f32 %v5815_v10 }
0x212f   : > { %v8304_v16 = vpop.permute.xlu1 %8303 }
0x2130   : > { %v8299_v56 = vpop.permute.xlu0 %8298  ;;  %v8306_v59 = vunpack.i.h.bf16 %v8304_v16  ;;  %v8305_v17 = vunpack.i.l.bf16 %v8304_v16 }
0x2131   : > { %v8301_v18 = vunpack.i.h.bf16 %v8299_v56  ;;  %v8300_v57 = vunpack.i.l.bf16 %v8299_v56 }
0x2132   : > { %v8009_v38 = vpack.c.bf16 %v8306_v59, %v8305_v17 }
0x2133   : > { %v7999_v19 = vpack.c.bf16 %v8301_v18, %v8300_v57  ;;  %v8309_v22 = vpop.permute.xlu1 %8308 }
0x2134   : > { %v8311_v20 = vunpack.i.h.bf16 %v8309_v22  ;;  %v8310_v35 = vunpack.i.l.bf16 %v8309_v22  ;;  %v5908_v31 = vpop.permute.xlu0 %5907 }
0x2135   : > { %8000 = vmatprep.subr.bf16.mxu0 %v7999_v19 }
0x2136   : > { %8002 = vmatpush3.bf16.msra.mxu0 %v7999_v19  ;;  %v8013_v28 = vpack.c.bf16 %v8311_v20, %v8310_v35 }
0x2137   : > { %v8422_v25 = vpop.eup %8421  ;;  %8010 = vmatprep.subr.bf16.mxu0 %v8009_v38  ;;  %v5910_v33 = vpop.permute.xlu1 %5909 }
0x2138   : > { %v8424_v26 = vpop.eup %8423  ;;  %v5817_v34 = vmul.f32 %v8422_v25, %v8416_v63 }
0x2139   : > { %7733 = vmatmul.mubr.msk.f32.vlgmr.msra.gmra.mrb[34].mxu0 %vm1880_vm3, %v5615_v5  ;;  %v5819_v4 = vmul.f32 %v8424_v26, %v8414_v62 }
0x213a   : > { %8012 = vmatpush3.bf16.msra.mxu0 %v8009_v38  ;;  %7746 = vmatprep.mubr.msk.f32.mxu0 %vm1880_vm3, %v5817_v34 }
0x213b   : > { %8015 = vmatprep.subr.msk.bf16.mxu0 %vm9210_vm8, %v8013_v28 }
0x213d   : > { %7747 = vmatmul.mubr.msk.f32.vlgmr.msra.gmra.mrb[36].mxu0 %vm1880_vm3, %v5819_v4 }
0x213e   : > { %7753 = vmatprep.mubr.msk.f32.mxu0 %vm2718_vm7, %v5908_v31 }
0x2143   : > { %8018 = vmatpush3.bf16.xpose.msk.msra.mxu0 %vm9210_vm8, %v8013_v28 }
0x214a   : > { %7754 = vmatmul.mubr.msk.f32.vlgmr.msra.gmra.mrb[38].mxu0 %vm2718_vm7, %v5910_v33 }
0x220c   : > { %v9693_v39 = vpop.f32.mrb[34].mxu0 }
0x220d   : > { %v9695_v40 = vpop.f32.mrb[35].mxu0 }
0x2210   : > { %v9697_v41 = vpop.f32.mrb[36].mxu0 }
0x2211   : > { %v9699_v42 = vpop.f32.mrb[37].mxu0 }
0x221d   : > { %v7755_v14 = vpop.f32.mrb[38].mxu0 }
0x221e   : > { %v5999_v11 = vmul.f32 %v7755_v14, %v9223_v30  ;;  %v5989_v15 = vpop.f32.mrb[39].mxu0 }
0x221f   : > { %v5998_v44 = vmul.f32 %v5989_v15, %v9223_v30 }
0x2220   : > { %v6001_v43 = vadd.f32 %v5999_v11, %v9226_v32 }
0x2221   : > { %v6000_v12 = vadd.f32 %v5998_v44, %v9226_v32 }
0x2222   : > { %v6005_v45 = vsel %vm1880_vm3, %v6001_v43, -inf }
0x2223   : > { %6006 = vmax.xlane.f32.xlu1 %v6005_v45  ;;  %v6002_v46 = vsel %vm1880_vm3, %v6000_v12, -inf }
0x2224   : > { %6003 = vmax.xlane.f32.xlu0 %v6002_v46 }
0x2234   : > { %8313 = vrot.lane.b32.xlu1 %v9631_v52, %s9955_s3 }
0x2238   : > { %6111 = vrot.lane.b32.xlu1 %v9633_v13, %s9959_s8 }
0x223c   : > { %6113 = vrot.lane.b32.xlu1 %v9643_v21, %s9959_s8 }
0x22b0   : > { %v6007_v37 = vpop.xlane.xlu1 %6006 }
0x22b1   : > { %v6009_v47 = vsub.f32 %v6001_v43, %v6007_v37  ;;  %v6004_v48 = vpop.xlane.xlu0 %6003 }
0x22b2   : > { %v6008_v36 = vsub.f32 %v6000_v12, %v6004_v48 }
0x22b3   : > { %v6012_v61 = vmul.f32 1.442695, %v6009_v47 }
0x22b4   : > { %v6010_v49 = vmul.f32 1.442695, %v6008_v36  ;;  %v8314_v50 = vpop.permute.xlu1 %8313 }
0x22b5   : > { %8425 = vpow2.f32 %v6012_v61  ;;  %v8316_v53 = vunpack.i.h.bf16 %v8314_v50  ;;  %v8315_v54 = vunpack.i.l.bf16 %v8314_v50 }
0x22b6   : > { %8427 = vpow2.f32 %v6010_v49 }
0x22b7   : > { %v8019_v58 = vpack.c.bf16 %v8316_v53, %v8315_v54 }
0x22b8   : > { %v6112_v16 = vpop.permute.xlu1 %6111 }
0x22b9   : > { %8020 = vmatprep.subr.bf16.mxu1 %v8019_v58 }
0x22ba   : > { %8022 = vmatpush3.bf16.msra.mxu1 %v8019_v58 }
0x22bc   : > { %v6114_v56 = vpop.permute.xlu1 %6113 }
0x22bf   : > { %v8426_v51 = vpop.eup %8425 }
0x22c0   : > { %v6017_v13 = vsel %vm1880_vm3, %v8426_v51, 0.0  ;;  %v8428_v60 = vpop.eup %8427 }
0x22c1   : > { %6018 = vadd.xlane.f32.xlu0 %v6017_v13  ;;  %v6014_v21 = vsel %vm1880_vm3, %v8428_v60, 0.0 }
0x22c5   : > { %6015 = vadd.xlane.f32.xlu0 %v6014_v21 }
0x22db   : > { %8318 = vrot.lane.b32.xlu0 %v9631_v52, %s9959_s8  ;;  %s9973_s8 = sld [smem:[#allocation50_spill]] }
0x22e1   : > { %v6345_v46 = vld [vmem:[%s9973_s8] sm:$0xff]  ;;  %v6346_v37 = vld [vmem:[%s9973_s8 + $0x8] sm:$0xff]  ;;  %v6347_v47 = vld [vmem:[%s9973_s8 + $0x10] sm:$0xff] }
0x22e2   : > { %v8033_v48 = vpack.c.bf16 %v6346_v37, %v6345_v46 }
0x234e   : > { %v6019_v62 = vpop.xlane.xlu0 %6018 }
0x234f   : > { %8429 = vrcp.f32 %v6019_v62 }
0x2352   : > { %v6016_v63 = vpop.xlane.xlu0 %6015 }
0x2353   : > { %8431 = vrcp.f32 %v6016_v63 }
0x2356   : > { %v8319_v0 = vpop.permute.xlu0 %8318 }
0x2357   : > { %v8321_v1 = vunpack.i.h.bf16 %v8319_v0  ;;  %v8320_v2 = vunpack.i.l.bf16 %v8319_v0 }
0x2359   : > { %v8023_v6 = vpack.c.bf16 %v8321_v1, %v8320_v2  ;;  %v8430_v8 = vpop.eup %8429  ;;  %v7202_v2 = vld [vmem:[#allocation6] ss:$0 sm:$0xff] }
0x235a   : > { %v6023_v23 = vmul.f32 %v8430_v8, %v8426_v51 }
0x235b   : > { %8025 = vmatprep.subr.msk.bf16.mxu1 %vm9210_vm8, %v8023_v6 }
0x235d   : > { %v8432_v9 = vpop.eup %8431 }
0x235e   : > { %v6021_v10 = vmul.f32 %v8432_v9, %v8428_v60 }
0x2360   : > { %7760 = vmatprep.mubr.msk.f32.mxu1 %vm1880_vm3, %v6021_v10 }
0x2361   : > { %7761 = vmatmul.mubr.msk.f32.vlgmr.msra.gmra.mrb[38].mxu1 %vm1880_vm3, %v6023_v23 }
0x2362   : > { %8028 = vmatpush3.bf16.xpose.msk.msra.mxu1 %vm9210_vm8, %v8023_v6  ;;  %7767 = vmatprep.mubr.msk.f32.mxu1 %vm2718_vm7, %v6112_v16 }
0x2369   : > { %7768 = vmatmul.mubr.msk.f32.vlgmr.msra.gmra.mrb[40].mxu1 %vm2718_vm7, %v6114_v56 }
0x2434   : > { %v7762_v59 = vpop.f32.mrb[38].mxu1 }
0x2435   : > { %v6102_v17 = vpop.f32.mrb[39].mxu1 }
0x243c   : > { %v7769_v18 = vpop.f32.mrb[40].mxu1 }
0x243d   : > { %v6203_v57 = vmul.f32 %v7769_v18, %v9223_v30  ;;  %v6193_v19 = vpop.f32.mrb[41].mxu1 }
0x243e   : > { %v6202_v22 = vmul.f32 %v6193_v19, %v9223_v30 }
0x243f   : > { %v6205_v24 = vadd.f32 %v6203_v57, %v9226_v32 }
0x2440   : > { %v6204_v38 = vadd.f32 %v6202_v22, %v9226_v32 }
0x2441   : > { %v6209_v27 = vsel %vm1880_vm3, %v6205_v24, -inf }
0x2442   : > { %6210 = vmax.xlane.f32.xlu1 %v6209_v27  ;;  %v6206_v20 = vsel %vm1880_vm3, %v6204_v38, -inf }
0x2443   : > { %6207 = vmax.xlane.f32.xlu0 %v6206_v20 }
0x2453   : > { %8323 = vrot.lane.b32.xlu1 %v9631_v52, %s9958_s5 }
0x2457   : > { %6319 = vrot.lane.b32.xlu1 %v9697_v41, %s9961_s9 }
0x245b   : > { %6325 = vrot.lane.b32.xlu1 %v6102_v17, %s9963_s11 }
0x24cf   : > { %v6211_v35 = vpop.xlane.xlu1 %6210 }
0x24d0   : > { %v6213_v30 = vsub.f32 %v6205_v24, %v6211_v35  ;;  %v6208_v25 = vpop.xlane.xlu0 %6207 }
0x24d1   : > { %v6212_v5 = vsub.f32 %v6204_v38, %v6208_v25 }
0x24d2   : > { %v6216_v26 = vmul.f32 1.442695, %v6213_v30 }
0x24d3   : > { %v6214_v32 = vmul.f32 1.442695, %v6212_v5  ;;  %v8324_v34 = vpop.permute.xlu1 %8323  ;;  %v6572_v5 = vld [vmem:[%s9975_s6] sm:$0xff] }
0x24d4   : > { %v8326_v28 = vunpack.i.h.bf16 %v8324_v34  ;;  %v8325_v4 = vunpack.i.l.bf16 %v8324_v34 }
0x24d5   : > { %8433 = vpow2.f32 %v6214_v32  ;;  %v6574_v32 = vld [vmem:[%s9975_s6 + $0x10] sm:$0xff] }
0x24d6   : > { %v8029_v31 = vpack.c.bf16 %v8326_v28, %v8325_v4  ;;  %8435 = vpow2.f32 %v6216_v26  ;;  %v6573_v26 = vld [vmem:[%s9975_s6 + $0x8] sm:$0xff]  ;;  %v6575_v28 = vld [vmem:[%s9975_s6 + $0x18] sm:$0xff] }
0x24d7   : > { %v6320_v53 = vpop.permute.xlu1 %6319  ;;  %v8049_v34 = vpack.c.bf16 %v6573_v26, %v6572_v5  ;;  %v8053_v4 = vpack.c.bf16 %v6575_v28, %v6574_v32 }
0x24d8   : > { %8030 = vmatprep.subr.bf16.mxu0 %v8029_v31  ;;  %v6340_v60 = vsel %vm2718_vm7, %v9693_v39, %v6320_v53  ;;  %v6578_v53 = vld [vmem:[%s9975_s6 + $0x30] sm:$0xff] }
0x24d9   : > { %8032 = vmatpush3.bf16.msra.mxu0 %v8029_v31  ;;  %v6576_v31 = vld [vmem:[%s9975_s6 + $0x20] sm:$0xff] }
0x24da   : > { %8034 = vmatprep.subr.bf16.mxu0 %v8033_v48 }
0x24db   : > { %v6326_v58 = vpop.permute.xlu1 %6325 }
0x24df   : > { %v8434_v52 = vpop.eup %8433 }
0x24e0   : > { %v6218_v33 = vsel %vm1880_vm3, %v8434_v52, 0.0  ;;  %v8436_v41 = vpop.eup %8435 }
0x24e1   : > { %6219 = vadd.xlane.f32.xlu0 %v6218_v33  ;;  %v6221_v14 = vsel %vm1880_vm3, %v8436_v41, 0.0 }
0x24e5   : > { %6222 = vadd.xlane.f32.xlu0 %v6221_v14 }
0x24fb   : > { %6317 = vrot.lane.b32.xlu0 %v9699_v42, %s9961_s9  ;;  %v6348_v42 = vld [vmem:[%s9973_s8 + $0x18] sm:$0xff] }
0x24fc   : > { %v8037_v36 = vpack.c.bf16 %v6348_v42, %v6347_v47 }
0x24ff   : > { %6327 = vrot.lane.b32.xlu0 %v7762_v59, %s9963_s11  ;;  %s9976_s11 = sld [smem:[#allocation55_spill]] }
0x256e   : > { %v6220_v11 = vpop.xlane.xlu0 %6219 }
0x256f   : > { %8437 = vrcp.f32 %v6220_v11 }
0x2572   : > { %v6223_v15 = vpop.xlane.xlu0 %6222 }
0x2573   : > { %8439 = vrcp.f32 %v6223_v15 }
0x2576   : > { %v6318_v50 = vpop.permute.xlu0 %6317 }
0x2577   : > { %v6339_v51 = vsel %vm2718_vm7, %v9695_v40, %v6318_v50 }
0x2578   : > { %v6341_v62 = vsel %vm1880_vm3, %v6339_v51, %v6326_v58  ;;  %v7205_v51 = vld [vmem:[#allocation7] ss:$0 sm:$0xff] }
0x2579   : > { %v8438_v44 = vpop.eup %8437 }
0x257a   : > { %v6225_v43 = vmul.f32 %v8438_v44, %v8434_v52  ;;  %v6328_v54 = vpop.permute.xlu0 %6327  ;;  %v6577_v52 = vld [vmem:[%s9975_s6 + $0x28] sm:$0xff] }
0x257b   : > { %v6342_v63 = vsel %vm1880_vm3, %v6340_v60, %v6328_v54  ;;  %v8057_v33 = vpack.c.bf16 %v6577_v52, %v6576_v31  ;;  %v6579_v54 = vld [vmem:[%s9975_s6 + $0x38] sm:$0xff] }
0x257c   : > { %7774 = vmatprep.mubr.msk.f32.mxu0 %vm1880_vm3, %v6225_v43  ;;  %v8061_v58 = vpack.c.bf16 %v6579_v54, %v6578_v53 }
0x257d   : > { %v8440_v12 = vpop.eup %8439 }
0x257e   : > { %v6227_v45 = vmul.f32 %v8440_v12, %v8436_v41  ;;  %v6437_v12 = vld [vmem:[%s9976_s11] sm:$0x3] }
0x257f   : > { %v6475_v42 = vrot.slane %v6437_v12, %v9363_v3 }
0x2580   : > { %7775 = vmatmul.mubr.msk.f32.vlgmr.msra.gmra.mrb[40].mxu0 %vm1880_vm3, %v6227_v45  ;;  %v6469_v45 = vrot.slane %v6437_v12, %v9221_v29 }
0x2581   : > { %8036 = vmatpush3.bf16.msra.mxu0 %v8033_v48 }
0x2582   : > { %8038 = vmatprep.subr.bf16.mxu0 %v8037_v36 }
0x2585   : > { %8040 = vmatpush3.bf16.msra.mxu0 %v8037_v36 }
0x2586   : > { %8050 = vmatprep.subr.bf16.mxu0 %v8049_v34 }
0x2653   : > { %v7776_v61 = vpop.f32.mrb[40].mxu0 }
0x2654   : > { %6335 = vrot.lane.b32.xlu0 %v7776_v61, %s9966_s13  ;;  %v6306_v49 = vpop.f32.mrb[41].mxu0 }
0x2655   : > { %6333 = vrot.lane.b32.xlu1 %v6306_v49, %s9966_s13  ;;  %s9974_s13 = sld [smem:[#allocation51_spill]] }
0x265b   : > { %v6478_v38 = vld [vmem:[%s9974_s13] sm:$0xff]  ;;  %v6479_v27 = vld [vmem:[%s9974_s13 + $0x8] sm:$0xff]  ;;  %v6480_v35 = vld [vmem:[%s9974_s13 + $0x10] sm:$0xff] }
0x265c   : > { %v8041_v20 = vpack.c.bf16 %v6479_v27, %v6478_v38  ;;  %v6481_v30 = vld [vmem:[%s9974_s13 + $0x18] sm:$0xff] }
0x265d   : > { %v8045_v25 = vpack.c.bf16 %v6481_v30, %v6480_v35 }
0x265e   : > { %8042 = vmatprep.subr.bf16.mxu1 %v8041_v20 }
0x265f   : > { %8044 = vmatpush3.bf16.msra.mxu1 %v8041_v20 }
0x2660   : > { %8046 = vmatprep.subr.bf16.mxu1 %v8045_v25 }
0x2663   : > { %8048 = vmatpush3.bf16.msra.mxu1 %v8045_v25  ;;  %v6668_v25 = vld [vmem:[%s9977_s15] sm:$0x3] }
0x2664   : > { %v6700_v5 = vrot.slane %v6668_v25, %v9221_v29  ;;  %v6706_v28 = vrot.slane %v6668_v25, %v9363_v3 }
0x26c6   : > { %v6336_v13 = vpop.permute.xlu0 %6335 }
0x26c7   : > { %v6334_v21 = vpop.permute.xlu1 %6333  ;;  %v6344_v1 = vsel %vm3563_vm9, %v6342_v63, %v6336_v13 }
0x26c8   : > { %v6343_v0 = vsel %vm3563_vm9, %v6341_v62, %v6334_v21 }
0x26c9   : > { %7785 = vmatprep.mubr.msk.f32.mxu0 %vm2630_vm6, %v6343_v0 }
0x26ca   : > { %7786 = vmatmul.mubr.msk.f32.vlgmr.msra.gmra.mrb[42].mxu0 %vm2630_vm6, %v6344_v1  ;;  %v7208_v1 = vld [vmem:[#allocation9] ss:$0 sm:$0xff] }
0x26cb   : > { %8052 = vmatpush3.bf16.msra.mxu0 %v8049_v34 }
0x26cc   : > { %8054 = vmatprep.subr.bf16.mxu0 %v8053_v4 }
0x26cf   : > { %8056 = vmatpush3.bf16.msra.mxu0 %v8053_v4 }
0x26d0   : > { %8058 = vmatprep.subr.bf16.mxu0 %v8057_v33 }
0x26d3   : > { %8060 = vmatpush3.bf16.msra.mxu0 %v8057_v33 }
0x26d4   : > { %8062 = vmatprep.subr.bf16.mxu0 %v8061_v58 }
0x26d7   : > { %8064 = vmatpush3.bf16.msra.mxu0 %v8061_v58 }
0x279d   : > { %v7787_v6 = vpop.f32.mrb[42].mxu0 }
0x279e   : > { %v6434_v40 = vadd.f32 %v7787_v6, %v7202_v2  ;;  %v6428_v8 = vpop.f32.mrb[43].mxu0 }
0x279f   : > { %v6429_v9 = vadd.f32 %v7202_v2, %v6428_v8 }
0x27a0   : > { %v6439_v39 = vadd.f32 %v6434_v40, %v9627_v55 }
0x27a1   : > { %v6438_v10 = vadd.f32 %v6429_v9, %v9622_v7 }
0x27a2   : > { %v6443_v23 = vsel %vm2630_vm6, %v6439_v39, 0.0 }
0x27a3   : > { %6444 = vadd.xlane.f32.xlu0 %v6443_v23  ;;  %v6440_v16 = vsel %vm2630_vm6, %v6438_v10, 0.0 }
0x27a4   : > { %6441 = vadd.xlane.f32.xlu1 %v6440_v16 }
0x2830   : > { %v6445_v56 = vpop.xlane.xlu0 %6444 }
0x2831   : > { %v6447_v59 = vmul.f32 0.03125, %v6445_v56  ;;  %v6442_v17 = vpop.xlane.xlu1 %6441 }
0x2832   : > { %v6446_v18 = vmul.f32 0.03125, %v6442_v17 }
0x2833   : > { %v6449_v57 = vsub.f32 %v6439_v39, %v6447_v59 }
0x2834   : > { %v6448_v19 = vsub.f32 %v6438_v10, %v6446_v18 }
0x2835   : > { %v6451_v22 = vmul.f32 %v6449_v57, %v6449_v57 }
0x2836   : > { %v6450_v55 = vmul.f32 %v6448_v19, %v6448_v19 }
0x2837   : > { %v6455_v7 = vsel %vm2630_vm6, %v6451_v22, 0.0 }
0x2838   : > { %6456 = vadd.xlane.f32.xlu1 %v6455_v7  ;;  %v6452_v24 = vsel %vm2630_vm6, %v6450_v55, 0.0 }
0x2839   : > { %6453 = vadd.xlane.f32.xlu0 %v6452_v24 }
0x28c5   : > { %v6457_v41 = vpop.xlane.xlu1 %6456 }
0x28c6   : > { %v6459_v14 = vmul.f32 0.03125, %v6457_v41  ;;  %v6454_v11 = vpop.xlane.xlu0 %6453 }
0x28c7   : > { %v6458_v15 = vmul.f32 0.03125, %v6454_v11 }
0x28c8   : > { %v6461_v44 = vadd.f32 1e-05, %v6459_v14 }
0x28c9   : > { %v6460_v43 = vadd.f32 1e-05, %v6458_v15 }
0x28ca   : > { %8441 = vrsqrt.f32 %v6461_v44 }
0x28cb   : > { %8443 = vrsqrt.f32 %v6460_v43 }
0x28d4   : > { %v8442_v46 = vpop.eup %8441 }
0x28d5   : > { %v8444_v37 = vpop.eup %8443  ;;  %v6465_v47 = vmul.f32 %v8442_v46, %v6449_v57 }
0x28d6   : > { %v6464_v48 = vmul.f32 %v8444_v37, %v6448_v19 }
0x28d7   : > { %v6471_v36 = vmul.f32 %v6469_v45, %v6465_v47 }
0x28d8   : > { %v6470_v61 = vmul.f32 %v6469_v45, %v6464_v48  ;;  %v6749_v48 = vld [vmem:[%s8951_s21] sm:$0xff] }
0x28d9   : > { %v6477_v50 = vadd.f32 %v6475_v42, %v6471_v36 }
0x28da   : > { %v6476_v49 = vadd.f32 %v6475_v42, %v6470_v61  ;;  %v6750_v42 = vld [vmem:[%s8951_s21 + $0x8] sm:$0xff]  ;;  %v6751_v61 = vld [vmem:[%s8951_s21 + $0x10] sm:$0xff] }
0x28db   : > { %v8065_v36 = vpack.c.bf16 %v6750_v42, %v6749_v48 }
0x28dc   : > { %7796 = vmatprep.mubr.msk.f32.mxu1 %vm2630_vm6, %v6476_v49 }
0x28dd   : > { %7797 = vmatmul.mubr.msk.f32.vlgmr.msra.gmra.mrb[42].mxu1 %vm2630_vm6, %v6477_v50  ;;  %8066 = vmatprep.subr.bf16.mxu1 %v8065_v36 }
0x28de   : > { %8068 = vmatpush3.bf16.msra.mxu1 %v8065_v36 }
0x29b0   : > { %v7798_v13 = vpop.f32.mrb[42].mxu1 }
0x29b1   : > { %v6567_v60 = vadd.f32 %v7798_v13, %v7205_v51  ;;  %v6561_v21 = vpop.f32.mrb[43].mxu1 }
0x29b2   : > { %v6562_v62 = vadd.f32 %v7205_v51, %v6561_v21 }
0x29b3   : > { %v6571_v0 = vmax.f32 %v6567_v60, 0.0 }
0x29b4   : > { %v6570_v63 = vmax.f32 %v6562_v62, 0.0  ;;  %v7211_v62 = vld [vmem:[%s8946_s19] ss:$0 sm:$0xff] }
0x29b6   : > { %7815 = vmatprep.mubr.msk.f32.mxu0 %vm3809_vm10, %v6570_v63 }
0x29b7   : > { %7816 = vmatmul.mubr.msk.f32.vlgmr.msra.gmra.mrb[44].mxu0 %vm3809_vm10, %v6571_v0 }
0x2a8a   : > { %v7817_v2 = vpop.f32.mrb[44].mxu0 }
0x2a8b   : > { %v6665_v6 = vadd.f32 %v7817_v2, %v7208_v1  ;;  %v6659_v40 = vpop.f32.mrb[45].mxu0  ;;  %v7212_v2 = vld [vmem:[%s8946_s19 + $0x1] ss:$0 sm:$0xff] }
0x2a8c   : > { %v6660_v8 = vadd.f32 %v7208_v1, %v6659_v40 }
0x2a8d   : > { %v6670_v9 = vadd.f32 %v6665_v6, %v6477_v50 }
0x2a8e   : > { %v6669_v39 = vadd.f32 %v6660_v8, %v6476_v49  ;;  %v6752_v49 = vld [vmem:[%s8951_s21 + $0x18] sm:$0xff] }
0x2a8f   : > { %v6674_v10 = vsel %vm2630_vm6, %v6670_v9, 0.0  ;;  %v8069_v50 = vpack.c.bf16 %v6752_v49, %v6751_v61 }
0x2a90   : > { %6675 = vadd.xlane.f32.xlu1 %v6674_v10  ;;  %v6671_v23 = vsel %vm2630_vm6, %v6669_v39, 0.0 }
0x2a91   : > { %6672 = vadd.xlane.f32.xlu0 %v6671_v23  ;;  %8070 = vmatprep.subr.bf16.mxu1 %v8069_v50 }
0x2a92   : > { %8072 = vmatpush3.bf16.msra.mxu1 %v8069_v50 }
0x2b1d   : > { %v6676_v16 = vpop.xlane.xlu1 %6675 }
0x2b1e   : > { %v6678_v56 = vmul.f32 0.03125, %v6676_v16  ;;  %v6673_v59 = vpop.xlane.xlu0 %6672 }
0x2b1f   : > { %v6677_v17 = vmul.f32 0.03125, %v6673_v59 }
0x2b20   : > { %v6680_v18 = vsub.f32 %v6670_v9, %v6678_v56 }
0x2b21   : > { %v6679_v57 = vsub.f32 %v6669_v39, %v6677_v17  ;;  %v7213_v39 = vld [vmem:[%s8956_s30] ss:$0 sm:$0xff] }
0x2b22   : > { %v6682_v19 = vmul.f32 %v6680_v18, %v6680_v18 }
0x2b23   : > { %v6681_v22 = vmul.f32 %v6679_v57, %v6679_v57 }
0x2b24   : > { %v6686_v55 = vsel %vm2630_vm6, %v6682_v19, 0.0 }
0x2b25   : > { %6687 = vadd.xlane.f32.xlu1 %v6686_v55  ;;  %v6683_v7 = vsel %vm2630_vm6, %v6681_v22, 0.0 }
0x2b26   : > { %6684 = vadd.xlane.f32.xlu0 %v6683_v7 }
0x2bb2   : > { %v6688_v24 = vpop.xlane.xlu1 %6687 }
0x2bb3   : > { %v6690_v38 = vmul.f32 0.03125, %v6688_v24  ;;  %v6685_v27 = vpop.xlane.xlu0 %6684 }
0x2bb4   : > { %v6689_v20 = vmul.f32 0.03125, %v6685_v27 }
0x2bb5   : > { %v6692_v35 = vadd.f32 1e-05, %v6690_v38 }
0x2bb6   : > { %v6691_v30 = vadd.f32 1e-05, %v6689_v20 }
0x2bb7   : > { %8445 = vrsqrt.f32 %v6692_v35 }
0x2bb8   : > { %8447 = vrsqrt.f32 %v6691_v30 }
0x2bc1   : > { %v8446_v26 = vpop.eup %8445 }
0x2bc2   : > { %v8448_v32 = vpop.eup %8447  ;;  %v6696_v34 = vmul.f32 %v8446_v26, %v6680_v18 }
0x2bc3   : > { %v6695_v4 = vmul.f32 %v8448_v32, %v6679_v57 }
0x2bc4   : > { %v6702_v31 = vmul.f32 %v6700_v5, %v6696_v34 }
0x2bc5   : > { %v6701_v52 = vmul.f32 %v6700_v5, %v6695_v4 }
0x2bc6   : > { %v6708_v33 = vadd.f32 %v6706_v28, %v6702_v31 }
0x2bc7   : > { %v6707_v41 = vadd.f32 %v6706_v28, %v6701_v52 }
0x2bc8   : > { %v6714_v14 = vsel %vm2630_vm6, %v6708_v33, 0.0 }
0x2bc9   : > { %6715 = vadd.xlane.f32.xlu1 %v6714_v14  ;;  %v6711_v11 = vsel %vm2630_vm6, %v6707_v41, 0.0 }
0x2bca   : > { %6712 = vadd.xlane.f32.xlu0 %v6711_v11 }
0x2c56   : > { %v6716_v29 = vpop.xlane.xlu1 %6715 }
0x2c57   : > { %v6718_v15 = vmul.f32 0.03125, %v6716_v29  ;;  %v6713_v44 = vpop.xlane.xlu0 %6712 }
0x2c58   : > { %v6717_v43 = vmul.f32 0.03125, %v6713_v44 }
0x2c59   : > { %v6720_v3 = vsub.f32 %v6708_v33, %v6718_v15 }
0x2c5a   : > { %v6719_v12 = vsub.f32 %v6707_v41, %v6717_v43 }
0x2c5b   : > { %v6722_v45 = vmul.f32 %v6720_v3, %v6720_v3 }
0x2c5c   : > { %v6721_v46 = vmul.f32 %v6719_v12, %v6719_v12 }
0x2c5d   : > { %v6726_v37 = vsel %vm2630_vm6, %v6722_v45, 0.0 }
0x2c5e   : > { %6727 = vadd.xlane.f32.xlu1 %v6726_v37  ;;  %v6723_v47 = vsel %vm2630_vm6, %v6721_v46, 0.0 }
0x2c5f   : > { %6724 = vadd.xlane.f32.xlu0 %v6723_v47 }
0x2ceb   : > { %v6728_v53 = vpop.xlane.xlu1 %6727 }
0x2cec   : > { %v6730_v54 = vmul.f32 0.03125, %v6728_v53  ;;  %v6725_v58 = vpop.xlane.xlu0 %6724 }
0x2ced   : > { %v6729_v51 = vmul.f32 0.03125, %v6725_v58 }
0x2cee   : > { %v6732_v13 = vadd.f32 1e-05, %v6730_v54 }
0x2cef   : > { %v6731_v60 = vadd.f32 1e-05, %v6729_v51 }
0x2cf0   : > { %8449 = vrsqrt.f32 %v6732_v13 }
0x2cf1   : > { %8451 = vrsqrt.f32 %v6731_v60 }
0x2cfa   : > { %v8450_v21 = vpop.eup %8449 }
0x2cfb   : > { %v8452_v63 = vpop.eup %8451  ;;  %v6736_v0 = vmul.f32 %v8450_v21, %v6720_v3 }
0x2cfc   : > { %v6735_v1 = vmul.f32 %v8452_v63, %v6719_v12 }
0x2cfd   : > { %v6742_v6 = vmul.f32 %v7211_v62, %v6736_v0 }
0x2cfe   : > { %v6741_v40 = vmul.f32 %v7211_v62, %v6735_v1 }
0x2cff   : > { %v6748_v9 = vadd.f32 %v7212_v2, %v6742_v6 }
0x2d00   : > { %v6747_v8 = vadd.f32 %v7212_v2, %v6741_v40 }
0x2d02   : > { %7826 = vmatprep.mubr.msk.f32.mxu1 %vm2630_vm6, %v6747_v8 }
0x2d03   : > { %7827 = vmatmul.mubr.msk.f32.vlgmr.msra.gmra.mrb[44].mxu1 %vm2630_vm6, %v6748_v9 }
0x2dd6   : > { %v7828_v10 = vpop.f32.mrb[44].mxu1 }
0x2dd7   : > { %v6838_v23 = vadd.f32 %v7828_v10, %v7213_v39  ;;  %v6832_v16 = vpop.f32.mrb[45].mxu1 }
0x2dd8   : > { %v6833_v56 = vadd.f32 %v7213_v39, %v6832_v16 }
0x2dd9   : > { %6842 = vst [vmem:[%s1713_s1 + $0x8] sm:$0xff] %v6838_v23 }
0x2dda   : > { %6841 = vst [vmem:[%s1713_s1] sm:$0xff] %v6833_v56 }
0x2ddb PF: > { %s120_s7 = sadd.s32 1, %s8611_s7  }
0x2ddc   : > { %p117_p1 = scmp.ge.s32.totalorder %s120_s7, 4  }
0x2dde   :  { %119 = sbr.rel (!%p117_p1) target bundleno = 108 (0x6c), region = 355 }
0x2de5   :  { %6864 = vsyncpa [#allocation3], 1 }
0x2de6   :  { %6866 = vsyncpa [#allocation3 + $0x1], 1 }
0x2de7   :  { %6867 = vsyncpa [#allocation5], 1 }
0x2de8   :  { %6868 = vsyncpa [#allocation8], 1 }

</bundles_post_ra>
